<compile_context>
chip_gen: v7x
topology: tpu7x:2x2x1
jax: 0.10.0
libtpu: 0.0.40
codegen_flags: <defaults>
</compile_context>

<pallas_src>
import math

import numpy as np
import jax
import jax.numpy as jnp
from jax.experimental import pallas as pl
from jax.experimental.pallas import tpu as pltpu


# ----------------------------------------------------------------------------------
# Fused aggregation kernel (prob_embed + dir_diff + IBRNet-with-NeuRay aggregation).
# Block layout: per-view tensors are (V, RW, F) with RW = TR * D rows (TR rays of D
# samples); per-sample tensors are (RW, F).  View reductions = sum over axis 0.
# ----------------------------------------------------------------------------------
def make_agg_kernel(n_views, tile_rays, n_samples, neuray_dim=32, n_head=4, d_k=4,
                    act_dtype=jnp.bfloat16):
    V, TR, D = n_views, tile_rays, n_samples
    RW = TR * D
    nd = neuray_dim
    act = act_dtype
    inv_views = 1.0 / float(V)
    inv_temp = 1.0 / (float(d_k) ** 0.5)

    def elu(x):
        # exp only on the non-positive branch (no overflow on the unselected branch)
        return jnp.where(x > 0, x, jnp.exp(jnp.minimum(x, 0)) - 1)

    def sigmoid(x):  # f32 inputs
        return pl.reciprocal(1.0 + jnp.exp(-x), approx=True)

    def mm2(a, w):
        # bf16 MXU operands (weights pre-cast), f32 accumulate
        return jnp.dot(a.astype(jnp.bfloat16), w, preferred_element_type=jnp.float32)

    def mm3(x3, w):
        v, r, k = x3.shape
        return mm2(x3.reshape(v * r, k), w).reshape(v, r, -1)

    def kernel(rgbf_ref, rf_ref, small_ref, qdir_ref, pos_ref,
               pe1, pe2, rd1, rd2, bs1_ps, bs1_pv, bs2,
               vf1, vf2, v21, v22, ge1, ge2,
               qkv, wfc, ln, og1, og2, rg1, rg2, rg3,
               out_ref):
        small = small_ref[...]                                   # bf16 (V, RW, 6)
        hit = small[:, :, 0:1].astype(jnp.float32)
        vis_in = small[:, :, 1:2].astype(jnp.float32)
        mask = small[:, :, 2:3].astype(jnp.float32)              # 0/1, exact in bf16
        dirs = small[:, :, 3:6].astype(jnp.float32)
        qdir = qdir_ref[...]                                     # f32 (RW, 3)

        # --- get_dir_diff (fused): diff & dot of prj_dir vs que_dir over views ---
        diff = dirs - qdir[None]
        ddot = jnp.sum(dirs * qdir[None], axis=-1, keepdims=True)
        ray_diff = jnp.concatenate([diff, ddot], axis=-1).astype(act)   # (V, RW, 4)

        # --- prob_embed (fused): Linear(2+nd, nd) -> ReLU -> Linear(nd, nd) ---
        hp = (hit - 0.5) * 2.0
        vi = (vis_in - 0.5) * 2.0
        h = (mm3(rf_ref[...], pe1[0:nd, :]) + hp * pe1[nd:nd + 1, :]
             + vi * pe1[nd + 1:nd + 2, :] + pe1[nd + 2:nd + 3, :])
        h = jnp.maximum(h.astype(act), 0.0)
        neuray = (mm3(h, pe2[0:nd, :]) + pe2[nd:nd + 1, :]).astype(act)  # (V, RW, nd)

        # --- ray_dir_fc ---
        h = elu(mm3(ray_diff, rd1[0:4, :]).astype(act) + rd1[4:5, :])
        direction_feat = elu(mm3(h, rd2[0:16, :]).astype(act) + rd2[16:17, :])
        rgb_feat = rgbf_ref[...].astype(act) + direction_feat            # (V, RW, F)
        fdim = rgb_feat.shape[-1]

        # mask-weighted mean/variance over the view axis (hoisted broadcast: 2 uses)
        mask_sum = jnp.sum(mask, axis=0)                                  # f32 (RW, 1)
        weight = (mask * pl.reciprocal(mask_sum + 1e-8, approx=True)).astype(act)
        wb = jnp.broadcast_to(weight, (V, RW, fdim))
        mean = jnp.sum(rgb_feat * wb, axis=0)                             # (RW, F)
        var = jnp.sum(wb * (rgb_feat - mean) ** 2, axis=0)                # (RW, F)

        # --- base_fc on cat([mean, var, rgb_feat, neuray]) ---
        # per-sample part computed once (V x cheaper), per-view part at V*RW rows
        ps = mm2(mean, bs1_ps[0:fdim, :]) + mm2(var, bs1_ps[fdim:2 * fdim, :])
        pv = (mm3(rgb_feat, bs1_pv[0:fdim, :]) + mm3(neuray, bs1_pv[fdim:fdim + nd, :])
              + bs1_pv[fdim + nd:fdim + nd + 1, :])
        x = elu((ps + pv).astype(act))
        x = elu(mm3(x, bs2[0:64, :]).astype(act) + bs2[64:65, :])         # (V, RW, 32)

        # --- vis_fc / vis_fc2 ---
        h = elu(mm3(x * weight, vf1[0:32, :]).astype(act) + vf1[32:33, :])
        xv = elu(mm3(h, vf2[0:32, :]).astype(act) + vf2[32:33, :])        # (V, RW, 33)
        vis = sigmoid(xv[:, :, 32:33].astype(jnp.float32)) * mask         # f32 (V, RW, 1)
        x = x + xv[:, :, 0:32]
        h = elu(mm3(x * vis.astype(act), v21[0:32, :]).astype(act) + v21[32:33, :])
        vis = sigmoid(mm3(h, v22[0:32, :]) + v22[32:33, :]) * mask        # f32 (V, RW, 1)
        vis_sum = jnp.sum(vis, axis=0)
        weight2_f = vis * pl.reciprocal(vis_sum + 1e-8, approx=True)      # f32
        weight2 = weight2_f.astype(act)
        w2b = jnp.broadcast_to(weight2, (V, RW, 32))                      # hoisted: 2 uses
        mean2 = jnp.sum(x * w2b, axis=0)                                  # (RW, 32)
        var2 = jnp.sum(w2b * (x - mean2) ** 2, axis=0)                    # (RW, 32)
        w_mean = jnp.sum(weight2_f, axis=0) * inv_views                   # f32 (RW, 1)

        # --- geometry_fc on cat([mean, var, weight.mean(views)]) (per-sample, f32) ---
        g = (mm2(mean2, ge1[0:32, :]) + mm2(var2, ge1[32:64, :])
             + w_mean * ge1[64:65, :] + ge1[65:66, :])
        globalfeat = elu(mm2(elu(g), ge2[0:64, :]) + ge2[64:65, :])       # f32 (RW, 16)

        num_valid_obs = mask_sum                                          # f32 (RW, 1)
        pos = jnp.broadcast_to(pos_ref[...][None], (TR, D, 16)).reshape(RW, 16)
        globalfeat = globalfeat + pos

        # --- per-ray multi-head self-attention over the D samples (dropout = identity).
        #     VPU/XLU formulation unrolled over D (static) -- avoids TR serial tiny
        #     batched MXU matmuls; single fused fc matmul at the end.
        residual = globalfeat
        proj = mm2(globalfeat, qkv[...])                                  # f32 (RW, 48)=[q|k|v]
        projr = proj.reshape(TR, D, 48)
        q = proj[:, 0:16] * inv_temp
        valid = num_valid_obs > 1.0                                       # bool (RW, 1)

        score_cols = []
        v_bcast = []
        for j in range(D):                                                # static unroll
            kv_j = projr[:, j, 16:48]                                     # (TR, 32) = [k_j|v_j]
            kv_jb = jnp.broadcast_to(kv_j[:, None, :], (TR, D, 32)).reshape(RW, 32)
            v_bcast.append(kv_jb[:, 16:32])
            p = q * kv_jb[:, 0:16]                                        # (RW, 16)
            score_cols.append(jnp.sum(p.reshape(RW, n_head, d_k), axis=-1))   # (RW, H)
        scores = jnp.stack(score_cols, axis=-1)                           # (RW, H, D)
        scores = jnp.where(valid.reshape(RW, 1, 1), scores, -1e9)         # query-row mask
        mx = jnp.max(scores, axis=-1, keepdims=True)                      # stable softmax
        e = jnp.exp(scores - mx)                                          # all-masked -> uniform
        attn = e * pl.reciprocal(jnp.sum(e, axis=-1, keepdims=True), approx=True)

        att_out = jnp.zeros((RW, n_head * d_k), jnp.float32)
        for j in range(D):
            aj = jnp.broadcast_to(attn[:, :, j][:, :, None], (RW, n_head, d_k))
            att_out = att_out + aj.reshape(RW, n_head * d_k) * v_bcast[j]
        gq = mm2(att_out, wfc[...]) + residual                            # one (RW,16)@(16,16)

        mu = jnp.mean(gq, axis=-1, keepdims=True)
        var_ln = jnp.mean((gq - mu) ** 2, axis=-1, keepdims=True)
        globalfeat = (gq - mu) * jax.lax.rsqrt(var_ln + 1e-6) * ln[0:1, :] + ln[1:2, :]

        # --- out_geometry_fc -> sigma ---
        h = elu(mm2(globalfeat, og1[0:16, :]) + og1[16:17, :])
        sigma = jnp.maximum(mm2(h, og2[0:16, :]) + og2[16:17, :], 0.0)    # (RW, 1)
        sigma = jnp.where(num_valid_obs < 1.0, 0.0, sigma)

        # --- rgb_fc on cat([x, vis, ray_diff]) -> per-view blending weights ---
        h = (mm3(x, rg1[0:32, :]) + vis * rg1[32:33, :]
             + mm3(ray_diff, rg1[33:37, :]) + rg1[37:38, :])
        h = elu(h.astype(act))
        h = elu(mm3(h, rg2[0:16, :]).astype(act) + rg2[16:17, :])
        logits = mm3(h, rg3[0:8, :]) + rg3[8:9, :]                        # f32 (V, RW, 1)
        logits = jnp.where(mask == 0.0, -1e9, logits)
        mxv = jnp.max(logits, axis=0)                                     # stable softmax over views
        ev = jnp.exp(logits - mxv)
        blend = ev * pl.reciprocal(jnp.sum(ev, axis=0), approx=True)
        rgb_out = jnp.sum(rgb_feat[:, :, 0:3].astype(jnp.float32) * blend, axis=0)   # (RW, 3)

        out = jnp.concatenate([rgb_out.reshape(TR, D, 3), sigma.reshape(TR, D, 1)], axis=-1)
        out_ref[...] = out.astype(out_ref.dtype)

    return kernel


# ----------------------------------------------------------------------------------
# Parameter init (deterministic, synthetic).  Each Linear is packed as [W; b] rows;
# split first layers are packed in the order their activation blocks are concatenated.
# Weights are pre-cast to bf16 once here (no per-step casts inside the kernel).
# ----------------------------------------------------------------------------------
def _linear_wb(key, fi, fo, bias_scale=0.02):
    kw, kb = jax.random.split(key)
    w = jax.random.normal(kw, (fi, fo), jnp.float32) * (1.0 / math.sqrt(max(fi, 1)))
    b = jax.random.normal(kb, (1, fo), jnp.float32) * bias_scale
    return jnp.concatenate([w, b], axis=0)


def _posenc(d_hid, n_samples):
    pos = np.arange(n_samples, dtype=np.float64)[:, None]
    hid = np.arange(d_hid, dtype=np.float64)[None, :]
    angle = pos / np.power(10000.0, 2.0 * (hid // 2) / d_hid)
    table = np.zeros((n_samples, d_hid), dtype=np.float64)
    table[:, 0::2] = np.sin(angle[:, 0::2])
    table[:, 1::2] = np.cos(angle[:, 1::2])
    return jnp.asarray(table, dtype=jnp.float32)


def init_params(key, neuray_dim=32, in_feat_ch=32, n_samples=8):
    keys = iter(jax.random.split(key, 64))
    nk = lambda: next(keys)
    f = in_feat_ch + 3

    pe1 = _linear_wb(nk(), neuray_dim + 2, neuray_dim)   # [W_rayfeats; w_hit; w_vis; b]
    pe2 = _linear_wb(nk(), neuray_dim, neuray_dim)
    rd1 = _linear_wb(nk(), 4, 16)
    rd2 = _linear_wb(nk(), 16, f)
    bs1 = _linear_wb(nk(), 3 * f + neuray_dim, 64)       # input = [mean|var|rgb_feat|neuray]
    bs1_ps = bs1[0:2 * f]                                # per-sample: [W_mean; W_var]
    bs1_pv = bs1[2 * f:]                                 # per-view:   [W_rgbfeat; W_neuray; b]
    bs2 = _linear_wb(nk(), 64, 32)
    vf1 = _linear_wb(nk(), 32, 32)
    vf2 = _linear_wb(nk(), 32, 33)
    v21 = _linear_wb(nk(), 32, 32)
    v22 = _linear_wb(nk(), 32, 1)
    ge1 = _linear_wb(nk(), 65, 64)                       # input = [mean|var|w_mean]
    ge2 = _linear_wb(nk(), 64, 16)
    qkv = jnp.concatenate(
        [jax.random.normal(nk(), (16, 16), jnp.float32) * 0.25 for _ in range(3)], axis=1)
    wfc = jax.random.normal(nk(), (16, 16), jnp.float32) * 0.25
    ln = jnp.concatenate([jnp.ones((1, 16), jnp.float32), jnp.zeros((1, 16), jnp.float32)], axis=0)
    og1 = _linear_wb(nk(), 16, 16)
    og2 = _linear_wb(nk(), 16, 1)
    rg1 = _linear_wb(nk(), 37, 16)                       # rows = [W_x; w_vis; W_raydiff; b]
    rg2 = _linear_wb(nk(), 16, 8)
    rg3 = _linear_wb(nk(), 8, 1)

    agg = [pe1, pe2, rd1, rd2, bs1_ps, bs1_pv, bs2,
           vf1, vf2, v21, v22, ge1, ge2,
           qkv, wfc, ln, og1, og2, rg1, rg2, rg3]
    agg = [w.astype(jnp.bfloat16) for w in agg]          # pre-cast once (MXU operands)
    return {"agg": agg, "pos_enc": _posenc(16, n_samples)}


# ----------------------------------------------------------------------------------
# Hardware query + ray-tile choice.
# ----------------------------------------------------------------------------------
def _tpu_hw_info():
    vmem = None
    try:
        vmem = int(pltpu.get_tpu_info().vmem_capacity_bytes)
    except Exception:
        vmem = None
    try:
        kind = jax.devices()[0].device_kind.lower()
    except Exception:
        kind = ""
    if vmem is None:
        vmem = 64 * 1024 * 1024 if "v7" in kind else 128 * 1024 * 1024
    return vmem, kind


def _choose_ray_tile(R, D, V, max_rows):
    """Largest divisor of R with V*TR*D <= max_rows, RW=TR*D a multiple of 16 (bf16
    sublane tile); prefer >=4 even grid steps (v7x: 2 TCs, >=2 steps each), then >=2."""
    cands = [t for t in range(1, R + 1)
             if R % t == 0 and (t * D) % 16 == 0 and V * t * D <= max_rows]
    if not cands:
        return R  # full-extent block is always layout-legal
    for pred in (lambda s: s >= 4 and s % 2 == 0,
                 lambda s: s >= 2,
                 lambda s: True):
        picks = [t for t in cands if pred(R // t)]
        if picks:
            return max(picks)
    return max(cands)


# ----------------------------------------------------------------------------------
# Forward (wrapper = free reshapes/concats only; all compute in the fused Pallas kernel)
# ----------------------------------------------------------------------------------
def aggregation_net_forward(params, prj_dict, que_dir, cfg):
    hit_prob = prj_dict["hit_prob"].astype(jnp.float32)
    vis_in = prj_dict["vis"].astype(jnp.float32)
    rgb = prj_dict["rgb"].astype(jnp.float32)
    dirs = prj_dict["dir"].astype(jnp.float32)
    ray_feats = prj_dict["ray_feats"].astype(jnp.float32)
    img_feats = prj_dict["img_feats"].astype(jnp.float32)
    mask = prj_dict["mask"].astype(jnp.float32)

    rfn, qn, rn, dn, _ = hit_prob.shape
    assert dn == cfg["sample_num"], "pos_encoding length must match the sample count"
    assert dn % 8 == 0, "sample_num must be a multiple of 8 (sublane tile)"
    neuray_dim = ray_feats.shape[-1]
    V, R, D = rfn, qn * rn, dn
    N = R * D

    def flat(x):  # (V, qn, rn, dn, F) -> (V, N, F): free reshape, no transpose
        return x.reshape(V, N, x.shape[-1])

    # bf16 HBM storage for all per-view inputs (halves DMA traffic); narrow lane-1
    # operands (hit, vis, mask) + prj_dir packed into one slab.
    rgbf = flat(jnp.concatenate([rgb, img_feats], axis=-1)).astype(jnp.bfloat16)
    rf = flat(ray_feats).astype(jnp.bfloat16)
    small = flat(jnp.concatenate([hit_prob, vis_in, mask, dirs], axis=-1)).astype(jnp.bfloat16)
    qdir = que_dir.astype(jnp.float32).reshape(N, 3)

    vmem_cap, kind = _tpu_hw_info()
    # ray tile budget derived from physical VMEM (~8192 rows on v7x, ~16384 on v5e/v6e)
    max_rows = int(max(2048, min(16384, vmem_cap // (8 * 1024))))
    TR = _choose_ray_tile(R, D, V, max_rows)
    RW = TR * D
    # v5e has no bf16 VALU: keep elementwise chains f32 there, bf16 elsewhere
    act_dtype = jnp.float32 if "v5" in kind else jnp.bfloat16
    vmem_limit = int(min(vmem_cap * 3 // 4, 100 * 1024 * 1024))

    data = [rgbf, rf, small]
    weights = [params["pos_enc"]] + list(params["agg"])

    in_specs = ([pl.BlockSpec((V, RW, a.shape[-1]), lambda r: (0, r, 0)) for a in data]
                + [pl.BlockSpec((RW, 3), lambda r: (r, 0))]
                + [pl.BlockSpec(w.shape, lambda r: (0, 0)) for w in weights])

    kernel = make_agg_kernel(n_views=V, tile_rays=TR, n_samples=D,
                             neuray_dim=neuray_dim, act_dtype=act_dtype)
    out = pl.pallas_call(
        kernel,
        grid=(R // TR,),
        in_specs=in_specs,
        out_specs=pl.BlockSpec((TR, D, 4), lambda r: (r, 0, 0)),
        out_shape=jax.ShapeDtypeStruct((R, D, 4), jnp.float32),
        compiler_params=pltpu.CompilerParams(
            dimension_semantics=("parallel",),
            vmem_limit_bytes=vmem_limit,
        ),
    )(*data, qdir, *weights)

    colors = out[..., 0:3].reshape(qn, rn, dn, 3)
    density = out[..., 3].reshape(qn, rn, dn)
    return density, colors


# ----------------------------------------------------------------------------------
if __name__ == "__main__":
    rfn, qn, rn, dn = 3, 1, 4, 8           # views, queries, rays, samples
    neuray_dim, in_feat_ch = 32, 32
    cfg = {"sample_num": dn, "neuray_dim": neuray_dim, "use_img_feats": False}

    root = jax.random.PRNGKey(0)
    k_in, k_par = jax.random.split(root)
    ks = iter(jax.random.split(k_in, 16))
    nk = lambda: next(ks)

    def unit(v):
        return v / (jnp.linalg.norm(v, axis=-1, keepdims=True) + 1e-8)

    mask = (jax.random.uniform(nk(), (rfn, qn, rn, dn, 1)) > 0.3)
    mask = mask.at[0].set(True)            # guarantee >=1 valid view per sample

    prj_dict = {
        "ray_feats": jax.random.normal(nk(), (rfn, qn, rn, dn, neuray_dim), jnp.float32),
        "hit_prob":  jax.random.uniform(nk(), (rfn, qn, rn, dn, 1), jnp.float32),
        "vis":       jax.random.uniform(nk(), (rfn, qn, rn, dn, 1), jnp.float32),
        "alpha":     jax.random.uniform(nk(), (rfn, qn, rn, dn, 1), jnp.float32),
        "rgb":       jax.random.uniform(nk(), (rfn, qn, rn, dn, 3), jnp.float32),
        "dir":       unit(jax.random.normal(nk(), (rfn, qn, rn, dn, 3), jnp.float32)),
        "img_feats": jax.random.normal(nk(), (rfn, qn, rn, dn, in_feat_ch), jnp.float32),
        "mask":      mask,
    }
    que_dir = unit(jax.random.normal(nk(), (qn, rn, dn, 3), jnp.float32))

    params = init_params(k_par, neuray_dim=neuray_dim, in_feat_ch=in_feat_ch, n_samples=dn)

    density, colors = aggregation_net_forward(params, prj_dict, que_dir, cfg)
    density, colors = jax.block_until_ready((density, colors))

    assert density.shape == (qn, rn, dn)
    assert colors.shape == (qn, rn, dn, 3)
    assert bool(jnp.all(jnp.isfinite(density))) and bool(jnp.all(jnp.isfinite(colors)))
    print("KERNEL_OK")
</pallas_src>

<mosaic_0001>
module attributes {stable_mosaic.version = 11 : i64} {
  func.func @kernel(%arg0: i32, %arg1: memref<3x16x35xbf16, #tpu.memory_space<vmem>>, %arg2: memref<3x16x32xbf16, #tpu.memory_space<vmem>>, %arg3: memref<3x16x6xbf16, #tpu.memory_space<vmem>>, %arg4: memref<16x3xf32, #tpu.memory_space<vmem>>, %arg5: memref<8x16xf32, #tpu.memory_space<vmem>>, %arg6: memref<35x32xbf16, #tpu.memory_space<vmem>>, %arg7: memref<33x32xbf16, #tpu.memory_space<vmem>>, %arg8: memref<5x16xbf16, #tpu.memory_space<vmem>>, %arg9: memref<17x35xbf16, #tpu.memory_space<vmem>>, %arg10: memref<70x64xbf16, #tpu.memory_space<vmem>>, %arg11: memref<68x64xbf16, #tpu.memory_space<vmem>>, %arg12: memref<65x32xbf16, #tpu.memory_space<vmem>>, %arg13: memref<33x32xbf16, #tpu.memory_space<vmem>>, %arg14: memref<33x33xbf16, #tpu.memory_space<vmem>>, %arg15: memref<33x32xbf16, #tpu.memory_space<vmem>>, %arg16: memref<33x1xbf16, #tpu.memory_space<vmem>>, %arg17: memref<66x64xbf16, #tpu.memory_space<vmem>>, %arg18: memref<65x16xbf16, #tpu.memory_space<vmem>>, %arg19: memref<16x48xbf16, #tpu.memory_space<vmem>>, %arg20: memref<16x16xbf16, #tpu.memory_space<vmem>>, %arg21: memref<2x16xbf16, #tpu.memory_space<vmem>>, %arg22: memref<17x16xbf16, #tpu.memory_space<vmem>>, %arg23: memref<17x1xbf16, #tpu.memory_space<vmem>>, %arg24: memref<38x16xbf16, #tpu.memory_space<vmem>>, %arg25: memref<17x8xbf16, #tpu.memory_space<vmem>>, %arg26: memref<9x1xbf16, #tpu.memory_space<vmem>>, %arg27: memref<2x8x4xf32, #tpu.memory_space<vmem>>) attributes {dimension_semantics = [#tpu.dimension_semantics<parallel>], iteration_bounds = array<i64: 2>, scalar_prefetch = 0 : i64, scratch_operands = 0 : i64, tpu.core_type = #tpu.core_type<tc>, window_params = [{transform_indices = @transform_0, window_bounds = array<i64: 3, 16, 35>}, {transform_indices = @transform_1, window_bounds = array<i64: 3, 16, 32>}, {transform_indices = @transform_2, window_bounds = array<i64: 3, 16, 6>}, {transform_indices = @transform_3, window_bounds = array<i64: 16, 3>}, {pipeline_mode = #tpu.pipeline_mode<synchronous>, transform_indices = @transform_4, window_bounds = array<i64: 8, 16>}, {pipeline_mode = #tpu.pipeline_mode<synchronous>, transform_indices = @transform_5, window_bounds = array<i64: 35, 32>}, {pipeline_mode = #tpu.pipeline_mode<synchronous>, transform_indices = @transform_6, window_bounds = array<i64: 33, 32>}, {pipeline_mode = #tpu.pipeline_mode<synchronous>, transform_indices = @transform_7, window_bounds = array<i64: 5, 16>}, {pipeline_mode = #tpu.pipeline_mode<synchronous>, transform_indices = @transform_8, window_bounds = array<i64: 17, 35>}, {pipeline_mode = #tpu.pipeline_mode<synchronous>, transform_indices = @transform_9, window_bounds = array<i64: 70, 64>}, {pipeline_mode = #tpu.pipeline_mode<synchronous>, transform_indices = @transform_10, window_bounds = array<i64: 68, 64>}, {pipeline_mode = #tpu.pipeline_mode<synchronous>, transform_indices = @transform_11, window_bounds = array<i64: 65, 32>}, {pipeline_mode = #tpu.pipeline_mode<synchronous>, transform_indices = @transform_12, window_bounds = array<i64: 33, 32>}, {pipeline_mode = #tpu.pipeline_mode<synchronous>, transform_indices = @transform_13, window_bounds = array<i64: 33, 33>}, {pipeline_mode = #tpu.pipeline_mode<synchronous>, transform_indices = @transform_14, window_bounds = array<i64: 33, 32>}, {pipeline_mode = #tpu.pipeline_mode<synchronous>, transform_indices = @transform_15, window_bounds = array<i64: 33, 1>}, {pipeline_mode = #tpu.pipeline_mode<synchronous>, transform_indices = @transform_16, window_bounds = array<i64: 66, 64>}, {pipeline_mode = #tpu.pipeline_mode<synchronous>, transform_indices = @transform_17, window_bounds = array<i64: 65, 16>}, {pipeline_mode = #tpu.pipeline_mode<synchronous>, transform_indices = @transform_18, window_bounds = array<i64: 16, 48>}, {pipeline_mode = #tpu.pipeline_mode<synchronous>, transform_indices = @transform_19, window_bounds = array<i64: 16, 16>}, {pipeline_mode = #tpu.pipeline_mode<synchronous>, transform_indices = @transform_20, window_bounds = array<i64: 2, 16>}, {pipeline_mode = #tpu.pipeline_mode<synchronous>, transform_indices = @transform_21, window_bounds = array<i64: 17, 16>}, {pipeline_mode = #tpu.pipeline_mode<synchronous>, transform_indices = @transform_22, window_bounds = array<i64: 17, 1>}, {pipeline_mode = #tpu.pipeline_mode<synchronous>, transform_indices = @transform_23, window_bounds = array<i64: 38, 16>}, {pipeline_mode = #tpu.pipeline_mode<synchronous>, transform_indices = @transform_24, window_bounds = array<i64: 17, 8>}, {pipeline_mode = #tpu.pipeline_mode<synchronous>, transform_indices = @transform_25, window_bounds = array<i64: 9, 1>}, {transform_indices = @transform_26, window_bounds = array<i64: 2, 8, 4>}]} {
    %c0 = arith.constant 0 : index
    %c0_0 = arith.constant 0 : index
    %c0_1 = arith.constant 0 : index
    %0 = vector.load %arg3[%c0, %c0_0, %c0_1] : memref<3x16x6xbf16, #tpu.memory_space<vmem>>, vector<3x16x6xbf16>
    %1 = vector.extract_strided_slice %0 {offsets = [0, 0, 0], sizes = [3, 16, 1], strides = [1, 1, 1]} : vector<3x16x6xbf16> to vector<3x16x1xbf16>
    %2 = arith.extf %1 : vector<3x16x1xbf16> to vector<3x16x1xf32>
    %3 = vector.extract_strided_slice %0 {offsets = [0, 0, 1], sizes = [3, 16, 1], strides = [1, 1, 1]} : vector<3x16x6xbf16> to vector<3x16x1xbf16>
    %4 = arith.extf %3 : vector<3x16x1xbf16> to vector<3x16x1xf32>
    %5 = vector.extract_strided_slice %0 {offsets = [0, 0, 2], sizes = [3, 16, 1], strides = [1, 1, 1]} : vector<3x16x6xbf16> to vector<3x16x1xbf16>
    %6 = arith.extf %5 : vector<3x16x1xbf16> to vector<3x16x1xf32>
    %7 = vector.extract_strided_slice %0 {offsets = [0, 0, 3], sizes = [3, 16, 3], strides = [1, 1, 1]} : vector<3x16x6xbf16> to vector<3x16x3xbf16>
    %8 = arith.extf %7 : vector<3x16x3xbf16> to vector<3x16x3xf32>
    %c0_2 = arith.constant 0 : index
    %c0_3 = arith.constant 0 : index
    %9 = vector.load %arg4[%c0_2, %c0_3] : memref<16x3xf32, #tpu.memory_space<vmem>>, vector<16x3xf32>
    %10 = vector.shape_cast %9 : vector<16x3xf32> to vector<1x16x3xf32>
    %11 = vector.broadcast %10 : vector<1x16x3xf32> to vector<3x16x3xf32>
    %12 = arith.subf %8, %11 : vector<3x16x3xf32>
    %13 = vector.shape_cast %9 : vector<16x3xf32> to vector<1x16x3xf32>
    %14 = vector.broadcast %13 : vector<1x16x3xf32> to vector<3x16x3xf32>
    %15 = arith.mulf %8, %14 : vector<3x16x3xf32>
    %cst = arith.constant dense<0.000000e+00> : vector<3x16xf32>
    %16 = vector.multi_reduction <add>, %15, %cst [2] : vector<3x16x3xf32> to vector<3x16xf32>
    %17 = vector.shape_cast %16 : vector<3x16xf32> to vector<3x16x1xf32>
    %18 = tpu.concatenate %12, %17 in 2 : vector<3x16x3xf32>, vector<3x16x1xf32> -> vector<3x16x4xf32>
    %19 = arith.truncf %18 : vector<3x16x4xf32> to vector<3x16x4xbf16>
    %cst_4 = arith.constant 5.000000e-01 : f32
    %20 = vector.broadcast %cst_4 : f32 to vector<3x16x1xf32>
    %21 = arith.subf %2, %20 : vector<3x16x1xf32>
    %cst_5 = arith.constant 2.000000e+00 : f32
    %22 = vector.broadcast %cst_5 : f32 to vector<3x16x1xf32>
    %23 = arith.mulf %21, %22 : vector<3x16x1xf32>
    %cst_6 = arith.constant 5.000000e-01 : f32
    %24 = vector.broadcast %cst_6 : f32 to vector<3x16x1xf32>
    %25 = arith.subf %4, %24 : vector<3x16x1xf32>
    %cst_7 = arith.constant 2.000000e+00 : f32
    %26 = vector.broadcast %cst_7 : f32 to vector<3x16x1xf32>
    %27 = arith.mulf %25, %26 : vector<3x16x1xf32>
    %c0_8 = arith.constant 0 : index
    %c0_9 = arith.constant 0 : index
    %c0_10 = arith.constant 0 : index
    %28 = vector.load %arg2[%c0_8, %c0_9, %c0_10] : memref<3x16x32xbf16, #tpu.memory_space<vmem>>, vector<3x16x32xbf16>
    %c0_11 = arith.constant 0 : index
    %c0_12 = arith.constant 0 : index
    %29 = vector.load %arg6[%c0_11, %c0_12] : memref<35x32xbf16, #tpu.memory_space<vmem>>, vector<32x32xbf16>
    %30 = vector.shape_cast %28 : vector<3x16x32xbf16> to vector<48x32xbf16>
    %cst_13 = arith.constant dense<0.000000e+00> : vector<48x32xf32>
    %31 = tpu.matmul %30, %29, %cst_13 {dimension_numbers = #tpu.dot_dimension_numbers<[1], [0], [0], [1], [0, 0, 1, 1], [], []>} : vector<48x32xbf16>, vector<32x32xbf16>, vector<48x32xf32> -> vector<48x32xf32>
    %32 = vector.shape_cast %31 : vector<48x32xf32> to vector<3x16x32xf32>
    %c32 = arith.constant 32 : index
    %c0_14 = arith.constant 0 : index
    %33 = vector.load %arg6[%c32, %c0_14] : memref<35x32xbf16, #tpu.memory_space<vmem>>, vector<1x32xbf16>
    %34 = arith.extf %33 : vector<1x32xbf16> to vector<1x32xf32>
    %35 = vector.shape_cast %34 : vector<1x32xf32> to vector<1x1x32xf32>
    %36 = vector.broadcast %23 : vector<3x16x1xf32> to vector<3x16x32xf32>
    %37 = vector.broadcast %35 : vector<1x1x32xf32> to vector<3x16x32xf32>
    %38 = arith.mulf %36, %37 : vector<3x16x32xf32>
    %39 = arith.addf %32, %38 : vector<3x16x32xf32>
    %c33 = arith.constant 33 : index
    %c0_15 = arith.constant 0 : index
    %40 = vector.load %arg6[%c33, %c0_15] : memref<35x32xbf16, #tpu.memory_space<vmem>>, vector<1x32xbf16>
    %41 = arith.extf %40 : vector<1x32xbf16> to vector<1x32xf32>
    %42 = vector.shape_cast %41 : vector<1x32xf32> to vector<1x1x32xf32>
    %43 = vector.broadcast %27 : vector<3x16x1xf32> to vector<3x16x32xf32>
    %44 = vector.broadcast %42 : vector<1x1x32xf32> to vector<3x16x32xf32>
    %45 = arith.mulf %43, %44 : vector<3x16x32xf32>
    %46 = arith.addf %39, %45 : vector<3x16x32xf32>
    %c34 = arith.constant 34 : index
    %c0_16 = arith.constant 0 : index
    %47 = vector.load %arg6[%c34, %c0_16] : memref<35x32xbf16, #tpu.memory_space<vmem>>, vector<1x32xbf16>
    %48 = arith.extf %47 : vector<1x32xbf16> to vector<1x32xf32>
    %49 = vector.shape_cast %48 : vector<1x32xf32> to vector<1x1x32xf32>
    %50 = vector.broadcast %49 : vector<1x1x32xf32> to vector<3x16x32xf32>
    %51 = arith.addf %46, %50 : vector<3x16x32xf32>
    %52 = arith.truncf %51 : vector<3x16x32xf32> to vector<3x16x32xbf16>
    %cst_17 = arith.constant 0.000000e+00 : bf16
    %53 = vector.broadcast %cst_17 : bf16 to vector<3x16x32xbf16>
    %54 = arith.maximumf %52, %53 : vector<3x16x32xbf16>
    %c0_18 = arith.constant 0 : index
    %c0_19 = arith.constant 0 : index
    %55 = vector.load %arg7[%c0_18, %c0_19] : memref<33x32xbf16, #tpu.memory_space<vmem>>, vector<32x32xbf16>
    %56 = vector.shape_cast %54 : vector<3x16x32xbf16> to vector<48x32xbf16>
    %cst_20 = arith.constant dense<0.000000e+00> : vector<48x32xf32>
    %57 = tpu.matmul %56, %55, %cst_20 {dimension_numbers = #tpu.dot_dimension_numbers<[1], [0], [0], [1], [0, 0, 1, 1], [], []>} : vector<48x32xbf16>, vector<32x32xbf16>, vector<48x32xf32> -> vector<48x32xf32>
    %58 = vector.shape_cast %57 : vector<48x32xf32> to vector<3x16x32xf32>
    %c32_21 = arith.constant 32 : index
    %c0_22 = arith.constant 0 : index
    %59 = vector.load %arg7[%c32_21, %c0_22] : memref<33x32xbf16, #tpu.memory_space<vmem>>, vector<1x32xbf16>
    %60 = arith.extf %59 : vector<1x32xbf16> to vector<1x32xf32>
    %61 = vector.shape_cast %60 : vector<1x32xf32> to vector<1x1x32xf32>
    %62 = vector.broadcast %61 : vector<1x1x32xf32> to vector<3x16x32xf32>
    %63 = arith.addf %58, %62 : vector<3x16x32xf32>
    %64 = arith.truncf %63 : vector<3x16x32xf32> to vector<3x16x32xbf16>
    %c0_23 = arith.constant 0 : index
    %c0_24 = arith.constant 0 : index
    %65 = vector.load %arg8[%c0_23, %c0_24] : memref<5x16xbf16, #tpu.memory_space<vmem>>, vector<4x16xbf16>
    %66 = vector.shape_cast %19 : vector<3x16x4xbf16> to vector<48x4xbf16>
    %cst_25 = arith.constant dense<0.000000e+00> : vector<48x16xf32>
    %67 = tpu.matmul %66, %65, %cst_25 {dimension_numbers = #tpu.dot_dimension_numbers<[1], [0], [0], [1], [0, 0, 1, 1], [], []>} : vector<48x4xbf16>, vector<4x16xbf16>, vector<48x16xf32> -> vector<48x16xf32>
    %68 = vector.shape_cast %67 : vector<48x16xf32> to vector<3x16x16xf32>
    %69 = arith.truncf %68 : vector<3x16x16xf32> to vector<3x16x16xbf16>
    %c4 = arith.constant 4 : index
    %c0_26 = arith.constant 0 : index
    %70 = vector.load %arg8[%c4, %c0_26] : memref<5x16xbf16, #tpu.memory_space<vmem>>, vector<1x16xbf16>
    %71 = vector.shape_cast %70 : vector<1x16xbf16> to vector<1x1x16xbf16>
    %72 = vector.broadcast %71 : vector<1x1x16xbf16> to vector<3x16x16xbf16>
    %73 = arith.addf %69, %72 : vector<3x16x16xbf16>
    %cst_27 = arith.constant 0.000000e+00 : bf16
    %74 = vector.broadcast %cst_27 : bf16 to vector<3x16x16xbf16>
    %75 = arith.cmpf ogt, %73, %74 : vector<3x16x16xbf16>
    %cst_28 = arith.constant 0.000000e+00 : bf16
    %76 = vector.broadcast %cst_28 : bf16 to vector<3x16x16xbf16>
    %77 = arith.minimumf %73, %76 : vector<3x16x16xbf16>
    %78 = math.exp %77 : vector<3x16x16xbf16>
    %cst_29 = arith.constant 1.000000e+00 : bf16
    %79 = vector.broadcast %cst_29 : bf16 to vector<3x16x16xbf16>
    %80 = arith.subf %78, %79 : vector<3x16x16xbf16>
    %81 = arith.select %75, %73, %80 : vector<3x16x16xi1>, vector<3x16x16xbf16>
    %c0_30 = arith.constant 0 : index
    %c0_31 = arith.constant 0 : index
    %82 = vector.load %arg9[%c0_30, %c0_31] : memref<17x35xbf16, #tpu.memory_space<vmem>>, vector<16x35xbf16>
    %83 = vector.shape_cast %81 : vector<3x16x16xbf16> to vector<48x16xbf16>
    %cst_32 = arith.constant dense<0.000000e+00> : vector<48x35xf32>
    %84 = tpu.matmul %83, %82, %cst_32 {dimension_numbers = #tpu.dot_dimension_numbers<[1], [0], [0], [1], [0, 0, 1, 1], [], []>} : vector<48x16xbf16>, vector<16x35xbf16>, vector<48x35xf32> -> vector<48x35xf32>
    %85 = vector.shape_cast %84 : vector<48x35xf32> to vector<3x16x35xf32>
    %86 = arith.truncf %85 : vector<3x16x35xf32> to vector<3x16x35xbf16>
    %c16 = arith.constant 16 : index
    %c0_33 = arith.constant 0 : index
    %87 = vector.load %arg9[%c16, %c0_33] : memref<17x35xbf16, #tpu.memory_space<vmem>>, vector<1x35xbf16>
    %88 = vector.shape_cast %87 : vector<1x35xbf16> to vector<1x1x35xbf16>
    %89 = vector.broadcast %88 : vector<1x1x35xbf16> to vector<3x16x35xbf16>
    %90 = arith.addf %86, %89 : vector<3x16x35xbf16>
    %cst_34 = arith.constant 0.000000e+00 : bf16
    %91 = vector.broadcast %cst_34 : bf16 to vector<3x16x35xbf16>
    %92 = arith.cmpf ogt, %90, %91 : vector<3x16x35xbf16>
    %cst_35 = arith.constant 0.000000e+00 : bf16
    %93 = vector.broadcast %cst_35 : bf16 to vector<3x16x35xbf16>
    %94 = arith.minimumf %90, %93 : vector<3x16x35xbf16>
    %95 = math.exp %94 : vector<3x16x35xbf16>
    %cst_36 = arith.constant 1.000000e+00 : bf16
    %96 = vector.broadcast %cst_36 : bf16 to vector<3x16x35xbf16>
    %97 = arith.subf %95, %96 : vector<3x16x35xbf16>
    %98 = arith.select %92, %90, %97 : vector<3x16x35xi1>, vector<3x16x35xbf16>
    %c0_37 = arith.constant 0 : index
    %c0_38 = arith.constant 0 : index
    %c0_39 = arith.constant 0 : index
    %99 = vector.load %arg1[%c0_37, %c0_38, %c0_39] : memref<3x16x35xbf16, #tpu.memory_space<vmem>>, vector<3x16x35xbf16>
    %100 = arith.addf %99, %98 : vector<3x16x35xbf16>
    %cst_40 = arith.constant dense<0.000000e+00> : vector<16x1xf32>
    %101 = vector.multi_reduction <add>, %6, %cst_40 [0] : vector<3x16x1xf32> to vector<16x1xf32>
    %cst_41 = arith.constant 9.99999993E-9 : f32
    %102 = vector.broadcast %cst_41 : f32 to vector<16x1xf32>
    %103 = arith.addf %101, %102 : vector<16x1xf32>
    %104 = tpu.reciprocal %103 {approx = true} : vector<16x1xf32> -> vector<16x1xf32>
    %105 = vector.shape_cast %104 : vector<16x1xf32> to vector<1x16x1xf32>
    %106 = vector.broadcast %105 : vector<1x16x1xf32> to vector<3x16x1xf32>
    %107 = arith.mulf %6, %106 : vector<3x16x1xf32>
    %108 = arith.truncf %107 : vector<3x16x1xf32> to vector<3x16x1xbf16>
    %109 = vector.shape_cast %108 : vector<3x16x1xbf16> to vector<3x16x1xbf16>
    %110 = vector.broadcast %109 : vector<3x16x1xbf16> to vector<3x16x35xbf16>
    %111 = arith.mulf %100, %110 : vector<3x16x35xbf16>
    %112 = arith.extf %111 : vector<3x16x35xbf16> to vector<3x16x35xf32>
    %cst_42 = arith.constant dense<0.000000e+00> : vector<16x35xf32>
    %113 = vector.multi_reduction <add>, %112, %cst_42 [0] : vector<3x16x35xf32> to vector<16x35xf32>
    %114 = arith.truncf %113 : vector<16x35xf32> to vector<16x35xbf16>
    %115 = vector.shape_cast %114 : vector<16x35xbf16> to vector<1x16x35xbf16>
    %116 = vector.broadcast %115 : vector<1x16x35xbf16> to vector<3x16x35xbf16>
    %117 = arith.subf %100, %116 : vector<3x16x35xbf16>
    %118 = arith.mulf %117, %117 : vector<3x16x35xbf16>
    %119 = arith.mulf %110, %118 : vector<3x16x35xbf16>
    %120 = arith.extf %119 : vector<3x16x35xbf16> to vector<3x16x35xf32>
    %cst_43 = arith.constant dense<0.000000e+00> : vector<16x35xf32>
    %121 = vector.multi_reduction <add>, %120, %cst_43 [0] : vector<3x16x35xf32> to vector<16x35xf32>
    %122 = arith.truncf %121 : vector<16x35xf32> to vector<16x35xbf16>
    %c0_44 = arith.constant 0 : index
    %c0_45 = arith.constant 0 : index
    %123 = vector.load %arg10[%c0_44, %c0_45] : memref<70x64xbf16, #tpu.memory_space<vmem>>, vector<35x64xbf16>
    %cst_46 = arith.constant dense<0.000000e+00> : vector<16x64xf32>
    %124 = tpu.matmul %114, %123, %cst_46 {dimension_numbers = #tpu.dot_dimension_numbers<[1], [0], [0], [1], [0, 0, 1, 1], [], []>} : vector<16x35xbf16>, vector<35x64xbf16>, vector<16x64xf32> -> vector<16x64xf32>
    %c35 = arith.constant 35 : index
    %c0_47 = arith.constant 0 : index
    %125 = vector.load %arg10[%c35, %c0_47] : memref<70x64xbf16, #tpu.memory_space<vmem>>, vector<35x64xbf16>
    %cst_48 = arith.constant dense<0.000000e+00> : vector<16x64xf32>
    %126 = tpu.matmul %122, %125, %cst_48 {dimension_numbers = #tpu.dot_dimension_numbers<[1], [0], [0], [1], [0, 0, 1, 1], [], []>} : vector<16x35xbf16>, vector<35x64xbf16>, vector<16x64xf32> -> vector<16x64xf32>
    %127 = arith.addf %124, %126 : vector<16x64xf32>
    %c0_49 = arith.constant 0 : index
    %c0_50 = arith.constant 0 : index
    %128 = vector.load %arg11[%c0_49, %c0_50] : memref<68x64xbf16, #tpu.memory_space<vmem>>, vector<35x64xbf16>
    %129 = vector.shape_cast %100 : vector<3x16x35xbf16> to vector<48x35xbf16>
    %cst_51 = arith.constant dense<0.000000e+00> : vector<48x64xf32>
    %130 = tpu.matmul %129, %128, %cst_51 {dimension_numbers = #tpu.dot_dimension_numbers<[1], [0], [0], [1], [0, 0, 1, 1], [], []>} : vector<48x35xbf16>, vector<35x64xbf16>, vector<48x64xf32> -> vector<48x64xf32>
    %131 = vector.shape_cast %130 : vector<48x64xf32> to vector<3x16x64xf32>
    %c35_52 = arith.constant 35 : index
    %c0_53 = arith.constant 0 : index
    %132 = vector.load %arg11[%c35_52, %c0_53] : memref<68x64xbf16, #tpu.memory_space<vmem>>, vector<32x64xbf16>
    %133 = vector.shape_cast %64 : vector<3x16x32xbf16> to vector<48x32xbf16>
    %cst_54 = arith.constant dense<0.000000e+00> : vector<48x64xf32>
    %134 = tpu.matmul %133, %132, %cst_54 {dimension_numbers = #tpu.dot_dimension_numbers<[1], [0], [0], [1], [0, 0, 1, 1], [], []>} : vector<48x32xbf16>, vector<32x64xbf16>, vector<48x64xf32> -> vector<48x64xf32>
    %135 = vector.shape_cast %134 : vector<48x64xf32> to vector<3x16x64xf32>
    %136 = arith.addf %131, %135 : vector<3x16x64xf32>
    %c67 = arith.constant 67 : index
    %c0_55 = arith.constant 0 : index
    %137 = vector.load %arg11[%c67, %c0_55] : memref<68x64xbf16, #tpu.memory_space<vmem>>, vector<1x64xbf16>
    %138 = arith.extf %137 : vector<1x64xbf16> to vector<1x64xf32>
    %139 = vector.shape_cast %138 : vector<1x64xf32> to vector<1x1x64xf32>
    %140 = vector.broadcast %139 : vector<1x1x64xf32> to vector<3x16x64xf32>
    %141 = arith.addf %136, %140 : vector<3x16x64xf32>
    %142 = vector.shape_cast %127 : vector<16x64xf32> to vector<1x16x64xf32>
    %143 = vector.broadcast %142 : vector<1x16x64xf32> to vector<3x16x64xf32>
    %144 = arith.addf %143, %141 : vector<3x16x64xf32>
    %145 = arith.truncf %144 : vector<3x16x64xf32> to vector<3x16x64xbf16>
    %cst_56 = arith.constant 0.000000e+00 : bf16
    %146 = vector.broadcast %cst_56 : bf16 to vector<3x16x64xbf16>
    %147 = arith.cmpf ogt, %145, %146 : vector<3x16x64xbf16>
    %cst_57 = arith.constant 0.000000e+00 : bf16
    %148 = vector.broadcast %cst_57 : bf16 to vector<3x16x64xbf16>
    %149 = arith.minimumf %145, %148 : vector<3x16x64xbf16>
    %150 = math.exp %149 : vector<3x16x64xbf16>
    %cst_58 = arith.constant 1.000000e+00 : bf16
    %151 = vector.broadcast %cst_58 : bf16 to vector<3x16x64xbf16>
    %152 = arith.subf %150, %151 : vector<3x16x64xbf16>
    %153 = arith.select %147, %145, %152 : vector<3x16x64xi1>, vector<3x16x64xbf16>
    %c0_59 = arith.constant 0 : index
    %c0_60 = arith.constant 0 : index
    %154 = vector.load %arg12[%c0_59, %c0_60] : memref<65x32xbf16, #tpu.memory_space<vmem>>, vector<64x32xbf16>
    %155 = vector.shape_cast %153 : vector<3x16x64xbf16> to vector<48x64xbf16>
    %cst_61 = arith.constant dense<0.000000e+00> : vector<48x32xf32>
    %156 = tpu.matmul %155, %154, %cst_61 {dimension_numbers = #tpu.dot_dimension_numbers<[1], [0], [0], [1], [0, 0, 1, 1], [], []>} : vector<48x64xbf16>, vector<64x32xbf16>, vector<48x32xf32> -> vector<48x32xf32>
    %157 = vector.shape_cast %156 : vector<48x32xf32> to vector<3x16x32xf32>
    %158 = arith.truncf %157 : vector<3x16x32xf32> to vector<3x16x32xbf16>
    %c64 = arith.constant 64 : index
    %c0_62 = arith.constant 0 : index
    %159 = vector.load %arg12[%c64, %c0_62] : memref<65x32xbf16, #tpu.memory_space<vmem>>, vector<1x32xbf16>
    %160 = vector.shape_cast %159 : vector<1x32xbf16> to vector<1x1x32xbf16>
    %161 = vector.broadcast %160 : vector<1x1x32xbf16> to vector<3x16x32xbf16>
    %162 = arith.addf %158, %161 : vector<3x16x32xbf16>
    %cst_63 = arith.constant 0.000000e+00 : bf16
    %163 = vector.broadcast %cst_63 : bf16 to vector<3x16x32xbf16>
    %164 = arith.cmpf ogt, %162, %163 : vector<3x16x32xbf16>
    %cst_64 = arith.constant 0.000000e+00 : bf16
    %165 = vector.broadcast %cst_64 : bf16 to vector<3x16x32xbf16>
    %166 = arith.minimumf %162, %165 : vector<3x16x32xbf16>
    %167 = math.exp %166 : vector<3x16x32xbf16>
    %cst_65 = arith.constant 1.000000e+00 : bf16
    %168 = vector.broadcast %cst_65 : bf16 to vector<3x16x32xbf16>
    %169 = arith.subf %167, %168 : vector<3x16x32xbf16>
    %170 = arith.select %164, %162, %169 : vector<3x16x32xi1>, vector<3x16x32xbf16>
    %171 = vector.broadcast %108 : vector<3x16x1xbf16> to vector<3x16x32xbf16>
    %172 = arith.mulf %170, %171 : vector<3x16x32xbf16>
    %c0_66 = arith.constant 0 : index
    %c0_67 = arith.constant 0 : index
    %173 = vector.load %arg13[%c0_66, %c0_67] : memref<33x32xbf16, #tpu.memory_space<vmem>>, vector<32x32xbf16>
    %174 = vector.shape_cast %172 : vector<3x16x32xbf16> to vector<48x32xbf16>
    %cst_68 = arith.constant dense<0.000000e+00> : vector<48x32xf32>
    %175 = tpu.matmul %174, %173, %cst_68 {dimension_numbers = #tpu.dot_dimension_numbers<[1], [0], [0], [1], [0, 0, 1, 1], [], []>} : vector<48x32xbf16>, vector<32x32xbf16>, vector<48x32xf32> -> vector<48x32xf32>
    %176 = vector.shape_cast %175 : vector<48x32xf32> to vector<3x16x32xf32>
    %177 = arith.truncf %176 : vector<3x16x32xf32> to vector<3x16x32xbf16>
    %c32_69 = arith.constant 32 : index
    %c0_70 = arith.constant 0 : index
    %178 = vector.load %arg13[%c32_69, %c0_70] : memref<33x32xbf16, #tpu.memory_space<vmem>>, vector<1x32xbf16>
    %179 = vector.shape_cast %178 : vector<1x32xbf16> to vector<1x1x32xbf16>
    %180 = vector.broadcast %179 : vector<1x1x32xbf16> to vector<3x16x32xbf16>
    %181 = arith.addf %177, %180 : vector<3x16x32xbf16>
    %cst_71 = arith.constant 0.000000e+00 : bf16
    %182 = vector.broadcast %cst_71 : bf16 to vector<3x16x32xbf16>
    %183 = arith.cmpf ogt, %181, %182 : vector<3x16x32xbf16>
    %cst_72 = arith.constant 0.000000e+00 : bf16
    %184 = vector.broadcast %cst_72 : bf16 to vector<3x16x32xbf16>
    %185 = arith.minimumf %181, %184 : vector<3x16x32xbf16>
    %186 = math.exp %185 : vector<3x16x32xbf16>
    %cst_73 = arith.constant 1.000000e+00 : bf16
    %187 = vector.broadcast %cst_73 : bf16 to vector<3x16x32xbf16>
    %188 = arith.subf %186, %187 : vector<3x16x32xbf16>
    %189 = arith.select %183, %181, %188 : vector<3x16x32xi1>, vector<3x16x32xbf16>
    %c0_74 = arith.constant 0 : index
    %c0_75 = arith.constant 0 : index
    %190 = vector.load %arg14[%c0_74, %c0_75] : memref<33x33xbf16, #tpu.memory_space<vmem>>, vector<32x33xbf16>
    %191 = vector.shape_cast %189 : vector<3x16x32xbf16> to vector<48x32xbf16>
    %cst_76 = arith.constant dense<0.000000e+00> : vector<48x33xf32>
    %192 = tpu.matmul %191, %190, %cst_76 {dimension_numbers = #tpu.dot_dimension_numbers<[1], [0], [0], [1], [0, 0, 1, 1], [], []>} : vector<48x32xbf16>, vector<32x33xbf16>, vector<48x33xf32> -> vector<48x33xf32>
    %193 = vector.shape_cast %192 : vector<48x33xf32> to vector<3x16x33xf32>
    %194 = arith.truncf %193 : vector<3x16x33xf32> to vector<3x16x33xbf16>
    %c32_77 = arith.constant 32 : index
    %c0_78 = arith.constant 0 : index
    %195 = vector.load %arg14[%c32_77, %c0_78] : memref<33x33xbf16, #tpu.memory_space<vmem>>, vector<1x33xbf16>
    %196 = vector.shape_cast %195 : vector<1x33xbf16> to vector<1x1x33xbf16>
    %197 = vector.broadcast %196 : vector<1x1x33xbf16> to vector<3x16x33xbf16>
    %198 = arith.addf %194, %197 : vector<3x16x33xbf16>
    %cst_79 = arith.constant 0.000000e+00 : bf16
    %199 = vector.broadcast %cst_79 : bf16 to vector<3x16x33xbf16>
    %200 = arith.cmpf ogt, %198, %199 : vector<3x16x33xbf16>
    %cst_80 = arith.constant 0.000000e+00 : bf16
    %201 = vector.broadcast %cst_80 : bf16 to vector<3x16x33xbf16>
    %202 = arith.minimumf %198, %201 : vector<3x16x33xbf16>
    %203 = math.exp %202 : vector<3x16x33xbf16>
    %cst_81 = arith.constant 1.000000e+00 : bf16
    %204 = vector.broadcast %cst_81 : bf16 to vector<3x16x33xbf16>
    %205 = arith.subf %203, %204 : vector<3x16x33xbf16>
    %206 = arith.select %200, %198, %205 : vector<3x16x33xi1>, vector<3x16x33xbf16>
    %207 = vector.extract_strided_slice %206 {offsets = [0, 0, 32], sizes = [3, 16, 1], strides = [1, 1, 1]} : vector<3x16x33xbf16> to vector<3x16x1xbf16>
    %208 = arith.extf %207 : vector<3x16x1xbf16> to vector<3x16x1xf32>
    %cst_82 = arith.constant 0.000000e+00 : f32
    %209 = vector.broadcast %cst_82 : f32 to vector<3x16x1xf32>
    %210 = arith.subf %209, %208 : vector<3x16x1xf32>
    %211 = math.exp %210 : vector<3x16x1xf32>
    %cst_83 = arith.constant 1.000000e+00 : f32
    %212 = vector.broadcast %cst_83 : f32 to vector<3x16x1xf32>
    %213 = arith.addf %212, %211 : vector<3x16x1xf32>
    %214 = tpu.reciprocal %213 {approx = true} : vector<3x16x1xf32> -> vector<3x16x1xf32>
    %215 = arith.mulf %214, %6 : vector<3x16x1xf32>
    %216 = vector.extract_strided_slice %206 {offsets = [0, 0, 0], sizes = [3, 16, 32], strides = [1, 1, 1]} : vector<3x16x33xbf16> to vector<3x16x32xbf16>
    %217 = arith.addf %170, %216 : vector<3x16x32xbf16>
    %218 = arith.truncf %215 : vector<3x16x1xf32> to vector<3x16x1xbf16>
    %219 = vector.broadcast %218 : vector<3x16x1xbf16> to vector<3x16x32xbf16>
    %220 = arith.mulf %217, %219 : vector<3x16x32xbf16>
    %c0_84 = arith.constant 0 : index
    %c0_85 = arith.constant 0 : index
    %221 = vector.load %arg15[%c0_84, %c0_85] : memref<33x32xbf16, #tpu.memory_space<vmem>>, vector<32x32xbf16>
    %222 = vector.shape_cast %220 : vector<3x16x32xbf16> to vector<48x32xbf16>
    %cst_86 = arith.constant dense<0.000000e+00> : vector<48x32xf32>
    %223 = tpu.matmul %222, %221, %cst_86 {dimension_numbers = #tpu.dot_dimension_numbers<[1], [0], [0], [1], [0, 0, 1, 1], [], []>} : vector<48x32xbf16>, vector<32x32xbf16>, vector<48x32xf32> -> vector<48x32xf32>
    %224 = vector.shape_cast %223 : vector<48x32xf32> to vector<3x16x32xf32>
    %225 = arith.truncf %224 : vector<3x16x32xf32> to vector<3x16x32xbf16>
    %c32_87 = arith.constant 32 : index
    %c0_88 = arith.constant 0 : index
    %226 = vector.load %arg15[%c32_87, %c0_88] : memref<33x32xbf16, #tpu.memory_space<vmem>>, vector<1x32xbf16>
    %227 = vector.shape_cast %226 : vector<1x32xbf16> to vector<1x1x32xbf16>
    %228 = vector.broadcast %227 : vector<1x1x32xbf16> to vector<3x16x32xbf16>
    %229 = arith.addf %225, %228 : vector<3x16x32xbf16>
    %cst_89 = arith.constant 0.000000e+00 : bf16
    %230 = vector.broadcast %cst_89 : bf16 to vector<3x16x32xbf16>
    %231 = arith.cmpf ogt, %229, %230 : vector<3x16x32xbf16>
    %cst_90 = arith.constant 0.000000e+00 : bf16
    %232 = vector.broadcast %cst_90 : bf16 to vector<3x16x32xbf16>
    %233 = arith.minimumf %229, %232 : vector<3x16x32xbf16>
    %234 = math.exp %233 : vector<3x16x32xbf16>
    %cst_91 = arith.constant 1.000000e+00 : bf16
    %235 = vector.broadcast %cst_91 : bf16 to vector<3x16x32xbf16>
    %236 = arith.subf %234, %235 : vector<3x16x32xbf16>
    %237 = arith.select %231, %229, %236 : vector<3x16x32xi1>, vector<3x16x32xbf16>
    %c0_92 = arith.constant 0 : index
    %c0_93 = arith.constant 0 : index
    %238 = vector.load %arg16[%c0_92, %c0_93] : memref<33x1xbf16, #tpu.memory_space<vmem>>, vector<32x1xbf16>
    %239 = vector.shape_cast %237 : vector<3x16x32xbf16> to vector<48x32xbf16>
    %cst_94 = arith.constant dense<0.000000e+00> : vector<48x1xf32>
    %240 = tpu.matmul %239, %238, %cst_94 {dimension_numbers = #tpu.dot_dimension_numbers<[1], [0], [0], [1], [0, 0, 1, 1], [], []>} : vector<48x32xbf16>, vector<32x1xbf16>, vector<48x1xf32> -> vector<48x1xf32>
    %241 = vector.shape_cast %240 : vector<48x1xf32> to vector<3x16x1xf32>
    %c32_95 = arith.constant 32 : index
    %c0_96 = arith.constant 0 : index
    %242 = vector.load %arg16[%c32_95, %c0_96] : memref<33x1xbf16, #tpu.memory_space<vmem>>, vector<1x1xbf16>
    %243 = arith.extf %242 : vector<1x1xbf16> to vector<1x1xf32>
    %244 = vector.shape_cast %243 : vector<1x1xf32> to vector<1x1x1xf32>
    %245 = vector.broadcast %244 : vector<1x1x1xf32> to vector<3x16x1xf32>
    %246 = arith.addf %241, %245 : vector<3x16x1xf32>
    %cst_97 = arith.constant 0.000000e+00 : f32
    %247 = vector.broadcast %cst_97 : f32 to vector<3x16x1xf32>
    %248 = arith.subf %247, %246 : vector<3x16x1xf32>
    %249 = math.exp %248 : vector<3x16x1xf32>
    %cst_98 = arith.constant 1.000000e+00 : f32
    %250 = vector.broadcast %cst_98 : f32 to vector<3x16x1xf32>
    %251 = arith.addf %250, %249 : vector<3x16x1xf32>
    %252 = tpu.reciprocal %251 {approx = true} : vector<3x16x1xf32> -> vector<3x16x1xf32>
    %253 = arith.mulf %252, %6 : vector<3x16x1xf32>
    %cst_99 = arith.constant dense<0.000000e+00> : vector<16x1xf32>
    %254 = vector.multi_reduction <add>, %253, %cst_99 [0] : vector<3x16x1xf32> to vector<16x1xf32>
    %cst_100 = arith.constant 9.99999993E-9 : f32
    %255 = vector.broadcast %cst_100 : f32 to vector<16x1xf32>
    %256 = arith.addf %254, %255 : vector<16x1xf32>
    %257 = tpu.reciprocal %256 {approx = true} : vector<16x1xf32> -> vector<16x1xf32>
    %258 = vector.shape_cast %257 : vector<16x1xf32> to vector<1x16x1xf32>
    %259 = vector.broadcast %258 : vector<1x16x1xf32> to vector<3x16x1xf32>
    %260 = arith.mulf %253, %259 : vector<3x16x1xf32>
    %261 = arith.truncf %260 : vector<3x16x1xf32> to vector<3x16x1xbf16>
    %262 = vector.shape_cast %261 : vector<3x16x1xbf16> to vector<3x16x1xbf16>
    %263 = vector.broadcast %262 : vector<3x16x1xbf16> to vector<3x16x32xbf16>
    %264 = arith.mulf %217, %263 : vector<3x16x32xbf16>
    %265 = arith.extf %264 : vector<3x16x32xbf16> to vector<3x16x32xf32>
    %cst_101 = arith.constant dense<0.000000e+00> : vector<16x32xf32>
    %266 = vector.multi_reduction <add>, %265, %cst_101 [0] : vector<3x16x32xf32> to vector<16x32xf32>
    %267 = arith.truncf %266 : vector<16x32xf32> to vector<16x32xbf16>
    %268 = vector.shape_cast %267 : vector<16x32xbf16> to vector<1x16x32xbf16>
    %269 = vector.broadcast %268 : vector<1x16x32xbf16> to vector<3x16x32xbf16>
    %270 = arith.subf %217, %269 : vector<3x16x32xbf16>
    %271 = arith.mulf %270, %270 : vector<3x16x32xbf16>
    %272 = arith.mulf %263, %271 : vector<3x16x32xbf16>
    %273 = arith.extf %272 : vector<3x16x32xbf16> to vector<3x16x32xf32>
    %cst_102 = arith.constant dense<0.000000e+00> : vector<16x32xf32>
    %274 = vector.multi_reduction <add>, %273, %cst_102 [0] : vector<3x16x32xf32> to vector<16x32xf32>
    %275 = arith.truncf %274 : vector<16x32xf32> to vector<16x32xbf16>
    %cst_103 = arith.constant dense<0.000000e+00> : vector<16x1xf32>
    %276 = vector.multi_reduction <add>, %260, %cst_103 [0] : vector<3x16x1xf32> to vector<16x1xf32>
    %cst_104 = arith.constant 0.333333343 : f32
    %277 = vector.broadcast %cst_104 : f32 to vector<16x1xf32>
    %278 = arith.mulf %276, %277 : vector<16x1xf32>
    %c0_105 = arith.constant 0 : index
    %c0_106 = arith.constant 0 : index
    %279 = vector.load %arg17[%c0_105, %c0_106] : memref<66x64xbf16, #tpu.memory_space<vmem>>, vector<32x64xbf16>
    %cst_107 = arith.constant dense<0.000000e+00> : vector<16x64xf32>
    %280 = tpu.matmul %267, %279, %cst_107 {dimension_numbers = #tpu.dot_dimension_numbers<[1], [0], [0], [1], [0, 0, 1, 1], [], []>} : vector<16x32xbf16>, vector<32x64xbf16>, vector<16x64xf32> -> vector<16x64xf32>
    %c32_108 = arith.constant 32 : index
    %c0_109 = arith.constant 0 : index
    %281 = vector.load %arg17[%c32_108, %c0_109] : memref<66x64xbf16, #tpu.memory_space<vmem>>, vector<32x64xbf16>
    %cst_110 = arith.constant dense<0.000000e+00> : vector<16x64xf32>
    %282 = tpu.matmul %275, %281, %cst_110 {dimension_numbers = #tpu.dot_dimension_numbers<[1], [0], [0], [1], [0, 0, 1, 1], [], []>} : vector<16x32xbf16>, vector<32x64xbf16>, vector<16x64xf32> -> vector<16x64xf32>
    %283 = arith.addf %280, %282 : vector<16x64xf32>
    %c64_111 = arith.constant 64 : index
    %c0_112 = arith.constant 0 : index
    %284 = vector.load %arg17[%c64_111, %c0_112] : memref<66x64xbf16, #tpu.memory_space<vmem>>, vector<1x64xbf16>
    %285 = arith.extf %284 : vector<1x64xbf16> to vector<1x64xf32>
    %286 = vector.broadcast %278 : vector<16x1xf32> to vector<16x64xf32>
    %287 = vector.broadcast %285 : vector<1x64xf32> to vector<16x64xf32>
    %288 = arith.mulf %286, %287 : vector<16x64xf32>
    %289 = arith.addf %283, %288 : vector<16x64xf32>
    %c65 = arith.constant 65 : index
    %c0_113 = arith.constant 0 : index
    %290 = vector.load %arg17[%c65, %c0_113] : memref<66x64xbf16, #tpu.memory_space<vmem>>, vector<1x64xbf16>
    %291 = arith.extf %290 : vector<1x64xbf16> to vector<1x64xf32>
    %292 = vector.broadcast %291 : vector<1x64xf32> to vector<16x64xf32>
    %293 = arith.addf %289, %292 : vector<16x64xf32>
    %cst_114 = arith.constant 0.000000e+00 : f32
    %294 = vector.broadcast %cst_114 : f32 to vector<16x64xf32>
    %295 = arith.cmpf ogt, %293, %294 : vector<16x64xf32>
    %cst_115 = arith.constant 0.000000e+00 : f32
    %296 = vector.broadcast %cst_115 : f32 to vector<16x64xf32>
    %297 = arith.minimumf %293, %296 : vector<16x64xf32>
    %298 = math.exp %297 : vector<16x64xf32>
    %cst_116 = arith.constant 1.000000e+00 : f32
    %299 = vector.broadcast %cst_116 : f32 to vector<16x64xf32>
    %300 = arith.subf %298, %299 : vector<16x64xf32>
    %301 = arith.select %295, %293, %300 : vector<16x64xi1>, vector<16x64xf32>
    %c0_117 = arith.constant 0 : index
    %c0_118 = arith.constant 0 : index
    %302 = vector.load %arg18[%c0_117, %c0_118] : memref<65x16xbf16, #tpu.memory_space<vmem>>, vector<64x16xbf16>
    %303 = arith.truncf %301 : vector<16x64xf32> to vector<16x64xbf16>
    %cst_119 = arith.constant dense<0.000000e+00> : vector<16x16xf32>
    %304 = tpu.matmul %303, %302, %cst_119 {dimension_numbers = #tpu.dot_dimension_numbers<[1], [0], [0], [1], [0, 0, 1, 1], [], []>} : vector<16x64xbf16>, vector<64x16xbf16>, vector<16x16xf32> -> vector<16x16xf32>
    %c64_120 = arith.constant 64 : index
    %c0_121 = arith.constant 0 : index
    %305 = vector.load %arg18[%c64_120, %c0_121] : memref<65x16xbf16, #tpu.memory_space<vmem>>, vector<1x16xbf16>
    %306 = arith.extf %305 : vector<1x16xbf16> to vector<1x16xf32>
    %307 = vector.broadcast %306 : vector<1x16xf32> to vector<16x16xf32>
    %308 = arith.addf %304, %307 : vector<16x16xf32>
    %cst_122 = arith.constant 0.000000e+00 : f32
    %309 = vector.broadcast %cst_122 : f32 to vector<16x16xf32>
    %310 = arith.cmpf ogt, %308, %309 : vector<16x16xf32>
    %cst_123 = arith.constant 0.000000e+00 : f32
    %311 = vector.broadcast %cst_123 : f32 to vector<16x16xf32>
    %312 = arith.minimumf %308, %311 : vector<16x16xf32>
    %313 = math.exp %312 : vector<16x16xf32>
    %cst_124 = arith.constant 1.000000e+00 : f32
    %314 = vector.broadcast %cst_124 : f32 to vector<16x16xf32>
    %315 = arith.subf %313, %314 : vector<16x16xf32>
    %316 = arith.select %310, %308, %315 : vector<16x16xi1>, vector<16x16xf32>
    %c0_125 = arith.constant 0 : index
    %c0_126 = arith.constant 0 : index
    %317 = vector.load %arg5[%c0_125, %c0_126] : memref<8x16xf32, #tpu.memory_space<vmem>>, vector<8x16xf32>
    %318 = vector.shape_cast %317 : vector<8x16xf32> to vector<1x8x16xf32>
    %319 = vector.shape_cast %318 : vector<1x8x16xf32> to vector<1x8x16xf32>
    %320 = vector.broadcast %319 : vector<1x8x16xf32> to vector<2x8x16xf32>
    %321 = vector.shape_cast %320 : vector<2x8x16xf32> to vector<16x16xf32>
    %322 = arith.addf %316, %321 : vector<16x16xf32>
    %c0_127 = arith.constant 0 : index
    %c0_128 = arith.constant 0 : index
    %323 = vector.load %arg19[%c0_127, %c0_128] : memref<16x48xbf16, #tpu.memory_space<vmem>>, vector<16x48xbf16>
    %324 = arith.truncf %322 : vector<16x16xf32> to vector<16x16xbf16>
    %cst_129 = arith.constant dense<0.000000e+00> : vector<16x48xf32>
    %325 = tpu.matmul %324, %323, %cst_129 {dimension_numbers = #tpu.dot_dimension_numbers<[1], [0], [0], [1], [0, 0, 1, 1], [], []>} : vector<16x16xbf16>, vector<16x48xbf16>, vector<16x48xf32> -> vector<16x48xf32>
    %326 = vector.shape_cast %325 : vector<16x48xf32> to vector<2x8x48xf32>
    %327 = vector.extract_strided_slice %325 {offsets = [0, 0], sizes = [16, 16], strides = [1, 1]} : vector<16x48xf32> to vector<16x16xf32>
    %cst_130 = arith.constant 5.000000e-01 : f32
    %328 = vector.broadcast %cst_130 : f32 to vector<16x16xf32>
    %329 = arith.mulf %327, %328 : vector<16x16xf32>
    %cst_131 = arith.constant 1.000000e+00 : f32
    %330 = vector.broadcast %cst_131 : f32 to vector<16x1xf32>
    %331 = arith.cmpf ogt, %101, %330 : vector<16x1xf32>
    %332 = vector.extract_strided_slice %326 {offsets = [0, 0, 16], sizes = [2, 1, 32], strides = [1, 1, 1]} : vector<2x8x48xf32> to vector<2x1x32xf32>
    %333 = vector.shape_cast %332 : vector<2x1x32xf32> to vector<2x32xf32>
    %334 = vector.shape_cast %333 : vector<2x32xf32> to vector<2x1x32xf32>
    %335 = vector.shape_cast %334 : vector<2x1x32xf32> to vector<2x1x32xf32>
    %336 = vector.broadcast %335 : vector<2x1x32xf32> to vector<2x8x32xf32>
    %337 = vector.shape_cast %336 : vector<2x8x32xf32> to vector<16x32xf32>
    %338 = vector.extract_strided_slice %337 {offsets = [0, 16], sizes = [16, 16], strides = [1, 1]} : vector<16x32xf32> to vector<16x16xf32>
    %339 = vector.extract_strided_slice %337 {offsets = [0, 0], sizes = [16, 16], strides = [1, 1]} : vector<16x32xf32> to vector<16x16xf32>
    %340 = arith.mulf %329, %339 : vector<16x16xf32>
    %341 = vector.shape_cast %340 : vector<16x16xf32> to vector<16x4x4xf32>
    %cst_132 = arith.constant dense<0.000000e+00> : vector<16x4xf32>
    %342 = vector.multi_reduction <add>, %341, %cst_132 [2] : vector<16x4x4xf32> to vector<16x4xf32>
    %343 = vector.extract_strided_slice %326 {offsets = [0, 1, 16], sizes = [2, 1, 32], strides = [1, 1, 1]} : vector<2x8x48xf32> to vector<2x1x32xf32>
    %344 = vector.shape_cast %343 : vector<2x1x32xf32> to vector<2x32xf32>
    %345 = vector.shape_cast %344 : vector<2x32xf32> to vector<2x1x32xf32>
    %346 = vector.shape_cast %345 : vector<2x1x32xf32> to vector<2x1x32xf32>
    %347 = vector.broadcast %346 : vector<2x1x32xf32> to vector<2x8x32xf32>
    %348 = vector.shape_cast %347 : vector<2x8x32xf32> to vector<16x32xf32>
    %349 = vector.extract_strided_slice %348 {offsets = [0, 16], sizes = [16, 16], strides = [1, 1]} : vector<16x32xf32> to vector<16x16xf32>
    %350 = vector.extract_strided_slice %348 {offsets = [0, 0], sizes = [16, 16], strides = [1, 1]} : vector<16x32xf32> to vector<16x16xf32>
    %351 = arith.mulf %329, %350 : vector<16x16xf32>
    %352 = vector.shape_cast %351 : vector<16x16xf32> to vector<16x4x4xf32>
    %cst_133 = arith.constant dense<0.000000e+00> : vector<16x4xf32>
    %353 = vector.multi_reduction <add>, %352, %cst_133 [2] : vector<16x4x4xf32> to vector<16x4xf32>
    %354 = vector.extract_strided_slice %326 {offsets = [0, 2, 16], sizes = [2, 1, 32], strides = [1, 1, 1]} : vector<2x8x48xf32> to vector<2x1x32xf32>
    %355 = vector.shape_cast %354 : vector<2x1x32xf32> to vector<2x32xf32>
    %356 = vector.shape_cast %355 : vector<2x32xf32> to vector<2x1x32xf32>
    %357 = vector.shape_cast %356 : vector<2x1x32xf32> to vector<2x1x32xf32>
    %358 = vector.broadcast %357 : vector<2x1x32xf32> to vector<2x8x32xf32>
    %359 = vector.shape_cast %358 : vector<2x8x32xf32> to vector<16x32xf32>
    %360 = vector.extract_strided_slice %359 {offsets = [0, 16], sizes = [16, 16], strides = [1, 1]} : vector<16x32xf32> to vector<16x16xf32>
    %361 = vector.extract_strided_slice %359 {offsets = [0, 0], sizes = [16, 16], strides = [1, 1]} : vector<16x32xf32> to vector<16x16xf32>
    %362 = arith.mulf %329, %361 : vector<16x16xf32>
    %363 = vector.shape_cast %362 : vector<16x16xf32> to vector<16x4x4xf32>
    %cst_134 = arith.constant dense<0.000000e+00> : vector<16x4xf32>
    %364 = vector.multi_reduction <add>, %363, %cst_134 [2] : vector<16x4x4xf32> to vector<16x4xf32>
    %365 = vector.extract_strided_slice %326 {offsets = [0, 3, 16], sizes = [2, 1, 32], strides = [1, 1, 1]} : vector<2x8x48xf32> to vector<2x1x32xf32>
    %366 = vector.shape_cast %365 : vector<2x1x32xf32> to vector<2x32xf32>
    %367 = vector.shape_cast %366 : vector<2x32xf32> to vector<2x1x32xf32>
    %368 = vector.shape_cast %367 : vector<2x1x32xf32> to vector<2x1x32xf32>
    %369 = vector.broadcast %368 : vector<2x1x32xf32> to vector<2x8x32xf32>
    %370 = vector.shape_cast %369 : vector<2x8x32xf32> to vector<16x32xf32>
    %371 = vector.extract_strided_slice %370 {offsets = [0, 16], sizes = [16, 16], strides = [1, 1]} : vector<16x32xf32> to vector<16x16xf32>
    %372 = vector.extract_strided_slice %370 {offsets = [0, 0], sizes = [16, 16], strides = [1, 1]} : vector<16x32xf32> to vector<16x16xf32>
    %373 = arith.mulf %329, %372 : vector<16x16xf32>
    %374 = vector.shape_cast %373 : vector<16x16xf32> to vector<16x4x4xf32>
    %cst_135 = arith.constant dense<0.000000e+00> : vector<16x4xf32>
    %375 = vector.multi_reduction <add>, %374, %cst_135 [2] : vector<16x4x4xf32> to vector<16x4xf32>
    %376 = vector.extract_strided_slice %326 {offsets = [0, 4, 16], sizes = [2, 1, 32], strides = [1, 1, 1]} : vector<2x8x48xf32> to vector<2x1x32xf32>
    %377 = vector.shape_cast %376 : vector<2x1x32xf32> to vector<2x32xf32>
    %378 = vector.shape_cast %377 : vector<2x32xf32> to vector<2x1x32xf32>
    %379 = vector.shape_cast %378 : vector<2x1x32xf32> to vector<2x1x32xf32>
    %380 = vector.broadcast %379 : vector<2x1x32xf32> to vector<2x8x32xf32>
    %381 = vector.shape_cast %380 : vector<2x8x32xf32> to vector<16x32xf32>
    %382 = vector.extract_strided_slice %381 {offsets = [0, 16], sizes = [16, 16], strides = [1, 1]} : vector<16x32xf32> to vector<16x16xf32>
    %383 = vector.extract_strided_slice %381 {offsets = [0, 0], sizes = [16, 16], strides = [1, 1]} : vector<16x32xf32> to vector<16x16xf32>
    %384 = arith.mulf %329, %383 : vector<16x16xf32>
    %385 = vector.shape_cast %384 : vector<16x16xf32> to vector<16x4x4xf32>
    %cst_136 = arith.constant dense<0.000000e+00> : vector<16x4xf32>
    %386 = vector.multi_reduction <add>, %385, %cst_136 [2] : vector<16x4x4xf32> to vector<16x4xf32>
    %387 = vector.extract_strided_slice %326 {offsets = [0, 5, 16], sizes = [2, 1, 32], strides = [1, 1, 1]} : vector<2x8x48xf32> to vector<2x1x32xf32>
    %388 = vector.shape_cast %387 : vector<2x1x32xf32> to vector<2x32xf32>
    %389 = vector.shape_cast %388 : vector<2x32xf32> to vector<2x1x32xf32>
    %390 = vector.shape_cast %389 : vector<2x1x32xf32> to vector<2x1x32xf32>
    %391 = vector.broadcast %390 : vector<2x1x32xf32> to vector<2x8x32xf32>
    %392 = vector.shape_cast %391 : vector<2x8x32xf32> to vector<16x32xf32>
    %393 = vector.extract_strided_slice %392 {offsets = [0, 16], sizes = [16, 16], strides = [1, 1]} : vector<16x32xf32> to vector<16x16xf32>
    %394 = vector.extract_strided_slice %392 {offsets = [0, 0], sizes = [16, 16], strides = [1, 1]} : vector<16x32xf32> to vector<16x16xf32>
    %395 = arith.mulf %329, %394 : vector<16x16xf32>
    %396 = vector.shape_cast %395 : vector<16x16xf32> to vector<16x4x4xf32>
    %cst_137 = arith.constant dense<0.000000e+00> : vector<16x4xf32>
    %397 = vector.multi_reduction <add>, %396, %cst_137 [2] : vector<16x4x4xf32> to vector<16x4xf32>
    %398 = vector.extract_strided_slice %326 {offsets = [0, 6, 16], sizes = [2, 1, 32], strides = [1, 1, 1]} : vector<2x8x48xf32> to vector<2x1x32xf32>
    %399 = vector.shape_cast %398 : vector<2x1x32xf32> to vector<2x32xf32>
    %400 = vector.shape_cast %399 : vector<2x32xf32> to vector<2x1x32xf32>
    %401 = vector.shape_cast %400 : vector<2x1x32xf32> to vector<2x1x32xf32>
    %402 = vector.broadcast %401 : vector<2x1x32xf32> to vector<2x8x32xf32>
    %403 = vector.shape_cast %402 : vector<2x8x32xf32> to vector<16x32xf32>
    %404 = vector.extract_strided_slice %403 {offsets = [0, 16], sizes = [16, 16], strides = [1, 1]} : vector<16x32xf32> to vector<16x16xf32>
    %405 = vector.extract_strided_slice %403 {offsets = [0, 0], sizes = [16, 16], strides = [1, 1]} : vector<16x32xf32> to vector<16x16xf32>
    %406 = arith.mulf %329, %405 : vector<16x16xf32>
    %407 = vector.shape_cast %406 : vector<16x16xf32> to vector<16x4x4xf32>
    %cst_138 = arith.constant dense<0.000000e+00> : vector<16x4xf32>
    %408 = vector.multi_reduction <add>, %407, %cst_138 [2] : vector<16x4x4xf32> to vector<16x4xf32>
    %409 = vector.extract_strided_slice %326 {offsets = [0, 7, 16], sizes = [2, 1, 32], strides = [1, 1, 1]} : vector<2x8x48xf32> to vector<2x1x32xf32>
    %410 = vector.shape_cast %409 : vector<2x1x32xf32> to vector<2x32xf32>
    %411 = vector.shape_cast %410 : vector<2x32xf32> to vector<2x1x32xf32>
    %412 = vector.shape_cast %411 : vector<2x1x32xf32> to vector<2x1x32xf32>
    %413 = vector.broadcast %412 : vector<2x1x32xf32> to vector<2x8x32xf32>
    %414 = vector.shape_cast %413 : vector<2x8x32xf32> to vector<16x32xf32>
    %415 = vector.extract_strided_slice %414 {offsets = [0, 16], sizes = [16, 16], strides = [1, 1]} : vector<16x32xf32> to vector<16x16xf32>
    %416 = vector.extract_strided_slice %414 {offsets = [0, 0], sizes = [16, 16], strides = [1, 1]} : vector<16x32xf32> to vector<16x16xf32>
    %417 = arith.mulf %329, %416 : vector<16x16xf32>
    %418 = vector.shape_cast %417 : vector<16x16xf32> to vector<16x4x4xf32>
    %cst_139 = arith.constant dense<0.000000e+00> : vector<16x4xf32>
    %419 = vector.multi_reduction <add>, %418, %cst_139 [2] : vector<16x4x4xf32> to vector<16x4xf32>
    %420 = vector.shape_cast %342 : vector<16x4xf32> to vector<16x4x1xf32>
    %421 = vector.shape_cast %353 : vector<16x4xf32> to vector<16x4x1xf32>
    %422 = vector.shape_cast %364 : vector<16x4xf32> to vector<16x4x1xf32>
    %423 = vector.shape_cast %375 : vector<16x4xf32> to vector<16x4x1xf32>
    %424 = vector.shape_cast %386 : vector<16x4xf32> to vector<16x4x1xf32>
    %425 = vector.shape_cast %397 : vector<16x4xf32> to vector<16x4x1xf32>
    %426 = vector.shape_cast %408 : vector<16x4xf32> to vector<16x4x1xf32>
    %427 = vector.shape_cast %419 : vector<16x4xf32> to vector<16x4x1xf32>
    %428 = tpu.concatenate %420, %421, %422, %423, %424, %425, %426, %427 in 2 : vector<16x4x1xf32>, vector<16x4x1xf32>, vector<16x4x1xf32>, vector<16x4x1xf32>, vector<16x4x1xf32>, vector<16x4x1xf32>, vector<16x4x1xf32>, vector<16x4x1xf32> -> vector<16x4x8xf32>
    %429 = vector.shape_cast %331 : vector<16x1xi1> to vector<16x1x1xi1>
    %cst_140 = arith.constant -1.000000e+09 : f32
    %430 = vector.shape_cast %429 : vector<16x1x1xi1> to vector<16x1x1xi1>
    %431 = vector.broadcast %430 : vector<16x1x1xi1> to vector<16x4x8xi1>
    %432 = vector.broadcast %cst_140 : f32 to vector<16x4x8xf32>
    %433 = arith.select %431, %428, %432 : vector<16x4x8xi1>, vector<16x4x8xf32>
    %cst_141 = arith.constant dense<0xFF800000> : vector<16x4xf32>
    %434 = vector.multi_reduction <maximumf>, %433, %cst_141 [2] : vector<16x4x8xf32> to vector<16x4xf32>
    %435 = vector.shape_cast %434 : vector<16x4xf32> to vector<16x4x1xf32>
    %436 = vector.broadcast %435 : vector<16x4x1xf32> to vector<16x4x8xf32>
    %437 = arith.subf %433, %436 : vector<16x4x8xf32>
    %438 = math.exp %437 : vector<16x4x8xf32>
    %cst_142 = arith.constant dense<0.000000e+00> : vector<16x4xf32>
    %439 = vector.multi_reduction <add>, %438, %cst_142 [2] : vector<16x4x8xf32> to vector<16x4xf32>
    %440 = vector.shape_cast %439 : vector<16x4xf32> to vector<16x4x1xf32>
    %441 = tpu.reciprocal %440 {approx = true} : vector<16x4x1xf32> -> vector<16x4x1xf32>
    %442 = vector.broadcast %441 : vector<16x4x1xf32> to vector<16x4x8xf32>
    %443 = arith.mulf %438, %442 : vector<16x4x8xf32>
    %cst_143 = arith.constant 0.000000e+00 : f32
    %444 = vector.broadcast %cst_143 : f32 to vector<16x16xf32>
    %445 = vector.extract_strided_slice %443 {offsets = [0, 0, 0], sizes = [16, 4, 1], strides = [1, 1, 1]} : vector<16x4x8xf32> to vector<16x4x1xf32>
    %446 = vector.shape_cast %445 : vector<16x4x1xf32> to vector<16x4xf32>
    %447 = vector.shape_cast %446 : vector<16x4xf32> to vector<16x4x1xf32>
    %448 = vector.shape_cast %447 : vector<16x4x1xf32> to vector<16x4x1xf32>
    %449 = vector.broadcast %448 : vector<16x4x1xf32> to vector<16x4x4xf32>
    %450 = vector.shape_cast %449 : vector<16x4x4xf32> to vector<16x16xf32>
    %451 = arith.mulf %450, %338 : vector<16x16xf32>
    %452 = arith.addf %444, %451 : vector<16x16xf32>
    %453 = vector.extract_strided_slice %443 {offsets = [0, 0, 1], sizes = [16, 4, 1], strides = [1, 1, 1]} : vector<16x4x8xf32> to vector<16x4x1xf32>
    %454 = vector.shape_cast %453 : vector<16x4x1xf32> to vector<16x4xf32>
    %455 = vector.shape_cast %454 : vector<16x4xf32> to vector<16x4x1xf32>
    %456 = vector.shape_cast %455 : vector<16x4x1xf32> to vector<16x4x1xf32>
    %457 = vector.broadcast %456 : vector<16x4x1xf32> to vector<16x4x4xf32>
    %458 = vector.shape_cast %457 : vector<16x4x4xf32> to vector<16x16xf32>
    %459 = arith.mulf %458, %349 : vector<16x16xf32>
    %460 = arith.addf %452, %459 : vector<16x16xf32>
    %461 = vector.extract_strided_slice %443 {offsets = [0, 0, 2], sizes = [16, 4, 1], strides = [1, 1, 1]} : vector<16x4x8xf32> to vector<16x4x1xf32>
    %462 = vector.shape_cast %461 : vector<16x4x1xf32> to vector<16x4xf32>
    %463 = vector.shape_cast %462 : vector<16x4xf32> to vector<16x4x1xf32>
    %464 = vector.shape_cast %463 : vector<16x4x1xf32> to vector<16x4x1xf32>
    %465 = vector.broadcast %464 : vector<16x4x1xf32> to vector<16x4x4xf32>
    %466 = vector.shape_cast %465 : vector<16x4x4xf32> to vector<16x16xf32>
    %467 = arith.mulf %466, %360 : vector<16x16xf32>
    %468 = arith.addf %460, %467 : vector<16x16xf32>
    %469 = vector.extract_strided_slice %443 {offsets = [0, 0, 3], sizes = [16, 4, 1], strides = [1, 1, 1]} : vector<16x4x8xf32> to vector<16x4x1xf32>
    %470 = vector.shape_cast %469 : vector<16x4x1xf32> to vector<16x4xf32>
    %471 = vector.shape_cast %470 : vector<16x4xf32> to vector<16x4x1xf32>
    %472 = vector.shape_cast %471 : vector<16x4x1xf32> to vector<16x4x1xf32>
    %473 = vector.broadcast %472 : vector<16x4x1xf32> to vector<16x4x4xf32>
    %474 = vector.shape_cast %473 : vector<16x4x4xf32> to vector<16x16xf32>
    %475 = arith.mulf %474, %371 : vector<16x16xf32>
    %476 = arith.addf %468, %475 : vector<16x16xf32>
    %477 = vector.extract_strided_slice %443 {offsets = [0, 0, 4], sizes = [16, 4, 1], strides = [1, 1, 1]} : vector<16x4x8xf32> to vector<16x4x1xf32>
    %478 = vector.shape_cast %477 : vector<16x4x1xf32> to vector<16x4xf32>
    %479 = vector.shape_cast %478 : vector<16x4xf32> to vector<16x4x1xf32>
    %480 = vector.shape_cast %479 : vector<16x4x1xf32> to vector<16x4x1xf32>
    %481 = vector.broadcast %480 : vector<16x4x1xf32> to vector<16x4x4xf32>
    %482 = vector.shape_cast %481 : vector<16x4x4xf32> to vector<16x16xf32>
    %483 = arith.mulf %482, %382 : vector<16x16xf32>
    %484 = arith.addf %476, %483 : vector<16x16xf32>
    %485 = vector.extract_strided_slice %443 {offsets = [0, 0, 5], sizes = [16, 4, 1], strides = [1, 1, 1]} : vector<16x4x8xf32> to vector<16x4x1xf32>
    %486 = vector.shape_cast %485 : vector<16x4x1xf32> to vector<16x4xf32>
    %487 = vector.shape_cast %486 : vector<16x4xf32> to vector<16x4x1xf32>
    %488 = vector.shape_cast %487 : vector<16x4x1xf32> to vector<16x4x1xf32>
    %489 = vector.broadcast %488 : vector<16x4x1xf32> to vector<16x4x4xf32>
    %490 = vector.shape_cast %489 : vector<16x4x4xf32> to vector<16x16xf32>
    %491 = arith.mulf %490, %393 : vector<16x16xf32>
    %492 = arith.addf %484, %491 : vector<16x16xf32>
    %493 = vector.extract_strided_slice %443 {offsets = [0, 0, 6], sizes = [16, 4, 1], strides = [1, 1, 1]} : vector<16x4x8xf32> to vector<16x4x1xf32>
    %494 = vector.shape_cast %493 : vector<16x4x1xf32> to vector<16x4xf32>
    %495 = vector.shape_cast %494 : vector<16x4xf32> to vector<16x4x1xf32>
    %496 = vector.shape_cast %495 : vector<16x4x1xf32> to vector<16x4x1xf32>
    %497 = vector.broadcast %496 : vector<16x4x1xf32> to vector<16x4x4xf32>
    %498 = vector.shape_cast %497 : vector<16x4x4xf32> to vector<16x16xf32>
    %499 = arith.mulf %498, %404 : vector<16x16xf32>
    %500 = arith.addf %492, %499 : vector<16x16xf32>
    %501 = vector.extract_strided_slice %443 {offsets = [0, 0, 7], sizes = [16, 4, 1], strides = [1, 1, 1]} : vector<16x4x8xf32> to vector<16x4x1xf32>
    %502 = vector.shape_cast %501 : vector<16x4x1xf32> to vector<16x4xf32>
    %503 = vector.shape_cast %502 : vector<16x4xf32> to vector<16x4x1xf32>
    %504 = vector.shape_cast %503 : vector<16x4x1xf32> to vector<16x4x1xf32>
    %505 = vector.broadcast %504 : vector<16x4x1xf32> to vector<16x4x4xf32>
    %506 = vector.shape_cast %505 : vector<16x4x4xf32> to vector<16x16xf32>
    %507 = arith.mulf %506, %415 : vector<16x16xf32>
    %508 = arith.addf %500, %507 : vector<16x16xf32>
    %c0_144 = arith.constant 0 : index
    %c0_145 = arith.constant 0 : index
    %509 = vector.load %arg20[%c0_144, %c0_145] : memref<16x16xbf16, #tpu.memory_space<vmem>>, vector<16x16xbf16>
    %510 = arith.truncf %508 : vector<16x16xf32> to vector<16x16xbf16>
    %cst_146 = arith.constant dense<0.000000e+00> : vector<16x16xf32>
    %511 = tpu.matmul %510, %509, %cst_146 {dimension_numbers = #tpu.dot_dimension_numbers<[1], [0], [0], [1], [0, 0, 1, 1], [], []>} : vector<16x16xbf16>, vector<16x16xbf16>, vector<16x16xf32> -> vector<16x16xf32>
    %512 = arith.addf %511, %322 : vector<16x16xf32>
    %cst_147 = arith.constant dense<0.000000e+00> : vector<16xf32>
    %513 = vector.multi_reduction <add>, %512, %cst_147 [1] : vector<16x16xf32> to vector<16xf32>
    %514 = vector.shape_cast %513 : vector<16xf32> to vector<16x1xf32>
    %cst_148 = arith.constant 1.600000e+01 : f32
    %515 = vector.broadcast %cst_148 : f32 to vector<16x1xf32>
    %516 = arith.divf %514, %515 : vector<16x1xf32>
    %517 = vector.broadcast %516 : vector<16x1xf32> to vector<16x16xf32>
    %518 = arith.subf %512, %517 : vector<16x16xf32>
    %519 = arith.mulf %518, %518 : vector<16x16xf32>
    %cst_149 = arith.constant dense<0.000000e+00> : vector<16xf32>
    %520 = vector.multi_reduction <add>, %519, %cst_149 [1] : vector<16x16xf32> to vector<16xf32>
    %521 = vector.shape_cast %520 : vector<16xf32> to vector<16x1xf32>
    %cst_150 = arith.constant 1.600000e+01 : f32
    %522 = vector.broadcast %cst_150 : f32 to vector<16x1xf32>
    %523 = arith.divf %521, %522 : vector<16x1xf32>
    %524 = vector.broadcast %516 : vector<16x1xf32> to vector<16x16xf32>
    %525 = arith.subf %512, %524 : vector<16x16xf32>
    %cst_151 = arith.constant 9.99999997E-7 : f32
    %526 = vector.broadcast %cst_151 : f32 to vector<16x1xf32>
    %527 = arith.addf %523, %526 : vector<16x1xf32>
    %528 = math.rsqrt %527 : vector<16x1xf32>
    %529 = vector.broadcast %528 : vector<16x1xf32> to vector<16x16xf32>
    %530 = arith.mulf %525, %529 : vector<16x16xf32>
    %c0_152 = arith.constant 0 : index
    %c0_153 = arith.constant 0 : index
    %531 = vector.load %arg21[%c0_152, %c0_153] : memref<2x16xbf16, #tpu.memory_space<vmem>>, vector<1x16xbf16>
    %532 = arith.extf %531 : vector<1x16xbf16> to vector<1x16xf32>
    %533 = vector.broadcast %532 : vector<1x16xf32> to vector<16x16xf32>
    %534 = arith.mulf %530, %533 : vector<16x16xf32>
    %c1 = arith.constant 1 : index
    %c0_154 = arith.constant 0 : index
    %535 = vector.load %arg21[%c1, %c0_154] : memref<2x16xbf16, #tpu.memory_space<vmem>>, vector<1x16xbf16>
    %536 = arith.extf %535 : vector<1x16xbf16> to vector<1x16xf32>
    %537 = vector.broadcast %536 : vector<1x16xf32> to vector<16x16xf32>
    %538 = arith.addf %534, %537 : vector<16x16xf32>
    %c0_155 = arith.constant 0 : index
    %c0_156 = arith.constant 0 : index
    %539 = vector.load %arg22[%c0_155, %c0_156] : memref<17x16xbf16, #tpu.memory_space<vmem>>, vector<16x16xbf16>
    %540 = arith.truncf %538 : vector<16x16xf32> to vector<16x16xbf16>
    %cst_157 = arith.constant dense<0.000000e+00> : vector<16x16xf32>
    %541 = tpu.matmul %540, %539, %cst_157 {dimension_numbers = #tpu.dot_dimension_numbers<[1], [0], [0], [1], [0, 0, 1, 1], [], []>} : vector<16x16xbf16>, vector<16x16xbf16>, vector<16x16xf32> -> vector<16x16xf32>
    %c16_158 = arith.constant 16 : index
    %c0_159 = arith.constant 0 : index
    %542 = vector.load %arg22[%c16_158, %c0_159] : memref<17x16xbf16, #tpu.memory_space<vmem>>, vector<1x16xbf16>
    %543 = arith.extf %542 : vector<1x16xbf16> to vector<1x16xf32>
    %544 = vector.broadcast %543 : vector<1x16xf32> to vector<16x16xf32>
    %545 = arith.addf %541, %544 : vector<16x16xf32>
    %cst_160 = arith.constant 0.000000e+00 : f32
    %546 = vector.broadcast %cst_160 : f32 to vector<16x16xf32>
    %547 = arith.cmpf ogt, %545, %546 : vector<16x16xf32>
    %cst_161 = arith.constant 0.000000e+00 : f32
    %548 = vector.broadcast %cst_161 : f32 to vector<16x16xf32>
    %549 = arith.minimumf %545, %548 : vector<16x16xf32>
    %550 = math.exp %549 : vector<16x16xf32>
    %cst_162 = arith.constant 1.000000e+00 : f32
    %551 = vector.broadcast %cst_162 : f32 to vector<16x16xf32>
    %552 = arith.subf %550, %551 : vector<16x16xf32>
    %553 = arith.select %547, %545, %552 : vector<16x16xi1>, vector<16x16xf32>
    %c0_163 = arith.constant 0 : index
    %c0_164 = arith.constant 0 : index
    %554 = vector.load %arg23[%c0_163, %c0_164] : memref<17x1xbf16, #tpu.memory_space<vmem>>, vector<16x1xbf16>
    %555 = arith.truncf %553 : vector<16x16xf32> to vector<16x16xbf16>
    %cst_165 = arith.constant dense<0.000000e+00> : vector<16x1xf32>
    %556 = tpu.matmul %555, %554, %cst_165 {dimension_numbers = #tpu.dot_dimension_numbers<[1], [0], [0], [1], [0, 0, 1, 1], [], []>} : vector<16x16xbf16>, vector<16x1xbf16>, vector<16x1xf32> -> vector<16x1xf32>
    %c16_166 = arith.constant 16 : index
    %c0_167 = arith.constant 0 : index
    %557 = vector.load %arg23[%c16_166, %c0_167] : memref<17x1xbf16, #tpu.memory_space<vmem>>, vector<1x1xbf16>
    %558 = arith.extf %557 : vector<1x1xbf16> to vector<1x1xf32>
    %559 = vector.broadcast %558 : vector<1x1xf32> to vector<16x1xf32>
    %560 = arith.addf %556, %559 : vector<16x1xf32>
    %cst_168 = arith.constant 0.000000e+00 : f32
    %561 = vector.broadcast %cst_168 : f32 to vector<16x1xf32>
    %562 = arith.maximumf %560, %561 : vector<16x1xf32>
    %cst_169 = arith.constant 1.000000e+00 : f32
    %563 = vector.broadcast %cst_169 : f32 to vector<16x1xf32>
    %564 = arith.cmpf olt, %101, %563 : vector<16x1xf32>
    %cst_170 = arith.constant 0.000000e+00 : f32
    %565 = vector.broadcast %cst_170 : f32 to vector<16x1xf32>
    %566 = arith.select %564, %565, %562 : vector<16x1xi1>, vector<16x1xf32>
    %c0_171 = arith.constant 0 : index
    %c0_172 = arith.constant 0 : index
    %567 = vector.load %arg24[%c0_171, %c0_172] : memref<38x16xbf16, #tpu.memory_space<vmem>>, vector<32x16xbf16>
    %568 = vector.shape_cast %217 : vector<3x16x32xbf16> to vector<48x32xbf16>
    %cst_173 = arith.constant dense<0.000000e+00> : vector<48x16xf32>
    %569 = tpu.matmul %568, %567, %cst_173 {dimension_numbers = #tpu.dot_dimension_numbers<[1], [0], [0], [1], [0, 0, 1, 1], [], []>} : vector<48x32xbf16>, vector<32x16xbf16>, vector<48x16xf32> -> vector<48x16xf32>
    %570 = vector.shape_cast %569 : vector<48x16xf32> to vector<3x16x16xf32>
    %c32_174 = arith.constant 32 : index
    %c0_175 = arith.constant 0 : index
    %571 = vector.load %arg24[%c32_174, %c0_175] : memref<38x16xbf16, #tpu.memory_space<vmem>>, vector<1x16xbf16>
    %572 = arith.extf %571 : vector<1x16xbf16> to vector<1x16xf32>
    %573 = vector.shape_cast %572 : vector<1x16xf32> to vector<1x1x16xf32>
    %574 = vector.broadcast %253 : vector<3x16x1xf32> to vector<3x16x16xf32>
    %575 = vector.broadcast %573 : vector<1x1x16xf32> to vector<3x16x16xf32>
    %576 = arith.mulf %574, %575 : vector<3x16x16xf32>
    %577 = arith.addf %570, %576 : vector<3x16x16xf32>
    %c33_176 = arith.constant 33 : index
    %c0_177 = arith.constant 0 : index
    %578 = vector.load %arg24[%c33_176, %c0_177] : memref<38x16xbf16, #tpu.memory_space<vmem>>, vector<4x16xbf16>
    %579 = vector.shape_cast %19 : vector<3x16x4xbf16> to vector<48x4xbf16>
    %cst_178 = arith.constant dense<0.000000e+00> : vector<48x16xf32>
    %580 = tpu.matmul %579, %578, %cst_178 {dimension_numbers = #tpu.dot_dimension_numbers<[1], [0], [0], [1], [0, 0, 1, 1], [], []>} : vector<48x4xbf16>, vector<4x16xbf16>, vector<48x16xf32> -> vector<48x16xf32>
    %581 = vector.shape_cast %580 : vector<48x16xf32> to vector<3x16x16xf32>
    %582 = arith.addf %577, %581 : vector<3x16x16xf32>
    %c37 = arith.constant 37 : index
    %c0_179 = arith.constant 0 : index
    %583 = vector.load %arg24[%c37, %c0_179] : memref<38x16xbf16, #tpu.memory_space<vmem>>, vector<1x16xbf16>
    %584 = arith.extf %583 : vector<1x16xbf16> to vector<1x16xf32>
    %585 = vector.shape_cast %584 : vector<1x16xf32> to vector<1x1x16xf32>
    %586 = vector.broadcast %585 : vector<1x1x16xf32> to vector<3x16x16xf32>
    %587 = arith.addf %582, %586 : vector<3x16x16xf32>
    %588 = arith.truncf %587 : vector<3x16x16xf32> to vector<3x16x16xbf16>
    %cst_180 = arith.constant 0.000000e+00 : bf16
    %589 = vector.broadcast %cst_180 : bf16 to vector<3x16x16xbf16>
    %590 = arith.cmpf ogt, %588, %589 : vector<3x16x16xbf16>
    %cst_181 = arith.constant 0.000000e+00 : bf16
    %591 = vector.broadcast %cst_181 : bf16 to vector<3x16x16xbf16>
    %592 = arith.minimumf %588, %591 : vector<3x16x16xbf16>
    %593 = math.exp %592 : vector<3x16x16xbf16>
    %cst_182 = arith.constant 1.000000e+00 : bf16
    %594 = vector.broadcast %cst_182 : bf16 to vector<3x16x16xbf16>
    %595 = arith.subf %593, %594 : vector<3x16x16xbf16>
    %596 = arith.select %590, %588, %595 : vector<3x16x16xi1>, vector<3x16x16xbf16>
    %c0_183 = arith.constant 0 : index
    %c0_184 = arith.constant 0 : index
    %597 = vector.load %arg25[%c0_183, %c0_184] : memref<17x8xbf16, #tpu.memory_space<vmem>>, vector<16x8xbf16>
    %598 = vector.shape_cast %596 : vector<3x16x16xbf16> to vector<48x16xbf16>
    %cst_185 = arith.constant dense<0.000000e+00> : vector<48x8xf32>
    %599 = tpu.matmul %598, %597, %cst_185 {dimension_numbers = #tpu.dot_dimension_numbers<[1], [0], [0], [1], [0, 0, 1, 1], [], []>} : vector<48x16xbf16>, vector<16x8xbf16>, vector<48x8xf32> -> vector<48x8xf32>
    %600 = vector.shape_cast %599 : vector<48x8xf32> to vector<3x16x8xf32>
    %601 = arith.truncf %600 : vector<3x16x8xf32> to vector<3x16x8xbf16>
    %c16_186 = arith.constant 16 : index
    %c0_187 = arith.constant 0 : index
    %602 = vector.load %arg25[%c16_186, %c0_187] : memref<17x8xbf16, #tpu.memory_space<vmem>>, vector<1x8xbf16>
    %603 = vector.shape_cast %602 : vector<1x8xbf16> to vector<1x1x8xbf16>
    %604 = vector.broadcast %603 : vector<1x1x8xbf16> to vector<3x16x8xbf16>
    %605 = arith.addf %601, %604 : vector<3x16x8xbf16>
    %cst_188 = arith.constant 0.000000e+00 : bf16
    %606 = vector.broadcast %cst_188 : bf16 to vector<3x16x8xbf16>
    %607 = arith.cmpf ogt, %605, %606 : vector<3x16x8xbf16>
    %cst_189 = arith.constant 0.000000e+00 : bf16
    %608 = vector.broadcast %cst_189 : bf16 to vector<3x16x8xbf16>
    %609 = arith.minimumf %605, %608 : vector<3x16x8xbf16>
    %610 = math.exp %609 : vector<3x16x8xbf16>
    %cst_190 = arith.constant 1.000000e+00 : bf16
    %611 = vector.broadcast %cst_190 : bf16 to vector<3x16x8xbf16>
    %612 = arith.subf %610, %611 : vector<3x16x8xbf16>
    %613 = arith.select %607, %605, %612 : vector<3x16x8xi1>, vector<3x16x8xbf16>
    %c0_191 = arith.constant 0 : index
    %c0_192 = arith.constant 0 : index
    %614 = vector.load %arg26[%c0_191, %c0_192] : memref<9x1xbf16, #tpu.memory_space<vmem>>, vector<8x1xbf16>
    %615 = vector.shape_cast %613 : vector<3x16x8xbf16> to vector<48x8xbf16>
    %cst_193 = arith.constant dense<0.000000e+00> : vector<48x1xf32>
    %616 = tpu.matmul %615, %614, %cst_193 {dimension_numbers = #tpu.dot_dimension_numbers<[1], [0], [0], [1], [0, 0, 1, 1], [], []>} : vector<48x8xbf16>, vector<8x1xbf16>, vector<48x1xf32> -> vector<48x1xf32>
    %617 = vector.shape_cast %616 : vector<48x1xf32> to vector<3x16x1xf32>
    %c8 = arith.constant 8 : index
    %c0_194 = arith.constant 0 : index
    %618 = vector.load %arg26[%c8, %c0_194] : memref<9x1xbf16, #tpu.memory_space<vmem>>, vector<1x1xbf16>
    %619 = arith.extf %618 : vector<1x1xbf16> to vector<1x1xf32>
    %620 = vector.shape_cast %619 : vector<1x1xf32> to vector<1x1x1xf32>
    %621 = vector.broadcast %620 : vector<1x1x1xf32> to vector<3x16x1xf32>
    %622 = arith.addf %617, %621 : vector<3x16x1xf32>
    %cst_195 = arith.constant 0.000000e+00 : f32
    %623 = vector.broadcast %cst_195 : f32 to vector<3x16x1xf32>
    %624 = arith.cmpf oeq, %6, %623 : vector<3x16x1xf32>
    %cst_196 = arith.constant -1.000000e+09 : f32
    %625 = vector.broadcast %cst_196 : f32 to vector<3x16x1xf32>
    %626 = arith.select %624, %625, %622 : vector<3x16x1xi1>, vector<3x16x1xf32>
    %cst_197 = arith.constant dense<0xFF800000> : vector<16x1xf32>
    %627 = vector.multi_reduction <maximumf>, %626, %cst_197 [0] : vector<3x16x1xf32> to vector<16x1xf32>
    %628 = vector.shape_cast %627 : vector<16x1xf32> to vector<1x16x1xf32>
    %629 = vector.broadcast %628 : vector<1x16x1xf32> to vector<3x16x1xf32>
    %630 = arith.subf %626, %629 : vector<3x16x1xf32>
    %631 = math.exp %630 : vector<3x16x1xf32>
    %cst_198 = arith.constant dense<0.000000e+00> : vector<16x1xf32>
    %632 = vector.multi_reduction <add>, %631, %cst_198 [0] : vector<3x16x1xf32> to vector<16x1xf32>
    %633 = tpu.reciprocal %632 {approx = true} : vector<16x1xf32> -> vector<16x1xf32>
    %634 = vector.shape_cast %633 : vector<16x1xf32> to vector<1x16x1xf32>
    %635 = vector.broadcast %634 : vector<1x16x1xf32> to vector<3x16x1xf32>
    %636 = arith.mulf %631, %635 : vector<3x16x1xf32>
    %637 = vector.extract_strided_slice %100 {offsets = [0, 0, 0], sizes = [3, 16, 3], strides = [1, 1, 1]} : vector<3x16x35xbf16> to vector<3x16x3xbf16>
    %638 = arith.extf %637 : vector<3x16x3xbf16> to vector<3x16x3xf32>
    %639 = vector.broadcast %636 : vector<3x16x1xf32> to vector<3x16x3xf32>
    %640 = arith.mulf %638, %639 : vector<3x16x3xf32>
    %cst_199 = arith.constant dense<0.000000e+00> : vector<16x3xf32>
    %641 = vector.multi_reduction <add>, %640, %cst_199 [0] : vector<3x16x3xf32> to vector<16x3xf32>
    %642 = vector.shape_cast %641 : vector<16x3xf32> to vector<2x8x3xf32>
    %643 = vector.shape_cast %566 : vector<16x1xf32> to vector<2x8x1xf32>
    %644 = tpu.concatenate %642, %643 in 2 : vector<2x8x3xf32>, vector<2x8x1xf32> -> vector<2x8x4xf32>
    %c0_200 = arith.constant 0 : index
    %c0_201 = arith.constant 0 : index
    %c0_202 = arith.constant 0 : index
    %645 = vector.load %arg27[%c0_200, %c0_201, %c0_202] : memref<2x8x4xf32, #tpu.memory_space<vmem>>, vector<2x8x4xf32>
    tpu.vector_store %arg27[%c0_200, %c0_201, %c0_202], %644 {strides = array<i32>} : memref<2x8x4xf32, #tpu.memory_space<vmem>>, vector<2x8x4xf32>,
    return
  }
  func.func @transform_0(%arg0: i32) -> (i32, i32, i32) {
    %c0_i32 = arith.constant 0 : i32
    %c0_i32_0 = arith.constant 0 : i32
    %c0_i32_1 = arith.constant 0 : i32
    return %c0_i32, %arg0, %c0_i32_0 : i32, i32, i32
  }
  func.func @transform_1(%arg0: i32) -> (i32, i32, i32) {
    %c0_i32 = arith.constant 0 : i32
    %c0_i32_0 = arith.constant 0 : i32
    %c0_i32_1 = arith.constant 0 : i32
    return %c0_i32, %arg0, %c0_i32_0 : i32, i32, i32
  }
  func.func @transform_2(%arg0: i32) -> (i32, i32, i32) {
    %c0_i32 = arith.constant 0 : i32
    %c0_i32_0 = arith.constant 0 : i32
    %c0_i32_1 = arith.constant 0 : i32
    return %c0_i32, %arg0, %c0_i32_0 : i32, i32, i32
  }
  func.func @transform_3(%arg0: i32) -> (i32, i32) {
    %c0_i32 = arith.constant 0 : i32
    %c0_i32_0 = arith.constant 0 : i32
    return %arg0, %c0_i32 : i32, i32
  }
  func.func @transform_4(%arg0: i32) -> (i32, i32) {
    %c0_i32 = arith.constant 0 : i32
    %c0_i32_0 = arith.constant 0 : i32
    %c0_i32_1 = arith.constant 0 : i32
    return %c0_i32, %c0_i32_0 : i32, i32
  }
  func.func @transform_5(%arg0: i32) -> (i32, i32) {
    %c0_i32 = arith.constant 0 : i32
    %c0_i32_0 = arith.constant 0 : i32
    %c0_i32_1 = arith.constant 0 : i32
    return %c0_i32, %c0_i32_0 : i32, i32
  }
  func.func @transform_6(%arg0: i32) -> (i32, i32) {
    %c0_i32 = arith.constant 0 : i32
    %c0_i32_0 = arith.constant 0 : i32
    %c0_i32_1 = arith.constant 0 : i32
    return %c0_i32, %c0_i32_0 : i32, i32
  }
  func.func @transform_7(%arg0: i32) -> (i32, i32) {
    %c0_i32 = arith.constant 0 : i32
    %c0_i32_0 = arith.constant 0 : i32
    %c0_i32_1 = arith.constant 0 : i32
    return %c0_i32, %c0_i32_0 : i32, i32
  }
  func.func @transform_8(%arg0: i32) -> (i32, i32) {
    %c0_i32 = arith.constant 0 : i32
    %c0_i32_0 = arith.constant 0 : i32
    %c0_i32_1 = arith.constant 0 : i32
    return %c0_i32, %c0_i32_0 : i32, i32
  }
  func.func @transform_9(%arg0: i32) -> (i32, i32) {
    %c0_i32 = arith.constant 0 : i32
    %c0_i32_0 = arith.constant 0 : i32
    %c0_i32_1 = arith.constant 0 : i32
    return %c0_i32, %c0_i32_0 : i32, i32
  }
  func.func @transform_10(%arg0: i32) -> (i32, i32) {
    %c0_i32 = arith.constant 0 : i32
    %c0_i32_0 = arith.constant 0 : i32
    %c0_i32_1 = arith.constant 0 : i32
    return %c0_i32, %c0_i32_0 : i32, i32
  }
  func.func @transform_11(%arg0: i32) -> (i32, i32) {
    %c0_i32 = arith.constant 0 : i32
    %c0_i32_0 = arith.constant 0 : i32
    %c0_i32_1 = arith.constant 0 : i32
    return %c0_i32, %c0_i32_0 : i32, i32
  }
  func.func @transform_12(%arg0: i32) -> (i32, i32) {
    %c0_i32 = arith.constant 0 : i32
    %c0_i32_0 = arith.constant 0 : i32
    %c0_i32_1 = arith.constant 0 : i32
    return %c0_i32, %c0_i32_0 : i32, i32
  }
  func.func @transform_13(%arg0: i32) -> (i32, i32) {
    %c0_i32 = arith.constant 0 : i32
    %c0_i32_0 = arith.constant 0 : i32
    %c0_i32_1 = arith.constant 0 : i32
    return %c0_i32, %c0_i32_0 : i32, i32
  }
  func.func @transform_14(%arg0: i32) -> (i32, i32) {
    %c0_i32 = arith.constant 0 : i32
    %c0_i32_0 = arith.constant 0 : i32
    %c0_i32_1 = arith.constant 0 : i32
    return %c0_i32, %c0_i32_0 : i32, i32
  }
  func.func @transform_15(%arg0: i32) -> (i32, i32) {
    %c0_i32 = arith.constant 0 : i32
    %c0_i32_0 = arith.constant 0 : i32
    %c0_i32_1 = arith.constant 0 : i32
    return %c0_i32, %c0_i32_0 : i32, i32
  }
  func.func @transform_16(%arg0: i32) -> (i32, i32) {
    %c0_i32 = arith.constant 0 : i32
    %c0_i32_0 = arith.constant 0 : i32
    %c0_i32_1 = arith.constant 0 : i32
    return %c0_i32, %c0_i32_0 : i32, i32
  }
  func.func @transform_17(%arg0: i32) -> (i32, i32) {
    %c0_i32 = arith.constant 0 : i32
    %c0_i32_0 = arith.constant 0 : i32
    %c0_i32_1 = arith.constant 0 : i32
    return %c0_i32, %c0_i32_0 : i32, i32
  }
  func.func @transform_18(%arg0: i32) -> (i32, i32) {
    %c0_i32 = arith.constant 0 : i32
    %c0_i32_0 = arith.constant 0 : i32
    %c0_i32_1 = arith.constant 0 : i32
    return %c0_i32, %c0_i32_0 : i32, i32
  }
  func.func @transform_19(%arg0: i32) -> (i32, i32) {
    %c0_i32 = arith.constant 0 : i32
    %c0_i32_0 = arith.constant 0 : i32
    %c0_i32_1 = arith.constant 0 : i32
    return %c0_i32, %c0_i32_0 : i32, i32
  }
  func.func @transform_20(%arg0: i32) -> (i32, i32) {
    %c0_i32 = arith.constant 0 : i32
    %c0_i32_0 = arith.constant 0 : i32
    %c0_i32_1 = arith.constant 0 : i32
    return %c0_i32, %c0_i32_0 : i32, i32
  }
  func.func @transform_21(%arg0: i32) -> (i32, i32) {
    %c0_i32 = arith.constant 0 : i32
    %c0_i32_0 = arith.constant 0 : i32
    %c0_i32_1 = arith.constant 0 : i32
    return %c0_i32, %c0_i32_0 : i32, i32
  }
  func.func @transform_22(%arg0: i32) -> (i32, i32) {
    %c0_i32 = arith.constant 0 : i32
    %c0_i32_0 = arith.constant 0 : i32
    %c0_i32_1 = arith.constant 0 : i32
    return %c0_i32, %c0_i32_0 : i32, i32
  }
  func.func @transform_23(%arg0: i32) -> (i32, i32) {
    %c0_i32 = arith.constant 0 : i32
    %c0_i32_0 = arith.constant 0 : i32
    %c0_i32_1 = arith.constant 0 : i32
    return %c0_i32, %c0_i32_0 : i32, i32
  }
  func.func @transform_24(%arg0: i32) -> (i32, i32) {
    %c0_i32 = arith.constant 0 : i32
    %c0_i32_0 = arith.constant 0 : i32
    %c0_i32_1 = arith.constant 0 : i32
    return %c0_i32, %c0_i32_0 : i32, i32
  }
  func.func @transform_25(%arg0: i32) -> (i32, i32) {
    %c0_i32 = arith.constant 0 : i32
    %c0_i32_0 = arith.constant 0 : i32
    %c0_i32_1 = arith.constant 0 : i32
    return %c0_i32, %c0_i32_0 : i32, i32
  }
  func.func @transform_26(%arg0: i32) -> (i32, i32, i32) {
    %c0_i32 = arith.constant 0 : i32
    %c0_i32_0 = arith.constant 0 : i32
    %c0_i32_1 = arith.constant 0 : i32
    return %arg0, %c0_i32, %c0_i32_0 : i32, i32, i32
  }
}

</mosaic_0001>

<bundles_post_ra>
// kernel: tpu_custom_call.1
= control target key start
LH: loop header
LB: loop body
LE: loop exit
PB: predicated region body
PF: predicated region fallthrough
CT: control target
= control target key end

     0   :  { %s15333_s0 = inlined_call_operand.hbm [shape: bf16[3,32,35], index: 0, kind: input, shape index: {}]   ;;  %s15334_s1 = inlined_call_operand.hbm [shape: bf16[3,32,32], index: 1, kind: input, shape index: {}]   ;;  %s15335_s2 = inlined_call_operand.hbm [shape: bf16[3,32,6], index: 2, kind: input, shape index: {}]   ;;  %s15336_s3 = inlined_call_operand.hbm [shape: f32[32,3], index: 3, kind: input, shape index: {}]   ;;  %s15337_s4 = inlined_call_operand.hbm [shape: f32[8,16], index: 4, kind: input, shape index: {}]   ;;  %s15338_s5 = inlined_call_operand.hbm [shape: bf16[35,32], index: 5, kind: input, shape index: {}]   ;;  %s15339_s6 = inlined_call_operand.hbm [shape: bf16[33,32], index: 6, kind: input, shape index: {}]   ;;  %s15340_s7 = inlined_call_operand.hbm [shape: bf16[5,16], index: 7, kind: input, shape index: {}]   ;;  %s15341_s8 = inlined_call_operand.hbm [shape: bf16[17,35], index: 8, kind: input, shape index: {}]   ;;  %s15342_s9 = inlined_call_operand.hbm [shape: bf16[70,64], index: 9, kind: input, shape index: {}]   ;;  %s15343_s10 = inlined_call_operand.hbm [shape: bf16[68,64], index: 10, kind: input, shape index: {}]   ;;  %s15344_s11 = inlined_call_operand.hbm [shape: bf16[65,32], index: 11, kind: input, shape index: {}]   ;;  %s15345_s12 = inlined_call_operand.hbm [shape: bf16[33,32], index: 12, kind: input, shape index: {}]   ;;  %s15346_s13 = inlined_call_operand.hbm [shape: bf16[33,33], index: 13, kind: input, shape index: {}]   ;;  %s15347_s14 = inlined_call_operand.hbm [shape: bf16[33,32], index: 14, kind: input, shape index: {}]   ;;  %s15348_s15 = inlined_call_operand.hbm [shape: bf16[33,1], index: 15, kind: input, shape index: {}]   ;;  %s15349_s16 = inlined_call_operand.hbm [shape: bf16[66,64], index: 16, kind: input, shape index: {}]   ;;  %s15350_s17 = inlined_call_operand.hbm [shape: bf16[65,16], index: 17, kind: input, shape index: {}]   ;;  %s15351_s18 = inlined_call_operand.hbm [shape: bf16[16,48], index: 18, kind: input, shape index: {}]   ;;  %s15352_s19 = inlined_call_operand.hbm [shape: bf16[16,16], index: 19, kind: input, shape index: {}]   ;;  %s15353_s20 = inlined_call_operand.hbm [shape: bf16[2,16], index: 20, kind: input, shape index: {}]   ;;  %s15354_s21 = inlined_call_operand.hbm [shape: bf16[17,16], index: 21, kind: input, shape index: {}]   ;;  %s15355_s22 = inlined_call_operand.hbm [shape: bf16[17,1], index: 22, kind: input, shape index: {}]   ;;  %s15356_s23 = inlined_call_operand.hbm [shape: bf16[38,16], index: 23, kind: input, shape index: {}]   ;;  %s15357_s24 = inlined_call_operand.hbm [shape: bf16[17,8], index: 24, kind: input, shape index: {}]   ;;  %s15358_s25 = inlined_call_operand.hbm [shape: bf16[9,1], index: 25, kind: input, shape index: {}]   ;;  %s15359_s26 = inlined_call_operand.hbm [shape: f32[4,8,4], index: 26, kind: output, shape index: {}]  }
   0x1   :  { %15470 = sst [smem:[#allocation143_spill]] %s15333_s0 }
   0x2   :  { %15471 = sst [smem:[#allocation144_spill]] %s15334_s1 }
   0x3   :  { %15472 = sst [smem:[#allocation145_spill]] %s15335_s2 }
   0x4   :  { %15473 = sst [smem:[#allocation146_spill]] %s15336_s3 }
   0x5   :  { %15474 = sst [smem:[#allocation147_spill]] %s15337_s4 }
   0x6   :  { %15475 = sst [smem:[#allocation148_spill]] %s15338_s5 }
   0x7   :  { %15476 = sst [smem:[#allocation149_spill]] %s15339_s6 }
   0x8   :  { %15477 = sst [smem:[#allocation150_spill]] %s15340_s7 }
   0x9   :  { %15478 = sst [smem:[#allocation151_spill]] %s15341_s8 }
   0xa   :  { %15479 = sst [smem:[#allocation152_spill]] %s15342_s9 }
   0xb   :  { %15480 = sst [smem:[#allocation153_spill]] %s15343_s10 }
   0xc   :  { %15481 = sst [smem:[#allocation154_spill]] %s15344_s11 }
   0xd   :  { %15482 = sst [smem:[#allocation155_spill]] %s15345_s12 }
   0xe   :  { %15483 = sst [smem:[#allocation156_spill]] %s15346_s13 }
   0xf   :  { %15484 = sst [smem:[#allocation157_spill]] %s15357_s24 }
  0x10   :  { %15485 = sst [smem:[#allocation158_spill]] %s15358_s25 }
  0x11   :  { %15486 = sst [smem:[#allocation159_spill]] %s15359_s26 }
  0x12   :  { %31 = vsyncpa [#allocation3], 0 }
  0x13   :  { %33 = vsyncpa [#allocation3 + $0x1], 0 }
  0x14   :  { %34 = vsyncpa [#allocation6], 0 }
  0x15   :  { %36 = vsyncpa [#allocation6 + $0x1], 0 }
  0x16   :  { %37 = vsyncpa [#allocation9], 0 }
  0x17   :  { %39 = vsyncpa [#allocation9 + $0x1], 0 }
  0x18   :  { %40 = vsyncpa [#allocation12], 0 }
  0x19   :  { %41 = vsyncpa [#allocation15], 0 }
  0x1a   :  { %42 = vsyncpa [#allocation18], 0 }
  0x1b   :  { %43 = vsyncpa [#allocation21], 0 }
  0x1c   :  { %44 = vsyncpa [#allocation24], 0 }
  0x1d   :  { %45 = vsyncpa [#allocation27], 0 }
  0x1e   :  { %46 = vsyncpa [#allocation30], 0 }
  0x1f   :  { %47 = vsyncpa [#allocation33], 0 }
  0x20   :  { %48 = vsyncpa [#allocation36], 0 }
  0x21   :  { %49 = vsyncpa [#allocation39], 0 }
  0x22   :  { %50 = vsyncpa [#allocation42], 0 }
  0x23   :  { %51 = vsyncpa [#allocation4], 0 }
  0x24   :  { %53 = vsyncpa [#allocation4 + $0x1], 0  ;;  %s11521_s27 = smov 0   ;;  %s11523_s3 = smov 0  }
  0x25   :  { %s11525_s7 = smov 0   ;;  %s11527_s28 = smov 0  }
  0x26 LB: > { %15487 = sst [smem:[#allocation69_spill]] %s11293_s27  ;;  %s11542_s8 = sadd.s32 4294967295, %s11305_s28   ;;  %s11305_s28 = sphi %s11527_s28, %s15748_s28   ;;  %s11301_s7 = sphi %s11525_s7, %s15751_s7   ;;  %s11297_s3 = sphi %s11523_s3, %s15750_s3   ;;  %s11293_s27 = sphi %s11521_s27, %s15749_s27  }
  0x27   : > { %15488 = sst [smem:[#allocation70_spill]] %s11297_s3  ;;  %s9201_s4 = sadd.s32 4294967294, %s11305_s28  }
  0x28   : > { %15489 = sst [smem:[#allocation71_spill]] %s11301_s7  ;;  %s11546_s29 = sadd.s32 1, %s11305_s28  }
  0x29   : > { %15490 = sst [smem:[#allocation72_spill]] %s11305_s28  ;;  %s66_s0 = sadd.s32 1, %s11301_s7 }
  0x2a   : > { %15491 = sst [smem:[#allocation73_spill]] %s11542_s8  ;;  %s63_s9 = ssub.s32 %s11305_s28, %s11546_s29 }
  0x2b   : > { %15492 = sst [smem:[#allocation74_spill]] %s11546_s29  ;;  %p73_p0 = scmp.ne.s32.totalorder %s11301_s7, %s11297_s3 }
  0x2c   : > { %p64_p1 = scmp.eq.s32.totalorder %s63_s9, 0  ;;  %p74_p2 = scmp.eq.s32.totalorder %s11305_s28, 0 }
  0x2d   : > { %p79_p3 = scmp.ne.s32.totalorder %s11297_s3, %s11293_s27  ;;  %p15380_p4 = scmp.eq.s32.totalorder %s11542_s8, 0 }
  0x2e   : > { %s11558_s30 = scalar_select %p64_p1, %s11301_s7, %s66_s0  }
  0x2f   : > { %p11560_p5 = por %p74_p2, %p73_p0  ;;  %p11566_p6 = por %p15380_p4, %p79_p3 }
  0x30   : > { %15493 = sst [smem:[#allocation75_spill]] %s11558_s30  ;;  %p643_p7 = scmp.eq.s32.totalorder %s11542_s8, 1 }
  0x31   : > { %s15494_s2 = scalar_select %p11560_p5, 1, 0 }
  0x32   : > { %s15496_s5 = scalar_select %p11566_p6, 1, 0 }
  0x33   : > { %15495 = sst [smem:[#allocation76_spill]] %s15494_s2  ;;  %p649_p8 = scmp.eq.s32.totalorder %s9201_s4, 1 }
  0x34   : > { %15497 = sst [smem:[#allocation77_spill]] %s15496_s5  ;;  %p9202_p9 = scmp.ge.s32.totalorder %s11305_s28, 1 }
  0x35   : > { %p656_p10 = scmp.lt.s32.totalorder %s11305_s28, 3  ;;  %p11573_p11 = por %p643_p7, %p73_p0 }
  0x36   : > { %p11577_p12 = por %p649_p8, %p79_p3  ;;  %s11307_s0 = smov [#allocation11]  }
  0x37   : > { %s15498_s10 = scalar_select %p11573_p11, 1, 0 }
  0x38   : > { %s15500_s6 = scalar_select %p11577_p12, 1, 0 }
  0x39   : > { %15499 = sst [smem:[#allocation78_spill]] %s15498_s10  ;;  %p11581_p13 = pnand %p9202_p9, %p656_p10 }
  0x3a   : > { %15501 = sst [smem:[#allocation79_spill]] %s15500_s6  ;;  %s679_s9 = sshll.u32 %s11307_s0, 4  ;;  %s680_s9 = int_to_ptr.vmem [resolvable:$true] %s679_s9 }
  0x3b   : > { %s15502_s1 = scalar_select %p11581_p13, 1, 0 }
  0x3c   : > { %p9955_p1 = pneg %p11581_p13  ;;  %s11308_s30 = smov [#allocation14]  }
  0x3d   : > { %15503 = sst [smem:[#allocation80_spill]] %s15502_s1  ;;  %s706_s29 = sshll.u32 %s11308_s30, 4  ;;  %s11593_s29 = int_to_ptr.vmem [resolvable:$true] %s706_s29 }
  0x3e   : > { %p11589_p2 = pnand %p9955_p1, %p15380_p4  ;;  %s15505_s26 = sld [smem:[#allocation148_spill]] }
  0x40   : > { %p11603_p3 = pneg %p11589_p2 }
  0x44   : > { %s10539_s10 = scalar_lea.hbm %s15505_s26, 320 }
  0x45   : > { %p10540_p0 = scmp.ne.s32.totalorder %s15505_s26, %s10539_s10  ;;  %p10546_p9 = scmp.lt.u32.totalorder %s10539_s10, %s15505_s26 }
  0x47   : > { %p10542_p7 = pnand %p11603_p3, %p10540_p0 }
  0x49   : > { %p10543_p8 = pneg %p10542_p7 }
  0x4b   : > { %p10548_p10 = pnand %p10546_p9, %p10543_p8 }
  0x4d   : > { %10551 = shalt.err (!%p10548_p10)
}
  0x4e   : > { %s10552_s27 = scalar_lea.vmem %s680_s9, 320  ;;  %p10560_p11 = scmp.lt.s32.totalorder %s680_s9, %s680_s9 }
  0x4f   : > { %p10553_p1 = scmp.ne.s32.totalorder %s680_s9, %s10552_s27  ;;  %p10561_p6 = scmp.lt.s32.totalorder %s10552_s27, %s10552_s27 }
  0x51   : > { %p10555_p4 = pnand %p10553_p1, %p11603_p3  ;;  %p10562_p13 = por %p10561_p6, %p10560_p11 }
  0x53   : > { %p10556_p12 = pneg %p10555_p4 }
  0x55   : > { %p10563_p5 = pnand %p10562_p13, %p10556_p12 }
  0x57   : > { %10566 = shalt.err (!%p10563_p5)
}
  0x58   : > { %s15395_s3 = smov 64   ;;  %s15393_s5 = smov 4  }
  0x59   : > { %9961 = dma.hbm_to_vmem [thread:$0]  (!%p11589_p2), %s15505_s26, 320, %s680_s9, [#allocation12], %s15395_s3, %s15395_s3, %s15393_s5  }
  0x5a   : > { %s15507_s1 = sld [smem:[#allocation150_spill]] }
  0x60   : > { %s10567_s2 = scalar_lea.hbm %s15507_s1, 64 }
  0x61   : > { %p10568_p4 = scmp.ne.s32.totalorder %s15507_s1, %s10567_s2  ;;  %p10574_p11 = scmp.lt.u32.totalorder %s10567_s2, %s15507_s1 }
  0x63   : > { %p10570_p5 = pnand %p10568_p4, %p11603_p3 }
  0x65   : > { %p10571_p6 = pneg %p10570_p5 }
  0x67   : > { %p10576_p12 = pnand %p10574_p11, %p10571_p6 }
  0x69   : > { %10579 = shalt.err (!%p10576_p12)
}
  0x6a   : > { %s10580_s9 = scalar_lea.vmem %s11593_s29, 64  ;;  %p10588_p8 = scmp.lt.s32.totalorder %s11593_s29, %s11593_s29 }
  0x6b   : > { %p10581_p13 = scmp.ne.s32.totalorder %s11593_s29, %s10580_s9  ;;  %p10589_p9 = scmp.lt.s32.totalorder %s10580_s9, %s10580_s9 }
  0x6d   : > { %p10583_p0 = pnand %p10581_p13, %p11603_p3  ;;  %p10590_p10 = por %p10589_p9, %p10588_p8 }
  0x6f   : > { %p10584_p7 = pneg %p10583_p0 }
  0x71   : > { %p10591_p1 = pnand %p10590_p10, %p10584_p7 }
  0x73   : > { %10594 = shalt.err (!%p10591_p1)
}
  0x74   : > { %9967 = dma.hbm_to_vmem [thread:$0]  (!%p11589_p2), %s15507_s1, 64, %s11593_s29, [#allocation15]  }
  0x75   : > { %s11311_s28 = smov [#allocation17]   ;;  %s11312_s8 = smov [#allocation20]  }
  0x76   : > { %s729_s2 = sshll.u32 %s11311_s28, 4  ;;  %s755_s10 = sshll.u32 %s11312_s8, 4  ;;  %s730_s2 = int_to_ptr.vmem [resolvable:$true] %s729_s2  ;;  %s756_s10 = int_to_ptr.vmem [resolvable:$true] %s755_s10 }
  0x77   : > { %s15508_s27 = sld [smem:[#allocation152_spill]] }
  0x7d   : > { %s15509_s5 = smov %s15508_s27  ;;  %s10595_s9 = scalar_lea.hbm %s15508_s27, 576 }
  0x7e   : > { %p10596_p4 = scmp.ne.s32.totalorder %s15509_s5, %s10595_s9  ;;  %p10602_p11 = scmp.lt.u32.totalorder %s10595_s9, %s15509_s5 }
  0x80   : > { %p10598_p5 = pnand %p10596_p4, %p11603_p3 }
  0x82   : > { %p10599_p6 = pneg %p10598_p5 }
  0x84   : > { %p10604_p12 = pnand %p10602_p11, %p10599_p6 }
  0x86   : > { %10607 = shalt.err (!%p10604_p12)
}
  0x87   : > { %s10608_s29 = scalar_lea.vmem %s730_s2, 576  ;;  %p10616_p8 = scmp.lt.s32.totalorder %s730_s2, %s730_s2 }
  0x88   : > { %p10609_p13 = scmp.ne.s32.totalorder %s730_s2, %s10608_s29  ;;  %p10617_p9 = scmp.lt.s32.totalorder %s10608_s29, %s10608_s29 }
  0x8a   : > { %p10611_p0 = pnand %p10609_p13, %p11603_p3  ;;  %p10618_p10 = por %p10617_p9, %p10616_p8 }
  0x8c   : > { %p10612_p7 = pneg %p10611_p0 }
  0x8e   : > { %p10619_p1 = pnand %p10618_p10, %p10612_p7 }
  0x90   : > { %10622 = shalt.err (!%p10619_p1)
}
  0x91   : > { %s15510_s26 = smov 4   ;;  %s15511_s3 = smov 64  }
  0x92   : > { %9973 = dma.hbm_to_vmem [thread:$0]  (!%p11589_p2), %s15509_s5, 576, %s730_s2, [#allocation18], %s15511_s3, %s15511_s3, %s15510_s26  }
  0x93   : > { %s15512_s11 = sld [smem:[#allocation154_spill]] }
  0x99   : > { %s10623_s6 = scalar_lea.hbm %s15512_s11, 576 }
  0x9a   : > { %p10624_p4 = scmp.ne.s32.totalorder %s15512_s11, %s10623_s6  ;;  %p10630_p11 = scmp.lt.u32.totalorder %s10623_s6, %s15512_s11 }
  0x9c   : > { %p10626_p5 = pnand %p10624_p4, %p11603_p3 }
  0x9e   : > { %p10627_p6 = pneg %p10626_p5 }
  0xa0   : > { %p10632_p12 = pnand %p10630_p11, %p10627_p6 }
  0xa2   : > { %10635 = shalt.err (!%p10632_p12)
}
  0xa3   : > { %s10636_s29 = scalar_lea.vmem %s756_s10, 576  ;;  %p10644_p8 = scmp.lt.s32.totalorder %s756_s10, %s756_s10 }
  0xa4   : > { %p10637_p13 = scmp.ne.s32.totalorder %s756_s10, %s10636_s29  ;;  %p10645_p9 = scmp.lt.s32.totalorder %s10636_s29, %s10636_s29 }
  0xa6   : > { %p10639_p0 = pnand %p10637_p13, %p11603_p3  ;;  %p10646_p10 = por %p10645_p9, %p10644_p8 }
  0xa8   : > { %p10640_p7 = pneg %p10639_p0 }
  0xaa   : > { %p10647_p1 = pnand %p10646_p10, %p10640_p7 }
  0xac   : > { %10650 = shalt.err (!%p10647_p1)
}
  0xad   : > { %9979 = dma.hbm_to_vmem [thread:$0]  (!%p11589_p2), %s15512_s11, 576, %s756_s10, [#allocation21], %s15511_s3, %s15511_s3, %s15510_s26  }
  0xae   : > { %s11313_s7 = smov [#allocation23]   ;;  %s11314_s8 = smov [#allocation26]  }
  0xaf   : > { %s781_s28 = sshll.u32 %s11313_s7, 4  ;;  %s807_s6 = sshll.u32 %s11314_s8, 4  ;;  %s782_s28 = int_to_ptr.vmem [resolvable:$true] %s781_s28  ;;  %s808_s6 = int_to_ptr.vmem [resolvable:$true] %s807_s6 }
  0xb0   : > { %s15513_s13 = sld [smem:[#allocation156_spill]] }
  0xb6   : > { %s10651_s9 = scalar_lea.hbm %s15513_s13, 320 }
  0xb7   : > { %p10652_p4 = scmp.ne.s32.totalorder %s15513_s13, %s10651_s9  ;;  %p10658_p11 = scmp.lt.u32.totalorder %s10651_s9, %s15513_s13 }
  0xb9   : > { %p10654_p5 = pnand %p10652_p4, %p11603_p3 }
  0xbb   : > { %p10655_p6 = pneg %p10654_p5 }
  0xbd   : > { %p10660_p12 = pnand %p10658_p11, %p10655_p6 }
  0xbf   : > { %10663 = shalt.err (!%p10660_p12)
}
  0xc0   : > { %s10664_s10 = scalar_lea.vmem %s782_s28, 320  ;;  %p10672_p8 = scmp.lt.s32.totalorder %s782_s28, %s782_s28 }
  0xc1   : > { %p10665_p13 = scmp.ne.s32.totalorder %s782_s28, %s10664_s10  ;;  %p10673_p9 = scmp.lt.s32.totalorder %s10664_s10, %s10664_s10 }
  0xc3   : > { %p10667_p0 = pnand %p10665_p13, %p11603_p3  ;;  %p10674_p10 = por %p10673_p9, %p10672_p8 }
  0xc5   : > { %p10668_p7 = pneg %p10667_p0 }
  0xc7   : > { %p10675_p1 = pnand %p10674_p10, %p10668_p7 }
  0xc9   : > { %10678 = shalt.err (!%p10675_p1)
}
  0xca   : > { %9985 = dma.hbm_to_vmem [thread:$0]  (!%p11589_p2), %s15513_s13, 320, %s782_s28, [#allocation24], %s15511_s3, %s15511_s3, %s15510_s26  }
  0xcb   : > { %s10679_s30 = scalar_lea.hbm %s15348_s15, 320 }
  0xcc   : > { %p10680_p4 = scmp.ne.s32.totalorder %s15348_s15, %s10679_s30  ;;  %p10686_p11 = scmp.lt.u32.totalorder %s10679_s30, %s15348_s15 }
  0xce   : > { %p10682_p5 = pnand %p10680_p4, %p11603_p3 }
  0xd0   : > { %p10683_p6 = pneg %p10682_p5 }
  0xd2   : > { %p10688_p12 = pnand %p10686_p11, %p10683_p6 }
  0xd4   : > { %10691 = shalt.err (!%p10688_p12)
}
  0xd5   : > { %s10692_s2 = scalar_lea.vmem %s808_s6, 320  ;;  %p10700_p8 = scmp.lt.s32.totalorder %s808_s6, %s808_s6 }
  0xd6   : > { %p10693_p13 = scmp.ne.s32.totalorder %s808_s6, %s10692_s2  ;;  %p10701_p9 = scmp.lt.s32.totalorder %s10692_s2, %s10692_s2 }
  0xd8   : > { %p10695_p0 = pnand %p10693_p13, %p11603_p3  ;;  %p10702_p10 = por %p10701_p9, %p10700_p8 }
  0xda   : > { %p10696_p7 = pneg %p10695_p0 }
  0xdc   : > { %p10703_p1 = pnand %p10702_p10, %p10696_p7 }
  0xde   : > { %10706 = shalt.err (!%p10703_p1)
}
  0xdf   : > { %9991 = dma.hbm_to_vmem [thread:$0]  (!%p11589_p2), %s15348_s15, 320, %s808_s6, [#allocation27], %s15511_s3, %s15511_s3, %s15510_s26  }
  0xe0   : > { %s11315_s1 = smov [#allocation29]   ;;  %s11316_s7 = smov [#allocation32]  }
  0xe1   : > { %s833_s24 = sshll.u32 %s11315_s1, 4  ;;  %s859_s8 = sshll.u32 %s11316_s7, 4  ;;  %s834_s24 = int_to_ptr.vmem [resolvable:$true] %s833_s24  ;;  %s860_s8 = int_to_ptr.vmem [resolvable:$true] %s859_s8 }
  0xe2   : > { %s10707_s9 = scalar_lea.hbm %s15350_s17, 576 }
  0xe3   : > { %p10708_p4 = scmp.ne.s32.totalorder %s15350_s17, %s10707_s9  ;;  %p10714_p11 = scmp.lt.u32.totalorder %s10707_s9, %s15350_s17 }
  0xe5   : > { %p10710_p5 = pnand %p10708_p4, %p11603_p3 }
  0xe7   : > { %p10711_p6 = pneg %p10710_p5 }
  0xe9   : > { %p10716_p12 = pnand %p10714_p11, %p10711_p6 }
  0xeb   : > { %10719 = shalt.err (!%p10716_p12)
}
  0xec   : > { %s10720_s6 = scalar_lea.vmem %s834_s24, 576  ;;  %p10728_p8 = scmp.lt.s32.totalorder %s834_s24, %s834_s24 }
  0xed   : > { %p10721_p13 = scmp.ne.s32.totalorder %s834_s24, %s10720_s6  ;;  %p10729_p9 = scmp.lt.s32.totalorder %s10720_s6, %s10720_s6 }
  0xef   : > { %p10723_p0 = pnand %p10721_p13, %p11603_p3  ;;  %p10730_p10 = por %p10729_p9, %p10728_p8 }
  0xf1   : > { %p10724_p7 = pneg %p10723_p0 }
  0xf3   : > { %p10731_p1 = pnand %p10730_p10, %p10724_p7 }
  0xf5   : > { %10734 = shalt.err (!%p10731_p1)
}
  0xf6   : > { %9997 = dma.hbm_to_vmem [thread:$0]  (!%p11589_p2), %s15350_s17, 576, %s834_s24, [#allocation30], %s15511_s3, %s15511_s3, %s15510_s26  }
  0xf7   : > { %s10735_s27 = scalar_lea.hbm %s15352_s19, 128 }
  0xf8   : > { %p10736_p4 = scmp.ne.s32.totalorder %s15352_s19, %s10735_s27  ;;  %p10742_p11 = scmp.lt.u32.totalorder %s10735_s27, %s15352_s19 }
  0xfa   : > { %p10738_p5 = pnand %p10736_p4, %p11603_p3 }
  0xfc   : > { %p10739_p6 = pneg %p10738_p5 }
  0xfe   : > { %p10744_p12 = pnand %p10742_p11, %p10739_p6 }
 0x100   : > { %10747 = shalt.err (!%p10744_p12)
}
 0x101   : > { %s10748_s28 = scalar_lea.vmem %s860_s8, 128  ;;  %p10756_p8 = scmp.lt.s32.totalorder %s860_s8, %s860_s8 }
 0x102   : > { %p10749_p13 = scmp.ne.s32.totalorder %s860_s8, %s10748_s28  ;;  %p10757_p9 = scmp.lt.s32.totalorder %s10748_s28, %s10748_s28 }
 0x104   : > { %p10751_p0 = pnand %p10749_p13, %p11603_p3  ;;  %p10758_p10 = por %p10757_p9, %p10756_p8 }
 0x106   : > { %p10752_p7 = pneg %p10751_p0 }
 0x108   : > { %p10759_p1 = pnand %p10758_p10, %p10752_p7 }
 0x10a   : > { %10762 = shalt.err (!%p10759_p1)
}
 0x10b   : > { %10003 = dma.hbm_to_vmem [thread:$0]  (!%p11589_p2), %s15352_s19, 128, %s860_s8, [#allocation33], %s15511_s3, %s15511_s3, %s15510_s26  }
 0x10c   : > { %s11317_s10 = smov [#allocation35]   ;;  %s11318_s7 = smov [#allocation38]  }
 0x10d   : > { %s883_s1 = sshll.u32 %s11317_s10, 4  ;;  %s909_s30 = sshll.u32 %s11318_s7, 4  ;;  %s884_s1 = int_to_ptr.vmem [resolvable:$true] %s883_s1  ;;  %s910_s30 = int_to_ptr.vmem [resolvable:$true] %s909_s30 }
 0x10e   : > { %s10763_s25 = scalar_lea.hbm %s15354_s21, 192 }
 0x10f   : > { %p10764_p4 = scmp.ne.s32.totalorder %s15354_s21, %s10763_s25  ;;  %p10770_p11 = scmp.lt.u32.totalorder %s10763_s25, %s15354_s21 }
 0x111   : > { %p10766_p5 = pnand %p10764_p4, %p11603_p3 }
 0x113   : > { %p10767_p6 = pneg %p10766_p5 }
 0x115   : > { %p10772_p12 = pnand %p10770_p11, %p10767_p6 }
 0x117   : > { %10775 = shalt.err (!%p10772_p12)
}
 0x118   : > { %s10776_s8 = scalar_lea.vmem %s884_s1, 192  ;;  %p10784_p8 = scmp.lt.s32.totalorder %s884_s1, %s884_s1 }
 0x119   : > { %p10777_p13 = scmp.ne.s32.totalorder %s884_s1, %s10776_s8  ;;  %p10785_p9 = scmp.lt.s32.totalorder %s10776_s8, %s10776_s8 }
 0x11b   : > { %p10779_p0 = pnand %p10777_p13, %p11603_p3  ;;  %p10786_p10 = por %p10785_p9, %p10784_p8 }
 0x11d   : > { %p10780_p7 = pneg %p10779_p0 }
 0x11f   : > { %p10787_p1 = pnand %p10786_p10, %p10780_p7 }
 0x121   : > { %10790 = shalt.err (!%p10787_p1)
}
 0x122   : > { %10009 = dma.hbm_to_vmem [thread:$0]  (!%p11589_p2), %s15354_s21, 192, %s884_s1, [#allocation36], %s15511_s3, %s15511_s3, %s15510_s26  }
 0x123   : > { %s10791_s9 = scalar_lea.hbm %s15356_s23, 320 }
 0x124   : > { %p10792_p4 = scmp.ne.s32.totalorder %s15356_s23, %s10791_s9  ;;  %p10798_p11 = scmp.lt.u32.totalorder %s10791_s9, %s15356_s23 }
 0x126   : > { %p10794_p5 = pnand %p10792_p4, %p11603_p3 }
 0x128   : > { %p10795_p6 = pneg %p10794_p5 }
 0x12a   : > { %p10800_p12 = pnand %p10798_p11, %p10795_p6 }
 0x12c   : > { %10803 = shalt.err (!%p10800_p12)
}
 0x12d   : > { %s10804_s24 = scalar_lea.vmem %s910_s30, 320  ;;  %p10812_p8 = scmp.lt.s32.totalorder %s910_s30, %s910_s30 }
 0x12e   : > { %p10805_p13 = scmp.ne.s32.totalorder %s910_s30, %s10804_s24  ;;  %p10813_p9 = scmp.lt.s32.totalorder %s10804_s24, %s10804_s24 }
 0x130   : > { %p10807_p0 = pnand %p10805_p13, %p11603_p3  ;;  %p10814_p10 = por %p10813_p9, %p10812_p8 }
 0x132   : > { %p10808_p7 = pneg %p10807_p0 }
 0x134   : > { %p10815_p1 = pnand %p10814_p10, %p10808_p7 }
 0x136   : > { %10818 = shalt.err (!%p10815_p1)
}
 0x137   : > { %10015 = dma.hbm_to_vmem [thread:$0]  (!%p11589_p2), %s15356_s23, 320, %s910_s30, [#allocation39], %s15511_s3, %s15511_s3, %s15510_s26  }
 0x138   : > { %s11319_s6 = smov [#allocation10]   ;;  %s11320_s7 = smov [#allocation13]  }
 0x139   : > { %s669_s10 = sshll.u32 %s11319_s6, 4  ;;  %s692_s27 = sshll.u32 %s11320_s7, 4  ;;  %s670_s10 = int_to_ptr.vmem [resolvable:$true] %s669_s10  ;;  %s693_s27 = int_to_ptr.vmem [resolvable:$true] %s692_s27 }
 0x13a   : > { %s15514_s29 = sld [smem:[#allocation147_spill]] }
 0x140   : > { %s10819_s2 = scalar_lea.hbm %s15514_s29, 128 }
 0x141   : > { %p10820_p4 = scmp.ne.s32.totalorder %s15514_s29, %s10819_s2  ;;  %p10826_p11 = scmp.lt.u32.totalorder %s10819_s2, %s15514_s29 }
 0x143   : > { %p10822_p5 = pnand %p10820_p4, %p11603_p3 }
 0x145   : > { %p10823_p6 = pneg %p10822_p5 }
 0x147   : > { %p10828_p12 = pnand %p10826_p11, %p10823_p6 }
 0x149   : > { %10831 = shalt.err (!%p10828_p12)
}
 0x14a   : > { %s10832_s30 = scalar_lea.vmem %s670_s10, 128  ;;  %p10840_p8 = scmp.lt.s32.totalorder %s670_s10, %s670_s10 }
 0x14b   : > { %p10833_p13 = scmp.ne.s32.totalorder %s670_s10, %s10832_s30  ;;  %p10841_p9 = scmp.lt.s32.totalorder %s10832_s30, %s10832_s30 }
 0x14d   : > { %p10835_p0 = pnand %p10833_p13, %p11603_p3  ;;  %p10842_p10 = por %p10841_p9, %p10840_p8 }
 0x14f   : > { %p10836_p7 = pneg %p10835_p0 }
 0x151   : > { %p10843_p1 = pnand %p10842_p10, %p10836_p7 }
 0x153   : > { %10846 = shalt.err (!%p10843_p1)
}
 0x154   : > { %9958 = dma.hbm_to_vmem [thread:$0]  (!%p11589_p2), %s15514_s29, 128, %s670_s10, [#allocation9]  }
 0x155   : > { %s15515_s9 = sld [smem:[#allocation149_spill]] }
 0x15b   : > { %s10847_s25 = scalar_lea.hbm %s15515_s9, 320 }
 0x15c   : > { %p10848_p4 = scmp.ne.s32.totalorder %s15515_s9, %s10847_s25  ;;  %p10854_p11 = scmp.lt.u32.totalorder %s10847_s25, %s15515_s9 }
 0x15e   : > { %p10850_p5 = pnand %p10848_p4, %p11603_p3 }
 0x160   : > { %p10851_p6 = pneg %p10850_p5 }
 0x162   : > { %p10856_p12 = pnand %p10854_p11, %p10851_p6 }
 0x164   : > { %10859 = shalt.err (!%p10856_p12)
}
 0x165   : > { %s10860_s30 = scalar_lea.vmem %s693_s27, 320  ;;  %p10868_p8 = scmp.lt.s32.totalorder %s693_s27, %s693_s27 }
 0x166   : > { %p10861_p13 = scmp.ne.s32.totalorder %s693_s27, %s10860_s30  ;;  %p10869_p9 = scmp.lt.s32.totalorder %s10860_s30, %s10860_s30 }
 0x168   : > { %p10863_p0 = pnand %p10861_p13, %p11603_p3  ;;  %p10870_p10 = por %p10869_p9, %p10868_p8 }
 0x16a   : > { %p10864_p7 = pneg %p10863_p0 }
 0x16c   : > { %p10871_p1 = pnand %p10870_p10, %p10864_p7 }
 0x16e   : > { %10874 = shalt.err (!%p10871_p1)
}
 0x16f   : > { %9964 = dma.hbm_to_vmem [thread:$0]  (!%p11589_p2), %s15515_s9, 320, %s693_s27, [#allocation12], %s15511_s3, %s15511_s3, %s15510_s26  }
 0x170   : > { %s11321_s6 = smov [#allocation16]   ;;  %s11322_s7 = smov [#allocation19]  }
 0x171   : > { %s716_s5 = sshll.u32 %s11321_s6, 4  ;;  %s742_s25 = sshll.u32 %s11322_s7, 4  ;;  %s717_s5 = int_to_ptr.vmem [resolvable:$true] %s716_s5  ;;  %s743_s25 = int_to_ptr.vmem [resolvable:$true] %s742_s25 }
 0x172   : > { %s15516_s24 = sld [smem:[#allocation151_spill]] }
 0x178   : > { %s10875_s1 = scalar_lea.hbm %s15516_s24, 192 }
 0x179   : > { %p10876_p4 = scmp.ne.s32.totalorder %s15516_s24, %s10875_s1  ;;  %p10882_p11 = scmp.lt.u32.totalorder %s10875_s1, %s15516_s24 }
 0x17b   : > { %p10878_p5 = pnand %p10876_p4, %p11603_p3 }
 0x17d   : > { %p10879_p6 = pneg %p10878_p5 }
 0x17f   : > { %p10884_p12 = pnand %p10882_p11, %p10879_p6 }
 0x181   : > { %10887 = shalt.err (!%p10884_p12)
}
 0x182   : > { %s10888_s27 = scalar_lea.vmem %s717_s5, 192  ;;  %p10896_p8 = scmp.lt.s32.totalorder %s717_s5, %s717_s5 }
 0x183   : > { %p10889_p13 = scmp.ne.s32.totalorder %s717_s5, %s10888_s27  ;;  %p10897_p9 = scmp.lt.s32.totalorder %s10888_s27, %s10888_s27 }
 0x185   : > { %p10891_p0 = pnand %p10889_p13, %p11603_p3  ;;  %p10898_p10 = por %p10897_p9, %p10896_p8 }
 0x187   : > { %p10892_p7 = pneg %p10891_p0 }
 0x189   : > { %p10899_p1 = pnand %p10898_p10, %p10892_p7 }
 0x18b   : > { %10902 = shalt.err (!%p10899_p1)
}
 0x18c   : > { %9970 = dma.hbm_to_vmem [thread:$0]  (!%p11589_p2), %s15516_s24, 192, %s717_s5, [#allocation15], %s15511_s3, %s15511_s3, %s15510_s26  }
 0x18d   : > { %s15517_s7 = sld [smem:[#allocation153_spill]] }
 0x193   : > { %s15518_s2 = smov %s15517_s7  ;;  %s10903_s28 = scalar_lea.hbm %s15517_s7, 576 }
 0x194   : > { %p10904_p4 = scmp.ne.s32.totalorder %s15518_s2, %s10903_s28  ;;  %p10910_p11 = scmp.lt.u32.totalorder %s10903_s28, %s15518_s2 }
 0x196   : > { %p10906_p5 = pnand %p10904_p4, %p11603_p3 }
 0x198   : > { %p10907_p6 = pneg %p10906_p5 }
 0x19a   : > { %p10912_p12 = pnand %p10910_p11, %p10907_p6 }
 0x19c   : > { %10915 = shalt.err (!%p10912_p12)
}
 0x19d   : > { %s10916_s11 = scalar_lea.vmem %s743_s25, 576  ;;  %p10924_p8 = scmp.lt.s32.totalorder %s743_s25, %s743_s25 }
 0x19e   : > { %p10917_p13 = scmp.ne.s32.totalorder %s743_s25, %s10916_s11  ;;  %p10925_p9 = scmp.lt.s32.totalorder %s10916_s11, %s10916_s11 }
 0x1a0   : > { %p10919_p0 = pnand %p10917_p13, %p11603_p3  ;;  %p10926_p10 = por %p10925_p9, %p10924_p8 }
 0x1a2   : > { %p10920_p7 = pneg %p10919_p0 }
 0x1a4   : > { %p10927_p1 = pnand %p10926_p10, %p10920_p7 }
 0x1a6   : > { %10930 = shalt.err (!%p10927_p1)
}
 0x1a7   : > { %9976 = dma.hbm_to_vmem [thread:$0]  (!%p11589_p2), %s15518_s2, 576, %s743_s25, [#allocation18], %s15511_s3, %s15511_s3, %s15510_s26  }
 0x1a8   : > { %s11323_s8 = smov [#allocation22]   ;;  %s11324_s7 = smov [#allocation25]  }
 0x1a9   : > { %s768_s6 = sshll.u32 %s11323_s8, 4  ;;  %s794_s28 = sshll.u32 %s11324_s7, 4  ;;  %s769_s6 = int_to_ptr.vmem [resolvable:$true] %s768_s6  ;;  %s795_s28 = int_to_ptr.vmem [resolvable:$true] %s794_s28 }
 0x1aa   : > { %s15519_s12 = sld [smem:[#allocation155_spill]] }
 0x1b0   : > { %s10931_s10 = scalar_lea.hbm %s15519_s12, 320 }
 0x1b1   : > { %p10932_p4 = scmp.ne.s32.totalorder %s15519_s12, %s10931_s10  ;;  %p10938_p11 = scmp.lt.u32.totalorder %s10931_s10, %s15519_s12 }
 0x1b3   : > { %p10934_p5 = pnand %p10932_p4, %p11603_p3 }
 0x1b5   : > { %p10935_p6 = pneg %p10934_p5 }
 0x1b7   : > { %p10940_p12 = pnand %p10938_p11, %p10935_p6 }
 0x1b9   : > { %10943 = shalt.err (!%p10940_p12)
}
 0x1ba   : > { %s10944_s25 = scalar_lea.vmem %s769_s6, 320  ;;  %p10952_p8 = scmp.lt.s32.totalorder %s769_s6, %s769_s6 }
 0x1bb   : > { %p10945_p13 = scmp.ne.s32.totalorder %s769_s6, %s10944_s25  ;;  %p10953_p9 = scmp.lt.s32.totalorder %s10944_s25, %s10944_s25 }
 0x1bd   : > { %p10947_p0 = pnand %p10945_p13, %p11603_p3  ;;  %p10954_p10 = por %p10953_p9, %p10952_p8 }
 0x1bf   : > { %p10948_p7 = pneg %p10947_p0 }
 0x1c1   : > { %p10955_p1 = pnand %p10954_p10, %p10948_p7 }
 0x1c3   : > { %10958 = shalt.err (!%p10955_p1)
}
 0x1c4   : > { %9982 = dma.hbm_to_vmem [thread:$0]  (!%p11589_p2), %s15519_s12, 320, %s769_s6, [#allocation21], %s15511_s3, %s15511_s3, %s15510_s26  }
 0x1c5   : > { %s10959_s1 = scalar_lea.hbm %s15347_s14, 320 }
 0x1c6   : > { %p10960_p4 = scmp.ne.s32.totalorder %s15347_s14, %s10959_s1  ;;  %p10966_p11 = scmp.lt.u32.totalorder %s10959_s1, %s15347_s14 }
 0x1c8   : > { %p10962_p5 = pnand %p10960_p4, %p11603_p3 }
 0x1ca   : > { %p10963_p6 = pneg %p10962_p5 }
 0x1cc   : > { %p10968_p12 = pnand %p10966_p11, %p10963_p6 }
 0x1ce   : > { %10971 = shalt.err (!%p10968_p12)
}
 0x1cf   : > { %s10972_s5 = scalar_lea.vmem %s795_s28, 320  ;;  %p10980_p8 = scmp.lt.s32.totalorder %s795_s28, %s795_s28 }
 0x1d0   : > { %p10973_p13 = scmp.ne.s32.totalorder %s795_s28, %s10972_s5  ;;  %p10981_p9 = scmp.lt.s32.totalorder %s10972_s5, %s10972_s5 }
 0x1d2   : > { %p10975_p0 = pnand %p10973_p13, %p11603_p3  ;;  %p10982_p10 = por %p10981_p9, %p10980_p8 }
 0x1d4   : > { %p10976_p7 = pneg %p10975_p0 }
 0x1d6   : > { %p10983_p1 = pnand %p10982_p10, %p10976_p7 }
 0x1d8   : > { %10986 = shalt.err (!%p10983_p1)
}
 0x1d9   : > { %9988 = dma.hbm_to_vmem [thread:$0]  (!%p11589_p2), %s15347_s14, 320, %s795_s28, [#allocation24], %s15511_s3, %s15511_s3, %s15510_s26  }
 0x1da   : > { %s11325_s9 = smov [#allocation28]   ;;  %s11326_s8 = smov [#allocation31]  }
 0x1db   : > { %s820_s13 = sshll.u32 %s11325_s9, 4  ;;  %s846_s7 = sshll.u32 %s11326_s8, 4  ;;  %s821_s13 = int_to_ptr.vmem [resolvable:$true] %s820_s13  ;;  %s847_s7 = int_to_ptr.vmem [resolvable:$true] %s846_s7 }
 0x1dc   : > { %s10987_s10 = scalar_lea.hbm %s15349_s16, 576 }
 0x1dd   : > { %p10988_p4 = scmp.ne.s32.totalorder %s15349_s16, %s10987_s10  ;;  %p10994_p11 = scmp.lt.u32.totalorder %s10987_s10, %s15349_s16 }
 0x1df   : > { %p10990_p5 = pnand %p10988_p4, %p11603_p3 }
 0x1e1   : > { %p10991_p6 = pneg %p10990_p5 }
 0x1e3   : > { %p10996_p12 = pnand %p10994_p11, %p10991_p6 }
 0x1e5   : > { %10999 = shalt.err (!%p10996_p12)
}
 0x1e6   : > { %s11000_s28 = scalar_lea.vmem %s821_s13, 576  ;;  %p11008_p8 = scmp.lt.s32.totalorder %s821_s13, %s821_s13 }
 0x1e7   : > { %p11001_p13 = scmp.ne.s32.totalorder %s821_s13, %s11000_s28  ;;  %p11009_p9 = scmp.lt.s32.totalorder %s11000_s28, %s11000_s28 }
 0x1e9   : > { %p11003_p0 = pnand %p11001_p13, %p11603_p3  ;;  %p11010_p10 = por %p11009_p9, %p11008_p8 }
 0x1eb   : > { %p11004_p7 = pneg %p11003_p0 }
 0x1ed   : > { %p11011_p1 = pnand %p11010_p10, %p11004_p7 }
 0x1ef   : > { %11014 = shalt.err (!%p11011_p1)
}
 0x1f0   : > { %9994 = dma.hbm_to_vmem [thread:$0]  (!%p11589_p2), %s15349_s16, 576, %s821_s13, [#allocation27], %s15511_s3, %s15511_s3, %s15510_s26  }
 0x1f1   : > { %s11015_s30 = scalar_lea.hbm %s15351_s18, 128 }
 0x1f2   : > { %p11016_p4 = scmp.ne.s32.totalorder %s15351_s18, %s11015_s30  ;;  %p11022_p11 = scmp.lt.u32.totalorder %s11015_s30, %s15351_s18 }
 0x1f4   : > { %p11018_p5 = pnand %p11016_p4, %p11603_p3 }
 0x1f6   : > { %p11019_p6 = pneg %p11018_p5 }
 0x1f8   : > { %p11024_p12 = pnand %p11022_p11, %p11019_p6 }
 0x1fa   : > { %11027 = shalt.err (!%p11024_p12)
}
 0x1fb   : > { %s11028_s6 = scalar_lea.vmem %s847_s7, 128  ;;  %p11036_p8 = scmp.lt.s32.totalorder %s847_s7, %s847_s7 }
 0x1fc   : > { %p11029_p13 = scmp.ne.s32.totalorder %s847_s7, %s11028_s6  ;;  %p11037_p9 = scmp.lt.s32.totalorder %s11028_s6, %s11028_s6 }
 0x1fe   : > { %p11031_p0 = pnand %p11029_p13, %p11603_p3  ;;  %p11038_p10 = por %p11037_p9, %p11036_p8 }
 0x200   : > { %p11032_p7 = pneg %p11031_p0 }
 0x202   : > { %p11039_p1 = pnand %p11038_p10, %p11032_p7 }
 0x204   : > { %11042 = shalt.err (!%p11039_p1)
}
 0x205   : > { %10000 = dma.hbm_to_vmem [thread:$0]  (!%p11589_p2), %s15351_s18, 128, %s847_s7, [#allocation30], %s15511_s3, %s15511_s3, %s15510_s26  }
 0x206   : > { %s11327_s25 = smov [#allocation34]   ;;  %s11328_s8 = smov [#allocation37]  }
 0x207   : > { %s873_s9 = sshll.u32 %s11327_s25, 4  ;;  %s896_s1 = sshll.u32 %s11328_s8, 4  ;;  %s874_s9 = int_to_ptr.vmem [resolvable:$true] %s873_s9  ;;  %s897_s1 = int_to_ptr.vmem [resolvable:$true] %s896_s1 }
 0x208   : > { %s11043_s27 = scalar_lea.hbm %s15353_s20, 16 }
 0x209   : > { %p11044_p4 = scmp.ne.s32.totalorder %s15353_s20, %s11043_s27  ;;  %p11050_p11 = scmp.lt.u32.totalorder %s11043_s27, %s15353_s20 }
 0x20b   : > { %p11046_p5 = pnand %p11044_p4, %p11603_p3 }
 0x20d   : > { %p11047_p6 = pneg %p11046_p5 }
 0x20f   : > { %p11052_p12 = pnand %p11050_p11, %p11047_p6 }
 0x211   : > { %11055 = shalt.err (!%p11052_p12)
}
 0x212   : > { %s11056_s7 = scalar_lea.vmem %s874_s9, 16  ;;  %s11063_s28 = scalar_lea.vmem %s874_s9, 32 }
 0x213   : > { %p11057_p13 = scmp.ne.s32.totalorder %s874_s9, %s11056_s7  ;;  %p11064_p8 = scmp.lt.s32.totalorder %s874_s9, %s874_s9 }
 0x214   : > { %p11065_p9 = scmp.lt.s32.totalorder %s11063_s28, %s11056_s7 }
 0x215   : > { %p11059_p0 = pnand %p11057_p13, %p11603_p3 }
 0x216   : > { %p11066_p10 = por %p11065_p9, %p11064_p8 }
 0x217   : > { %p11060_p7 = pneg %p11059_p0 }
 0x219   : > { %p11067_p1 = pnand %p11066_p10, %p11060_p7 }
 0x21b   : > { %11070 = shalt.err (!%p11067_p1)
}
 0x21c   : > { %10006 = dma.hbm_to_vmem [thread:$0]  (!%p11589_p2), %s15353_s20, 16, %s874_s9, [#allocation33]  }
 0x21d   : > { %s11071_s27 = scalar_lea.hbm %s15355_s22, 192 }
 0x21e   : > { %p11072_p4 = scmp.ne.s32.totalorder %s15355_s22, %s11071_s27  ;;  %p11078_p11 = scmp.lt.u32.totalorder %s11071_s27, %s15355_s22 }
 0x220   : > { %p11074_p5 = pnand %p11072_p4, %p11603_p3 }
 0x222   : > { %p11075_p6 = pneg %p11074_p5 }
 0x224   : > { %p11080_p12 = pnand %p11078_p11, %p11075_p6 }
 0x226   : > { %11083 = shalt.err (!%p11080_p12)
}
 0x227   : > { %s11084_s7 = scalar_lea.vmem %s897_s1, 192  ;;  %p11092_p8 = scmp.lt.s32.totalorder %s897_s1, %s897_s1 }
 0x228   : > { %p11085_p13 = scmp.ne.s32.totalorder %s897_s1, %s11084_s7  ;;  %p11093_p9 = scmp.lt.s32.totalorder %s11084_s7, %s11084_s7 }
 0x22a   : > { %p11087_p0 = pnand %p11085_p13, %p11603_p3  ;;  %p11094_p10 = por %p11093_p9, %p11092_p8 }
 0x22c   : > { %p11088_p7 = pneg %p11087_p0 }
 0x22e   : > { %p11095_p1 = pnand %p11094_p10, %p11088_p7 }
 0x230   : > { %11098 = shalt.err (!%p11095_p1)
}
 0x231   : > { %10012 = dma.hbm_to_vmem [thread:$0]  (!%p11589_p2), %s15355_s22, 192, %s897_s1, [#allocation36], %s15511_s3, %s15511_s3, %s15510_s26  }
 0x232   : > { %s11329_s25 = smov [#allocation40]   ;;  %s11330_s30 = smov [#allocation41]  }
 0x233   : > { %s922_s8 = sshll.u32 %s11329_s25, 4  ;;  %s935_s10 = sshll.u32 %s11330_s30, 4  ;;  %s923_s8 = int_to_ptr.vmem [resolvable:$true] %s922_s8  ;;  %s936_s10 = int_to_ptr.vmem [resolvable:$true] %s935_s10 }
 0x234   : > { %s15520_s5 = sld [smem:[#allocation157_spill]] }
 0x23a   : > { %s11099_s6 = scalar_lea.hbm %s15520_s5, 192 }
 0x23b   : > { %p11100_p4 = scmp.ne.s32.totalorder %s15520_s5, %s11099_s6  ;;  %p11106_p11 = scmp.lt.u32.totalorder %s11099_s6, %s15520_s5 }
 0x23d   : > { %p11102_p5 = pnand %p11100_p4, %p11603_p3 }
 0x23f   : > { %p11103_p6 = pneg %p11102_p5 }
 0x241   : > { %p11108_p12 = pnand %p11106_p11, %p11103_p6 }
 0x243   : > { %11111 = shalt.err (!%p11108_p12)
}
 0x244   : > { %s11112_s1 = scalar_lea.vmem %s923_s8, 192  ;;  %p11120_p8 = scmp.lt.s32.totalorder %s923_s8, %s923_s8 }
 0x245   : > { %p11113_p13 = scmp.ne.s32.totalorder %s923_s8, %s11112_s1  ;;  %p11121_p9 = scmp.lt.s32.totalorder %s11112_s1, %s11112_s1 }
 0x247   : > { %p11115_p0 = pnand %p11113_p13, %p11603_p3  ;;  %p11122_p10 = por %p11121_p9, %p11120_p8 }
 0x249   : > { %p11116_p7 = pneg %p11115_p0 }
 0x24b   : > { %p11123_p1 = pnand %p11122_p10, %p11116_p7 }
 0x24d   : > { %11126 = shalt.err (!%p11123_p1)
}
 0x24e   : > { %10018 = dma.hbm_to_vmem [thread:$0]  (!%p11589_p2), %s15520_s5, 192, %s923_s8, [#allocation39], %s15511_s3, %s15511_s3, %s15510_s26  }
 0x24f   : > { %s15521_s27 = sld [smem:[#allocation158_spill]] }
 0x255   : > { %s15522_s11 = smov %s15521_s27  ;;  %s11127_s6 = scalar_lea.hbm %s15521_s27, 128 }
 0x256   : > { %p11128_p4 = scmp.ne.s32.totalorder %s15522_s11, %s11127_s6  ;;  %p11134_p11 = scmp.lt.u32.totalorder %s11127_s6, %s15522_s11 }
 0x258   : > { %p11130_p5 = pnand %p11128_p4, %p11603_p3 }
 0x25a   : > { %p11131_p6 = pneg %p11130_p5 }
 0x25c   : > { %p11136_p12 = pnand %p11134_p11, %p11131_p6 }
 0x25e   : > { %11139 = shalt.err (!%p11136_p12)
}
 0x25f   : > { %s11140_s2 = scalar_lea.vmem %s936_s10, 128  ;;  %p11148_p8 = scmp.lt.s32.totalorder %s936_s10, %s936_s10 }
 0x260   : > { %p11141_p13 = scmp.ne.s32.totalorder %s936_s10, %s11140_s2  ;;  %p11149_p9 = scmp.lt.s32.totalorder %s11140_s2, %s11140_s2 }
 0x262   : > { %p11143_p0 = pnand %p11141_p13, %p11603_p3  ;;  %p11150_p10 = por %p11149_p9, %p11148_p8 }
 0x264   : > { %p11144_p7 = pneg %p11143_p0 }
 0x266   : > { %p11151_p1 = pnand %p11150_p10, %p11144_p7 }
 0x268   : > { %11154 = shalt.err (!%p11151_p1)
}
 0x269   : > { %10021 = dma.hbm_to_vmem [thread:$0]  (!%p11589_p2), %s15522_s11, 128, %s936_s10, [#allocation42], %s15511_s3, %s15511_s3, %s15510_s26  }
 0x26a   : > { %s15523_s25 = sld [smem:[#allocation72_spill]] }
 0x270   : > { %p9225_p4 = scmp.ge.s32.totalorder %s15523_s25, 2 }
 0x272   : > { %945 = sbr.rel (%p9225_p4) target bundleno = 709 (0x2c5), region = 104 }
 0x279   : > { %s15524_s0 = sld [smem:[#allocation71_spill]]  ;;  %s15525_s30 = sld [smem:[#allocation72_spill]] }
 0x27a   : > { %s15526_s27 = sld [smem:[#allocation76_spill]]  ;;  %s11331_s3 = smov 256  }
 0x27b   : > { %s15528_s9 = sld [smem:[#allocation143_spill]]  ;;  %s11332_s25 = smov 128  }
 0x27c   : > { %s11334_s5 = smov 64  }
 0x27f   : > { %s12063_s4 = sand.u32 1, %s15524_s0   ;;  %s12069_s26 = sshll.u32 %s15525_s30, 7 }
 0x280   : > { %s12066_s6 = smul.u32 24, %s12063_s4  ;;  %p15527_p2 = scmp.ne.s32.totalorder %s15526_s27, 0 }
 0x281   : > { %s959_s1 = scalar_lea.hbm %s15528_s9, %s12069_s26  ;;  %s11333_s0 = smov 2  }
 0x282   : > { %9881 = sst [smem:[#allocation45]] (%p15527_p2), %s11331_s3  ;;  %s953_s8 = scalar_lea.vmem [#allocation2], %s12066_s6 }
 0x283   : > { %s9880_s10 = scalar_select %p15527_p2, [#allocation0], [#allocation50] }
 0x284   : > { %s972_s28 = sshll.u32 %s953_s8, 4  ;;  %9882 = sst [smem:[#allocation45 + $0x1]] (%p15527_p2), %s11332_s25  ;;  %s973_s28 = int_to_ptr.vmem [resolvable:$true] %s972_s28 }
 0x285   : > { %s964_s2 = sld [smem:[%s9880_s10]]   ;;  %s11335_s3 = smov 4  }
 0x286   : > { %9883 = sst [smem:[#allocation45 + $0x2]] (%p15527_p2), %s11333_s0  ;;  %s950_s7 = scalar_lea.sflag [#allocation3], %s12063_s4 }
 0x287   : > { %9884 = sst [smem:[#allocation45 + $0x3]] (%p15527_p2), %s11334_s5  ;;  %s11336_s9 = smov [#allocation44]  }
 0x288   : > { %9885 = sst [smem:[#allocation45 + $0x4]] (%p15527_p2), %s11334_s5 }
 0x289   : > { %9886 = sst [smem:[#allocation45 + $0x5]] (%p15527_p2), %s11335_s3 }
 0x28b   : > { %s9228_s13 = sshll.u32 %s964_s2, 26 }
 0x28c   : > { %s9229_s10 = sadd.s32 134217728, %s9228_s13 }
 0x28d   : > { %9887 = dma.general (%p15527_p2), %s959_s1, 384, %s973_s28, %s950_s7, %s11336_s9, [#allocation45], %s9229_s10, 0  }
 0x28e   : > { %s15405_s8 = sand.u32 1, %s15525_s30   ;;  %s15529_s0 = sld [smem:[#allocation144_spill]] }
 0x28f   : > { %s9888_s2 = scalar_select %p15527_p2, [#allocation0], [#allocation51] }
 0x290   : > { %s999_s13 = scalar_lea.vmem [#allocation5], %s12066_s6  ;;  %s11337_s28 = smov 256  }
 0x291   : > { %s1018_s11 = sshll.u32 %s999_s13, 4  ;;  %s1010_s1 = sld [smem:[%s9888_s2]]   ;;  %s1019_s11 = int_to_ptr.vmem [resolvable:$true] %s1018_s11 }
 0x292   : > { %9889 = sst [smem:[#allocation47]] (%p15527_p2), %s11337_s28  ;;  %s11338_s10 = smov 128  }
 0x293   : > { %9890 = sst [smem:[#allocation47 + $0x1]] (%p15527_p2), %s11338_s10  ;;  %s11339_s7 = smov 2  }
 0x294   : > { %s1005_s3 = scalar_lea.hbm %s15529_s0, %s12069_s26  ;;  %9891 = sst [smem:[#allocation47 + $0x2]] (%p15527_p2), %s11339_s7 }
 0x295   : > { %s11340_s9 = smov 64   ;;  %s11341_s25 = smov 4  }
 0x296   : > { %9892 = sst [smem:[#allocation47 + $0x3]] (%p15527_p2), %s11340_s9  ;;  %s996_s2 = scalar_lea.sflag [#allocation6], %s15405_s8 }
 0x297   : > { %9893 = sst [smem:[#allocation47 + $0x4]] (%p15527_p2), %s11340_s9  ;;  %s9232_s5 = sshll.u32 %s1010_s1, 26 }
 0x298   : > { %9894 = sst [smem:[#allocation47 + $0x5]] (%p15527_p2), %s11341_s25  ;;  %s9233_s0 = sadd.s32 134217728, %s9232_s5 }
 0x299   : > { %s11342_s13 = smov [#allocation46]  }
 0x29a   : > { %9895 = dma.general (%p15527_p2), %s1005_s3, 384, %s1019_s11, %s996_s2, %s11342_s13, [#allocation47], %s9233_s0, 0  }
 0x29b   : > { %s15530_s12 = sld [smem:[#allocation145_spill]]  ;;  %s1045_s9 = scalar_lea.vmem [#allocation7], %s12066_s6 }
 0x29c   : > { %s9896_s7 = scalar_select %p15527_p2, [#allocation0], [#allocation52] }
 0x29d   : > { %s1064_s5 = sshll.u32 %s1045_s9, 4  ;;  %s11343_s11 = smov 256   ;;  %s1065_s5 = int_to_ptr.vmem [resolvable:$true] %s1064_s5 }
 0x29e   : > { %s1056_s25 = sld [smem:[%s9896_s7]]   ;;  %s11344_s3 = smov 128  }
 0x29f   : > { %9897 = sst [smem:[#allocation49]] (%p15527_p2), %s11343_s11  ;;  %s11345_s0 = smov 2  }
 0x2a0   : > { %9898 = sst [smem:[#allocation49 + $0x1]] (%p15527_p2), %s11344_s3  ;;  %s11346_s13 = smov 64  }
 0x2a1   : > { %s1051_s1 = scalar_lea.hbm %s15530_s12, %s12069_s26  ;;  %9899 = sst [smem:[#allocation49 + $0x2]] (%p15527_p2), %s11345_s0 }
 0x2a2   : > { %9900 = sst [smem:[#allocation49 + $0x3]] (%p15527_p2), %s11346_s13  ;;  %s11347_s6 = smov 4  }
 0x2a3   : > { %9901 = sst [smem:[#allocation49 + $0x4]] (%p15527_p2), %s11346_s13  ;;  %s11348_s28 = smov [#allocation48]  }
 0x2a4   : > { %s9236_s12 = sshll.u32 %s1056_s25, 26  ;;  %9902 = sst [smem:[#allocation49 + $0x5]] (%p15527_p2), %s11347_s6 }
 0x2a5   : > { %s9237_s26 = sadd.s32 134217728, %s9236_s12  ;;  %s9238_s10 = sshll.u32 %s12063_s4, 4 }
 0x2a6   : > { %9903 = dma.general (%p15527_p2), %s1051_s1, 384, %s1065_s5, %s996_s2, %s11348_s28, [#allocation49], %s9237_s26, 0  }
 0x2a7   : > { %s9402_s7 = sshll.u32 %s15525_s30, 8  ;;  %s15531_s3 = sld [smem:[#allocation146_spill]] }
 0x2a8   : > { %s1091_s25 = scalar_lea.vmem [#allocation8], %s9238_s10  ;;  %s15533_s2 = sand.u32 1, %s15525_s30  }
 0x2a9   : > { %s1098_s13 = sshll.u32 %s1091_s25, 4  ;;  %s12149_s1 = scalar_lea.sflag [#allocation9], %s15533_s2  ;;  %s12145_s13 = int_to_ptr.vmem [resolvable:$true] %s1098_s13 }
 0x2ad   : > { %s15532_s0 = smov %s15531_s3  ;;  %s12143_s8 = scalar_lea.hbm %s15531_s3, %s9402_s7 }
 0x2ae   : > { %s11155_s5 = scalar_lea.hbm %s12143_s8, 256  ;;  %s11159_s6 = scalar_lea.hbm %s15532_s0, 512 }
 0x2af   : > { %p11156_p3 = scmp.ne.s32.totalorder %s12143_s8, %s11155_s5  ;;  %p11160_p11 = scmp.lt.u32.totalorder %s12143_s8, %s15532_s0 }
 0x2b0   : > { %p11161_p12 = scmp.lt.u32.totalorder %s11159_s6, %s11155_s5  ;;  %p11163_p0 = scmp.lt.u32.totalorder %s11155_s5, %s12143_s8 }
 0x2b1   : > { %p11157_p5 = pnand %p11156_p3, %p15527_p2 }
 0x2b2   : > { %p11162_p13 = por %p11161_p12, %p11160_p11 }
 0x2b3   : > { %p11158_p6 = pneg %p11157_p5 }
 0x2b4   : > { %p11164_p7 = por %p11163_p0, %p11162_p13 }
 0x2b6   : > { %p11165_p8 = pnand %p11164_p7, %p11158_p6 }
 0x2b8   : > { %11168 = shalt.err (!%p11165_p8)
}
 0x2b9   : > { %s11169_s30 = scalar_lea.vmem %s12145_s13, 256  ;;  %s11349_s10 = smov [#allocation8]  }
 0x2ba   : > { %p11170_p9 = scmp.ne.s32.totalorder %s12145_s13, %s11169_s30  ;;  %s11173_s7 = sshll.u32 %s11349_s10, 4  ;;  %s11174_s7 = int_to_ptr.vmem [resolvable:$false] %s11173_s7 }
 0x2bb   : > { %s11175_s9 = scalar_lea.vmem %s11174_s7, 512  ;;  %p11176_p3 = scmp.lt.s32.totalorder %s12145_s13, %s11174_s7 }
 0x2bc   : > { %p11171_p10 = pnand %p11170_p9, %p15527_p2  ;;  %p11177_p5 = scmp.lt.s32.totalorder %s11175_s9, %s11169_s30 }
 0x2be   : > { %p11172_p1 = pneg %p11171_p10  ;;  %p11178_p11 = por %p11177_p5, %p11176_p3 }
 0x2c0   : > { %p11179_p12 = pnand %p11178_p11, %p11172_p1 }
 0x2c2   : > { %11182 = shalt.err (!%p11179_p12)
}
 0x2c3   : > { %s11350_s11 = smov 128   ;;  %s11351_s3 = smov 8  }
 0x2c4   : > { %9904 = dma.hbm_to_vmem [thread:$0]  (%p15527_p2), %s12143_s8, 256, %s12145_s13, %s12149_s1, %s11350_s11, %s11350_s11, %s11351_s3  }
 0x2c5 PF: > { %s15534_s25 = sld [smem:[#allocation80_spill]] }
 0x2cb   : > { %p15535_p6 = scmp.ne.s32.totalorder %s15534_s25, 0 }
 0x2cd   : > { %1110 = sbr.rel (%p15535_p6) target bundleno = 7443 (0x1d13), region = 124 }
 0x2d4   : > { %s15536_s2 = sld [smem:[#allocation70_spill]] }
 0x2d5   : > { %s15537_s5 = sld [smem:[#allocation77_spill]] }
 0x2da   : > { %s12176_s4 = sand.u32 1, %s15536_s2  }
 0x2db   : > { %s9835_s12 = smul.u32 24, %s12176_s4  ;;  %s1113_s6 = scalar_lea.sflag [#allocation3], %s12176_s4 }
 0x2dc   : > { %p15538_p13 = scmp.ne.s32.totalorder %s15537_s5, 0 }
 0x2dd   : > { %s12180_s26 = scalar_lea.vmem [#allocation2], %s9835_s12 }
 0x2de   : > { %11228 = dma.done.wait (%p15538_p13), %s1113_s6, 384  }
 0x2df   : > { %11230 = vsyncadd (%p15538_p13), %s1113_s6, 4294966912  ;;  %s15539_s27 = sld [smem:[#allocation73_spill]]  ;;  %s12187_s1 = scalar_lea.vmem [#allocation5], %s9835_s12 }
 0x2e5   : > { %s1121_s8 = sand.u32 1, %s15539_s27  }
 0x2e6   : > { %s1122_s13 = scalar_lea.sflag [#allocation6], %s1121_s8 }
 0x2e7   : > { %11232 = dma.done.wait (%p15538_p13), %s1122_s13, 768  }
 0x2e8   : > { %11234 = vsyncadd (%p15538_p13), %s1122_s13, 4294966528  ;;  %s9242_s28 = sshll.u32 %s12176_s4, 4  ;;  %s12194_s30 = scalar_lea.vmem [#allocation7], %s9835_s12 }
 0x2e9   : > { %s1140_s10 = scalar_lea.sflag [#allocation9], %s1121_s8  ;;  %s12198_s7 = scalar_lea.vmem [#allocation8], %s9242_s28 }
 0x2ea   : > { %11236 = dma.done.wait (%p15538_p13), %s1140_s10, 256  }
 0x2eb   : > { %11238 = vsyncadd (%p15538_p13), %s1140_s10, 4294967040  ;;  %p15540_p2 = scmp.eq.s32.totalorder %s15539_s27, 0 }
 0x2ed   : > { %11240 = dma.done.wait (%p15540_p2), [#allocation9], 128   ;;  %p15541_p0 = pmov %p15540_p2 }
 0x2ef   : > { %11242 = vsyncadd (%p15541_p0), [#allocation9], 4294967168  ;;  %p15542_p7 = pmov %p15541_p0 }
 0x2f0   : > { %p15543_p8 = pmov %p15541_p0 }
 0x2f1   : > { %11244 = dma.done.wait (%p15542_p7), [#allocation12], 640  }
 0x2f2   : > { %11246 = vsyncadd (%p15543_p8), [#allocation12], 4294966656  ;;  %p15544_p9 = pmov %p15541_p0 }
 0x2f3   : > { %p15545_p10 = pmov %p15541_p0 }
 0x2f4   : > { %11248 = dma.done.wait (%p15544_p9), [#allocation15], 256  }
 0x2f5   : > { %11250 = vsyncadd (%p15545_p10), [#allocation15], 4294967040  ;;  %p15546_p1 = pmov %p15541_p0 }
 0x2f6   : > { %p15547_p3 = pmov %p15541_p0 }
 0x2f7   : > { %11252 = dma.done.wait (%p15546_p1), [#allocation18], 1152  }
 0x2f8   : > { %11254 = vsyncadd (%p15547_p3), [#allocation18], 4294966144  ;;  %p15548_p5 = pmov %p15541_p0 }
 0x2f9   : > { %p15549_p11 = pmov %p15541_p0 }
 0x2fa   : > { %11256 = dma.done.wait (%p15548_p5), [#allocation21], 896  }
 0x2fb   : > { %11258 = vsyncadd (%p15549_p11), [#allocation21], 4294966400  ;;  %p15550_p12 = pmov %p15541_p0 }
 0x2fc   : > { %p15551_p6 = pmov %p15541_p0 }
 0x2fd   : > { %11260 = dma.done.wait (%p15550_p12), [#allocation24], 640  }
 0x2fe   : > { %11262 = vsyncadd (%p15551_p6), [#allocation24], 4294966656  ;;  %p15552_p13 = pmov %p15541_p0 }
 0x2ff   : > { %p15553_p2 = pmov %p15541_p0 }
 0x300   : > { %11264 = dma.done.wait (%p15552_p13), [#allocation27], 896  }
 0x301   : > { %11266 = vsyncadd (%p15553_p2), [#allocation27], 4294966400 }
 0x302   : > { %11268 = dma.done.wait (%p15541_p0), [#allocation30], 704   ;;  %p15554_p7 = pmov %p15541_p0 }
 0x303   : > { %p15555_p8 = pmov %p15541_p0 }
 0x304   : > { %11270 = vsyncadd (%p15554_p7), [#allocation30], 4294966592 }
 0x305   : > { %11272 = dma.done.wait (%p15555_p8), [#allocation33], 144   ;;  %p15556_p9 = pmov %p15541_p0 }
 0x306   : > { %p15557_p10 = pmov %p15541_p0 }
 0x307   : > { %11274 = vsyncadd (%p15556_p9), [#allocation33], 4294967152 }
 0x308   : > { %11276 = dma.done.wait (%p15557_p10), [#allocation36], 384   ;;  %p15558_p1 = pmov %p15541_p0 }
 0x309   : > { %p15559_p3 = pmov %p15541_p0 }
 0x30a   : > { %11278 = vsyncadd (%p15558_p1), [#allocation36], 4294966912 }
 0x30b   : > { %11280 = dma.done.wait (%p15559_p3), [#allocation39], 512   ;;  %p15560_p5 = pmov %p15541_p0 }
 0x30c   : > { %p15561_p11 = pmov %p15541_p0 }
 0x30d   : > { %11282 = vsyncadd (%p15560_p5), [#allocation39], 4294966784 }
 0x30e   : > { %11284 = dma.done.wait (%p15561_p11), [#allocation42], 128   ;;  %p15562_p12 = pmov %p15541_p0 }
 0x30f   : > { %v1334_v0 = vld [vmem:[%s12198_s7] sm:$0xff]  ;;  %s11352_s9 = smov 3   ;;  %v1335_v1 = vld [vmem:[%s12198_s7 + $0x8] sm:$0xff]  ;;  %v9407_v3 = vld [vmem:[%s12194_s30] sm:$0xff]   ;;  %s11353_s11 = smov 125   ;;  %v15414_v23 = vmov 0.0  }
 0x310   : > { %11286 = vsyncadd (%p15562_p12), [#allocation42], 4294967168  ;;  %1338 = vrot.lane.b32.xlu0 %v1334_v0, %s11352_s9  ;;  %v9418_v2 = vld [vmem:[%s12194_s30 + $0x8] sm:$0xff]   ;;  %v12258_v5 = vunpack.c.l.bf16 %v9407_v3  ;;  %v9419_v6 = vld [vmem:[%s12194_s30 + $0x10] sm:$0xff]   ;;  %v12265_v9 = vunpack.c.h.bf16 %v9407_v3  ;;  %9520 = vmatprep.subr.bf16.mxu0 %v15414_v23  ;;  %vm11355_vm0 = vmmov 0   ;;  %vm1762_vm1 = vcmask 1041408  }
 0x311   : > { %v12256_v4 = vunpack.c.l.bf16 %v9418_v2  ;;  %v12269_v11 = vunpack.c.l.bf16 %v9419_v6  ;;  %v12279_v15 = vunpack.c.h.bf16 %v9418_v2  ;;  %v12285_v17 = vunpack.c.h.bf16 %v9419_v6  ;;  %v10285_v22 = vld [vmem:[#allocation11] sm:$0xff]   ;;  %9524 = vmatprep.mubr.msk.bf16.mxu0 %vm11355_vm0, %v15414_v23  ;;  %v10286_v24 = vld [vmem:[#allocation11 + $0x8] sm:$0xff]   ;;  %9536 = vmatprep.subr.bf16.mxu1 %v15414_v23  ;;  %v10287_v26 = vld [vmem:[%s12187_s1] sm:$0xff]   ;;  %s11363_s3 = smov 30   ;;  %s11365_s25 = smov 126  }
 0x312   : > { %15564 = vst [vmem:[#allocation82_spill] sm:$0xff] %v12258_v5  ;;  %15565 = vst [vmem:[#allocation83_spill] sm:$0xff] %v12265_v9  ;;  %9521 = vmatpush3.bf16.msra.mxu0 %v10285_v22  ;;  %9540 = vmatprep.mubr.msk.bf16.mxu1 %vm11355_vm0, %v15414_v23  ;;  %v1751_v25 = vld [vmem:[#allocation14] sm:$0x3]  ;;  %vm1481_vm2 = vcmask 261120   ;;  %v10288_v28 = vld [vmem:[%s12187_s1 + $0x8] sm:$0xff]  }
 0x313   : > { %15563 = vst [vmem:[#allocation81_spill] sm:$0xff] %v12256_v4  ;;  %15566 = vst [vmem:[#allocation84_spill] sm:$0xff] %v12269_v11  ;;  %9522 = vmatprep.subr.bf16.mxu0 %v15414_v23  ;;  %v1764_v27 = vsel %vm1762_vm1, %v1751_v25, 0  ;;  %v10289_v29 = vld [vmem:[%s12187_s1 + $0x10] sm:$0xff]   ;;  %vm1380_vm3 = vcmask 23552   ;;  %v9266_v48 = vadd.f32 -0.5, %v12258_v5 }
 0x314   : > { %1340 = vrot.lane.b32.xlu0 %v1335_v1, %s11352_s9  ;;  %15567 = vst [vmem:[#allocation85_spill] sm:$0xff] %v12279_v15  ;;  %15568 = vst [vmem:[#allocation86_spill] sm:$0xff] %v12285_v17  ;;  %v9267_v49 = vadd.f32 -0.5, %v12265_v9  ;;  %v15410_v50 = vmov 0   ;;  %v15406_v51 = vmov 1   ;;  %v9268_v54 = vadd.f32 -0.5, %v12256_v4 }
 0x315   : > { %10195 = vset.pattern.permute.xlu1 %v15410_v50  ;;  %10197 = vset.pattern.permute.xlu0 %v15406_v51  ;;  %v1438_v52 = vmul.f32 2.0, %v9266_v48  ;;  %v9270_v55 = vadd.f32 -0.5, %v12269_v11  ;;  %v9271_v58 = vadd.f32 -0.5, %v12285_v17  ;;  %v9269_v59 = vadd.f32 -0.5, %v12279_v15  ;;  %v10290_v62 = vld [vmem:[#allocation13] sm:$0xff]   ;;  %v10291_v63 = vld [vmem:[#allocation13 + $0x8] sm:$0xff]  }
 0x316   : > { %9523 = vmatpush3.bf16.msra.mxu0 %v10286_v24  ;;  %v1439_v53 = vmul.f32 2.0, %v9267_v49  ;;  %v1440_v56 = vmul.f32 2.0, %v9268_v54  ;;  %9537 = vmatpush3.bf16.msra.mxu1 %v10290_v62  ;;  %vm1752_vm4 = vcmask 31744   ;;  %v1636_v54 = vld [vmem:[#allocation11 + $0x10] sm:$0x2]  ;;  %vm15452_vm5 = vcmask 23568  }
 0x317   : > { %9552 = vmatprep.subr.bf16.mxu0 %v15414_v23  ;;  %v1442_v57 = vmul.f32 2.0, %v9270_v55  ;;  %v1443_v60 = vmul.f32 2.0, %v9271_v58  ;;  %v1441_v61 = vmul.f32 2.0, %v9269_v59  ;;  %9538 = vmatprep.subr.bf16.mxu1 %v15414_v23  ;;  %v1637_v58 = vunpack.c.l.bf16 %v1636_v54  ;;  %s11367_s2 = smov 112   ;;  %s11368_s5 = smov 96  }
 0x318   : > { %vm1866_vm6 = vcmask 130048   ;;  %vm2227_vm10 = vcmask 1040384   ;;  %vm2195_vm11 = vsmask.f32 6400  ;;  %vm2103_vm13 = vcmask 285696   ;;  %s11369_s12 = smov 124  }
 0x319   : > { %9525 = vmatmul.mubr.msk.bf16.vlgmr.msra.gmra.mrb[0].mxu0 %vm1481_vm2, %v10287_v26  ;;  %s11370_s6 = smov 120   ;;  %s11379_s8 = smov 4  }
 0x31a   : > { %9528 = vmatprep.mubr.msk.bf16.mxu0 %vm11355_vm0, %v15414_v23  ;;  %9553 = vmatpush3.bf16.msra.mxu0 %v1764_v27  ;;  %s11380_s13 = smov 8   ;;  %s11381_s1 = smov 12  }
 0x31b   : > { %9580 = vmatprep.subr.bf16.mxu0 %v15414_v23  ;;  %9539 = vmatpush3.bf16.msra.mxu1 %v10291_v63  ;;  %s11382_s30 = smov 2   ;;  %s11383_s10 = smov 1  }
 0x31c   : > { %9566 = vmatprep.subr.bf16.mxu1 %v15414_v23  ;;  %s1314_s7 = scalar_lea.vmem [#allocation43], %s9242_s28 }
 0x31d   : > { %s8853_s9 = sshll.u32 %s1314_s7, 4  ;;  %s15279_s9 = int_to_ptr.vmem [resolvable:$true] %s8853_s9 }
 0x321   : > { %9529 = vmatmul.mubr.msk.bf16.gmra.mrb[4].mxu0 %vm1481_vm2, %v10288_v28 }
 0x322   : > { %9532 = vmatprep.mubr.msk.bf16.mxu0 %vm11355_vm0, %v15414_v23 }
 0x329   : > { %9533 = vmatmul.mubr.msk.bf16.gmra.mrb[8].mxu0 %vm1481_vm2, %v10289_v29 }
 0x32a   : > { %9554 = vmatprep.mubr.msk.bf16.mxu0 %vm11355_vm0, %v15414_v23 }
 0x382   : > { %v12261_v7 = vpop.permute.xlu0 %1338 }
 0x383   : > { %v1352_v8 = vmul.f32 %v12256_v4, %v12261_v7  ;;  %v1350_v10 = vmul.f32 %v12258_v5, %v12261_v7  ;;  %v1354_v13 = vmul.f32 %v12269_v11, %v12261_v7  ;;  %v1344_v20 = vsub.f32 %v12258_v5, %v12261_v7 }
 0x384   : > { %v1348_v43 = vsub.f32 %v12269_v11, %v12261_v7  ;;  %v1346_v46 = vsub.f32 %v12256_v4, %v12261_v7 }
 0x385   : > { %1366 = vrot.lane.b32.xlu0 %v1352_v8, %s11353_s11  ;;  %1362 = vrot.lane.b32.xlu1 %v1350_v10, %s11353_s11 }
 0x386   : > { %v12273_v12 = vpop.permute.xlu0 %1340 }
 0x387   : > { %v1351_v14 = vmul.f32 %v12265_v9, %v12273_v12  ;;  %v1353_v16 = vmul.f32 %v12279_v15, %v12273_v12  ;;  %v1355_v18 = vmul.f32 %v12285_v17, %v12273_v12  ;;  %v1345_v19 = vsub.f32 %v12265_v9, %v12273_v12 }
 0x388   : > { %v1349_v42 = vsub.f32 %v12285_v17, %v12273_v12  ;;  %v1347_v45 = vsub.f32 %v12279_v15, %v12273_v12 }
 0x389   : > { %1370 = vrot.lane.b32.xlu0 %v1354_v13, %s11353_s11  ;;  %1364 = vrot.lane.b32.xlu1 %v1351_v14, %s11353_s11  ;;  %v10180_v21 = vpack.i.bf16 %v1345_v19, %v1344_v20 }
 0x38a   : > { %v10190_v44 = vpack.i.bf16 %v1349_v42, %v1348_v43  ;;  %v10185_v47 = vpack.i.bf16 %v1347_v45, %v1346_v46  ;;  %v1548_v43 = vld [vmem:[#allocation11 + $0x10] sm:$0x1] }
 0x38b   : > { %v1549_v46 = vunpack.c.l.bf16 %v1548_v43 }
 0x38d   : > { %1368 = vrot.lane.b32.xlu1 %v1353_v16, %s11353_s11 }
 0x391   : > { %1372 = vrot.lane.b32.xlu1 %v1355_v18, %s11353_s11 }
 0x395   : > { %10181 = vrot.lane.b32.xlu1 %v10180_v21, %s11353_s11 }
 0x3ec   : > { %v1525_v0 = vpop.f32.mrb[0].mxu0 }
 0x3ed   : > { %v9526_v1 = vpop.f32.mrb[1].mxu0 }
 0x3ee   : > { %v1528_v2 = vpop.f32.mrb[2].mxu0 }
 0x3ef   : > { %v9527_v3 = vpop.f32.mrb[3].mxu0 }
 0x3f4   : > { %v12351_v6 = vpop.f32.mrb[4].mxu0 }
 0x3f5   : > { %v9530_v7 = vpop.f32.mrb[5].mxu0 }
 0x3f6   : > { %v12353_v10 = vpop.f32.mrb[6].mxu0 }
 0x3f7   : > { %v1363_v30 = vpop.permute.xlu1 %1362  ;;  %v1367_v32 = vpop.permute.xlu0 %1366 }
 0x3f8   : > { %v1381_v31 = vsel %vm1380_vm3, %v1363_v30, 0.0  ;;  %v1387_v34 = vsel %vm1380_vm3, %v1367_v32, 0.0  ;;  %v9531_v13 = vpop.f32.mrb[7].mxu0 }
 0x3f9   : > { %1382 = vadd.xlane.f32.xlu0 %v1381_v31 }
 0x3fb   : > { %v1365_v33 = vpop.permute.xlu1 %1364  ;;  %v1371_v38 = vpop.permute.xlu0 %1370 }
 0x3fc   : > { %v1384_v35 = vsel %vm1380_vm3, %v1365_v33, 0.0  ;;  %v1393_v39 = vsel %vm1380_vm3, %v1371_v38, 0.0  ;;  %v12357_v22 = vpop.f32.mrb[8].mxu0  ;;  %v1580_v38 = vlaneseq }
 0x3fd   : > { %1388 = vadd.xlane.f32.xlu0 %v1387_v34  ;;  %1385 = vadd.xlane.f32.xlu1 %v1384_v35  ;;  %v9534_v25 = vpop.f32.mrb[9].mxu0 }
 0x3fe   : > { %v12361_v26 = vpop.f32.mrb[10].mxu0  ;;  %v12376_v42 = vshrl.u32 %v1580_v38, 7 }
 0x3ff   : > { %v1369_v36 = vpop.permute.xlu1 %1368  ;;  %v9535_v28 = vpop.f32.mrb[11].mxu0 }
 0x400   : > { %v1390_v37 = vsel %vm1380_vm3, %v1369_v36, 0.0  ;;  %v12387_v48 = vsub.s32 1, %v12376_v42  ;;  %v12394_v59 = vsub.s32 2, %v12376_v42 }
 0x401   : > { %1391 = vadd.xlane.f32.xlu0 %v1390_v37 }
 0x402   : > { %15573 = vst [vmem:[#allocation91_spill] sm:$0xff] %v12387_v48  ;;  %v1641_v1 = vrot.slane %v1637_v58, %v12394_v59 }
 0x403   : > { %v1373_v40 = vpop.permute.xlu1 %1372 }
 0x404   : > { %v1396_v41 = vsel %vm1380_vm3, %v1373_v40, 0.0 }
 0x405   : > { %1394 = vadd.xlane.f32.xlu0 %v1393_v39 }
 0x407   : > { %v10182_v8 = vpop.permute.xlu1 %10181 }
 0x408   : > { %v10184_v14 = vunpack.i.h.bf16 %v10182_v8  ;;  %v10183_v16 = vunpack.i.l.bf16 %v10182_v8 }
 0x409   : > { %1397 = vadd.xlane.f32.xlu0 %v1396_v41 }
 0x40e   : > { %10191 = vrot.lane.b32.xlu1 %v10190_v44, %s11353_s11 }
 0x412   : > { %1552 = vperm.xlu1 %10195, %v1438_v52  }
 0x416   : > { %1557 = vperm.xlu1 %10195, %v1439_v53  }
 0x41a   : > { %10196 = vset.pattern.permute.xlu1 %v15406_v51 }
 0x41b   : > { %1597 = vperm.xlu1 %10196, %v1438_v52  }
 0x41f   : > { %10186 = vrot.lane.b32.xlu0 %v10185_v47, %s11353_s11  ;;  %10198 = vset.pattern.permute.xlu1 %v15410_v50  ;;  %v12382_v47 = vsub.s32 0, %v12376_v42  ;;  %s9405_s11 = sshll.u32 %s15539_s27, 8  ;;  %s8840_s27 = scalar_lea.sflag [#allocation4], %s12176_s4 }
 0x420   : > { %1562 = vperm.xlu1 %10198, %v1440_v56  }
 0x421   : > { %15572 = vst [vmem:[#allocation90_spill] sm:$0xff] %v12382_v47  ;;  %v1583_v49 = vrot.slane %v1549_v46, %v12382_v47 }
 0x423   : > { %1601 = vperm.xlu0 %10197, %v1439_v53   ;;  %v1623_v53 = vrot.slane %v1549_v46, %v12387_v48 }
 0x424   : > { %1567 = vperm.xlu1 %10198, %v1441_v61  }
 0x427   : > { %1605 = vperm.xlu0 %10197, %v1440_v56  }
 0x428   : > { %10199 = vset.pattern.permute.xlu1 %v15406_v51 }
 0x429   : > { %1609 = vperm.xlu1 %10199, %v1441_v61  }
 0x42b   : > { %10200 = vset.pattern.permute.xlu0 %v15410_v50 }
 0x42c   : > { %1572 = vperm.xlu0 %10200, %v1442_v57  }
 0x42d   : > { %10201 = vset.pattern.permute.xlu1 %v15410_v50 }
 0x42e   : > { %1577 = vperm.xlu1 %10201, %v1443_v60  }
 0x430   : > { %10203 = vset.pattern.permute.xlu0 %v15406_v51 }
 0x431   : > { %1617 = vperm.xlu0 %10203, %v1443_v60  }
 0x432   : > { %10202 = vset.pattern.permute.xlu1 %v15406_v51 }
 0x433   : > { %1613 = vperm.xlu1 %10202, %v1442_v57  }
 0x486   : > { %v1383_v12 = vpop.xlane.xlu0 %1382 }
 0x487   : > { %v1423_v20 = vsel %vm1380_vm3, %v10183_v16, %v1383_v12 }
 0x48a   : > { %v1389_v18 = vpop.xlane.xlu0 %1388  ;;  %v1386_v19 = vpop.xlane.xlu1 %1385 }
 0x48b   : > { %v1424_v21 = vsel %vm1380_vm3, %v10184_v14, %v1386_v19 }
 0x48c   : > { %v12359_v24 = vpack.c.bf16 %v1424_v21, %v1423_v20 }
 0x48e   : > { %15569 = vst [vmem:[#allocation87_spill] sm:$0xff] %v12359_v24  ;;  %v1392_v27 = vpop.xlane.xlu0 %1391  ;;  %9555 = vmatmul.mubr.msk.bf16.vlgmr.msra.gmra.mrb[12].mxu0 %vm1752_vm4, %v12359_v24  ;;  %v10192_v36 = vpop.permute.xlu1 %10191  ;;  %v11373_v24 = vmov 1934713408  }
 0x48f   : > { %9558 = vmatprep.mubr.msk.bf16.mxu0 %vm11355_vm0, %v15414_v23  ;;  %v10194_v39 = vunpack.i.h.bf16 %v10192_v36  ;;  %v10193_v40 = vunpack.i.l.bf16 %v10192_v36 }
 0x492   : > { %v1395_v29 = vpop.xlane.xlu0 %1394  ;;  %v1553_v52 = vpop.permute.xlu1 %1552 }
 0x493   : > { %v1427_v44 = vsel %vm1380_vm3, %v10193_v40, %v1395_v29  ;;  %v1584_v56 = vmul.f32 %v1583_v49, %v1553_v52 }
 0x495   : > { %v1590_v63 = vadd.f32 %v1584_v56, %v1525_v0 }
 0x496   : > { %v1398_v30 = vpop.xlane.xlu0 %1397  ;;  %v1558_v57 = vpop.permute.xlu1 %1557 }
 0x497   : > { %v1428_v41 = vsel %vm1380_vm3, %v10194_v39, %v1398_v30  ;;  %v1585_v60 = vmul.f32 %v1583_v49, %v1558_v57 }
 0x498   : > { %v12379_v45 = vpack.c.bf16 %v1428_v41, %v1427_v44 }
 0x499   : > { %v1591_v62 = vadd.f32 %v1585_v60, %v1528_v2  ;;  %v2003_v60 = vsel %vm15452_vm5, %v12256_v4, 0.0 }
 0x49a   : > { %v10187_v31 = vpop.permute.xlu0 %10186  ;;  %15571 = vst [vmem:[#allocation89_spill] sm:$0xff] %v12379_v45  ;;  %v1598_v3 = vpop.permute.xlu1 %1597 }
 0x49b   : > { %v10189_v32 = vunpack.i.h.bf16 %v10187_v31  ;;  %v10188_v33 = vunpack.i.l.bf16 %v10187_v31  ;;  %v1624_v8 = vmul.f32 %v1623_v53, %v1598_v3  ;;  %v2010_v3 = vsel %vm15452_vm5, %v12285_v17, 0.0 }
 0x49d   : > { %v1426_v34 = vsel %vm1380_vm3, %v10189_v32, %v1392_v27  ;;  %v1425_v35 = vsel %vm1380_vm3, %v10188_v33, %v1389_v18  ;;  %v1630_v12 = vadd.f32 %v1624_v8, %v1590_v63 }
 0x49e   : > { %v12369_v37 = vpack.c.bf16 %v1426_v34, %v1425_v35 }
 0x49f   : > { %v1642_v14 = vadd.f32 %v1641_v1, %v1630_v12  ;;  %v1563_v16 = vpop.permute.xlu1 %1562 }
 0x4a0   : > { %15570 = vst [vmem:[#allocation88_spill] sm:$0xff] %v12369_v37  ;;  %9559 = vmatmul.mubr.msk.bf16.gmra.mrb[16].mxu0 %vm1752_vm4, %v12369_v37  ;;  %v1586_v19 = vmul.f32 %v1583_v49, %v1563_v16 }
 0x4a1   : > { %9562 = vmatprep.mubr.msk.bf16.mxu0 %vm11355_vm0, %v15414_v23 }
 0x4a2   : > { %v1602_v55 = vpop.permute.xlu0 %1601  ;;  %v1592_v25 = vadd.f32 %v1586_v19, %v12351_v6 }
 0x4a3   : > { %v1625_v61 = vmul.f32 %v1623_v53, %v1602_v55  ;;  %v1568_v21 = vpop.permute.xlu1 %1567 }
 0x4a4   : > { %v1587_v2 = vmul.f32 %v1583_v49, %v1568_v21 }
 0x4a5   : > { %v1631_v7 = vadd.f32 %v1625_v61, %v1591_v62  ;;  %v2005_v61 = vsel %vm15452_vm5, %v12269_v11, 0.0  ;;  %v2007_v62 = vsel %vm15452_vm5, %v12265_v9, 0.0 }
 0x4a6   : > { %v1606_v18 = vpop.permute.xlu0 %1605  ;;  %v1593_v29 = vadd.f32 %v1587_v2, %v12353_v10 }
 0x4a7   : > { %v1643_v13 = vadd.f32 %v1641_v1, %v1631_v7  ;;  %v1626_v27 = vmul.f32 %v1623_v53, %v1606_v18 }
 0x4a8   : > { %9563 = vmatmul.mubr.msk.bf16.gmra.mrb[20].mxu0 %vm1752_vm4, %v12379_v45  ;;  %v1610_v31 = vpop.permute.xlu1 %1609 }
 0x4a9   : > { %9586 = vmatprep.mubr.msk.bf16.mxu0 %vm11355_vm0, %v15414_v23  ;;  %v1648_v20 = vpack.c.bf16 %v1643_v13, %v1642_v14  ;;  %v1632_v30 = vadd.f32 %v1626_v27, %v1592_v25  ;;  %v1627_v32 = vmul.f32 %v1623_v53, %v1610_v31 }
 0x4ab   : > { %v1651_v28 = vmax.bf16 %v15410_v50, %v1648_v20  ;;  %v1573_v0 = vpop.permute.xlu0 %1572  ;;  %v1644_v33 = vadd.f32 %v1641_v1, %v1632_v30  ;;  %v1633_v34 = vadd.f32 %v1627_v32, %v1593_v29  ;;  %v1826_v30 = vld [vmem:[#allocation14] sm:$0x4] }
 0x4ac   : > { %v1588_v6 = vmul.f32 %v1583_v49, %v1573_v0  ;;  %v1828_v31 = vpack.i.b16 %v1826_v30, %v1826_v30 }
 0x4ad   : > { %9541 = vmatmul.mubr.msk.bf16.vlgmr.msra.gmra.mrb[0].mxu1 %vm1481_vm2, %v1651_v28  ;;  %v1645_v36 = vadd.f32 %v1641_v1, %v1633_v34  ;;  %v1578_v38 = vpop.permute.xlu1 %1577 }
 0x4ae   : > { %9544 = vmatprep.mubr.msk.bf16.mxu1 %vm11355_vm0, %v15414_v23  ;;  %v1589_v39 = vmul.f32 %v1583_v49, %v1578_v38  ;;  %v1594_v44 = vadd.f32 %v1588_v6, %v12357_v22  ;;  %v10292_v22 = vld [vmem:[#allocation16] sm:$0xff]   ;;  %v1833_v34 = vrot.slane %v1828_v31, %v12394_v59 }
 0x4af   : > { %v1649_v41 = vpack.c.bf16 %v1645_v36, %v1644_v33  ;;  %9567 = vmatpush3.bf16.msra.mxu1 %v10292_v22 }
 0x4b0   : > { %v1618_v35 = vpop.permute.xlu0 %1617  ;;  %v1595_v43 = vadd.f32 %v1589_v39, %v12361_v26  ;;  %9600 = vmatprep.subr.bf16.mxu1 %v15414_v23  ;;  %v15412_v26 = vmov 2  }
 0x4b1   : > { %v1629_v40 = vmul.f32 %v1623_v53, %v1618_v35  ;;  %v1652_v58 = vmax.bf16 %v15410_v50, %v1649_v41  ;;  %10204 = vset.pattern.permute.xlu1 %v15412_v26  ;;  %10205 = vset.pattern.permute.xlu0 %v15412_v26 }
 0x4b2   : > { %v1614_v52 = vpop.permute.xlu1 %1613 }
 0x4b3   : > { %v1635_v46 = vadd.f32 %v1629_v40, %v1595_v43  ;;  %v1628_v54 = vmul.f32 %v1623_v53, %v1614_v52  ;;  %v2002_v53 = vsel %vm15452_vm5, %v12258_v5, 0.0 }
 0x4b4   : > { %v2004_v63 = vadd.f32 %v2003_v60, %v2002_v53 }
 0x4b5   : > { %v1647_v10 = vadd.f32 %v1641_v1, %v1635_v46  ;;  %v1634_v55 = vadd.f32 %v1628_v54, %v1594_v44  ;;  %9545 = vmatmul.mubr.msk.bf16.gmra.mrb[4].mxu1 %vm1481_vm2, %v1652_v58 }
 0x4b6   : > { %9548 = vmatprep.mubr.msk.bf16.mxu1 %vm11355_vm0, %v15414_v23  ;;  %v12428_v8 = vadd.f32 %v2005_v61, %v2004_v63 }
 0x4b7   : > { %v1646_v56 = vadd.f32 %v1641_v1, %v1634_v55  ;;  %v2008_v1 = vsel %vm15452_vm5, %v12279_v15, 0.0 }
 0x4b8   : > { %v2009_v7 = vadd.f32 %v2008_v1, %v2007_v62  ;;  %15574 = vst [vmem:[#allocation92_spill] sm:$0xff] %v12428_v8  ;;  %v2012_v13 = vadd.f32 1e-08, %v12428_v8 }
 0x4b9   : > { %v1650_v57 = vpack.c.bf16 %v1647_v10, %v1646_v56  ;;  %v15408_v10 = vmov 1065369472  }
 0x4ba   : > { %v12430_v12 = vadd.f32 %v2010_v3, %v2009_v7  ;;  %10333 = vrcp.f32 %v2012_v13  ;;  %v1736_v7 = vld [vmem:[#allocation13 + $0x10] sm:$0x1] }
 0x4bb   : > { %v1653_v49 = vmax.bf16 %v15410_v50, %v1650_v57 }
 0x4bc   : > { %15575 = vst [vmem:[#allocation93_spill] sm:$0xff] %v12430_v12  ;;  %v2013_v14 = vadd.f32 1e-08, %v12430_v12 }
 0x4bd   : > { %9549 = vmatmul.mubr.msk.bf16.gmra.mrb[8].mxu1 %vm1481_vm2, %v1653_v49 }
 0x4be   : > { %9568 = vmatprep.mubr.msk.bf16.mxu1 %vm11355_vm0, %v15414_v23  ;;  %10335 = vrcp.f32 %v2013_v14 }
 0x4c4   : > { %v10334_v16 = vpop.eup %10333 }
 0x4c5   : > { %v2016_v19 = vmul.f32 %v10334_v16, %v12258_v5  ;;  %v2020_v20 = vmul.f32 %v10334_v16, %v12269_v11  ;;  %v2018_v25 = vmul.f32 %v10334_v16, %v12256_v4  ;;  %v1737_v16 = vunpack.c.l.bf16 %v1736_v7 }
 0x4c8   : > { %v10336_v18 = vpop.eup %10335 }
 0x4c9   : > { %v2017_v21 = vmul.f32 %v10336_v18, %v12265_v9  ;;  %v2019_v27 = vmul.f32 %v10336_v18, %v12279_v15  ;;  %v2021_v28 = vmul.f32 %v10336_v18, %v12285_v17 }
 0x4cb   : > { %v2022_v2 = vpack.c.bf16 %v2017_v21, %v2016_v19  ;;  %v2024_v0 = vpack.c.bf16 %v2021_v28, %v2020_v20  ;;  %v2023_v29 = vpack.c.bf16 %v2019_v27, %v2018_v25  ;;  %v1741_v19 = vrot.slane %v1737_v16, %v12382_v47  ;;  %v10298_v16 = vld [vmem:[#allocation17 + $0x20] ss:$0 sps:$4 sm:$0x77]  }
 0x4cd   : > { %2027 = vperm.xlu1 %10204, %v2022_v2   ;;  %2037 = vperm.xlu0 %10205, %v2024_v0  }
 0x4d1   : > { %2032 = vperm.xlu1 %10204, %v2023_v29  }
 0x561   : > { %v1800_v32 = vpop.f32.mrb[12].mxu0 }
 0x562   : > { %v9556_v33 = vpop.f32.mrb[13].mxu0 }
 0x563   : > { %v1803_v35 = vpop.f32.mrb[14].mxu0 }
 0x564   : > { %v1823_v36 = vpack.c.bf16 %v1803_v35, %v1800_v32  ;;  %v9557_v6 = vpop.f32.mrb[15].mxu0 }
 0x566   : > { %v1834_v38 = vadd.bf16 %v1833_v34, %v1823_v36 }
 0x568   : > { %v1840_v39 = vmin.bf16 %v15410_v50, %v1834_v38  ;;  %vm1837_vm7 = vcmp.gt.bf16.partialorder %v1834_v38, 0 }
 0x56a   : > { %v1844_v40 = vmul.bf16 1069105081, %v1840_v39 }
 0x56c   : > { %10337 = vpow.bf16 %v1844_v40 }
 0x573   : > { %v1808_v41 = vpop.f32.mrb[16].mxu0 }
 0x574   : > { %v9560_v43 = vpop.f32.mrb[17].mxu0 }
 0x575   : > { %v1811_v44 = vpop.f32.mrb[18].mxu0 }
 0x576   : > { %v1824_v46 = vpack.c.bf16 %v1811_v44, %v1808_v41  ;;  %v9561_v52 = vpop.f32.mrb[19].mxu0 }
 0x577   : > { %v10338_v54 = vpop.eup %10337 }
 0x578   : > { %v1852_v55 = vsub.bf16 %v10338_v54, %v15408_v10  ;;  %v1835_v56 = vadd.bf16 %v1833_v34, %v1824_v46  ;;  %v10293_v54 = vld [vmem:[#allocation19] sm:$0xff]  }
 0x57a   : > { %v1855_v57 = vsel %vm1837_vm7, %v1834_v38, %v1852_v55  ;;  %v1841_v58 = vmin.bf16 %v15410_v50, %v1835_v56  ;;  %vm1838_vm8 = vcmp.gt.bf16.partialorder %v1835_v56, 0  ;;  %v11360_v55 = vmov 65535  }
 0x57b   : > { %v1816_v49 = vpop.f32.mrb[20].mxu0  ;;  %9569 = vmatmul.mubr.msk.bf16.vlgmr.msra.gmra.mrb[12].mxu1 %vm1866_vm6, %v1855_v57  ;;  %v10294_v57 = vld [vmem:[#allocation19 + $0x8] sm:$0xff]   ;;  %vm2632_vm7 = vcmask 523264  }
 0x57c   : > { %v1847_v22 = vmul.bf16 1069105081, %v1841_v58  ;;  %v9564_v53 = vpop.f32.mrb[21].mxu0  ;;  %9572 = vmatprep.mubr.msk.bf16.mxu1 %vm11355_vm0, %v15414_v23  ;;  %9601 = vmatpush3.bf16.msra.mxu1 %v10293_v54 }
 0x57d   : > { %v1819_v60 = vpop.f32.mrb[22].mxu0  ;;  %9602 = vmatprep.subr.bf16.mxu1 %v15414_v23  ;;  %v10296_v53 = vld [vmem:[#allocation17 + $0x10] sm:$0xfe]  }
 0x57e   : > { %10339 = vpow.bf16 %v1847_v22  ;;  %v1825_v61 = vpack.c.bf16 %v1819_v60, %v1816_v49  ;;  %v9565_v62 = vpop.f32.mrb[23].mxu0  ;;  %v10295_v49 = vld [vmem:[#allocation19 + $0x10] ss:$0 sps:$4 sm:$0x33]   ;;  %v10297_v60 = vld [vmem:[#allocation17 + $0x18] sm:$0xff]  }
 0x57f   : > { %v2200_v62 = vshll.u32 %v10296_v53, 16 }
 0x580   : > { %v1836_v63 = vadd.bf16 %v1833_v34, %v1825_v61  ;;  %v1713_v25 = vpop.f32.mrb[0].mxu1  ;;  %9603 = vmatpush3.bf16.msra.mxu1 %v10294_v57  ;;  %v2197_v61 = vshrl.u32 %v10296_v53, 16 }
 0x581   : > { %v12454_v27 = vadd.f32 %v1741_v19, %v1713_v25  ;;  %v9542_v28 = vpop.f32.mrb[1].mxu1  ;;  %9604 = vmatprep.subr.bf16.mxu1 %v15414_v23  ;;  %v2202_v7 = vrot.slane %v2200_v62, 2 }
 0x582   : > { %v1842_v1 = vmin.bf16 %v15410_v50, %v1836_v63  ;;  %vm1839_vm9 = vcmp.gt.bf16.partialorder %v1836_v63, 0  ;;  %v1716_v0 = vpop.f32.mrb[2].mxu1 }
 0x583   : > { %v12457_v29 = vadd.f32 %v1741_v19, %v1716_v0  ;;  %v9543_v30 = vpop.f32.mrb[3].mxu1 }
 0x584   : > { %v1850_v3 = vmul.bf16 1069105081, %v1842_v1  ;;  %v2208_v1 = vshll.u32 %v10297_v60, 16 }
 0x585   : > { %v1748_v31 = vpack.c.bf16 %v12457_v29, %v12454_v27  ;;  %v10305_v27 = vld [vmem:[#allocation20] sm:$0xff]   ;;  %v10306_v29 = vld [vmem:[#allocation20 + $0x8] sm:$0xff]  }
 0x586   : > { %10341 = vpow.bf16 %v1850_v3  ;;  %v2199_v3 = vrot.slane %v2197_v61, 1 }
 0x588   : > { %v1721_v32 = vpop.f32.mrb[4].mxu1 }
 0x589   : > { %v10340_v13 = vpop.eup %10339  ;;  %v12463_v33 = vadd.f32 %v1741_v19, %v1721_v32  ;;  %v9546_v34 = vpop.f32.mrb[5].mxu1 }
 0x58a   : > { %v1853_v14 = vsub.bf16 %v10340_v13, %v15408_v10  ;;  %v1724_v35 = vpop.f32.mrb[6].mxu1  ;;  %v1936_v34 = vld [vmem:[#allocation16 + $0x8] sm:$0x1] }
 0x58b   : > { %v12465_v36 = vadd.f32 %v1741_v19, %v1724_v35  ;;  %v9547_v6 = vpop.f32.mrb[7].mxu1  ;;  %v1938_v35 = vpack.i.b16 %v1936_v34, %v1936_v34 }
 0x58c   : > { %v1856_v18 = vsel %vm1838_vm8, %v1835_v56, %v1853_v14  ;;  %v2228_v56 = vsel %vm2227_vm10, 4294967295, %v11360_v55  ;;  %v2210_v14 = vrot.slane %v2208_v1, 2 }
 0x58d   : > { %9573 = vmatmul.mubr.msk.bf16.gmra.mrb[16].mxu1 %vm1866_vm6, %v1856_v18  ;;  %v1749_v38 = vpack.c.bf16 %v12465_v36, %v12463_v33  ;;  %v12477_v58 = vsel %vm1762_vm1, %v2228_v56, 0  ;;  %v2203_v18 = vor.u32 %v2202_v7, %v2199_v3  ;;  %v1968_v7 = vld [vmem:[%s12180_s26] sm:$0xf]  ;;  %v10308_v33 = vld [vmem:[#allocation20 + $0x18] sm:$0xff]  }
 0x58e   : > { %9576 = vmatprep.mubr.msk.bf16.mxu1 %vm11355_vm0, %v15414_v23  ;;  %v2381_v22 = vand.u32 %v10295_v49, %v12477_v58 }
 0x590   : > { %v1729_v39 = vpop.f32.mrb[8].mxu1  ;;  %9605 = vmatpush3.bf16.msra.mxu1 %v2381_v22 }
 0x591   : > { %v10342_v20 = vpop.eup %10341  ;;  %v12469_v40 = vadd.f32 %v1741_v19, %v1729_v39  ;;  %v9550_v41 = vpop.f32.mrb[9].mxu1  ;;  %9634 = vmatprep.subr.bf16.mxu1 %v15414_v23 }
 0x592   : > { %v1854_v21 = vsub.bf16 %v10342_v20, %v15408_v10  ;;  %v1732_v43 = vpop.f32.mrb[10].mxu1  ;;  %v2214_v20 = vshrl.u32 %v10298_v16, 16  ;;  %v1943_v41 = vrot.slane %v1938_v35, %v12382_v47 }
 0x593   : > { %v12471_v44 = vadd.f32 %v1741_v19, %v1732_v43  ;;  %v9551_v46 = vpop.f32.mrb[11].mxu1 }
 0x594   : > { %v1857_v2 = vsel %vm1839_vm9, %v1836_v63, %v1854_v21  ;;  %v2205_v63 = vshrl.u32 %v10297_v60, 16  ;;  %v2217_v21 = vshll.u32 %v10298_v16, 16  ;;  %v2216_v28 = vrot.slane %v2214_v20, 1 }
 0x595   : > { %9577 = vmatmul.mubr.msk.bf16.gmra.mrb[20].mxu1 %vm1866_vm6, %v1857_v2  ;;  %v1750_v52 = vpack.c.bf16 %v12471_v44, %v12469_v40 }
 0x596   : > { %9606 = vmatprep.mubr.msk.bf16.mxu1 %vm11355_vm0, %v15414_v23  ;;  %v2207_v13 = vrot.slane %v2205_v63, 1  ;;  %v2219_v2 = vrot.slane %v2217_v21, 2  ;;  %v11361_v21 = vmov 839922192  }
 0x598   : > { %v2211_v19 = vor.u32 %v2210_v14, %v2207_v13  ;;  %v2220_v0 = vor.u32 %v2219_v2, %v2216_v28  ;;  %v1969_v13 = vld [vmem:[%s12180_s26 + $0x4] sm:$0xf]  ;;  %v11362_v28 = vmov 1985246804  }
 0x599   : > { %v2051_v2 = vunpack.c.l.s4 %v11362_v28 }
 0x59a   : > { %v2212_v25 = vsel %vm2195_vm11, %v2203_v18, %v2211_v19  ;;  %v2221_v30 = vsel %vm2195_vm11, %v2211_v19, %v2220_v0  ;;  %v2231_v32 = vand.u32 %v12477_v58, %v2220_v0 }
 0x59b   : > { %9581 = vmatpush3.bf16.msra.mxu0 %v2212_v25  ;;  %v2044_v25 = vunpack.c.l.s4 %v11361_v21 }
 0x59c   : > { %9582 = vmatprep.subr.bf16.mxu0 %v15414_v23 }
 0x59f   : > { %9583 = vmatpush3.bf16.msra.mxu0 %v2221_v30 }
 0x5a0   : > { %9584 = vmatprep.subr.bf16.mxu0 %v15414_v23 }
 0x5a3   : > { %9585 = vmatpush3.bf16.msra.mxu0 %v2231_v32 }
 0x5a4   : > { %9590 = vmatprep.subr.bf16.mxu0 %v15414_v23 }
 0x64e   : > { %v1910_v6 = vpop.f32.mrb[12].mxu1 }
 0x64f   : > { %v9570_v39 = vpop.f32.mrb[13].mxu1 }
 0x650   : > { %v1913_v43 = vpop.f32.mrb[14].mxu1 }
 0x651   : > { %v1933_v46 = vpack.c.bf16 %v1913_v43, %v1910_v6  ;;  %v9571_v54 = vpop.f32.mrb[15].mxu1  ;;  %v2045_v43 = vunpack.c.0.s8 %v2044_v25 }
 0x653   : > { %v1944_v55 = vadd.bf16 %v1943_v41, %v1933_v46  ;;  %v2052_v46 = vunpack.c.0.s8 %v2051_v2 }
 0x655   : > { %v1950_v56 = vmin.bf16 %v15410_v50, %v1944_v55  ;;  %vm1947_vm12 = vcmp.gt.bf16.partialorder %v1944_v55, 0 }
 0x657   : > { %v1954_v57 = vmul.bf16 1069105081, %v1950_v56  ;;  %v2048_v56 = vsub.s32 %v2045_v43, %v12376_v42 }
 0x659   : > { %10343 = vpow.bf16 %v1954_v57  ;;  %v2055_v57 = vsub.s32 %v2052_v46, %v12376_v42 }
 0x660   : > { %v1918_v49 = vpop.f32.mrb[16].mxu1 }
 0x661   : > { %v9574_v22 = vpop.f32.mrb[17].mxu1 }
 0x662   : > { %v1921_v53 = vpop.f32.mrb[18].mxu1  ;;  %v12506_v22 = vpop.permute.xlu1 %2027 }
 0x663   : > { %v1934_v60 = vpack.c.bf16 %v1921_v53, %v1918_v49  ;;  %v9575_v61 = vpop.f32.mrb[19].mxu1  ;;  %v2049_v53 = vrot.slane %v12506_v22, %v2048_v56 }
 0x664   : > { %v10344_v62 = vpop.eup %10343 }
 0x665   : > { %v1962_v63 = vsub.bf16 %v10344_v62, %v15408_v10  ;;  %v1945_v1 = vadd.bf16 %v1943_v41, %v1934_v60 }
 0x666   : > { %v12511_v62 = vpop.permute.xlu1 %2032 }
 0x667   : > { %v1965_v3 = vsel %vm1947_vm12, %v1944_v55, %v1962_v63  ;;  %v1951_v14 = vmin.bf16 %v15410_v50, %v1945_v1  ;;  %vm1948_vm14 = vcmp.gt.bf16.partialorder %v1945_v1, 0 }
 0x668   : > { %v9292_v16 = vcombine.low %v1965_v3, %v1965_v3  ;;  %v9293_v18 = vcombine.high %v1965_v3, %v1965_v3  ;;  %v1926_v19 = vpop.f32.mrb[20].mxu1  ;;  %v1970_v3 = vld [vmem:[%s12180_s26 + $0x8] sm:$0xf] }
 0x669   : > { %v1957_v20 = vmul.bf16 1069105081, %v1951_v14  ;;  %v9578_v0 = vpop.f32.mrb[21].mxu1 }
 0x66a   : > { %v12494_v30 = vadd.bf16 %v9292_v16, %v1968_v7  ;;  %v12496_v32 = vadd.bf16 %v9293_v18, %v1969_v13  ;;  %v1929_v34 = vpop.f32.mrb[22].mxu1  ;;  %v1971_v7 = vld [vmem:[%s12180_s26 + $0xc] sm:$0xf] }
 0x66b   : > { %10345 = vpow.bf16 %v1957_v20  ;;  %v1935_v35 = vpack.c.bf16 %v1929_v34, %v1926_v19  ;;  %v9579_v6 = vpop.f32.mrb[23].mxu1  ;;  %v2063_v19 = vrot.slane %v12511_v62, %v2048_v56  ;;  %v2070_v20 = vrot.slane %v12511_v62, %v2055_v57 }
 0x66c   : > { %15576 = vst [vmem:[#allocation94_spill] sm:$0xff] %v12494_v30  ;;  %15577 = vst [vmem:[#allocation95_spill] sm:$0xff] %v12496_v32  ;;  %v9311_v39 = vcombine.low %v12494_v30, %v12496_v32  ;;  %v2091_v13 = vmul.bf16 %v2049_v53, %v12494_v30 }
 0x66d   : > { %v1946_v54 = vadd.bf16 %v1943_v41, %v1935_v35  ;;  %v2056_v41 = vrot.slane %v12506_v22, %v2055_v57 }
 0x66e   : > { %9607 = vmatmul.mubr.msk.bf16.vlgmr.msra.gmra.mrb[24].mxu1 %vm2103_vm13, %v9311_v39  ;;  %v2097_v28 = vunpack.c.l.bf16 %v2091_v13 }
 0x66f   : > { %v1952_v55 = vmin.bf16 %v15410_v50, %v1946_v54  ;;  %9610 = vmatprep.mubr.msk.bf16.mxu1 %vm11355_vm0, %v15414_v23  ;;  %v2092_v14 = vmul.bf16 %v2056_v41, %v12496_v32  ;;  %vm1949_vm15 = vcmp.gt.bf16.partialorder %v1946_v54, 0  ;;  %9635 = vmatpush3.bf16.msra.mxu1 %v10305_v27 }
 0x670   : > { %9636 = vmatprep.subr.bf16.mxu1 %v15414_v23 }
 0x671   : > { %v1960_v49 = vmul.bf16 1069105081, %v1952_v55  ;;  %v2098_v2 = vunpack.c.l.bf16 %v2092_v14 }
 0x673   : > { %10347 = vpow.bf16 %v1960_v49  ;;  %v2104_v49 = vsel %vm2103_vm13, %v2097_v28, 0.0  ;;  %v2109_v53 = vsel %vm2103_vm13, %v2098_v2, 0.0  ;;  %9637 = vmatpush3.bf16.msra.mxu1 %v10306_v29 }
 0x674   : > { %9638 = vmatprep.subr.bf16.mxu1 %v15414_v23 }
 0x676   : > { %v10346_v60 = vpop.eup %10345 }
 0x677   : > { %v1963_v61 = vsub.bf16 %v10346_v60, %v15408_v10  ;;  %v1972_v60 = vld [vmem:[%s12180_s26 + $0x10] sm:$0xf] }
 0x679   : > { %v1966_v63 = vsel %vm1948_vm14, %v1945_v1, %v1963_v61  ;;  %v12523_v1 = vpop.permute.xlu0 %2037  ;;  %v1973_v61 = vld [vmem:[%s12180_s26 + $0x14] sm:$0xf]  ;;  %s11371_s26 = smov 116  }
 0x67a   : > { %v9294_v16 = vcombine.low %v1966_v63, %v1966_v63  ;;  %v9295_v18 = vcombine.high %v1966_v63, %v1966_v63  ;;  %v2077_v55 = vrot.slane %v12523_v1, %v2048_v56  ;;  %v2084_v63 = vrot.slane %v12523_v1, %v2055_v57 }
 0x67c   : > { %v12519_v21 = vadd.bf16 %v9294_v16, %v1970_v3  ;;  %v12521_v25 = vadd.bf16 %v9295_v18, %v1971_v7 }
 0x67e   : > { %15578 = vst [vmem:[#allocation96_spill] sm:$0xff] %v12519_v21  ;;  %15579 = vst [vmem:[#allocation97_spill] sm:$0xff] %v12521_v25  ;;  %v10348_v0 = vpop.eup %10347  ;;  %v2093_v34 = vmul.bf16 %v2063_v19, %v12519_v21  ;;  %v2094_v35 = vmul.bf16 %v2070_v20, %v12521_v25  ;;  %v9312_v6 = vcombine.low %v12519_v21, %v12521_v25 }
 0x67f   : > { %v1964_v39 = vsub.bf16 %v10348_v0, %v15408_v10 }
 0x680   : > { %v2099_v43 = vunpack.c.l.bf16 %v2093_v34  ;;  %v2100_v46 = vunpack.c.l.bf16 %v2094_v35  ;;  %9611 = vmatmul.mubr.msk.bf16.gmra.mrb[28].mxu1 %vm2103_vm13, %v9312_v6 }
 0x681   : > { %v1967_v41 = vsel %vm1949_vm15, %v1946_v54, %v1964_v39  ;;  %9614 = vmatprep.mubr.msk.bf16.mxu1 %vm11355_vm0, %v15414_v23 }
 0x682   : > { %v9296_v3 = vcombine.low %v1967_v41, %v1967_v41  ;;  %v9297_v7 = vcombine.high %v1967_v41, %v1967_v41  ;;  %v2105_v13 = vsel %vm2103_vm13, %v2099_v43, 0.0  ;;  %v2110_v14 = vsel %vm2103_vm13, %v2100_v46, 0.0 }
 0x683   : > { %v2106_v16 = vadd.f32 %v2105_v13, %v2104_v49  ;;  %v2111_v56 = vadd.f32 %v2110_v14, %v2109_v53 }
 0x684   : > { %v12541_v18 = vadd.bf16 %v9296_v3, %v1972_v60  ;;  %v12543_v19 = vadd.bf16 %v9297_v7, %v1973_v61 }
 0x686   : > { %15580 = vst [vmem:[#allocation98_spill] sm:$0xff] %v12541_v18  ;;  %15581 = vst [vmem:[#allocation99_spill] sm:$0xff] %v12543_v19  ;;  %v2095_v54 = vmul.bf16 %v2077_v55, %v12541_v18  ;;  %v2096_v20 = vmul.bf16 %v2084_v63, %v12543_v19  ;;  %v9313_v57 = vcombine.low %v12541_v18, %v12543_v19 }
 0x688   : > { %v2101_v28 = vunpack.c.l.bf16 %v2095_v54  ;;  %v2102_v2 = vunpack.c.l.bf16 %v2096_v20  ;;  %9615 = vmatmul.mubr.msk.bf16.gmra.mrb[32].mxu1 %vm2103_vm13, %v9313_v57 }
 0x689   : > { %9642 = vmatprep.mubr.msk.bf16.mxu1 %vm11355_vm0, %v15414_v23 }
 0x68a   : > { %v2107_v0 = vsel %vm2103_vm13, %v2101_v28, 0.0  ;;  %v2112_v34 = vsel %vm2103_vm13, %v2102_v2, 0.0 }
 0x68b   : > { %v12554_v35 = vadd.f32 %v2107_v0, %v2106_v16  ;;  %v12556_v6 = vadd.f32 %v2112_v34, %v2111_v56 }
 0x68d   : > { %v9403_v39 = vpack.c.bf16 %v12554_v35, %v12554_v35  ;;  %v9404_v43 = vpack.c.bf16 %v12556_v6, %v12556_v6  ;;  %v2114_v46 = vpack.c.bf16 %v12556_v6, %v12554_v35 }
 0x68f   : > { %v2122_v55 = vsub.bf16 %v12494_v30, %v9403_v39  ;;  %v2123_v49 = vsub.bf16 %v12496_v32, %v9404_v43  ;;  %v2124_v53 = vsub.bf16 %v12519_v21, %v9403_v39  ;;  %v2125_v41 = vsub.bf16 %v12521_v25, %v9404_v43 }
 0x690   : > { %v2126_v60 = vsub.bf16 %v12541_v18, %v9403_v39  ;;  %v2127_v61 = vsub.bf16 %v12543_v19, %v9404_v43 }
 0x691   : > { %v2128_v63 = vmul.bf16 %v2122_v55, %v2122_v55  ;;  %v2129_v3 = vmul.bf16 %v2123_v49, %v2123_v49  ;;  %v2130_v7 = vmul.bf16 %v2124_v53, %v2124_v53  ;;  %v2131_v13 = vmul.bf16 %v2125_v41, %v2125_v41 }
 0x692   : > { %v2132_v14 = vmul.bf16 %v2126_v60, %v2126_v60  ;;  %v2133_v16 = vmul.bf16 %v2127_v61, %v2127_v61  ;;  %v10302_v61 = vld [vmem:[#allocation19 + $0x10] sm:$0xfe]  }
 0x693   : > { %v9300_v56 = vcombine.low %v2128_v63, %v2129_v3  ;;  %v9301_v54 = vcombine.low %v2130_v7, %v2131_v13  ;;  %v10303_v7 = vld [vmem:[#allocation19 + $0x18] sm:$0xff]  }
 0x694   : > { %v9302_v20 = vcombine.low %v2132_v14, %v2133_v16 }
 0x695   : > { %v2152_v57 = vmul.bf16 %v9300_v56, %v12506_v22  ;;  %v2153_v28 = vmul.bf16 %v9301_v54, %v12511_v62  ;;  %v10299_v54 = vld [vmem:[#allocation17] sm:$0xff]  }
 0x696   : > { %v2154_v2 = vmul.bf16 %v9302_v20, %v12523_v1  ;;  %v2459_v20 = vshrl.u32 %v10302_v61, 16 }
 0x697   : > { %v2155_v0 = vunpack.c.l.bf16 %v2152_v57  ;;  %v2156_v34 = vunpack.c.h.bf16 %v2152_v57  ;;  %v2157_v39 = vunpack.c.l.bf16 %v2153_v28  ;;  %v2158_v51 = vunpack.c.h.bf16 %v2153_v28 }
 0x698   : > { %v2159_v43 = vunpack.c.l.bf16 %v2154_v2  ;;  %v2160_v55 = vunpack.c.h.bf16 %v2154_v2  ;;  %v2462_v57 = vshll.u32 %v10302_v61, 16  ;;  %v2467_v2 = vshrl.u32 %v10303_v7, 16 }
 0x699   : > { %v2161_v49 = vsel %vm2103_vm13, %v2155_v0, 0.0  ;;  %v2162_v53 = vsel %vm2103_vm13, %v2157_v39, 0.0  ;;  %v2166_v41 = vsel %vm2103_vm13, %v2156_v34, 0.0  ;;  %v2167_v60 = vsel %vm2103_vm13, %v2158_v51, 0.0  ;;  %v10300_v51 = vld [vmem:[#allocation17 + $0x8] sm:$0xff]  }
 0x69a   : > { %v2163_v63 = vadd.f32 %v2162_v53, %v2161_v49  ;;  %v2168_v3 = vadd.f32 %v2167_v60, %v2166_v41  ;;  %v2164_v13 = vsel %vm2103_vm13, %v2159_v43, 0.0  ;;  %v2169_v14 = vsel %vm2103_vm13, %v2160_v55, 0.0  ;;  %v10304_v39 = vld [vmem:[#allocation19 + $0x20] ss:$0 sps:$4 sm:$0x33]  }
 0x69b   : > { %v2470_v0 = vshll.u32 %v10303_v7, 16  ;;  %v10301_v34 = vld [vmem:[#allocation17 + $0x10] ss:$0 sps:$4 sm:$0x33]   ;;  %v2461_v43 = vrot.slane %v2459_v20, 1  ;;  %v2464_v49 = vrot.slane %v2462_v57, 2 }
 0x69c   : > { %v2165_v16 = vadd.f32 %v2164_v13, %v2163_v63  ;;  %v2170_v56 = vadd.f32 %v2169_v14, %v2168_v3  ;;  %v2469_v55 = vrot.slane %v2467_v2, 1  ;;  %v2476_v41 = vshrl.u32 %v10304_v39, 16  ;;  %v2558_v2 = vld [vmem:[#allocation19 + $0x20] sm:$0x2] }
 0x69d   : > { %v2472_v53 = vrot.slane %v2470_v0, 2  ;;  %v2479_v60 = vshll.u32 %v10304_v39, 16  ;;  %v2293_v61 = vand.u32 %v10301_v34, %v12477_v58  ;;  %v2465_v63 = vor.u32 %v2464_v49, %v2461_v43 }
 0x69e   : > { %v2171_v28 = vpack.c.bf16 %v2170_v56, %v2165_v16  ;;  %v2478_v7 = vrot.slane %v2476_v41, 1  ;;  %v2559_v34 = vunpack.c.l.bf16 %v2558_v2  ;;  %v12619_v43 = vsub.s32 3, %v12376_v42 }
 0x69f   : > { %v2473_v3 = vor.u32 %v2472_v53, %v2469_v55  ;;  %v2481_v13 = vrot.slane %v2479_v60, 2 }
 0x6a0   : > { %9587 = vmatmul.mubr.msk.bf16.vlgmr.msra.gmra.mrb[24].mxu0 %vm2103_vm13, %v2171_v28  ;;  %v2563_v49 = vrot.slane %v2559_v34, %v12619_v43 }
 0x6a1   : > { %9591 = vmatpush3.bf16.msra.mxu0 %v10299_v54  ;;  %9596 = vmatprep.mubr.msk.bf16.mxu0 %vm11355_vm0, %v15414_v23  ;;  %v2474_v14 = vsel %vm2195_vm11, %v2465_v63, %v2473_v3  ;;  %v2482_v16 = vor.u32 %v2481_v13, %v2478_v7 }
 0x6a2   : > { %9592 = vmatprep.subr.bf16.mxu0 %v15414_v23 }
 0x6a3   : > { %v2483_v58 = vsel %vm2195_vm11, %v2473_v3, %v2482_v16 }
 0x6a5   : > { %9593 = vmatpush3.bf16.msra.mxu0 %v10300_v51 }
 0x6a6   : > { %9594 = vmatprep.subr.bf16.mxu0 %v15414_v23 }
 0x6a9   : > { %9595 = vmatpush3.bf16.msra.mxu0 %v2293_v61 }
 0x6aa   : > { %9618 = vmatprep.subr.bf16.mxu0 %v15414_v23 }
 0x6ac   : > { %9597 = vmatmul.mubr.msk.bf16.vlgmr.msra.gmra.mrb[24].mxu0 %vm2103_vm13, %v2114_v46 }
 0x6ad   : > { %9619 = vmatpush3.bf16.msra.mxu0 %v2474_v14  ;;  %9622 = vmatprep.mubr.msk.bf16.mxu0 %vm11355_vm0, %v15414_v23 }
 0x6ae   : > { %9620 = vmatprep.subr.bf16.mxu0 %v15414_v23 }
 0x6b1   : > { %9621 = vmatpush3.bf16.msra.mxu0 %v2483_v58 }
 0x6b2   : > { %9654 = vmatprep.subr.bf16.mxu0 %v15414_v23 }
 0x6b4   : > { %9623 = vmatmul.mubr.msk.bf16.vlgmr.msra.gmra.mrb[28].mxu0 %vm1481_vm2, %v1748_v31  ;;  %v10307_v31 = vld [vmem:[#allocation20 + $0x10] sm:$0xff]  }
 0x6b5   : > { %9626 = vmatprep.mubr.msk.bf16.mxu0 %vm11355_vm0, %v15414_v23  ;;  %9639 = vmatpush3.bf16.msra.mxu1 %v10307_v31 }
 0x6b6   : > { %9640 = vmatprep.subr.bf16.mxu1 %v15414_v23 }
 0x6b9   : > { %9641 = vmatpush3.bf16.msra.mxu1 %v10308_v33 }
 0x6ba   : > { %9670 = vmatprep.subr.bf16.mxu1 %v15414_v23 }
 0x6bc   : > { %9627 = vmatmul.mubr.msk.bf16.gmra.mrb[32].mxu0 %vm1481_vm2, %v1749_v38 }
 0x6bd   : > { %9630 = vmatprep.mubr.msk.bf16.mxu0 %vm11355_vm0, %v15414_v23 }
 0x6c4   : > { %9631 = vmatmul.mubr.msk.bf16.gmra.mrb[36].mxu0 %vm1481_vm2, %v1750_v52 }
 0x6c5   : > { %9658 = vmatprep.mubr.msk.bf16.mxu0 %vm11355_vm0, %v15414_v23 }
 0x741   : > { %v2417_v36 = vpop.f32.mrb[24].mxu1 }
 0x742   : > { %v9608_v38 = vpop.f32.mrb[25].mxu1 }
 0x743   : > { %v2420_v40 = vpop.f32.mrb[26].mxu1 }
 0x744   : > { %v9609_v44 = vpop.f32.mrb[27].mxu1 }
 0x753   : > { %v2425_v52 = vpop.f32.mrb[28].mxu1 }
 0x754   : > { %v9612_v35 = vpop.f32.mrb[29].mxu1 }
 0x755   : > { %v2428_v6 = vpop.f32.mrb[30].mxu1 }
 0x756   : > { %v9613_v46 = vpop.f32.mrb[31].mxu1 }
 0x75b   : > { %v2433_v56 = vpop.f32.mrb[32].mxu1 }
 0x75c   : > { %v9616_v54 = vpop.f32.mrb[33].mxu1 }
 0x75d   : > { %v2436_v20 = vpop.f32.mrb[34].mxu1 }
 0x75e   : > { %v9617_v57 = vpop.f32.mrb[35].mxu1 }
 0x77f   : > { %v2329_v28 = vpop.f32.mrb[24].mxu0 }
 0x780   : > { %v9598_v0 = vpop.f32.mrb[25].mxu0 }
 0x781   : > { %v2332_v39 = vpop.f32.mrb[26].mxu0 }
 0x782   : > { %v9599_v51 = vpop.f32.mrb[27].mxu0 }
 0x787   : > { %v2529_v55 = vpop.f32.mrb[28].mxu0 }
 0x788   : > { %v2552_v53 = vadd.f32 %v2529_v55, %v2417_v36  ;;  %v9624_v41 = vpop.f32.mrb[29].mxu0 }
 0x789   : > { %v2532_v60 = vpop.f32.mrb[30].mxu0 }
 0x78a   : > { %v2564_v61 = vadd.f32 %v2563_v49, %v2552_v53  ;;  %v2553_v63 = vadd.f32 %v2532_v60, %v2420_v40  ;;  %v9625_v3 = vpop.f32.mrb[31].mxu0 }
 0x78c   : > { %v2570_v7 = vadd.f32 %v2564_v61, %v2329_v28  ;;  %v2565_v13 = vadd.f32 %v2563_v49, %v2553_v63 }
 0x78e   : > { %v2571_v14 = vadd.f32 %v2565_v13, %v2332_v39 }
 0x78f   : > { %v2537_v16 = vpop.f32.mrb[32].mxu0 }
 0x790   : > { %v2576_v58 = vpack.c.bf16 %v2571_v14, %v2570_v7  ;;  %v2554_v27 = vadd.f32 %v2537_v16, %v2425_v52  ;;  %v9628_v29 = vpop.f32.mrb[33].mxu0 }
 0x791   : > { %v2540_v31 = vpop.f32.mrb[34].mxu0  ;;  %v10309_v29 = vld [vmem:[#allocation22] sm:$0xff]  }
 0x792   : > { %v2582_v33 = vmin.bf16 %v15410_v50, %v2576_v58  ;;  %v2566_v38 = vadd.f32 %v2563_v49, %v2554_v27  ;;  %v2555_v44 = vadd.f32 %v2540_v31, %v2428_v6  ;;  %v9629_v35 = vpop.f32.mrb[35].mxu0  ;;  %vm2579_vm8 = vcmp.gt.bf16.partialorder %v2576_v58, 0  ;;  %9655 = vmatpush3.bf16.msra.mxu0 %v10309_v29  ;;  %v10310_v31 = vld [vmem:[#allocation22 + $0x8] sm:$0xff]  }
 0x793   : > { %9656 = vmatprep.subr.bf16.mxu0 %v15414_v23 }
 0x794   : > { %v2586_v46 = vmul.bf16 1069105081, %v2582_v33  ;;  %v2572_v36 = vadd.f32 %v2566_v38, %v2329_v28  ;;  %v2567_v54 = vadd.f32 %v2563_v49, %v2555_v44  ;;  %v2702_v33 = vld [vmem:[#allocation20 + $0x20] sm:$0x1] }
 0x795   : > { %v2704_v38 = vpack.i.b16 %v2702_v33, %v2702_v33 }
 0x796   : > { %10349 = vpow.bf16 %v2586_v46  ;;  %v2573_v57 = vadd.f32 %v2567_v54, %v2332_v39  ;;  %9657 = vmatpush3.bf16.msra.mxu0 %v10310_v31 }
 0x797   : > { %v2545_v40 = vpop.f32.mrb[36].mxu0  ;;  %9686 = vmatprep.subr.bf16.mxu0 %v15414_v23  ;;  %v2709_v46 = vrot.slane %v2704_v38, %v12382_v47 }
 0x798   : > { %v2577_v2 = vpack.c.bf16 %v2573_v57, %v2572_v36  ;;  %v2556_v0 = vadd.f32 %v2545_v40, %v2433_v56  ;;  %v9632_v51 = vpop.f32.mrb[37].mxu0 }
 0x799   : > { %v2548_v34 = vpop.f32.mrb[38].mxu0 }
 0x79a   : > { %v2583_v55 = vmin.bf16 %v15410_v50, %v2577_v2  ;;  %v2568_v52 = vadd.f32 %v2563_v49, %v2556_v0  ;;  %v2557_v53 = vadd.f32 %v2548_v34, %v2436_v20  ;;  %v9633_v41 = vpop.f32.mrb[39].mxu0  ;;  %vm2580_vm9 = vcmp.gt.bf16.partialorder %v2577_v2, 0 }
 0x79c   : > { %v2589_v60 = vmul.bf16 1069105081, %v2583_v55  ;;  %v2574_v61 = vadd.f32 %v2568_v52, %v2329_v28  ;;  %v2569_v63 = vadd.f32 %v2563_v49, %v2557_v53 }
 0x79e   : > { %10351 = vpow.bf16 %v2589_v60  ;;  %v2575_v6 = vadd.f32 %v2569_v63, %v2332_v39 }
 0x7a0   : > { %v2578_v3 = vpack.c.bf16 %v2575_v6, %v2574_v61 }
 0x7a1   : > { %v10350_v7 = vpop.eup %10349 }
 0x7a2   : > { %v2584_v13 = vmin.bf16 %v15410_v50, %v2578_v3  ;;  %v2594_v14 = vsub.bf16 %v10350_v7, %v15408_v10  ;;  %vm2581_vm10 = vcmp.gt.bf16.partialorder %v2578_v3, 0 }
 0x7a4   : > { %v2592_v56 = vmul.bf16 1069105081, %v2584_v13  ;;  %v2597_v16 = vsel %vm2579_vm8, %v2576_v58, %v2594_v14 }
 0x7a5   : > { %9643 = vmatmul.mubr.msk.bf16.vlgmr.msra.gmra.mrb[36].mxu1 %vm2632_vm7, %v2597_v16 }
 0x7a6   : > { %10353 = vpow.bf16 %v2592_v56  ;;  %9646 = vmatprep.mubr.msk.bf16.mxu1 %vm11355_vm0, %v15414_v23 }
 0x7a9   : > { %v10352_v20 = vpop.eup %10351 }
 0x7aa   : > { %v2595_v28 = vsub.bf16 %v10352_v20, %v15408_v10 }
 0x7ac   : > { %v2598_v39 = vsel %vm2580_vm9, %v2577_v2, %v2595_v28 }
 0x7ad   : > { %9647 = vmatmul.mubr.msk.bf16.gmra.mrb[40].mxu1 %vm2632_vm7, %v2598_v39 }
 0x7ae   : > { %9650 = vmatprep.mubr.msk.bf16.mxu1 %vm11355_vm0, %v15414_v23 }
 0x7b1   : > { %v10354_v49 = vpop.eup %10353 }
 0x7b2   : > { %v2596_v27 = vsub.bf16 %v10354_v49, %v15408_v10 }
 0x7b4   : > { %v2599_v58 = vsel %vm2581_vm10, %v2578_v3, %v2596_v27 }
 0x7b5   : > { %9651 = vmatmul.mubr.msk.bf16.gmra.mrb[44].mxu1 %vm2632_vm7, %v2599_v58 }
 0x7b6   : > { %9674 = vmatprep.mubr.msk.bf16.mxu1 %vm11355_vm0, %v15414_v23 }
 0x878   : > { %v2676_v44 = vpop.f32.mrb[36].mxu1 }
 0x879   : > { %v9644_v35 = vpop.f32.mrb[37].mxu1 }
 0x87a   : > { %v2679_v36 = vpop.f32.mrb[38].mxu1  ;;  %v10312_v35 = vld [vmem:[#allocation23 + $0x8] sm:$0xff]  }
 0x87b   : > { %v2699_v54 = vpack.c.bf16 %v2679_v36, %v2676_v44  ;;  %v9645_v57 = vpop.f32.mrb[39].mxu1  ;;  %v12680_v36 = vpack.i.bf16 %v12279_v15, %v12256_v4 }
 0x87d   : > { %v2710_v40 = vadd.bf16 %v2709_v46, %v2699_v54  ;;  %v2822_v54 = vld [vmem:[#allocation22 + $0x10] sm:$0x1] }
 0x87e   : > { %v2824_v57 = vpack.i.b16 %v2822_v54, %v2822_v54 }
 0x87f   : > { %v2716_v2 = vmin.bf16 %v15410_v50, %v2710_v40  ;;  %vm2713_vm11 = vcmp.gt.bf16.partialorder %v2710_v40, 0 }
 0x880   : > { %v2684_v0 = vpop.f32.mrb[40].mxu1 }
 0x881   : > { %v2720_v51 = vmul.bf16 1069105081, %v2716_v2  ;;  %v9648_v34 = vpop.f32.mrb[41].mxu1 }
 0x882   : > { %v2687_v55 = vpop.f32.mrb[42].mxu1 }
 0x883   : > { %10355 = vpow.bf16 %v2720_v51  ;;  %v2700_v52 = vpack.c.bf16 %v2687_v55, %v2684_v0  ;;  %v9649_v53 = vpop.f32.mrb[43].mxu1  ;;  %v2829_v0 = vrot.slane %v2824_v57, %v12382_v47 }
 0x885   : > { %v2711_v41 = vadd.bf16 %v2709_v46, %v2700_v52 }
 0x887   : > { %v2717_v60 = vmin.bf16 %v15410_v50, %v2711_v41  ;;  %vm2714_vm12 = vcmp.gt.bf16.partialorder %v2711_v41, 0 }
 0x888   : > { %v2692_v61 = vpop.f32.mrb[44].mxu1 }
 0x889   : > { %v2723_v63 = vmul.bf16 1069105081, %v2717_v60  ;;  %v9652_v6 = vpop.f32.mrb[45].mxu1 }
 0x88a   : > { %v2695_v3 = vpop.f32.mrb[46].mxu1 }
 0x88b   : > { %10357 = vpow.bf16 %v2723_v63  ;;  %v2701_v7 = vpack.c.bf16 %v2695_v3, %v2692_v61  ;;  %v9653_v13 = vpop.f32.mrb[47].mxu1 }
 0x88d   : > { %v2712_v14 = vadd.bf16 %v2709_v46, %v2701_v7  ;;  %v12671_v46 = vpack.i.bf16 %v12265_v9, %v12258_v5 }
 0x88e   : > { %v10356_v56 = vpop.eup %10355 }
 0x88f   : > { %v2728_v16 = vsub.bf16 %v10356_v56, %v15408_v10  ;;  %v2718_v20 = vmin.bf16 %v15410_v50, %v2712_v14  ;;  %vm2715_vm13 = vcmp.gt.bf16.partialorder %v2712_v14, 0  ;;  %10207 = vrot.lane.b32.xlu1 %v12671_v46, %s11363_s3 }
 0x891   : > { %v12644_v28 = vsel %vm2713_vm11, %v2710_v40, %v2728_v16  ;;  %v2726_v39 = vmul.bf16 1069105081, %v2718_v20 }
 0x892   : > { %v2734_v49 = vmul.bf16 %v12644_v28, %v12506_v22 }
 0x893   : > { %10359 = vpow.bf16 %v2726_v39  ;;  %10212 = vrot.lane.b32.xlu1 %v12680_v36, %s11363_s3 }
 0x894   : > { %9659 = vmatmul.mubr.msk.bf16.vlgmr.msra.gmra.mrb[40].mxu0 %vm1481_vm2, %v2734_v49 }
 0x895   : > { %9662 = vmatprep.mubr.msk.bf16.mxu0 %vm11355_vm0, %v15414_v23 }
 0x896   : > { %v10358_v27 = vpop.eup %10357 }
 0x897   : > { %v2729_v58 = vsub.bf16 %v10358_v27, %v15408_v10 }
 0x899   : > { %v12652_v29 = vsel %vm2714_vm12, %v2711_v41, %v2729_v58 }
 0x89a   : > { %v2735_v31 = vmul.bf16 %v12652_v29, %v12511_v62  ;;  %v10311_v62 = vld [vmem:[#allocation23] sm:$0xff]  }
 0x89b   : > { %9671 = vmatpush3.bf16.msra.mxu1 %v10311_v62 }
 0x89c   : > { %9663 = vmatmul.mubr.msk.bf16.gmra.mrb[44].mxu0 %vm1481_vm2, %v2735_v31  ;;  %9672 = vmatprep.subr.bf16.mxu1 %v15414_v23 }
 0x89d   : > { %9666 = vmatprep.mubr.msk.bf16.mxu0 %vm11355_vm0, %v15414_v23 }
 0x89e   : > { %v10360_v22 = vpop.eup %10359 }
 0x89f   : > { %v2730_v33 = vsub.bf16 %v10360_v22, %v15408_v10  ;;  %9673 = vmatpush3.bf16.msra.mxu1 %v10312_v35 }
 0x8a0   : > { %9702 = vmatprep.subr.bf16.mxu1 %v15414_v23 }
 0x8a1   : > { %v12660_v38 = vsel %vm2715_vm13, %v2712_v14, %v2730_v33 }
 0x8a2   : > { %v2736_v44 = vmul.bf16 %v12660_v38, %v12523_v1  ;;  %v12675_v1 = vpack.i.bf16 %v12285_v17, %v12269_v11 }
 0x8a4   : > { %9667 = vmatmul.mubr.msk.bf16.gmra.mrb[48].mxu0 %vm1481_vm2, %v2736_v44  ;;  %10217 = vrot.lane.b32.xlu0 %v12675_v1, %s11363_s3  ;;  %s15741_s3 = sld [smem:[#allocation78_spill]] }
 0x8a5   : > { %9690 = vmatprep.mubr.msk.bf16.mxu0 %vm11355_vm0, %v15414_v23 }
 0x8aa   : > { %p15743_p13 = scmp.ne.s32.totalorder %s15741_s3, 0 }
 0x967   : > { %v2796_v40 = vpop.f32.mrb[40].mxu0 }
 0x968   : > { %v9660_v2 = vpop.f32.mrb[41].mxu0 }
 0x969   : > { %v2799_v51 = vpop.f32.mrb[42].mxu0 }
 0x96a   : > { %v2819_v34 = vpack.c.bf16 %v2799_v51, %v2796_v40  ;;  %v9661_v55 = vpop.f32.mrb[43].mxu0  ;;  %v10313_v51 = vld [vmem:[#allocation25] sm:$0xff]  }
 0x96b   : > { %9687 = vmatpush3.bf16.msra.mxu0 %v10313_v51  ;;  %v2939_v55 = vld [vmem:[#allocation23 + $0x10] sm:$0x1] }
 0x96c   : > { %v2830_v52 = vadd.bf16 %v2829_v0, %v2819_v34  ;;  %v10314_v34 = vld [vmem:[#allocation25 + $0x8] sm:$0xff]   ;;  %9688 = vmatprep.subr.bf16.mxu0 %v15414_v23 }
 0x96e   : > { %v2836_v53 = vmin.bf16 %v15410_v50, %v2830_v52  ;;  %vm2833_vm14 = vcmp.gt.bf16.partialorder %v2830_v52, 0 }
 0x96f   : > { %v2804_v41 = vpop.f32.mrb[44].mxu0  ;;  %9689 = vmatpush3.bf16.msra.mxu0 %v10314_v34 }
 0x970   : > { %v2840_v60 = vmul.bf16 1069105081, %v2836_v53  ;;  %v9664_v61 = vpop.f32.mrb[45].mxu0  ;;  %9718 = vmatprep.subr.bf16.mxu0 %v15414_v23 }
 0x971   : > { %v2807_v63 = vpop.f32.mrb[46].mxu0 }
 0x972   : > { %10361 = vpow.bf16 %v2840_v60  ;;  %v2820_v6 = vpack.c.bf16 %v2807_v63, %v2804_v41  ;;  %v9665_v3 = vpop.f32.mrb[47].mxu0 }
 0x974   : > { %v2831_v7 = vadd.bf16 %v2829_v0, %v2820_v6 }
 0x976   : > { %v2837_v13 = vmin.bf16 %v15410_v50, %v2831_v7  ;;  %vm2834_vm15 = vcmp.gt.bf16.partialorder %v2831_v7, 0 }
 0x977   : > { %v2812_v14 = vpop.f32.mrb[48].mxu0 }
 0x978   : > { %v2843_v56 = vmul.bf16 1069105081, %v2837_v13  ;;  %v9668_v16 = vpop.f32.mrb[49].mxu0 }
 0x979   : > { %v2815_v20 = vpop.f32.mrb[50].mxu0 }
 0x97a   : > { %10363 = vpow.bf16 %v2843_v56  ;;  %v2821_v39 = vpack.c.bf16 %v2815_v20, %v2812_v14  ;;  %v9669_v49 = vpop.f32.mrb[51].mxu0 }
 0x97c   : > { %v2832_v27 = vadd.bf16 %v2829_v0, %v2821_v39  ;;  %v11364_v0 = vmov 32  }
 0x97d   : > { %v10362_v58 = vpop.eup %10361  ;;  %10221 = vset.pattern.permute.xlu1 %v11364_v0  ;;  %10222 = vset.pattern.permute.xlu0 %v11364_v0 }
 0x97e   : > { %v2848_v31 = vsub.bf16 %v10362_v58, %v15408_v10  ;;  %v2838_v22 = vmin.bf16 %v15410_v50, %v2832_v27  ;;  %vm2835_vm8 = vcmp.gt.bf16.partialorder %v2832_v27, 0 }
 0x980   : > { %v2851_v33 = vsel %vm2833_vm14, %v2830_v52, %v2848_v31  ;;  %v2846_v44 = vmul.bf16 1069105081, %v2838_v22  ;;  %v2941_v52 = vpack.i.b16 %v2939_v55, %v2939_v55 }
 0x981   : > { %9675 = vmatmul.mubr.msk.bf16.vlgmr.msra.gmra.mrb[48].mxu1 %vm1481_vm2, %v2851_v33 }
 0x982   : > { %10365 = vpow.bf16 %v2846_v44  ;;  %9678 = vmatprep.mubr.msk.bf16.mxu1 %vm11355_vm0, %v15414_v23  ;;  %v2946_v60 = vrot.slane %v2941_v52, %v12382_v47 }
 0x985   : > { %v10364_v62 = vpop.eup %10363 }
 0x986   : > { %v2849_v35 = vsub.bf16 %v10364_v62, %v15408_v10 }
 0x988   : > { %v2852_v54 = vsel %vm2834_vm15, %v2831_v7, %v2849_v35  ;;  %vm3326_vm15 = vcmask 7168  }
 0x989   : > { %9679 = vmatmul.mubr.msk.bf16.gmra.mrb[52].mxu1 %vm1481_vm2, %v2852_v54 }
 0x98a   : > { %9682 = vmatprep.mubr.msk.bf16.mxu1 %vm11355_vm0, %v15414_v23 }
 0x98d   : > { %v10366_v57 = vpop.eup %10365 }
 0x98e   : > { %v2850_v40 = vsub.bf16 %v10366_v57, %v15408_v10 }
 0x990   : > { %v2853_v2 = vsel %vm2835_vm8, %v2832_v27, %v2850_v40 }
 0x991   : > { %9683 = vmatmul.mubr.msk.bf16.gmra.mrb[56].mxu1 %vm1481_vm2, %v2853_v2 }
 0x992   : > { %9706 = vmatprep.mubr.msk.bf16.mxu1 %vm11355_vm0, %v15414_v23 }
 0xa54   : > { %v2913_v53 = vpop.f32.mrb[48].mxu1 }
 0xa55   : > { %v9676_v41 = vpop.f32.mrb[49].mxu1 }
 0xa56   : > { %v2916_v61 = vpop.f32.mrb[50].mxu1 }
 0xa57   : > { %v2936_v63 = vpack.c.bf16 %v2916_v61, %v2913_v53  ;;  %v9677_v6 = vpop.f32.mrb[51].mxu1 }
 0xa59   : > { %v2947_v3 = vadd.bf16 %v2946_v60, %v2936_v63 }
 0xa5b   : > { %v2953_v7 = vmin.bf16 %v15410_v50, %v2947_v3  ;;  %vm2950_vm9 = vcmp.gt.bf16.partialorder %v2947_v3, 0 }
 0xa5c   : > { %v2921_v13 = vpop.f32.mrb[52].mxu1 }
 0xa5d   : > { %v2957_v14 = vmul.bf16 1069105081, %v2953_v7  ;;  %v9680_v56 = vpop.f32.mrb[53].mxu1 }
 0xa5e   : > { %v2924_v16 = vpop.f32.mrb[54].mxu1 }
 0xa5f   : > { %10367 = vpow.bf16 %v2957_v14  ;;  %v2937_v20 = vpack.c.bf16 %v2924_v16, %v2921_v13  ;;  %v9681_v39 = vpop.f32.mrb[55].mxu1 }
 0xa61   : > { %v2948_v49 = vadd.bf16 %v2946_v60, %v2937_v20 }
 0xa63   : > { %v2954_v27 = vmin.bf16 %v15410_v50, %v2948_v49  ;;  %vm2951_vm10 = vcmp.gt.bf16.partialorder %v2948_v49, 0 }
 0xa64   : > { %v2929_v58 = vpop.f32.mrb[56].mxu1 }
 0xa65   : > { %v2960_v31 = vmul.bf16 1069105081, %v2954_v27  ;;  %v9684_v22 = vpop.f32.mrb[57].mxu1 }
 0xa66   : > { %v2932_v33 = vpop.f32.mrb[58].mxu1 }
 0xa67   : > { %10369 = vpow.bf16 %v2960_v31  ;;  %v2938_v44 = vpack.c.bf16 %v2932_v33, %v2929_v58  ;;  %v9685_v62 = vpop.f32.mrb[59].mxu1 }
 0xa69   : > { %v2949_v35 = vadd.bf16 %v2946_v60, %v2938_v44 }
 0xa6a   : > { %v10368_v54 = vpop.eup %10367 }
 0xa6b   : > { %v2965_v57 = vsub.bf16 %v10368_v54, %v15408_v10  ;;  %v2955_v40 = vmin.bf16 %v15410_v50, %v2949_v35  ;;  %vm2952_vm11 = vcmp.gt.bf16.partialorder %v2949_v35, 0 }
 0xa6d   : > { %v12707_v2 = vsel %vm2950_vm9, %v2947_v3, %v2965_v57  ;;  %v2963_v0 = vmul.bf16 1069105081, %v2955_v40  ;;  %v10208_v40 = vpop.permute.xlu1 %10207 }
 0xa6e   : > { %v2971_v51 = vunpack.c.l.bf16 %v12707_v2  ;;  %v2972_v34 = vunpack.c.h.bf16 %v12707_v2 }
 0xa6f   : > { %10371 = vpow.bf16 %v2963_v0 }
 0xa70   : > { %v2977_v55 = vsub.f32 0.0, %v2971_v51  ;;  %v2978_v52 = vsub.f32 0.0, %v2972_v34 }
 0xa72   : > { %v10370_v53 = vpop.eup %10369  ;;  %v2983_v41 = vmul.f32 1.442695, %v2977_v55  ;;  %v2985_v61 = vmul.f32 1.442695, %v2978_v52  ;;  %v10209_v55 = vunpack.i.l.bf16 %v10208_v40  ;;  %v10210_v52 = vunpack.i.h.bf16 %v10208_v40 }
 0xa73   : > { %v2966_v60 = vsub.bf16 %v10370_v53, %v15408_v10 }
 0xa74   : > { %10373 = vpow2.f32 %v2983_v41 }
 0xa75   : > { %10375 = vpow2.f32 %v2985_v61  ;;  %v12712_v63 = vsel %vm2951_vm10, %v2948_v49, %v2966_v60  ;;  %vm3734_vm10 = vcmp.gt.f32.partialorder %v12428_v8, 1.0 }
 0xa76   : > { %v2973_v6 = vunpack.c.l.bf16 %v12712_v63  ;;  %v2974_v3 = vunpack.c.h.bf16 %v12712_v63 }
 0xa78   : > { %v2979_v7 = vsub.f32 0.0, %v2973_v6  ;;  %v2980_v13 = vsub.f32 0.0, %v2974_v3  ;;  %v10213_v6 = vpop.permute.xlu1 %10212 }
 0xa7a   : > { %v10372_v14 = vpop.eup %10371  ;;  %v2987_v56 = vmul.f32 1.442695, %v2979_v7  ;;  %v2989_v16 = vmul.f32 1.442695, %v2980_v13 }
 0xa7b   : > { %v2967_v20 = vsub.bf16 %v10372_v14, %v15408_v10 }
 0xa7c   : > { %10377 = vpow2.f32 %v2987_v56 }
 0xa7d   : > { %10379 = vpow2.f32 %v2989_v16  ;;  %v12717_v39 = vsel %vm2952_vm11, %v2949_v35, %v2967_v20  ;;  %v10214_v16 = vunpack.i.l.bf16 %v10213_v6  ;;  %v10215_v20 = vunpack.i.h.bf16 %v10213_v6 }
 0xa7e   : > { %v10374_v27 = vpop.eup %10373  ;;  %v2975_v49 = vunpack.c.l.bf16 %v12717_v39  ;;  %v2976_v58 = vunpack.c.h.bf16 %v12717_v39 }
 0xa7f   : > { %v10376_v31 = vpop.eup %10375  ;;  %v2995_v22 = vadd.f32 1.0, %v10374_v27 }
 0xa80   : > { %v2996_v33 = vadd.f32 1.0, %v10376_v31  ;;  %v2981_v44 = vsub.f32 0.0, %v2975_v49  ;;  %v2982_v62 = vsub.f32 0.0, %v2976_v58 }
 0xa81   : > { %10381 = vrcp.f32 %v2995_v22  ;;  %v10218_v22 = vpop.permute.xlu0 %10217 }
 0xa82   : > { %10383 = vrcp.f32 %v2996_v33  ;;  %v2991_v54 = vmul.f32 1.442695, %v2981_v44  ;;  %v2993_v57 = vmul.f32 1.442695, %v2982_v62  ;;  %v10219_v44 = vunpack.i.l.bf16 %v10218_v22 }
 0xa83   : > { %v10220_v62 = vunpack.i.h.bf16 %v10218_v22 }
 0xa84   : > { %10385 = vpow2.f32 %v2991_v54 }
 0xa85   : > { %10387 = vpow2.f32 %v2993_v57 }
 0xa86   : > { %v10378_v0 = vpop.eup %10377 }
 0xa87   : > { %v10380_v35 = vpop.eup %10379  ;;  %v2997_v51 = vadd.f32 1.0, %v10378_v0 }
 0xa88   : > { %v2998_v34 = vadd.f32 1.0, %v10380_v35 }
 0xa89   : > { %10389 = vrcp.f32 %v2997_v51  ;;  %v12725_v51 = vadd.bf16 %v12707_v2, %v12644_v28  ;;  %v12741_v28 = vadd.bf16 %v12717_v39, %v12660_v38  ;;  %v3146_v38 = vld [vmem:[#allocation25 + $0x10] sm:$0x1] }
 0xa8a   : > { %10391 = vrcp.f32 %v2998_v34  ;;  %v3148_v39 = vpack.i.b16 %v3146_v38, %v3146_v38 }
 0xa8b   : > { %v10382_v53 = vpop.eup %10381  ;;  %15582 = vst [vmem:[#allocation100_spill] sm:$0xff] %v12725_v51  ;;  %15584 = vst [vmem:[#allocation102_spill] sm:$0xff] %v12741_v28 }
 0xa8c   : > { %v10384_v41 = vpop.eup %10383  ;;  %v3031_v61 = vmul.f32 %v10382_v53, %v10209_v55 }
 0xa8d   : > { %v3032_v60 = vmul.f32 %v10384_v41, %v10210_v52  ;;  %v12733_v52 = vadd.bf16 %v12712_v63, %v12652_v29  ;;  %v10315_v29 = vld [vmem:[#allocation26] sm:$0xff]   ;;  %v10316_v63 = vld [vmem:[#allocation26 + $0x8] sm:$0xff]  }
 0xa8e   : > { %v10386_v3 = vpop.eup %10385  ;;  %9703 = vmatpush3.bf16.msra.mxu1 %v10315_v29 }
 0xa8f   : > { %v10388_v7 = vpop.eup %10387  ;;  %v2999_v13 = vadd.f32 1.0, %v10386_v3  ;;  %v3040_v14 = vpack.c.bf16 %v3032_v60, %v3031_v61  ;;  %15583 = vst [vmem:[#allocation101_spill] sm:$0xff] %v12733_v52  ;;  %9704 = vmatprep.subr.bf16.mxu1 %v15414_v23  ;;  %v3153_v3 = vrot.slane %v3148_v39, %v12382_v47  ;;  %v3260_v39 = vld [vmem:[#allocation26 + $0x10] sm:$0x1] }
 0xa90   : > { %v3000_v56 = vadd.f32 1.0, %v10388_v7 }
 0xa91   : > { %10393 = vrcp.f32 %v2999_v13  ;;  %3045 = vperm.xlu1 %10221, %v3040_v14  }
 0xa92   : > { %10395 = vrcp.f32 %v3000_v56  ;;  %9705 = vmatpush3.bf16.msra.mxu1 %v10316_v63 }
 0xa93   : > { %v10390_v27 = vpop.eup %10389  ;;  %9726 = vmatprep.subr.bf16.mxu1 %v15414_v23 }
 0xa94   : > { %v10392_v49 = vpop.eup %10391  ;;  %v3033_v58 = vmul.f32 %v10390_v27, %v10214_v16 }
 0xa95   : > { %v3034_v31 = vmul.f32 %v10392_v49, %v10215_v20 }
 0xa97   : > { %v3041_v33 = vpack.c.bf16 %v3034_v31, %v3033_v58 }
 0xa99   : > { %3050 = vperm.xlu0 %10222, %v3041_v33  }
 0xa9b   : > { %v10394_v54 = vpop.eup %10393 }
 0xa9c   : > { %v10396_v57 = vpop.eup %10395  ;;  %v3035_v40 = vmul.f32 %v10394_v54, %v10219_v44 }
 0xa9d   : > { %v3036_v0 = vmul.f32 %v10396_v57, %v10220_v62  ;;  %10238 = vset.pattern.permute.xlu0 %v15410_v50 }
 0xa9e   : > { %10229 = vrot.lane.b32.xlu0 %v12680_v36, %s11365_s25 }
 0xa9f   : > { %v3042_v35 = vpack.c.bf16 %v3036_v0, %v3035_v40 }
 0xaa1   : > { %3055 = vperm.xlu1 %10221, %v3042_v35  }
 0xaa5   : > { %10239 = vset.pattern.permute.xlu1 %v15410_v50 }
 0xaa6   : > { %10224 = vrot.lane.b32.xlu1 %v12671_v46, %s11365_s25 }
 0xaaa   : > { %10234 = vrot.lane.b32.xlu1 %v12675_v1, %s11365_s25 }
 0xb10   : > { %v3046_v34 = vpop.permute.xlu1 %3045 }
 0xb11   : > { %v3058_v55 = vmul.bf16 %v3046_v34, %v12725_v51 }
 0xb13   : > { %9691 = vmatmul.mubr.msk.bf16.vlgmr.msra.gmra.mrb[52].mxu0 %vm1481_vm2, %v3058_v55 }
 0xb14   : > { %9694 = vmatprep.mubr.msk.bf16.mxu0 %vm11355_vm0, %v15414_v23 }
 0xb18   : > { %v3051_v53 = vpop.permute.xlu0 %3050 }
 0xb19   : > { %v3059_v41 = vmul.bf16 %v3051_v53, %v12733_v52 }
 0xb1b   : > { %9695 = vmatmul.mubr.msk.bf16.gmra.mrb[56].mxu0 %vm1481_vm2, %v3059_v41 }
 0xb1c   : > { %9698 = vmatprep.mubr.msk.bf16.mxu0 %vm11355_vm0, %v15414_v23 }
 0xb20   : > { %v3056_v2 = vpop.permute.xlu1 %3055 }
 0xb21   : > { %v3060_v61 = vmul.bf16 %v3056_v2, %v12741_v28 }
 0xb23   : > { %9699 = vmatmul.mubr.msk.bf16.gmra.mrb[60].mxu0 %vm1481_vm2, %v3060_v61 }
 0xb24   : > { %9722 = vmatprep.mubr.msk.bf16.mxu0 %vm11355_vm0, %v15414_v23 }
 0xbe6   : > { %v3120_v60 = vpop.f32.mrb[52].mxu0 }
 0xbe7   : > { %v9692_v6 = vpop.f32.mrb[53].mxu0 }
 0xbe8   : > { %v3123_v7 = vpop.f32.mrb[54].mxu0 }
 0xbe9   : > { %v3143_v13 = vpack.c.bf16 %v3123_v7, %v3120_v60  ;;  %v9693_v14 = vpop.f32.mrb[55].mxu0  ;;  %v3261_v60 = vunpack.c.l.bf16 %v3260_v39 }
 0xbeb   : > { %v3154_v56 = vadd.bf16 %v3153_v3, %v3143_v13  ;;  %v3265_v6 = vrot.slane %v3261_v60, %v12382_v47 }
 0xbed   : > { %v3160_v16 = vmin.bf16 %v15410_v50, %v3154_v56  ;;  %vm3157_vm12 = vcmp.gt.bf16.partialorder %v3154_v56, 0 }
 0xbee   : > { %v3128_v20 = vpop.f32.mrb[56].mxu0 }
 0xbef   : > { %v3164_v27 = vmul.bf16 1069105081, %v3160_v16  ;;  %v9696_v49 = vpop.f32.mrb[57].mxu0 }
 0xbf0   : > { %v3131_v46 = vpop.f32.mrb[58].mxu0 }
 0xbf1   : > { %10397 = vpow.bf16 %v3164_v27  ;;  %v3144_v36 = vpack.c.bf16 %v3131_v46, %v3128_v20  ;;  %v9697_v58 = vpop.f32.mrb[59].mxu0 }
 0xbf3   : > { %v3155_v1 = vadd.bf16 %v3153_v3, %v3144_v36 }
 0xbf5   : > { %v3161_v31 = vmin.bf16 %v15410_v50, %v3155_v1  ;;  %vm3158_vm13 = vcmp.gt.bf16.partialorder %v3155_v1, 0 }
 0xbf6   : > { %v3136_v22 = vpop.f32.mrb[60].mxu0 }
 0xbf7   : > { %v3167_v33 = vmul.bf16 1069105081, %v3161_v31  ;;  %v9700_v44 = vpop.f32.mrb[61].mxu0 }
 0xbf8   : > { %v3139_v62 = vpop.f32.mrb[62].mxu0 }
 0xbf9   : > { %10399 = vpow.bf16 %v3167_v33  ;;  %v3145_v54 = vpack.c.bf16 %v3139_v62, %v3136_v22  ;;  %v9701_v57 = vpop.f32.mrb[63].mxu0 }
 0xbfb   : > { %v3156_v40 = vadd.bf16 %v3153_v3, %v3145_v54 }
 0xbfc   : > { %v10398_v0 = vpop.eup %10397 }
 0xbfd   : > { %v3172_v35 = vsub.bf16 %v10398_v0, %v15408_v10  ;;  %v3162_v34 = vmin.bf16 %v15410_v50, %v3156_v40  ;;  %vm3159_vm14 = vcmp.gt.bf16.partialorder %v3156_v40, 0 }
 0xbff   : > { %v3175_v55 = vsel %vm3157_vm12, %v3154_v56, %v3172_v35  ;;  %v3170_v53 = vmul.bf16 1069105081, %v3162_v34 }
 0xc00   : > { %9707 = vmatmul.mubr.msk.bf16.vlgmr.msra.gmra.mrb[60].mxu1 %vm1481_vm2, %v3175_v55 }
 0xc01   : > { %10401 = vpow.bf16 %v3170_v53  ;;  %9710 = vmatprep.mubr.msk.bf16.mxu1 %vm11355_vm0, %v15414_v23 }
 0xc04   : > { %v10400_v41 = vpop.eup %10399 }
 0xc05   : > { %v3173_v2 = vsub.bf16 %v10400_v41, %v15408_v10 }
 0xc07   : > { %v3176_v61 = vsel %vm3158_vm13, %v3155_v1, %v3173_v2 }
 0xc08   : > { %9711 = vmatmul.mubr.msk.bf16.gmra.mrb[64].mxu1 %vm1481_vm2, %v3176_v61 }
 0xc09   : > { %9714 = vmatprep.mubr.msk.bf16.mxu1 %vm11355_vm0, %v15414_v23 }
 0xc0c   : > { %v10402_v29 = vpop.eup %10401 }
 0xc0d   : > { %v3174_v63 = vsub.bf16 %v10402_v29, %v15408_v10 }
 0xc0f   : > { %v3177_v38 = vsel %vm3159_vm14, %v3156_v40, %v3174_v63 }
 0xc10   : > { %9715 = vmatmul.mubr.msk.bf16.gmra.mrb[68].mxu1 %vm1481_vm2, %v3177_v38 }
 0xc11   : > { %9730 = vmatprep.mubr.msk.bf16.mxu1 %vm11355_vm0, %v15414_v23 }
 0xcd3   : > { %v3237_v3 = vpop.f32.mrb[60].mxu1 }
 0xcd4   : > { %v3266_v7 = vadd.f32 %v3265_v6, %v3237_v3  ;;  %v9708_v13 = vpop.f32.mrb[61].mxu1 }
 0xcd5   : > { %v3240_v14 = vpop.f32.mrb[62].mxu1 }
 0xcd6   : > { %v3267_v56 = vadd.f32 %v3265_v6, %v3240_v14  ;;  %v9709_v16 = vpop.f32.mrb[63].mxu1  ;;  %v3272_v20 = vsub.f32 0.0, %v3266_v7 }
 0xcd7   : > { %v10230_v16 = vpop.permute.xlu0 %10229 }
 0xcd8   : > { %v3273_v27 = vsub.f32 0.0, %v3267_v56  ;;  %v3278_v49 = vmul.f32 1.442695, %v3272_v20 }
 0xcda   : > { %v3280_v1 = vmul.f32 1.442695, %v3273_v27  ;;  %10403 = vpow2.f32 %v3278_v49  ;;  %v10225_v49 = vpop.permute.xlu1 %10224 }
 0xcdb   : > { %v3245_v46 = vpop.f32.mrb[64].mxu1 }
 0xcdc   : > { %v3268_v36 = vadd.f32 %v3265_v6, %v3245_v46  ;;  %v9712_v58 = vpop.f32.mrb[65].mxu1  ;;  %10405 = vpow2.f32 %v3280_v1  ;;  %v10231_v46 = vunpack.i.l.bf16 %v10230_v16  ;;  %v10226_v1 = vunpack.i.l.bf16 %v10225_v49 }
 0xcdd   : > { %v3248_v31 = vpop.f32.mrb[66].mxu1 }
 0xcde   : > { %v3274_v22 = vsub.f32 0.0, %v3268_v36  ;;  %v3269_v33 = vadd.f32 %v3265_v6, %v3248_v31  ;;  %v9713_v44 = vpop.f32.mrb[67].mxu1  ;;  %v10232_v31 = vunpack.i.h.bf16 %v10230_v16 }
 0xcdf   : > { %v10227_v44 = vunpack.i.h.bf16 %v10225_v49 }
 0xce0   : > { %v3282_v62 = vmul.f32 1.442695, %v3274_v22  ;;  %v3275_v54 = vsub.f32 0.0, %v3269_v33  ;;  %v10235_v33 = vpop.permute.xlu1 %10234 }
 0xce2   : > { %10407 = vpow2.f32 %v3282_v62  ;;  %v3284_v57 = vmul.f32 1.442695, %v3275_v54 }
 0xce3   : > { %v3253_v40 = vpop.f32.mrb[68].mxu1 }
 0xce4   : > { %10409 = vpow2.f32 %v3284_v57  ;;  %v3270_v0 = vadd.f32 %v3265_v6, %v3253_v40  ;;  %v9716_v35 = vpop.f32.mrb[69].mxu1  ;;  %v10404_v29 = vpop.eup %10403 }
 0xce5   : > { %v3256_v34 = vpop.f32.mrb[70].mxu1  ;;  %v3290_v60 = vadd.f32 1.0, %v10404_v29 }
 0xce6   : > { %v3276_v55 = vsub.f32 0.0, %v3270_v0  ;;  %v3271_v53 = vadd.f32 %v3265_v6, %v3256_v34  ;;  %v9717_v41 = vpop.f32.mrb[71].mxu1  ;;  %v10406_v38 = vpop.eup %10405  ;;  %v10236_v0 = vunpack.i.l.bf16 %v10235_v33 }
 0xce7   : > { %v3291_v13 = vadd.f32 1.0, %v10406_v38 }
 0xce8   : > { %v3286_v2 = vmul.f32 1.442695, %v3276_v55  ;;  %v3277_v61 = vsub.f32 0.0, %v3271_v53  ;;  %v10237_v55 = vunpack.i.h.bf16 %v10235_v33 }
 0xcea   : > { %10411 = vpow2.f32 %v3286_v2  ;;  %v3288_v63 = vmul.f32 1.442695, %v3277_v61 }
 0xcec   : > { %v10408_v39 = vpop.eup %10407  ;;  %10413 = vpow2.f32 %v3288_v63 }
 0xced   : > { %v3292_v3 = vadd.f32 1.0, %v10408_v39 }
 0xcee   : > { %v10410_v7 = vpop.eup %10409 }
 0xcef   : > { %10415 = vrcp.f32 %v3292_v3  ;;  %v3293_v14 = vadd.f32 1.0, %v10410_v7 }
 0xcf0   : > { %10417 = vrcp.f32 %v3290_v60 }
 0xcf1   : > { %10419 = vrcp.f32 %v3293_v14 }
 0xcf2   : > { %10421 = vrcp.f32 %v3291_v13 }
 0xcf4   : > { %v10412_v56 = vpop.eup %10411 }
 0xcf5   : > { %v3294_v6 = vadd.f32 1.0, %v10412_v56 }
 0xcf6   : > { %v10414_v20 = vpop.eup %10413 }
 0xcf7   : > { %10423 = vrcp.f32 %v3294_v6  ;;  %v3295_v27 = vadd.f32 1.0, %v10414_v20 }
 0xcf9   : > { %v10416_v36 = vpop.eup %10415  ;;  %10425 = vrcp.f32 %v3295_v27 }
 0xcfa   : > { %v10418_v58 = vpop.eup %10417  ;;  %v12769_v62 = vmul.f32 %v10416_v36, %v10231_v46 }
 0xcfb   : > { %v10420_v22 = vpop.eup %10419  ;;  %v12771_v57 = vmul.f32 %v10418_v58, %v10226_v1 }
 0xcfc   : > { %15585 = vst [vmem:[#allocation103_spill] sm:$0xff] %v12769_v62  ;;  %v10422_v54 = vpop.eup %10421  ;;  %v12773_v40 = vmul.f32 %v10420_v22, %v10232_v31  ;;  %v3328_v34 = vsel %vm3326_vm15, %v12769_v62, 0.0 }
 0xcfd   : > { %15586 = vst [vmem:[#allocation104_spill] sm:$0xff] %v12771_v57  ;;  %v12775_v35 = vmul.f32 %v10422_v54, %v10227_v44  ;;  %v3327_v41 = vsel %vm3326_vm15, %v12771_v57, 0.0 }
 0xcfe   : > { %15587 = vst [vmem:[#allocation105_spill] sm:$0xff] %v12773_v40  ;;  %v3333_v2 = vsel %vm3326_vm15, %v12773_v40, 0.0  ;;  %v3329_v63 = vadd.f32 %v3328_v34, %v3327_v41 }
 0xcff   : > { %15588 = vst [vmem:[#allocation106_spill] sm:$0xff] %v12775_v35  ;;  %v3332_v38 = vsel %vm3326_vm15, %v12775_v35, 0.0 }
 0xd00   : > { %v3334_v3 = vadd.f32 %v3333_v2, %v3332_v38 }
 0xd01   : > { %v10424_v53 = vpop.eup %10423 }
 0xd02   : > { %v12783_v61 = vmul.f32 %v10424_v53, %v10236_v0 }
 0xd03   : > { %v10426_v29 = vpop.eup %10425 }
 0xd04   : > { %15589 = vst [vmem:[#allocation107_spill] sm:$0xff] %v12783_v61  ;;  %v12787_v39 = vmul.f32 %v10426_v29, %v10237_v55  ;;  %v3330_v60 = vsel %vm3326_vm15, %v12783_v61, 0.0 }
 0xd05   : > { %v3331_v7 = vadd.f32 %v3330_v60, %v3329_v63 }
 0xd06   : > { %15590 = vst [vmem:[#allocation108_spill] sm:$0xff] %v12787_v39  ;;  %v3335_v13 = vsel %vm3326_vm15, %v12787_v39, 0.0 }
 0xd07   : > { %v3336_v14 = vadd.f32 %v3335_v13, %v3334_v3  ;;  %v3337_v56 = vadd.f32 1e-08, %v3331_v7  ;;  %v10318_v3 = vld [vmem:[#allocation28] sm:$0xff]   ;;  %v10319_v7 = vld [vmem:[#allocation28 + $0x8] sm:$0xff]   ;;  %v10317_v13 = vld [vmem:[#allocation28 + $0x10] sm:$0xff]  }
 0xd08   : > { %9727 = vmatpush3.bf16.msra.mxu1 %v10318_v3  ;;  %9719 = vmatpush3.bf16.msra.mxu0 %v10317_v13 }
 0xd09   : > { %v3338_v6 = vadd.f32 1e-08, %v3336_v14  ;;  %10427 = vrcp.f32 %v3337_v56  ;;  %9728 = vmatprep.subr.bf16.mxu1 %v15414_v23  ;;  %9720 = vmatprep.subr.bf16.mxu0 %v15414_v23  ;;  %v10320_v14 = vld [vmem:[#allocation28 + $0x18] sm:$0xff]  }
 0xd0b   : > { %10429 = vrcp.f32 %v3338_v6 }
 0xd0c   : > { %9729 = vmatpush3.bf16.msra.mxu1 %v10319_v7  ;;  %9721 = vmatpush3.bf16.msra.mxu0 %v10320_v14 }
 0xd0d   : > { %9746 = vmatprep.subr.bf16.mxu1 %v15414_v23  ;;  %9734 = vmatprep.subr.bf16.mxu0 %v15414_v23 }
 0xd13   : > { %v10428_v16 = vpop.eup %10427 }
 0xd14   : > { %v3343_v20 = vmul.f32 %v10428_v16, %v12769_v62  ;;  %v3341_v27 = vmul.f32 %v10428_v16, %v12771_v57  ;;  %v3345_v46 = vmul.f32 %v10428_v16, %v12783_v61 }
 0xd15   : > { %v10430_v49 = vpop.eup %10429 }
 0xd16   : > { %v3344_v36 = vmul.f32 %v10430_v49, %v12773_v40  ;;  %v3342_v58 = vmul.f32 %v10430_v49, %v12775_v35  ;;  %v3411_v1 = vsel %vm3326_vm15, %v3341_v27, 0.0  ;;  %v3346_v31 = vmul.f32 %v10430_v49, %v12787_v39 }
 0xd17   : > { %v3412_v22 = vsel %vm3326_vm15, %v3343_v20, 0.0  ;;  %v3414_v0 = vsel %vm3326_vm15, %v3345_v46, 0.0 }
 0xd18   : > { %v3348_v33 = vpack.c.bf16 %v3344_v36, %v3343_v20  ;;  %v3347_v44 = vpack.c.bf16 %v3342_v58, %v3341_v27  ;;  %v3413_v54 = vadd.f32 %v3412_v22, %v3411_v1  ;;  %v3416_v34 = vsel %vm3326_vm15, %v3342_v58, 0.0 }
 0xd19   : > { %v3417_v55 = vsel %vm3326_vm15, %v3344_v36, 0.0  ;;  %v3419_v2 = vsel %vm3326_vm15, %v3346_v31, 0.0  ;;  %v3349_v29 = vpack.c.bf16 %v3346_v31, %v3345_v46 }
 0xd1a   : > { %3357 = vperm.xlu1 %10239, %v3348_v33   ;;  %3352 = vperm.xlu0 %10238, %v3347_v44   ;;  %v3415_v53 = vadd.f32 %v3414_v0, %v3413_v54  ;;  %v3418_v41 = vadd.f32 %v3417_v55, %v3416_v34 }
 0xd1c   : > { %v3421_v63 = vmul.f32 0.33333334, %v3415_v53  ;;  %v3420_v38 = vadd.f32 %v3419_v2, %v3418_v41 }
 0xd1e   : > { %3362 = vperm.xlu1 %10239, %v3349_v29   ;;  %3547 = vperm.xlu0 %10238, %v3421_v63   ;;  %v3422_v60 = vmul.f32 0.33333334, %v3420_v38 }
 0xd22   : > { %3552 = vperm.xlu1 %10239, %v3422_v60   ;;  %10241 = vset.pattern.permute.xlu0 %v15412_v26 }
 0xd26   : > { %10240 = vset.pattern.permute.xlu1 %v15412_v26 }
 0xd99   : > { %v3358_v56 = vpop.permute.xlu1 %3357  ;;  %v3353_v6 = vpop.permute.xlu0 %3352 }
 0xd9a   : > { %v3366_v16 = vmul.bf16 %v3358_v56, %v12733_v52  ;;  %v3365_v20 = vmul.bf16 %v3353_v6, %v12725_v51 }
 0xd9c   : > { %v3370_v27 = vunpack.c.l.bf16 %v3366_v16  ;;  %v3371_v49 = vunpack.c.h.bf16 %v3366_v16  ;;  %v3368_v46 = vunpack.c.l.bf16 %v3365_v20  ;;  %v3369_v36 = vunpack.c.h.bf16 %v3365_v20 }
 0xd9d   : > { %v3363_v58 = vpop.permute.xlu1 %3362 }
 0xd9e   : > { %v3375_v1 = vsel %vm1481_vm2, %v3370_v27, 0.0  ;;  %v3380_v31 = vsel %vm1481_vm2, %v3371_v49, 0.0  ;;  %v3374_v22 = vsel %vm1481_vm2, %v3368_v46, 0.0  ;;  %v3379_v33 = vsel %vm1481_vm2, %v3369_v36, 0.0 }
 0xd9f   : > { %v3367_v44 = vmul.bf16 %v3363_v58, %v12741_v28  ;;  %v3376_v34 = vadd.f32 %v3375_v1, %v3374_v22  ;;  %v3381_v55 = vadd.f32 %v3380_v31, %v3379_v33 }
 0xda1   : > { %v3372_v54 = vunpack.c.l.bf16 %v3367_v44  ;;  %v3373_v0 = vunpack.c.h.bf16 %v3367_v44 }
 0xda3   : > { %v3377_v53 = vsel %vm1481_vm2, %v3372_v54, 0.0  ;;  %v3382_v41 = vsel %vm1481_vm2, %v3373_v0, 0.0 }
 0xda4   : > { %v3378_v2 = vadd.f32 %v3377_v53, %v3376_v34  ;;  %v3383_v29 = vadd.f32 %v3382_v41, %v3381_v55 }
 0xda6   : > { %v3384_v63 = vpack.c.bf16 %v3383_v29, %v3378_v2  ;;  %v10321_v2 = vld [vmem:[#allocation29] sm:$0xff]   ;;  %v10322_v29 = vld [vmem:[#allocation29 + $0x8] sm:$0xff]  }
 0xda8   : > { %v3385_v38 = vsub.bf16 %v12725_v51, %v3384_v63  ;;  %v3386_v60 = vsub.bf16 %v12733_v52, %v3384_v63  ;;  %v3387_v3 = vsub.bf16 %v12741_v28, %v3384_v63  ;;  %9731 = vmatmul.mubr.msk.bf16.vlgmr.msra.gmra.mrb[72].mxu1 %vm1481_vm2, %v3384_v63  ;;  %v10323_v63 = vld [vmem:[#allocation29 + $0x10] sm:$0xff]   ;;  %v3809_v28 = vunpack.c.l.s4 %v11373_v24 }
 0xda9   : > { %9748 = vmatprep.mubr.msk.bf16.mxu1 %vm11355_vm0, %v15414_v23 }
 0xdaa   : > { %v3388_v7 = vmul.bf16 %v3385_v38, %v3385_v38  ;;  %v3389_v13 = vmul.bf16 %v3386_v60, %v3386_v60  ;;  %v3390_v14 = vmul.bf16 %v3387_v3, %v3387_v3  ;;  %v10324_v38 = vld [vmem:[#allocation29 + $0x18] sm:$0xff]  }
 0xdac   : > { %v3391_v16 = vmul.bf16 %v3388_v7, %v3353_v6  ;;  %v3392_v20 = vmul.bf16 %v3389_v13, %v3358_v56  ;;  %v3393_v27 = vmul.bf16 %v3390_v14, %v3363_v58  ;;  %v3543_v14 = vld [vmem:[#allocation28 + $0x20] sm:$0x1] }
 0xdae   : > { %v3394_v49 = vunpack.c.l.bf16 %v3391_v16  ;;  %v3395_v46 = vunpack.c.h.bf16 %v3391_v16  ;;  %v3396_v36 = vunpack.c.l.bf16 %v3392_v20  ;;  %v3397_v1 = vunpack.c.h.bf16 %v3392_v20 }
 0xdaf   : > { %v3398_v31 = vunpack.c.l.bf16 %v3393_v27  ;;  %v3399_v22 = vunpack.c.h.bf16 %v3393_v27  ;;  %v3544_v16 = vunpack.c.l.bf16 %v3543_v14  ;;  %v3548_v27 = vpop.permute.xlu0 %3547 }
 0xdb0   : > { %v3400_v33 = vsel %vm1481_vm2, %v3394_v49, 0.0  ;;  %v3401_v44 = vsel %vm1481_vm2, %v3396_v36, 0.0  ;;  %v3405_v54 = vsel %vm1481_vm2, %v3395_v46, 0.0  ;;  %v3406_v0 = vsel %vm1481_vm2, %v3397_v1, 0.0  ;;  %v3553_v49 = vpop.permute.xlu1 %3552 }
 0xdb1   : > { %v3402_v34 = vadd.f32 %v3401_v44, %v3400_v33  ;;  %v3407_v55 = vadd.f32 %v3406_v0, %v3405_v54  ;;  %v3403_v6 = vsel %vm1481_vm2, %v3398_v31, 0.0  ;;  %v3408_v56 = vsel %vm1481_vm2, %v3399_v22, 0.0 }
 0xdb2   : > { %v3558_v20 = vrot.slane %v3544_v16, %v12382_v47  ;;  %v3566_v31 = vrot.slane %v3544_v16, %v12387_v48  ;;  %v11366_v16 = vmov 1966171168  }
 0xdb3   : > { %v3404_v58 = vadd.f32 %v3403_v6, %v3402_v34  ;;  %v3409_v53 = vadd.f32 %v3408_v56, %v3407_v55 }
 0xdb4   : > { %v3559_v36 = vmul.f32 %v3558_v20, %v3548_v27  ;;  %v3560_v44 = vmul.f32 %v3558_v20, %v3553_v49  ;;  %v5633_v20 = vunpack.c.l.s4 %v11366_v16  ;;  %v5629_v27 = vsel %vm3734_vm10, 1, %v15410_v50 }
 0xdb5   : > { %v3410_v41 = vpack.c.bf16 %v3409_v53, %v3404_v58 }
 0xdb6   : > { %v5634_v49 = vunpack.c.0.s8 %v5633_v20 }
 0xdb7   : > { %9723 = vmatmul.mubr.msk.bf16.vlgmr.msra.gmra.mrb[64].mxu0 %vm1481_vm2, %v3410_v41 }
 0xdb8   : > { %9742 = vmatprep.mubr.msk.bf16.mxu0 %vm11355_vm0, %v15414_v23  ;;  %9735 = vmatpush3.bf16.msra.mxu0 %v10321_v2 }
 0xdb9   : > { %9736 = vmatprep.subr.bf16.mxu0 %v15414_v23 }
 0xdbc   : > { %9737 = vmatpush3.bf16.msra.mxu0 %v10322_v29 }
 0xdbd   : > { %9738 = vmatprep.subr.bf16.mxu0 %v15414_v23 }
 0xdc0   : > { %9739 = vmatpush3.bf16.msra.mxu0 %v10323_v63 }
 0xdc1   : > { %9740 = vmatprep.subr.bf16.mxu0 %v15414_v23 }
 0xdc4   : > { %9741 = vmatpush3.bf16.msra.mxu0 %v10324_v38 }
 0xdc5   : > { %9758 = vmatprep.subr.bf16.mxu0 %v15414_v23 }
 0xe7b   : > { %v3536_v60 = vpop.f32.mrb[72].mxu1 }
 0xe7c   : > { %v9732_v3 = vpop.f32.mrb[73].mxu1 }
 0xe7d   : > { %v3539_v7 = vpop.f32.mrb[74].mxu1 }
 0xe7e   : > { %v9733_v13 = vpop.f32.mrb[75].mxu1 }
 0xe8a   : > { %v3480_v46 = vpop.f32.mrb[64].mxu0 }
 0xe8b   : > { %v3537_v1 = vadd.f32 %v3536_v60, %v3480_v46  ;;  %v9724_v22 = vpop.f32.mrb[65].mxu0  ;;  %v5631_v46 = vcombine.high %v5629_v27, %v5629_v27 }
 0xe8c   : > { %v3483_v33 = vpop.f32.mrb[66].mxu0 }
 0xe8d   : > { %v3561_v54 = vadd.f32 %v3559_v36, %v3537_v1  ;;  %v3540_v0 = vadd.f32 %v3539_v7, %v3483_v33  ;;  %v9725_v34 = vpop.f32.mrb[67].mxu0  ;;  %v10325_v7 = vld [vmem:[#allocation31] sm:$0xff]   ;;  %v12848_v36 = vsub.s32 %v5634_v49, %v12376_v42 }
 0xe8e   : > { %9747 = vmatpush3.bf16.msra.mxu1 %v10325_v7 }
 0xe8f   : > { %v3567_v55 = vadd.f32 %v3566_v31, %v3561_v54  ;;  %v3562_v6 = vadd.f32 %v3560_v44, %v3540_v0  ;;  %9752 = vmatprep.subr.bf16.mxu1 %v15414_v23  ;;  %v5638_v1 = vrot.slane %v5629_v27, %v12848_v36 }
 0xe91   : > { %v3571_v56 = vmin.f32 %v3567_v55, 0.0  ;;  %v3568_v58 = vadd.f32 %v3566_v31, %v3562_v6  ;;  %vm3569_vm8 = vcmp.gt.f32.partialorder %v3567_v55, 0.0  ;;  %v5645_v31 = vrot.slane %v5631_v46, %v12848_v36 }
 0xe92   : > { %v5654_v22 = vrot.slane %v5638_v1, %v12848_v36  ;;  %v5646_v33 = vcombine.high %v5638_v1, %v5638_v1 }
 0xe93   : > { %v3573_v53 = vmul.f32 1.442695, %v3571_v56  ;;  %v3572_v41 = vmin.f32 %v3568_v58, 0.0  ;;  %vm3570_vm9 = vcmp.gt.f32.partialorder %v3568_v58, 0.0 }
 0xe94   : > { %vm5729_vm11 = vcmp.ne.s32.totalorder %v5654_v22, 0  ;;  %v5676_v44 = vcombine.high %v5654_v22, %v5654_v22  ;;  %v5668_v54 = vrot.slane %v5646_v33, %v12848_v36 }
 0xe95   : > { %10431 = vpow2.f32 %v3573_v53  ;;  %v3575_v2 = vmul.f32 1.442695, %v3572_v41  ;;  %v5745_v34 = vsel %vm5729_vm11, 1, %v15410_v50  ;;  %v5647_v53 = vcombine.high %v5645_v31, %v5645_v31 }
 0xe96   : > { %v5764_v56 = vrot.slane %v5745_v34, %v12382_v47  ;;  %vm5731_vm12 = vcmp.ne.s32.totalorder %v5676_v44, 0 }
 0xe97   : > { %10433 = vpow2.f32 %v3575_v2  ;;  %v5747_v41 = vsel %vm5731_vm12, 1, %v15410_v50 }
 0xe98   : > { %5826 = vperm.xlu1 %10240, %v5764_v56   ;;  %v5772_v2 = vrot.slane %v5747_v41, %v12382_v47 }
 0xe9c   : > { %5832 = vperm.xlu1 %10240, %v5772_v2  }
 0xe9f   : > { %v10432_v29 = vpop.eup %10431 }
 0xea0   : > { %v9359_v63 = vadd.f32 -1.0, %v10432_v29 }
 0xea1   : > { %v10434_v38 = vpop.eup %10433 }
 0xea2   : > { %v9360_v60 = vadd.f32 -1.0, %v10434_v38  ;;  %v3579_v3 = vsel %vm3569_vm8, %v3567_v55, %v9359_v63  ;;  %v5661_v55 = vrot.slane %v5645_v31, %v12848_v36  ;;  %vm5730_vm8 = vcmp.ne.s32.totalorder %v5668_v54, 0 }
 0xea3   : > { %v5746_v7 = vsel %vm5730_vm8, 1, %v15410_v50 }
 0xea4   : > { %v3580_v13 = vsel %vm3570_vm9, %v3568_v58, %v9360_v60  ;;  %v5678_v58 = vcombine.high %v5668_v54, %v5668_v54  ;;  %vm5733_vm14 = vcmp.ne.s32.totalorder %v5661_v55, 0  ;;  %v5675_v60 = vrot.slane %v5647_v53, %v12848_v36 }
 0xea5   : > { %v3589_v14 = vpack.c.bf16 %v3580_v13, %v3579_v3  ;;  %v5749_v16 = vsel %vm5733_vm14, 1, %v15410_v50  ;;  %v5768_v20 = vrot.slane %v5746_v7, %v12382_v47  ;;  %v5677_v27 = vcombine.high %v5661_v55, %v5661_v55 }
 0xea6   : > { %vm5732_vm13 = vcmp.ne.s32.totalorder %v5678_v58, 0  ;;  %vm5734_vm9 = vcmp.ne.s32.totalorder %v5675_v60, 0  ;;  %v5780_v46 = vrot.slane %v5749_v16, %v12382_v47  ;;  %v5679_v44 = vcombine.high %v5675_v60, %v5675_v60 }
 0xea7   : > { %9743 = vmatmul.mubr.msk.bf16.vlgmr.msra.gmra.mrb[68].mxu0 %vm2632_vm7, %v3589_v14  ;;  %vm3735_vm7 = vcmp.gt.f32.partialorder %v12430_v12, 1.0  ;;  %v5748_v63 = vsel %vm5732_vm13, 1, %v15410_v50  ;;  %5829 = vperm.xlu0 %10241, %v5768_v20   ;;  %v5750_v1 = vsel %vm5734_vm9, 1, %v15410_v50  ;;  %vm5735_vm11 = vcmp.ne.s32.totalorder %v5677_v27, 0 }
 0xea8   : > { %9760 = vmatprep.mubr.msk.bf16.mxu0 %vm11355_vm0, %v15414_v23  ;;  %v5630_v0 = vsel %vm3735_vm7, 1, %v15410_v50  ;;  %v5776_v13 = vrot.slane %v5748_v63, %v12382_v47  ;;  %v5751_v55 = vsel %vm5735_vm11, 1, %v15410_v50  ;;  %vm5736_vm13 = vcmp.ne.s32.totalorder %v5679_v44, 0 }
 0xea9   : > { %v5680_v6 = vcombine.high %v5630_v0, %v5630_v0  ;;  %v5687_v29 = vrot.slane %v5630_v0, %v12848_v36  ;;  %v5784_v0 = vrot.slane %v5750_v1, %v12382_v47  ;;  %v5788_v58 = vrot.slane %v5751_v55, %v12382_v47 }
 0xeaa   : > { %5835 = vperm.xlu1 %10240, %v5776_v13   ;;  %v5752_v41 = vsel %vm5736_vm13, 1, %v15410_v50  ;;  %v15591_v7 = vmov 1   ;;  %vm3910_vm13 = vcmask 27648  }
 0xeab   : > { %v5694_v38 = vrot.slane %v5680_v6, %v12848_v36  ;;  %v5703_v14 = vrot.slane %v5687_v29, %v12848_v36  ;;  %v5695_v56 = vcombine.high %v5687_v29, %v5687_v29  ;;  %v5792_v63 = vrot.slane %v5752_v41, %v12382_v47 }
 0xead   : > { %v5710_v3 = vrot.slane %v5694_v38, %v12848_v36  ;;  %v5725_v49 = vcombine.high %v5703_v14, %v5703_v14  ;;  %vm5737_vm14 = vcmp.ne.s32.totalorder %v5703_v14, 0  ;;  %v5717_v2 = vrot.slane %v5695_v56, %v12848_v36 }
 0xeae   : > { %5838 = vperm.xlu1 %10240, %v5780_v46   ;;  %v5753_v60 = vsel %vm5737_vm14, 1, %v15410_v50  ;;  %v5696_v29 = vcombine.high %v5694_v38, %v5694_v38  ;;  %vm5529_vm14 = vcmask 15360  }
 0xeaf   : > { %vm5741_vm10 = vcmp.ne.s32.totalorder %v5710_v3, 0  ;;  %vm5739_vm7 = vcmp.ne.s32.totalorder %v5725_v49, 0  ;;  %v5726_v33 = vcombine.high %v5710_v3, %v5710_v3  ;;  %vm5738_vm8 = vcmp.ne.s32.totalorder %v5717_v2, 0 }
 0xeb0   : > { %v5755_v31 = vsel %vm5739_vm7, 1, %v15410_v50  ;;  %v5757_v22 = vsel %vm5741_vm10, 1, %v15410_v50  ;;  %v5727_v3 = vcombine.high %v5717_v2, %v5717_v2  ;;  %v5796_v13 = vrot.slane %v5753_v60, %v12382_v47 }
 0xeb1   : > { %v5804_v54 = vrot.slane %v5755_v31, %v12382_v47  ;;  %vm5743_vm12 = vcmp.ne.s32.totalorder %v5726_v33, 0  ;;  %v5812_v34 = vrot.slane %v5757_v22, %v12382_v47  ;;  %v5754_v16 = vsel %vm5738_vm8, 1, %v15410_v50  ;;  %v3590_v22 = vld [vmem:[#allocation29 + $0x20] sm:$0x1] }
 0xeb2   : > { %v5759_v6 = vsel %vm5743_vm12, 1, %v15410_v50  ;;  %5841 = vperm.xlu1 %10240, %v5784_v0   ;;  %vm5740_vm9 = vcmp.ne.s32.totalorder %v5727_v3, 0  ;;  %v5724_v14 = vrot.slane %v5696_v29, %v12848_v36  ;;  %v5800_v20 = vrot.slane %v5754_v16, %v12382_v47 }
 0xeb3   : > { %5856 = vperm.xlu0 %10241, %v5804_v54   ;;  %v5820_v53 = vrot.slane %v5759_v6, %v12382_v47  ;;  %v5756_v27 = vsel %vm5740_vm9, 1, %v15410_v50  ;;  %v3591_v33 = vunpack.c.l.bf16 %v3590_v22  ;;  %vm5578_vm8 = vcmask 39936  }
 0xeb4   : > { %vm5742_vm10 = vcmp.ne.s32.totalorder %v5724_v14, 0  ;;  %v5728_v49 = vcombine.high %v5724_v14, %v5724_v14  ;;  %v5808_v38 = vrot.slane %v5756_v27, %v12382_v47  ;;  %vm5595_vm9 = vcmask 48128  }
 0xeb5   : > { %v5758_v46 = vsel %vm5742_vm10, 1, %v15410_v50  ;;  %v3595_v44 = vrot.slane %v3591_v33, %v12382_v47  ;;  %vm5612_vm10 = vcmask 56320  }
 0xeb6   : > { %5844 = vperm.xlu1 %10240, %v5788_v58   ;;  %vm5744_vm7 = vcmp.ne.s32.totalorder %v5728_v49, 0  ;;  %v5816_v1 = vrot.slane %v5758_v46, %v12382_v47 }
 0xeb7   : > { %5862 = vperm.xlu0 %10241, %v5812_v34   ;;  %v5760_v31 = vsel %vm5744_vm7, 1, %v15410_v50 }
 0xeb8   : > { %v5824_v36 = vrot.slane %v5760_v31, %v12382_v47 }
 0xeba   : > { %5847 = vperm.xlu1 %10240, %v5792_v63  }
 0xebb   : > { %5868 = vperm.xlu0 %10241, %v5820_v53  }
 0xebe   : > { %5850 = vperm.xlu1 %10240, %v5796_v13   ;;  %v3676_v13 = vld [vmem:[#allocation10] sm:$0xff] }
 0xebf   : > { %10244 = vset.pattern.permute.xlu0 %v15591_v7 }
 0xec2   : > { %5853 = vperm.xlu1 %10240, %v5800_v20  }
 0xec6   : > { %5859 = vperm.xlu1 %10240, %v5808_v38  }
 0xeca   : > { %5865 = vperm.xlu1 %10240, %v5816_v1  }
 0xece   : > { %5871 = vperm.xlu1 %10240, %v5824_v36  }
 0xed2   : > { %10242 = vset.pattern.permute.xlu1 %v15410_v50 }
 0xf7a   : > { %v3657_v54 = vpop.f32.mrb[68].mxu0 }
 0xf7b   : > { %v3658_v0 = vadd.f32 %v3657_v54, %v3595_v44  ;;  %v9744_v34 = vpop.f32.mrb[69].mxu0 }
 0xf7c   : > { %v3660_v55 = vpop.f32.mrb[70].mxu0 }
 0xf7d   : > { %v3666_v6 = vmin.f32 %v3658_v0, 0.0  ;;  %v3661_v56 = vadd.f32 %v3660_v55, %v3595_v44  ;;  %v9745_v58 = vpop.f32.mrb[71].mxu0  ;;  %vm3664_vm11 = vcmp.gt.f32.partialorder %v3658_v0, 0.0  ;;  %v4627_v55 = vsub.s32 4, %v12376_v42 }
 0xf7e   : > { %v12939_v58 = vsub.s32 5, %v12376_v42 }
 0xf7f   : > { %v3668_v53 = vmul.f32 1.442695, %v3666_v6  ;;  %v3667_v41 = vmin.f32 %v3661_v56, 0.0  ;;  %vm3665_vm12 = vcmp.gt.f32.partialorder %v3661_v56, 0.0 }
 0xf80   : > { %15594 = vst [vmem:[#allocation111_spill] sm:$0xff] %v12939_v58 }
 0xf81   : > { %10435 = vpow2.f32 %v3668_v53  ;;  %v3670_v2 = vmul.f32 1.442695, %v3667_v41  ;;  %v5071_v41 = vsub.s32 6, %v12376_v42 }
 0xf83   : > { %10437 = vpow2.f32 %v3670_v2 }
 0xf8b   : > { %v10436_v63 = vpop.eup %10435 }
 0xf8c   : > { %v9366_v60 = vadd.f32 -1.0, %v10436_v63  ;;  %v5293_v63 = vsub.s32 7, %v12376_v42 }
 0xf8d   : > { %v10438_v3 = vpop.eup %10437 }
 0xf8e   : > { %v3674_v29 = vsel %vm3664_vm11, %v3658_v0, %v9366_v60  ;;  %v9367_v16 = vadd.f32 -1.0, %v10438_v3  ;;  %vm5905_vm11 = vcmask 60416  }
 0xf8f   : > { %v12899_v20 = vadd.f32 %v3676_v13, %v3674_v29 }
 0xf90   : > { %v3675_v14 = vsel %vm3665_vm12, %v3661_v56, %v9367_v16 }
 0xf91   : > { %15592 = vst [vmem:[#allocation109_spill] sm:$0xff] %v12899_v20  ;;  %v12901_v27 = vadd.f32 %v3676_v13, %v3675_v14  ;;  %v12973_v13 = vpop.permute.xlu1 %5826 }
 0xf92   : > { %vm5873_vm7 = vcmp.eq.s32.totalorder %v12973_v13, 1 }
 0xf93   : > { %15593 = vst [vmem:[#allocation110_spill] sm:$0xff] %v12901_v27  ;;  %v3681_v49 = vpack.c.bf16 %v12901_v27, %v12899_v20 }
 0xf95   : > { %9749 = vmatmul.mubr.msk.bf16.vlgmr.msra.gmra.mrb[76].mxu1 %vm1866_vm6, %v3681_v49  ;;  %v12978_v16 = vpop.permute.xlu1 %5832 }
 0xf96   : > { %9754 = vmatprep.mubr.msk.bf16.mxu1 %vm11355_vm0, %v15414_v23  ;;  %vm5875_vm12 = vcmp.eq.s32.totalorder %v12978_v16, 1 }
 0xf99   : > { %v12983_v14 = vpop.permute.xlu1 %5835 }
 0xf9d   : > { %v12986_v49 = vpop.permute.xlu1 %5838 }
 0xf9e   : > { %vm5877_vm5 = vcmp.eq.s32.totalorder %v12986_v49, 1 }
0x1068   : > { %v12908_v38 = vpop.f32.mrb[76].mxu1 }
0x1069   : > { %v9750_v46 = vpop.f32.mrb[77].mxu1  ;;  %v3739_v1 = vrot.slane %v12908_v38, %v12382_v47  ;;  %v3962_v33 = vrot.slane %v12908_v38, %v12387_v48  ;;  %v4184_v54 = vrot.slane %v12908_v38, %v12394_v59  ;;  %v4406_v34 = vrot.slane %v12908_v38, %v12619_v43 }
0x106a   : > { %v12912_v31 = vpop.f32.mrb[78].mxu1  ;;  %v4628_v56 = vrot.slane %v12908_v38, %v4627_v55  ;;  %v4850_v53 = vrot.slane %v12908_v38, %v12939_v58  ;;  %v5072_v2 = vrot.slane %v12908_v38, %v5071_v41  ;;  %v12957_v3 = vrot.slane %v12908_v38, %v5293_v63  ;;  %v12988_v46 = vpop.permute.xlu1 %5841 }
0x106b   : > { %3746 = vrot.lane.b32.xlu0 %v3739_v1, %s11367_s2  ;;  %v9751_v36 = vpop.f32.mrb[79].mxu1  ;;  %v3743_v22 = vrot.slane %v12912_v31, %v12382_v47  ;;  %v3966_v44 = vrot.slane %v12912_v31, %v12387_v48  ;;  %v4188_v0 = vrot.slane %v12912_v31, %v12394_v59  ;;  %v4410_v6 = vrot.slane %v12912_v31, %v12619_v43 }
0x106c   : > { %v4632_v59 = vrot.slane %v12912_v31, %v4627_v55  ;;  %v4854_v43 = vrot.slane %v12912_v31, %v12939_v58  ;;  %v5076_v60 = vrot.slane %v12912_v31, %v5071_v41  ;;  %15595 = vst [vmem:[#allocation112_spill] sm:$0xff] %v12957_v3  ;;  %v12962_v29 = vrot.slane %v12912_v31, %v5293_v63 }
0x106d   : > { %3748 = vrot.lane.b32.xlu1 %v3743_v22, %s11367_s2  ;;  %v13016_v41 = vmul.f32 0.5, %v12912_v31  ;;  %v11372_v58 = vmov 1983009808   ;;  %v3810_v47 = vunpack.c.0.s8 %v3809_v28 }
0x106e   : > { %15596 = vst [vmem:[#allocation113_spill] sm:$0xff] %v12962_v29  ;;  %v3777_v45 = vunpack.c.l.s4 %v11372_v58 }
0x106f   : > { %3969 = vrot.lane.b32.xlu0 %v3962_v33, %s11367_s2  ;;  %v13194_v27 = vsub.s32 %v3810_v47, %v12376_v42 }
0x1070   : > { %v3778_v51 = vunpack.c.0.s8 %v3777_v45 }
0x1071   : > { %3971 = vrot.lane.b32.xlu1 %v3966_v44, %s11367_s2  ;;  %15615 = vst [vmem:[#allocation132_spill] sm:$0xff] %v13194_v27 }
0x1072   : > { %v13187_v35 = vsub.s32 %v3778_v51, %v12376_v42 }
0x1073   : > { %4191 = vrot.lane.b32.xlu0 %v4184_v54, %s11367_s2 }
0x1074   : > { %15613 = vst [vmem:[#allocation130_spill] sm:$0xff] %v13187_v35 }
0x1075   : > { %4193 = vrot.lane.b32.xlu1 %v4188_v0, %s11367_s2 }
0x1077   : > { %4413 = vrot.lane.b32.xlu0 %v4406_v34, %s11367_s2 }
0x1079   : > { %4415 = vrot.lane.b32.xlu1 %v4410_v6, %s11367_s2 }
0x107b   : > { %4635 = vrot.lane.b32.xlu0 %v4628_v56, %s11367_s2 }
0x107d   : > { %4637 = vrot.lane.b32.xlu1 %v4632_v59, %s11367_s2 }
0x107f   : > { %4857 = vrot.lane.b32.xlu0 %v4850_v53, %s11367_s2 }
0x1081   : > { %4859 = vrot.lane.b32.xlu1 %v4854_v43, %s11367_s2 }
0x1083   : > { %5079 = vrot.lane.b32.xlu0 %v5072_v2, %s11367_s2 }
0x1085   : > { %5081 = vrot.lane.b32.xlu1 %v5076_v60, %s11367_s2 }
0x1087   : > { %5301 = vrot.lane.b32.xlu0 %v12957_v3, %s11367_s2 }
0x1089   : > { %5303 = vrot.lane.b32.xlu1 %v12962_v29, %s11367_s2 }
0x108b   : > { %6330 = vrot.lane.b32.xlu0 %v3739_v1, %s11368_s5  ;;  %v12990_v1 = vpop.permute.xlu1 %5844 }
0x108d   : > { %6332 = vrot.lane.b32.xlu1 %v3743_v22, %s11368_s5 }
0x108f   : > { %6570 = vrot.lane.b32.xlu0 %v3962_v33, %s11368_s5  ;;  %v12992_v36 = vpop.permute.xlu1 %5847  ;;  %v12996_v33 = vpop.permute.xlu0 %5829 }
0x1091   : > { %6572 = vrot.lane.b32.xlu1 %v3966_v44, %s11368_s5 }
0x1093   : > { %6810 = vrot.lane.b32.xlu0 %v4184_v54, %s11368_s5  ;;  %v12994_v22 = vpop.permute.xlu1 %5850  ;;  %v13000_v54 = vpop.permute.xlu0 %5856 }
0x1095   : > { %6812 = vrot.lane.b32.xlu1 %v4188_v0, %s11368_s5 }
0x1097   : > { %7050 = vrot.lane.b32.xlu0 %v4406_v34, %s11368_s5  ;;  %v12998_v44 = vpop.permute.xlu1 %5853  ;;  %v13004_v34 = vpop.permute.xlu0 %5862 }
0x1098   : > { %15597 = vst [vmem:[#allocation114_spill] sm:$0xff] %v13004_v34 }
0x1099   : > { %7052 = vrot.lane.b32.xlu1 %v4410_v6, %s11368_s5 }
0x109b   : > { %7290 = vrot.lane.b32.xlu0 %v4628_v56, %s11368_s5  ;;  %v13002_v0 = vpop.permute.xlu1 %5859  ;;  %v13008_v6 = vpop.permute.xlu0 %5868 }
0x109c   : > { %15599 = vst [vmem:[#allocation116_spill] sm:$0xff] %v13008_v6 }
0x109d   : > { %7292 = vrot.lane.b32.xlu1 %v4632_v59, %s11368_s5  ;;  %v13013_v59 = vmul.f32 0.5, %v12908_v38 }
0x109f   : > { %7530 = vrot.lane.b32.xlu0 %v4850_v53, %s11368_s5  ;;  %v13006_v55 = vpop.permute.xlu1 %5865 }
0x10a0   : > { %15598 = vst [vmem:[#allocation115_spill] sm:$0xff] %v13006_v55 }
0x10a1   : > { %7532 = vrot.lane.b32.xlu1 %v4854_v43, %s11368_s5 }
0x10a3   : > { %7770 = vrot.lane.b32.xlu0 %v5072_v2, %s11368_s5  ;;  %v13010_v56 = vpop.permute.xlu1 %5871 }
0x10a4   : > { %15600 = vst [vmem:[#allocation117_spill] sm:$0xff] %v13010_v56 }
0x10a5   : > { %7772 = vrot.lane.b32.xlu1 %v5076_v60, %s11368_s5 }
0x10dd   : > { %v3747_v53 = vpop.permute.xlu0 %3746 }
0x10de   : > { %v13019_v43 = vmul.f32 %v3747_v53, %v13013_v59 }
0x10df   : > { %v3749_v2 = vpop.permute.xlu1 %3748 }
0x10e0   : > { %v13022_v63 = vmul.f32 %v3749_v2, %v13016_v41  ;;  %3756 = vrot.lane.b32.xlu0 %v13019_v43, %s11369_s12 }
0x10e1   : > { %v3970_v38 = vpop.permute.xlu0 %3969 }
0x10e2   : > { %3758 = vrot.lane.b32.xlu1 %v13022_v63, %s11369_s12  ;;  %v13035_v60 = vmul.f32 %v3970_v38, %v13013_v59 }
0x10e3   : > { %v3972_v31 = vpop.permute.xlu1 %3971 }
0x10e4   : > { %3762 = vrot.lane.b32.xlu0 %v13019_v43, %s11370_s6  ;;  %v13040_v53 = vmul.f32 %v3972_v31, %v13016_v41 }
0x10e5   : > { %v4192_v2 = vpop.permute.xlu0 %4191 }
0x10e6   : > { %3764 = vrot.lane.b32.xlu1 %v13022_v63, %s11370_s6  ;;  %v13053_v31 = vmul.f32 %v4192_v2, %v13013_v59 }
0x10e7   : > { %v4194_v38 = vpop.permute.xlu1 %4193 }
0x10e8   : > { %3768 = vrot.lane.b32.xlu0 %v13019_v43, %s11371_s26  ;;  %v13058_v10 = vmul.f32 %v4194_v38, %v13016_v41 }
0x10e9   : > { %v4414_v2 = vpop.permute.xlu0 %4413 }
0x10ea   : > { %3770 = vrot.lane.b32.xlu1 %v13022_v63, %s11371_s26  ;;  %v13071_v38 = vmul.f32 %v4414_v2, %v13013_v59 }
0x10eb   : > { %v4416_v50 = vpop.permute.xlu1 %4415 }
0x10ec   : > { %3979 = vrot.lane.b32.xlu0 %v13035_v60, %s11369_s12  ;;  %v13076_v26 = vmul.f32 %v4416_v50, %v13016_v41 }
0x10ed   : > { %v4636_v2 = vpop.permute.xlu0 %4635 }
0x10ee   : > { %3981 = vrot.lane.b32.xlu1 %v13040_v53, %s11369_s12  ;;  %v13089_v50 = vmul.f32 %v4636_v2, %v13013_v59 }
0x10ef   : > { %v4638_v23 = vpop.permute.xlu1 %4637 }
0x10f0   : > { %3985 = vrot.lane.b32.xlu0 %v13035_v60, %s11370_s6  ;;  %v13094_v19 = vmul.f32 %v4638_v23, %v13016_v41 }
0x10f1   : > { %v4858_v2 = vpop.permute.xlu0 %4857 }
0x10f2   : > { %3987 = vrot.lane.b32.xlu1 %v13040_v53, %s11370_s6  ;;  %v13107_v23 = vmul.f32 %v4858_v2, %v13013_v59 }
0x10f3   : > { %v4860_v18 = vpop.permute.xlu1 %4859 }
0x10f4   : > { %3991 = vrot.lane.b32.xlu0 %v13035_v60, %s11371_s26  ;;  %v13112_v25 = vmul.f32 %v4860_v18, %v13016_v41 }
0x10f5   : > { %v5080_v32 = vpop.permute.xlu0 %5079 }
0x10f6   : > { %3993 = vrot.lane.b32.xlu1 %v13040_v53, %s11371_s26  ;;  %v13125_v18 = vmul.f32 %v5080_v32, %v13013_v59 }
0x10f7   : > { %v5082_v30 = vpop.permute.xlu1 %5081 }
0x10f8   : > { %4201 = vrot.lane.b32.xlu0 %v13053_v31, %s11369_s12  ;;  %v13130_v21 = vmul.f32 %v5082_v30, %v13016_v41 }
0x10f9   : > { %v5302_v2 = vpop.permute.xlu0 %5301 }
0x10fa   : > { %4203 = vrot.lane.b32.xlu1 %v13058_v10, %s11369_s12  ;;  %v13147_v8 = vmul.f32 %v5302_v2, %v13013_v59 }
0x10fb   : > { %v5304_v30 = vpop.permute.xlu1 %5303 }
0x10fc   : > { %4207 = vrot.lane.b32.xlu0 %v13053_v31, %s11370_s6  ;;  %v13152_v15 = vmul.f32 %v5304_v30, %v13016_v41 }
0x10fd   : > { %v13134_v12 = vpop.permute.xlu0 %6330 }
0x10fe   : > { %4209 = vrot.lane.b32.xlu1 %v13058_v10, %s11370_s6  ;;  %15601 = vst [vmem:[#allocation118_spill] sm:$0xff] %v13134_v12 }
0x10ff   : > { %v13168_v41 = vpop.permute.xlu1 %6332 }
0x1100   : > { %4213 = vrot.lane.b32.xlu0 %v13053_v31, %s11371_s26  ;;  %15605 = vst [vmem:[#allocation122_spill] sm:$0xff] %v13168_v41 }
0x1101   : > { %v13142_v32 = vpop.permute.xlu0 %6570 }
0x1102   : > { %4215 = vrot.lane.b32.xlu1 %v13058_v10, %s11371_s26  ;;  %15602 = vst [vmem:[#allocation119_spill] sm:$0xff] %v13142_v32 }
0x1103   : > { %v13174_v30 = vpop.permute.xlu1 %6572 }
0x1104   : > { %4423 = vrot.lane.b32.xlu0 %v13071_v38, %s11369_s12  ;;  %15607 = vst [vmem:[#allocation124_spill] sm:$0xff] %v13174_v30 }
0x1105   : > { %v13156_v4 = vpop.permute.xlu0 %6810 }
0x1106   : > { %4425 = vrot.lane.b32.xlu1 %v13076_v26, %s11369_s12  ;;  %15603 = vst [vmem:[#allocation120_spill] sm:$0xff] %v13156_v4 }
0x1107   : > { %v13178_v9 = vpop.permute.xlu1 %6812 }
0x1108   : > { %4429 = vrot.lane.b32.xlu0 %v13071_v38, %s11370_s6  ;;  %15609 = vst [vmem:[#allocation126_spill] sm:$0xff] %v13178_v9 }
0x1109   : > { %v13164_v59 = vpop.permute.xlu0 %7050 }
0x110a   : > { %4431 = vrot.lane.b32.xlu1 %v13076_v26, %s11370_s6  ;;  %15604 = vst [vmem:[#allocation121_spill] sm:$0xff] %v13164_v59 }
0x110b   : > { %v13182_v5 = vpop.permute.xlu1 %7052 }
0x110c   : > { %4435 = vrot.lane.b32.xlu0 %v13071_v38, %s11371_s26  ;;  %15611 = vst [vmem:[#allocation128_spill] sm:$0xff] %v13182_v5 }
0x110d   : > { %v13172_v2 = vpop.permute.xlu0 %7290 }
0x110e   : > { %4437 = vrot.lane.b32.xlu1 %v13076_v26, %s11371_s26  ;;  %15606 = vst [vmem:[#allocation123_spill] sm:$0xff] %v13172_v2 }
0x110f   : > { %v13184_v52 = vpop.permute.xlu1 %7292 }
0x1110   : > { %4645 = vrot.lane.b32.xlu0 %v13089_v50, %s11369_s12  ;;  %15612 = vst [vmem:[#allocation129_spill] sm:$0xff] %v13184_v52 }
0x1111   : > { %v13176_v17 = vpop.permute.xlu0 %7530 }
0x1112   : > { %4647 = vrot.lane.b32.xlu1 %v13094_v19, %s11369_s12  ;;  %15608 = vst [vmem:[#allocation125_spill] sm:$0xff] %v13176_v17 }
0x1113   : > { %v13191_v62 = vpop.permute.xlu1 %7532 }
0x1114   : > { %4651 = vrot.lane.b32.xlu0 %v13089_v50, %s11370_s6  ;;  %15614 = vst [vmem:[#allocation131_spill] sm:$0xff] %v13191_v62 }
0x1115   : > { %v13180_v11 = vpop.permute.xlu0 %7770 }
0x1116   : > { %4653 = vrot.lane.b32.xlu1 %v13094_v19, %s11370_s6  ;;  %15610 = vst [vmem:[#allocation127_spill] sm:$0xff] %v13180_v11 }
0x1117   : > { %v13200_v62 = vpop.permute.xlu1 %7772 }
0x1118   : > { %4657 = vrot.lane.b32.xlu0 %v13089_v50, %s11371_s26  ;;  %15616 = vst [vmem:[#allocation133_spill] sm:$0xff] %v13200_v62 }
0x111a   : > { %4659 = vrot.lane.b32.xlu1 %v13094_v19, %s11371_s26 }
0x111c   : > { %4867 = vrot.lane.b32.xlu0 %v13107_v23, %s11369_s12 }
0x111e   : > { %4869 = vrot.lane.b32.xlu1 %v13112_v25, %s11369_s12 }
0x1120   : > { %4873 = vrot.lane.b32.xlu0 %v13107_v23, %s11370_s6 }
0x1122   : > { %4875 = vrot.lane.b32.xlu1 %v13112_v25, %s11370_s6 }
0x1124   : > { %4879 = vrot.lane.b32.xlu0 %v13107_v23, %s11371_s26 }
0x1126   : > { %4881 = vrot.lane.b32.xlu1 %v13112_v25, %s11371_s26 }
0x1128   : > { %5089 = vrot.lane.b32.xlu0 %v13125_v18, %s11369_s12 }
0x112a   : > { %5091 = vrot.lane.b32.xlu1 %v13130_v21, %s11369_s12 }
0x112c   : > { %5095 = vrot.lane.b32.xlu0 %v13125_v18, %s11370_s6 }
0x112e   : > { %5097 = vrot.lane.b32.xlu1 %v13130_v21, %s11370_s6 }
0x1130   : > { %5101 = vrot.lane.b32.xlu0 %v13125_v18, %s11371_s26 }
0x1132   : > { %5103 = vrot.lane.b32.xlu1 %v13130_v21, %s11371_s26 }
0x1134   : > { %5311 = vrot.lane.b32.xlu0 %v13147_v8, %s11369_s12 }
0x1136   : > { %5313 = vrot.lane.b32.xlu1 %v13152_v15, %s11369_s12  ;;  %s11183_s12 = scalar_lea.vmem %s15279_s9, 256 }
0x1137   : > { %p11184_p6 = scmp.ne.s32.totalorder %s15279_s9, %s11183_s12 }
0x1138   : > { %5317 = vrot.lane.b32.xlu0 %v13147_v8, %s11370_s6 }
0x1139   : > { %p11185_p2 = pnand %p11184_p6, %p15743_p13 }
0x113a   : > { %5319 = vrot.lane.b32.xlu1 %v13152_v15, %s11370_s6  ;;  %s11384_s6 = smov [#allocation43]  }
0x113b   : > { %p11186_p0 = pneg %p11185_p2 }
0x113c   : > { %5323 = vrot.lane.b32.xlu0 %v13147_v8, %s11371_s26 }
0x113e   : > { %5325 = vrot.lane.b32.xlu1 %v13152_v15, %s11371_s26  ;;  %s11187_s26 = sshll.u32 %s11384_s6, 4  ;;  %s11188_s26 = int_to_ptr.vmem [resolvable:$false] %s11187_s26 }
0x113f   : > { %p11190_p7 = scmp.lt.s32.totalorder %s15279_s9, %s11188_s26 }
0x1152   : > { %v3757_v37 = vpop.permute.xlu0 %3756 }
0x1156   : > { %v3763_v48 = vpop.permute.xlu0 %3762 }
0x1157   : > { %v3774_v39 = vcombine.low %v13019_v43, %v3763_v48  ;;  %v3775_v61 = vcombine.high %v13019_v43, %v3763_v48 }
0x1159   : > { %v3782_v24 = vrot.slane %v3774_v39, %v13187_v35  ;;  %v3789_v45 = vrot.slane %v3775_v61, %v13187_v35 }
0x115a   : > { %v3769_v40 = vpop.permute.xlu0 %3768 }
0x115b   : > { %v3790_v57 = vcombine.low %v3757_v37, %v3769_v40  ;;  %v3791_v58 = vcombine.high %v3757_v37, %v3769_v40 }
0x115d   : > { %v3798_v28 = vrot.slane %v3790_v57, %v13187_v35  ;;  %v3805_v51 = vrot.slane %v3791_v58, %v13187_v35  ;;  %v13211_v58 = vpop.permute.xlu1 %3758 }
0x115e   : > { %v3980_v20 = vpop.permute.xlu0 %3979 }
0x115f   : > { %v3806_v52 = vcombine.low %v3782_v24, %v3798_v28  ;;  %v3822_v5 = vcombine.low %v3789_v45, %v3805_v51  ;;  %v3807_v48 = vcombine.high %v3782_v24, %v3798_v28  ;;  %v3823_v43 = vcombine.high %v3789_v45, %v3805_v51 }
0x1161   : > { %v13203_v37 = vrot.slane %v3806_v52, %v13194_v27  ;;  %v3830_v42 = vrot.slane %v3822_v5, %v13194_v27  ;;  %v3821_v40 = vrot.slane %v3807_v48, %v13194_v27  ;;  %v3837_v39 = vrot.slane %v3823_v43, %v13194_v27  ;;  %v13221_v41 = vpop.permute.xlu1 %3764 }
0x1162   : > { %v3986_v47 = vpop.permute.xlu0 %3985  ;;  %v15617_v48 = vmov 0.0  }
0x1163   : > { %v3911_v57 = vsel %vm3910_vm13, %v13203_v37, 0.0  ;;  %v3923_v61 = vsel %vm3910_vm13, %v3830_v42, 0.0  ;;  %v3997_v24 = vcombine.low %v13035_v60, %v3986_v47  ;;  %v3917_v45 = vsel %vm3910_vm13, %v3821_v40, 0.0 }
0x1164   : > { %3912 = vadd.xlane.f32.xlu0 %v3911_v57  ;;  %3924 = vadd.xlane.f32.xlu1 %v3923_v61  ;;  %v3929_v51 = vsel %vm3910_vm13, %v3837_v39, 0.0  ;;  %v3839_v62 = vcombine.high %v3821_v40, %v15617_v48  ;;  %v3998_v9 = vcombine.high %v13035_v60, %v3986_v47 }
0x1165   : > { %v4005_v43 = vrot.slane %v3997_v24, %v13187_v35 }
0x1166   : > { %v3992_v52 = vpop.permute.xlu0 %3991  ;;  %v3920_v11 = vsel %vm3910_vm13, %v3839_v62, 0.0  ;;  %v4012_v40 = vrot.slane %v3998_v9, %v13187_v35  ;;  %v13231_v62 = vpop.permute.xlu1 %3770 }
0x1167   : > { %v4013_v5 = vcombine.low %v3980_v20, %v3992_v52  ;;  %v4014_v28 = vcombine.high %v3980_v20, %v3992_v52  ;;  %v3840_v20 = vcombine.high %v3830_v42, %v15617_v48 }
0x1168   : > { %3918 = vadd.xlane.f32.xlu0 %v3917_v45  ;;  %3930 = vadd.xlane.f32.xlu1 %v3929_v51 }
0x1169   : > { %v4021_v57 = vrot.slane %v4013_v5, %v13187_v35  ;;  %v4028_v61 = vrot.slane %v4014_v28, %v13187_v35  ;;  %v3926_v45 = vsel %vm3910_vm13, %v3840_v20, 0.0  ;;  %v3841_v28 = vcombine.high %v3837_v39, %v15617_v48 }
0x116a   : > { %v4202_v30 = vpop.permute.xlu0 %4201 }
0x116b   : > { %v4029_v52 = vcombine.low %v4005_v43, %v4021_v57  ;;  %v4030_v17 = vcombine.high %v4005_v43, %v4021_v57  ;;  %v4045_v24 = vcombine.low %v4012_v40, %v4028_v61  ;;  %v4046_v43 = vcombine.high %v4012_v40, %v4028_v61 }
0x116c   : > { %3921 = vadd.xlane.f32.xlu0 %v3920_v11 }
0x116d   : > { %v4037_v60 = vrot.slane %v4029_v52, %v13194_v27  ;;  %v4044_v51 = vrot.slane %v4030_v17, %v13194_v27  ;;  %v4053_v11 = vrot.slane %v4045_v24, %v13194_v27  ;;  %v3932_v52 = vsel %vm3910_vm13, %v3841_v28, 0.0  ;;  %v13242_v24 = vpop.permute.xlu1 %3981 }
0x116e   : > { %v4208_v47 = vpop.permute.xlu0 %4207  ;;  %v4060_v2 = vrot.slane %v4046_v43, %v13194_v27 }
0x116f   : > { %v4133_v5 = vsel %vm3910_vm13, %v4037_v60, 0.0  ;;  %v4219_v42 = vcombine.low %v13053_v31, %v4208_v47  ;;  %v4139_v20 = vsel %vm3910_vm13, %v4044_v51, 0.0  ;;  %v4061_v29 = vcombine.high %v4037_v60, %v15617_v48 }
0x1170   : > { %3927 = vadd.xlane.f32.xlu0 %v3926_v45  ;;  %4134 = vadd.xlane.f32.xlu1 %v4133_v5  ;;  %v4145_v5 = vsel %vm3910_vm13, %v4053_v11, 0.0  ;;  %v4062_v28 = vcombine.high %v4044_v51, %v15617_v48  ;;  %v4220_v60 = vcombine.high %v13053_v31, %v4208_v47  ;;  %v4064_v47 = vcombine.high %v4060_v2, %v15617_v48 }
0x1171   : > { %v4227_v17 = vrot.slane %v4219_v42, %v13187_v35  ;;  %v4136_v40 = vsel %vm3910_vm13, %v4061_v29, 0.0  ;;  %v13252_v29 = vpop.permute.xlu1 %3987 }
0x1172   : > { %v4214_v9 = vpop.permute.xlu0 %4213  ;;  %v4142_v43 = vsel %vm3910_vm13, %v4062_v28, 0.0  ;;  %v4234_v51 = vrot.slane %v4220_v60, %v13187_v35 }
0x1173   : > { %v4235_v57 = vcombine.low %v4202_v30, %v4214_v9  ;;  %v4236_v61 = vcombine.high %v4202_v30, %v4214_v9 }
0x1174   : > { %3933 = vadd.xlane.f32.xlu0 %v3932_v52  ;;  %4140 = vadd.xlane.f32.xlu1 %v4139_v20  ;;  %v4063_v52 = vcombine.high %v4053_v11, %v15617_v48 }
0x1175   : > { %v4243_v39 = vrot.slane %v4235_v57, %v13187_v35  ;;  %v4151_v57 = vsel %vm3910_vm13, %v4060_v2, 0.0  ;;  %v4250_v20 = vrot.slane %v4236_v61, %v13187_v35 }
0x1176   : > { %v4424_v45 = vpop.permute.xlu0 %4423  ;;  %v4148_v31 = vsel %vm3910_vm13, %v4063_v52, 0.0 }
0x1177   : > { %v4251_v59 = vcombine.low %v4227_v17, %v4243_v39  ;;  %v4252_v9 = vcombine.high %v4227_v17, %v4243_v39  ;;  %v4267_v28 = vcombine.low %v4234_v51, %v4250_v20  ;;  %v4154_v39 = vsel %vm3910_vm13, %v4064_v47, 0.0 }
0x1178   : > { %4137 = vadd.xlane.f32.xlu0 %v4136_v40  ;;  %4146 = vadd.xlane.f32.xlu1 %v4145_v5  ;;  %v4268_v60 = vcombine.high %v4234_v51, %v4250_v20 }
0x1179   : > { %v4259_v30 = vrot.slane %v4251_v59, %v13194_v27  ;;  %v4266_v61 = vrot.slane %v4252_v9, %v13194_v27  ;;  %v4275_v9 = vrot.slane %v4267_v28, %v13194_v27 }
0x117a   : > { %v4430_v42 = vpop.permute.xlu0 %4429  ;;  %v4282_v32 = vrot.slane %v4268_v60, %v13194_v27 }
0x117b   : > { %v4355_v11 = vsel %vm3910_vm13, %v4259_v30, 0.0  ;;  %v4441_v59 = vcombine.low %v13071_v38, %v4430_v42  ;;  %v4361_v2 = vsel %vm3910_vm13, %v4266_v61, 0.0  ;;  %v4367_v51 = vsel %vm3910_vm13, %v4275_v9, 0.0 }
0x117c   : > { %4143 = vadd.xlane.f32.xlu0 %v4142_v43  ;;  %4152 = vadd.xlane.f32.xlu1 %v4151_v57  ;;  %v13263_v57 = vpop.permute.xlu1 %3993  ;;  %v4283_v43 = vcombine.high %v4259_v30, %v15617_v48  ;;  %v4284_v47 = vcombine.high %v4266_v61, %v15617_v48  ;;  %v4442_v12 = vcombine.high %v13071_v38, %v4430_v42 }
0x117d   : > { %v4286_v42 = vcombine.high %v4282_v32, %v15617_v48 }
0x117e   : > { %v4436_v5 = vpop.permute.xlu0 %4435  ;;  %v4358_v20 = vsel %vm3910_vm13, %v4283_v43, 0.0  ;;  %v4456_v61 = vrot.slane %v4442_v12, %v13187_v35 }
0x117f   : > { %v4457_v40 = vcombine.low %v4424_v45, %v4436_v5 }
0x1180   : > { %4149 = vadd.xlane.f32.xlu0 %v4148_v31  ;;  %4356 = vadd.xlane.f32.xlu1 %v4355_v11  ;;  %v4449_v31 = vrot.slane %v4441_v59, %v13187_v35  ;;  %v4458_v11 = vcombine.high %v4424_v45, %v4436_v5  ;;  %v13275_v30 = vpop.permute.xlu1 %4203  ;;  %v4373_v45 = vsel %vm3910_vm13, %v4282_v32, 0.0  ;;  %v4364_v5 = vsel %vm3910_vm13, %v4284_v47, 0.0 }
0x1181   : > { %v4465_v52 = vrot.slane %v4457_v40, %v13187_v35 }
0x1182   : > { %v13260_v17 = vpop.permute.xlu0 %4645  ;;  %v4472_v28 = vrot.slane %v4458_v11, %v13187_v35 }
0x1183   : > { %v4473_v40 = vcombine.low %v4449_v31, %v4465_v52 }
0x1184   : > { %4155 = vadd.xlane.f32.xlu0 %v4154_v39  ;;  %4362 = vadd.xlane.f32.xlu1 %v4361_v2  ;;  %v4285_v39 = vcombine.high %v4275_v9, %v15617_v48  ;;  %v4474_v2 = vcombine.high %v4449_v31, %v4465_v52  ;;  %v4489_v43 = vcombine.low %v4456_v61, %v4472_v28  ;;  %v13286_v11 = vpop.permute.xlu1 %4209 }
0x1185   : > { %v4481_v60 = vrot.slane %v4473_v40, %v13194_v27  ;;  %v4490_v32 = vcombine.high %v4456_v61, %v4472_v28 }
0x1186   : > { %v4652_v4 = vpop.permute.xlu0 %4651  ;;  %v4488_v47 = vrot.slane %v4474_v2, %v13194_v27  ;;  %v4497_v31 = vrot.slane %v4489_v43, %v13194_v27 }
0x1187   : > { %v4577_v9 = vsel %vm3910_vm13, %v4481_v60, 0.0  ;;  %v4663_v12 = vcombine.low %v13089_v50, %v4652_v4  ;;  %v4504_v3 = vrot.slane %v4490_v32, %v13194_v27 }
0x1188   : > { %4359 = vadd.xlane.f32.xlu0 %v4358_v20  ;;  %4368 = vadd.xlane.f32.xlu1 %v4367_v51  ;;  %v4370_v51 = vsel %vm3910_vm13, %v4285_v39, 0.0  ;;  %v4505_v39 = vcombine.high %v4481_v60, %v15617_v48  ;;  %v13300_v2 = vpop.permute.xlu1 %4215  ;;  %v4664_v60 = vcombine.high %v13089_v50, %v4652_v4 }
0x1189   : > { %v4508_v50 = vcombine.high %v4504_v3, %v15617_v48 }
0x118a   : > { %v4658_v59 = vpop.permute.xlu0 %4657  ;;  %v4580_v61 = vsel %vm3910_vm13, %v4505_v39, 0.0 }
0x118b   : > { %v4679_v20 = vcombine.low %v13260_v17, %v4658_v59  ;;  %v4680_v28 = vcombine.high %v13260_v17, %v4658_v59 }
0x118c   : > { %4365 = vadd.xlane.f32.xlu0 %v4364_v5  ;;  %4374 = vadd.xlane.f32.xlu1 %v4373_v45  ;;  %v4376_v45 = vsel %vm3910_vm13, %v4286_v42, 0.0  ;;  %v4583_v5 = vsel %vm3910_vm13, %v4488_v47, 0.0  ;;  %v4506_v42 = vcombine.high %v4488_v47, %v15617_v48  ;;  %v4678_v47 = vrot.slane %v4664_v60, %v13187_v35 }
0x118d   : > { %v4687_v40 = vrot.slane %v4679_v20, %v13187_v35  ;;  %v4694_v32 = vrot.slane %v4680_v28, %v13187_v35 }
0x118e   : > { %v13283_v38 = vpop.permute.xlu0 %4867  ;;  %v4586_v17 = vsel %vm3910_vm13, %v4506_v42, 0.0 }
0x118f   : > { %v4711_v42 = vcombine.low %v4678_v47, %v4694_v32  ;;  %v4712_v60 = vcombine.high %v4678_v47, %v4694_v32 }
0x1190   : > { %4371 = vadd.xlane.f32.xlu0 %v4370_v51  ;;  %4578 = vadd.xlane.f32.xlu1 %v4577_v9  ;;  %v4671_v51 = vrot.slane %v4663_v12, %v13187_v35  ;;  %v4589_v9 = vsel %vm3910_vm13, %v4497_v31, 0.0  ;;  %v4507_v12 = vcombine.high %v4497_v31, %v15617_v48 }
0x1191   : > { %v4726_v7 = vrot.slane %v4712_v60, %v13194_v27 }
0x1192   : > { %v13293_v52 = vpop.permute.xlu0 %4873  ;;  %v4695_v43 = vcombine.low %v4671_v51, %v4687_v40  ;;  %v4696_v39 = vcombine.high %v4671_v51, %v4687_v40  ;;  %v4592_v4 = vsel %vm3910_vm13, %v4507_v12, 0.0 }
0x1193   : > { %v4885_v51 = vcombine.low %v13107_v23, %v13293_v52 }
0x1194   : > { %4377 = vadd.xlane.f32.xlu0 %v4376_v45  ;;  %4584 = vadd.xlane.f32.xlu1 %v4583_v5  ;;  %v4595_v45 = vsel %vm3910_vm13, %v4504_v3, 0.0  ;;  %v13311_v5 = vpop.permute.xlu1 %4425  ;;  %v4703_v59 = vrot.slane %v4695_v43, %v13194_v27  ;;  %v4710_v28 = vrot.slane %v4696_v39, %v13194_v27  ;;  %v4598_v43 = vsel %vm3910_vm13, %v4508_v50, 0.0 }
0x1196   : > { %v4880_v20 = vpop.permute.xlu0 %4879  ;;  %v4805_v3 = vsel %vm3910_vm13, %v4710_v28, 0.0  ;;  %v4727_v12 = vcombine.high %v4703_v59, %v15617_v48 }
0x1197   : > { %v4901_v31 = vcombine.low %v13283_v38, %v4880_v20 }
0x1198   : > { %4581 = vadd.xlane.f32.xlu0 %v4580_v61  ;;  %4590 = vadd.xlane.f32.xlu1 %v4589_v9  ;;  %v4799_v61 = vsel %vm3910_vm13, %v4703_v59, 0.0  ;;  %v13324_v40 = vpop.permute.xlu1 %4431  ;;  %v4802_v32 = vsel %vm3910_vm13, %v4727_v12, 0.0  ;;  %v4728_v59 = vcombine.high %v4710_v28, %v15617_v48 }
0x119a   : > { %v13317_v9 = vpop.permute.xlu0 %5089 }
0x119c   : > { %4587 = vadd.xlane.f32.xlu0 %v4586_v17  ;;  %4596 = vadd.xlane.f32.xlu1 %v4595_v45  ;;  %v4909_v45 = vrot.slane %v4901_v31, %v13187_v35  ;;  %v4719_v17 = vrot.slane %v4711_v42, %v13194_v27  ;;  %v13338_v50 = vpop.permute.xlu1 %4437  ;;  %v4886_v42 = vcombine.high %v13107_v23, %v13293_v52 }
0x119d   : > { %v4730_v23 = vcombine.high %v4726_v7, %v15617_v48 }
0x119e   : > { %v13333_v39 = vpop.permute.xlu0 %5095  ;;  %v4811_v47 = vsel %vm3910_vm13, %v4719_v17, 0.0  ;;  %v4729_v60 = vcombine.high %v4719_v17, %v15617_v48  ;;  %v4900_v28 = vrot.slane %v4886_v42, %v13187_v35 }
0x11a0   : > { %4593 = vadd.xlane.f32.xlu0 %v4592_v4  ;;  %4800 = vadd.xlane.f32.xlu1 %v4799_v61  ;;  %v4893_v4 = vrot.slane %v4885_v51, %v13187_v35  ;;  %v4902_v61 = vcombine.high %v13283_v38, %v4880_v20  ;;  %v4817_v38 = vsel %vm3910_vm13, %v4726_v7, 0.0  ;;  %v4808_v20 = vsel %vm3910_vm13, %v4728_v59, 0.0  ;;  %v13351_v56 = vpop.permute.xlu1 %4647 }
0x11a2   : > { %v4917_v31 = vcombine.low %v4893_v4, %v4909_v45  ;;  %v4916_v51 = vrot.slane %v4902_v61, %v13187_v35  ;;  %v4918_v12 = vcombine.high %v4893_v4, %v4909_v45  ;;  %v5107_v45 = vcombine.low %v13125_v18, %v13333_v39 }
0x11a4   : > { %4599 = vadd.xlane.f32.xlu0 %v4598_v43  ;;  %4806 = vadd.xlane.f32.xlu1 %v4805_v3  ;;  %v5102_v43 = vpop.permute.xlu0 %5101  ;;  %v4925_v3 = vrot.slane %v4917_v31, %v13194_v27  ;;  %v4933_v52 = vcombine.low %v4900_v28, %v4916_v51  ;;  %v4932_v17 = vrot.slane %v4918_v12, %v13194_v27  ;;  %v13363_v7 = vpop.permute.xlu1 %4653 }
0x11a5   : > { %v5123_v61 = vcombine.low %v13317_v9, %v5102_v43  ;;  %v4934_v31 = vcombine.high %v4900_v28, %v4916_v51  ;;  %v5115_v12 = vrot.slane %v5107_v45, %v13187_v35  ;;  %v5124_v51 = vcombine.high %v13317_v9, %v5102_v43 }
0x11a6   : > { %v4941_v4 = vrot.slane %v4933_v52, %v13194_v27 }
0x11a7   : > { %v5131_v42 = vrot.slane %v5123_v61, %v13187_v35  ;;  %v4948_v52 = vrot.slane %v4934_v31, %v13194_v27  ;;  %v4950_v61 = vcombine.high %v4932_v17, %v15617_v48  ;;  %v5138_v31 = vrot.slane %v5124_v51, %v13187_v35 }
0x11a8   : > { %4803 = vadd.xlane.f32.xlu0 %v4802_v32  ;;  %4812 = vadd.xlane.f32.xlu1 %v4811_v47  ;;  %v4814_v32 = vsel %vm3910_vm13, %v4729_v60, 0.0  ;;  %v5021_v47 = vsel %vm3910_vm13, %v4925_v3, 0.0  ;;  %v13358_v59 = vpop.permute.xlu0 %5311  ;;  %v4949_v60 = vcombine.high %v4925_v3, %v15617_v48  ;;  %v13375_v6 = vpop.permute.xlu1 %4659  ;;  %v5108_v3 = vcombine.high %v13125_v18, %v13333_v39 }
0x11a9   : > { %v5039_v45 = vsel %vm3910_vm13, %v4948_v52, 0.0  ;;  %v5030_v9 = vsel %vm3910_vm13, %v4950_v61, 0.0  ;;  %v4952_v18 = vcombine.high %v4948_v52, %v15617_v48 }
0x11aa   : > { %v5024_v28 = vsel %vm3910_vm13, %v4949_v60, 0.0  ;;  %v5122_v60 = vrot.slane %v5108_v3, %v13187_v35 }
0x11ac   : > { %4809 = vadd.xlane.f32.xlu0 %v4808_v20  ;;  %4818 = vadd.xlane.f32.xlu1 %v4817_v38  ;;  %v4820_v38 = vsel %vm3910_vm13, %v4730_v23, 0.0  ;;  %v5027_v20 = vsel %vm3910_vm13, %v4932_v17, 0.0  ;;  %v5139_v23 = vcombine.low %v5115_v12, %v5131_v42  ;;  %v13387_v39 = vpop.permute.xlu1 %4869  ;;  %v5155_v61 = vcombine.low %v5122_v60, %v5138_v31 }
0x11ae   : > { %v5147_v43 = vrot.slane %v5139_v23, %v13194_v27  ;;  %v5156_v23 = vcombine.high %v5122_v60, %v5138_v31 }
0x11b0   : > { %4815 = vadd.xlane.f32.xlu0 %v4814_v32  ;;  %5022 = vadd.xlane.f32.xlu1 %v5021_v47  ;;  %v5318_v32 = vpop.permute.xlu0 %5317  ;;  %v5033_v47 = vsel %vm3910_vm13, %v4941_v4, 0.0  ;;  %v5243_v51 = vsel %vm3910_vm13, %v5147_v43, 0.0 }
0x11b4   : > { %4821 = vadd.xlane.f32.xlu0 %v4820_v38  ;;  %5028 = vadd.xlane.f32.xlu1 %v5027_v20  ;;  %v4951_v38 = vcombine.high %v4941_v4, %v15617_v48  ;;  %v5140_v20 = vcombine.high %v5115_v12, %v5131_v42  ;;  %v5324_v17 = vpop.permute.xlu0 %5323  ;;  %v5329_v42 = vcombine.low %v13147_v8, %v5318_v32  ;;  %v5042_v12 = vsel %vm3910_vm13, %v4952_v18, 0.0 }
0x11b5   : > { %v5345_v4 = vcombine.low %v13358_v59, %v5324_v17  ;;  %v5346_v31 = vcombine.high %v13358_v59, %v5324_v17 }
0x11b7   : > { %v5353_v3 = vrot.slane %v5345_v4, %v13187_v35 }
0x11b8   : > { %5025 = vadd.xlane.f32.xlu0 %v5024_v28  ;;  %5034 = vadd.xlane.f32.xlu1 %v5033_v47  ;;  %v5036_v47 = vsel %vm3910_vm13, %v4951_v38, 0.0  ;;  %v5154_v28 = vrot.slane %v5140_v20, %v13194_v27  ;;  %v5163_v38 = vrot.slane %v5155_v61, %v13194_v27  ;;  %v5337_v20 = vrot.slane %v5329_v42, %v13187_v35 }
0x11ba   : > { %v5249_v52 = vsel %vm3910_vm13, %v5154_v28, 0.0  ;;  %v5255_v18 = vsel %vm3910_vm13, %v5163_v38, 0.0  ;;  %v5361_v4 = vcombine.low %v5337_v20, %v5353_v3  ;;  %v5362_v17 = vcombine.high %v5337_v20, %v5353_v3 }
0x11bb   : > { %v3858_v3 = vcombine.low %v13211_v58, %v13231_v62 }
0x11bc   : > { %5031 = vadd.xlane.f32.xlu0 %v5030_v9  ;;  %5040 = vadd.xlane.f32.xlu1 %v5039_v45  ;;  %v5171_v45 = vcombine.high %v5147_v43, %v15617_v48  ;;  %v13398_v9 = vpop.permute.xlu1 %4875  ;;  %v5330_v43 = vcombine.high %v13147_v8, %v5318_v32  ;;  %v5369_v59 = vrot.slane %v5361_v4, %v13194_v27 }
0x11be   : > { %v5246_v60 = vsel %vm3910_vm13, %v5171_v45, 0.0  ;;  %v5465_v32 = vsel %vm3910_vm13, %v5369_v59, 0.0 }
0x11c0   : > { %5037 = vadd.xlane.f32.xlu0 %v5036_v47  ;;  %5244 = vadd.xlane.f32.xlu1 %v5243_v51  ;;  %v5172_v47 = vcombine.high %v5154_v28, %v15617_v48  ;;  %v5170_v51 = vrot.slane %v5156_v23, %v13194_v27  ;;  %v13409_v42 = vpop.permute.xlu1 %4881  ;;  %v5360_v28 = vrot.slane %v5346_v31, %v13187_v35 }
0x11c1   : > { %v5173_v23 = vcombine.high %v5163_v38, %v15617_v48 }
0x11c2   : > { %v5252_v61 = vsel %vm3910_vm13, %v5172_v47, 0.0  ;;  %v5174_v45 = vcombine.high %v5170_v51, %v15617_v48  ;;  %v5376_v47 = vrot.slane %v5362_v17, %v13194_v27 }
0x11c3   : > { %v5258_v8 = vsel %vm3910_vm13, %v5173_v23, 0.0 }
0x11c4   : > { %5043 = vadd.xlane.f32.xlu0 %v5042_v12  ;;  %5250 = vadd.xlane.f32.xlu1 %v5249_v52  ;;  %v5261_v12 = vsel %vm3910_vm13, %v5170_v51, 0.0  ;;  %v5344_v52 = vrot.slane %v5330_v43, %v13187_v35  ;;  %v13419_v31 = vpop.permute.xlu1 %5091  ;;  %v5264_v38 = vsel %vm3910_vm13, %v5174_v45, 0.0  ;;  %v5471_v20 = vsel %vm3910_vm13, %v5376_v47, 0.0 }
0x11c5   : > { %v5393_v51 = vcombine.high %v5369_v59, %v15617_v48  ;;  %v3842_v43 = vcombine.low %v13022_v63, %v13221_v41  ;;  %v5394_v45 = vcombine.high %v5376_v47, %v15617_v48  ;;  %v3843_v47 = vcombine.high %v13022_v63, %v13221_v41 }
0x11c6   : > { %v5378_v4 = vcombine.high %v5344_v52, %v5360_v28 }
0x11c7   : > { %v5468_v23 = vsel %vm3910_vm13, %v5393_v51, 0.0 }
0x11c8   : > { %5247 = vadd.xlane.f32.xlu0 %v5246_v60  ;;  %5256 = vadd.xlane.f32.xlu1 %v5255_v18  ;;  %v5377_v60 = vcombine.low %v5344_v52, %v5360_v28  ;;  %v5392_v59 = vrot.slane %v5378_v4, %v13194_v27  ;;  %v3859_v28 = vcombine.high %v13211_v58, %v13231_v62 }
0x11ca   : > { %v5385_v18 = vrot.slane %v5377_v60, %v13194_v27  ;;  %v5483_v60 = vsel %vm3910_vm13, %v5392_v59, 0.0  ;;  %v3873_v51 = vrot.slane %v3859_v28, %v13187_v35 }
0x11cc   : > { %5253 = vadd.xlane.f32.xlu0 %v5252_v61  ;;  %5262 = vadd.xlane.f32.xlu1 %v5261_v12  ;;  %v3866_v61 = vrot.slane %v3858_v3, %v13187_v35  ;;  %v13430_v12 = vpop.permute.xlu1 %5097  ;;  %v5477_v17 = vsel %vm3910_vm13, %v5385_v18, 0.0  ;;  %v5395_v3 = vcombine.high %v5385_v18, %v15617_v48 }
0x11ce   : > { %v5480_v62 = vsel %vm3910_vm13, %v5395_v3, 0.0 }
0x11d0   : > { %5259 = vadd.xlane.f32.xlu0 %v5258_v8  ;;  %5466 = vadd.xlane.f32.xlu1 %v5465_v32  ;;  %v3850_v8 = vrot.slane %v3842_v43, %v13187_v35  ;;  %v5474_v32 = vsel %vm3910_vm13, %v5394_v45, 0.0  ;;  %v5396_v43 = vcombine.high %v5392_v59, %v15617_v48 }
0x11d2   : > { %v3874_v52 = vcombine.low %v3850_v8, %v3866_v61  ;;  %v3875_v58 = vcombine.high %v3850_v8, %v3866_v61  ;;  %v5486_v61 = vsel %vm3910_vm13, %v5396_v43, 0.0  ;;  %v4065_v8 = vcombine.low %v13040_v53, %v13252_v29 }
0x11d4   : > { %5265 = vadd.xlane.f32.xlu0 %v5264_v38  ;;  %5472 = vadd.xlane.f32.xlu1 %v5471_v20  ;;  %v3838_v38 = vcombine.high %v13203_v37, %v15617_v48  ;;  %v13446_v20 = vpop.permute.xlu1 %5103  ;;  %v3882_v18 = vrot.slane %v3874_v52, %v13194_v27  ;;  %v3857_v37 = vrot.slane %v3843_v47, %v13187_v35 }
0x11d5   : > { %v3889_v63 = vrot.slane %v3875_v58, %v13194_v27  ;;  %v4073_v47 = vrot.slane %v4065_v8, %v13187_v35 }
0x11d6   : > { %v3914_v4 = vsel %vm3910_vm13, %v3838_v38, 0.0  ;;  %v3890_v41 = vcombine.low %v3857_v37, %v3873_v51  ;;  %v3935_v45 = vsel %vm3910_vm13, %v3882_v18, 0.0  ;;  %v3906_v59 = vcombine.high %v3882_v18, %v15617_v48 }
0x11d7   : > { %v3941_v28 = vsel %vm3910_vm13, %v3889_v63, 0.0  ;;  %v3891_v52 = vcombine.high %v3857_v37, %v3873_v51  ;;  %v3907_v3 = vcombine.high %v3889_v63, %v15617_v48  ;;  %v4066_v63 = vcombine.high %v13040_v53, %v13252_v29 }
0x11d8   : > { %5469 = vadd.xlane.f32.xlu0 %v5468_v23  ;;  %5478 = vadd.xlane.f32.xlu1 %v5477_v17  ;;  %v4081_v23 = vcombine.low %v13242_v24, %v13263_v57  ;;  %v13457_v17 = vpop.permute.xlu1 %5313  ;;  %v3898_v38 = vrot.slane %v3890_v41, %v13194_v27  ;;  %v4303_v53 = vcombine.low %v13275_v30, %v13300_v2 }
0x11d9   : > { %v3944_v51 = vsel %vm3910_vm13, %v3907_v3, 0.0  ;;  %v4080_v8 = vrot.slane %v4066_v63, %v13187_v35 }
0x11da   : > { %v3947_v43 = vsel %vm3910_vm13, %v3898_v38, 0.0  ;;  %v3908_v18 = vcombine.high %v3898_v38, %v15617_v48 }
0x11dc   : > { %5475 = vadd.xlane.f32.xlu0 %v5474_v32  ;;  %5484 = vadd.xlane.f32.xlu1 %v5483_v60  ;;  %v4089_v32 = vrot.slane %v4081_v23, %v13187_v35  ;;  %v3938_v60 = vsel %vm3910_vm13, %v3906_v59, 0.0  ;;  %v13470_v58 = vpop.permute.xlu1 %5319 }
0x11de   : > { %v4097_v37 = vcombine.low %v4073_v47, %v4089_v32  ;;  %v4098_v59 = vcombine.high %v4073_v47, %v4089_v32  ;;  %v4287_v32 = vcombine.low %v13058_v10, %v13286_v11 }
0x11e0   : > { %5481 = vadd.xlane.f32.xlu0 %v5480_v62  ;;  %3915 = vadd.xlane.f32.xlu1 %v3914_v4  ;;  %v4082_v62 = vcombine.high %v13242_v24, %v13263_v57  ;;  %v3905_v4 = vrot.slane %v3891_v52, %v13194_v27  ;;  %v3950_v24 = vsel %vm3910_vm13, %v3908_v18, 0.0  ;;  %v4112_v38 = vrot.slane %v4098_v59, %v13194_v27 }
0x11e2   : > { %v4096_v41 = vrot.slane %v4082_v62, %v13187_v35  ;;  %v3909_v23 = vcombine.high %v3905_v4, %v15617_v48  ;;  %v3953_v57 = vsel %vm3910_vm13, %v3905_v4, 0.0  ;;  %v4311_v4 = vrot.slane %v4303_v53, %v13187_v35 }
0x11e3   : > { %v4163_v18 = vsel %vm3910_vm13, %v4112_v38, 0.0 }
0x11e4   : > { %5487 = vadd.xlane.f32.xlu0 %v5486_v61  ;;  %3936 = vadd.xlane.f32.xlu1 %v3935_v45  ;;  %v13482_v61 = vpop.permute.xlu1 %5325  ;;  %v4105_v45 = vrot.slane %v4097_v37, %v13194_v27  ;;  %v3956_v29 = vsel %vm3910_vm13, %v3909_v23, 0.0  ;;  %v4113_v62 = vcombine.low %v4080_v8, %v4096_v41  ;;  %v4130_v37 = vcombine.high %v4112_v38, %v15617_v48 }
0x11e5   : > { %v4295_v23 = vrot.slane %v4287_v32, %v13187_v35 }
0x11e6   : > { %v4129_v3 = vcombine.high %v4105_v45, %v15617_v48  ;;  %v4121_v63 = vrot.slane %v4113_v62, %v13194_v27 }
0x11e8   : > { %3939 = vadd.xlane.f32.xlu0 %v3938_v60  ;;  %3942 = vadd.xlane.f32.xlu1 %v3941_v28  ;;  %v4157_v60 = vsel %vm3910_vm13, %v4105_v45, 0.0  ;;  %v4304_v45 = vcombine.high %v13275_v30, %v13300_v2  ;;  %v4131_v53 = vcombine.high %v4121_v63, %v15617_v48  ;;  %v4320_v2 = vcombine.high %v4295_v23, %v4311_v4 }
0x11ea   : > { %v4318_v62 = vrot.slane %v4304_v45, %v13187_v35  ;;  %v4172_v32 = vsel %vm3910_vm13, %v4131_v53, 0.0 }
0x11ec   : > { %3945 = vadd.xlane.f32.xlu0 %v3944_v51  ;;  %3948 = vadd.xlane.f32.xlu1 %v3947_v43  ;;  %v4114_v51 = vcombine.high %v4080_v8, %v4096_v41  ;;  %v4160_v43 = vsel %vm3910_vm13, %v4129_v3, 0.0  ;;  %v4166_v41 = vsel %vm3910_vm13, %v4130_v37, 0.0  ;;  %v4169_v8 = vsel %vm3910_vm13, %v4121_v63, 0.0 }
0x11ed   : > { %v4525_v63 = vcombine.low %v13311_v5, %v13338_v50 }
0x11ee   : > { %v4128_v59 = vrot.slane %v4114_v51, %v13194_v27 }
0x11f0   : > { %3951 = vadd.xlane.f32.xlu0 %v3950_v24  ;;  %3954 = vadd.xlane.f32.xlu1 %v3953_v57  ;;  %v4175_v51 = vsel %vm3910_vm13, %v4128_v59, 0.0 }
0x11f1   : > { %v3913_v28 = vpop.xlane.xlu0 %3912  ;;  %v3925_v52 = vpop.xlane.xlu1 %3924 }
0x11f4   : > { %3957 = vadd.xlane.f32.xlu0 %v3956_v29  ;;  %4158 = vadd.xlane.f32.xlu1 %v4157_v60  ;;  %v4319_v29 = vcombine.low %v4295_v23, %v4311_v4  ;;  %v4288_v60 = vcombine.high %v13058_v10, %v13286_v11  ;;  %v4334_v4 = vrot.slane %v4320_v2, %v13194_v27 }
0x11f5   : > { %v3919_v47 = vpop.xlane.xlu0 %3918  ;;  %v3931_v24 = vpop.xlane.xlu1 %3930 }
0x11f6   : > { %v4302_v37 = vrot.slane %v4288_v60, %v13187_v35  ;;  %v4533_v60 = vrot.slane %v4525_v63, %v13187_v35 }
0x11f8   : > { %4161 = vadd.xlane.f32.xlu0 %v4160_v43  ;;  %4164 = vadd.xlane.f32.xlu1 %v4163_v18  ;;  %v4132_v43 = vcombine.high %v4128_v59, %v15617_v48  ;;  %v4327_v18 = vrot.slane %v4319_v29, %v13194_v27 }
0x11f9   : > { %v3922_v57 = vpop.xlane.xlu0 %3921 }
0x11fa   : > { %v4178_v23 = vsel %vm3910_vm13, %v4132_v43, 0.0  ;;  %v4379_v45 = vsel %vm3910_vm13, %v4327_v18, 0.0  ;;  %v4351_v59 = vcombine.high %v4327_v18, %v15617_v48  ;;  %v4336_v43 = vcombine.high %v4302_v37, %v4318_v62 }
0x11fc   : > { %4167 = vadd.xlane.f32.xlu0 %v4166_v41  ;;  %4170 = vadd.xlane.f32.xlu1 %v4169_v8  ;;  %v4335_v41 = vcombine.low %v4302_v37, %v4318_v62  ;;  %v4509_v8 = vcombine.low %v13076_v26, %v13324_v40  ;;  %v4382_v2 = vsel %vm3910_vm13, %v4351_v59, 0.0  ;;  %v4350_v37 = vrot.slane %v4336_v43, %v13194_v27 }
0x11fd   : > { %v3928_v3 = vpop.xlane.xlu0 %3927  ;;  %v4135_v38 = vpop.xlane.xlu1 %4134 }
0x11fe   : > { %v5513_v30 = vsel %vm3326_vm15, %v3913_v28, %v4135_v38  ;;  %v4352_v38 = vcombine.high %v4334_v4, %v15617_v48  ;;  %v4517_v18 = vrot.slane %v4509_v8, %v13187_v35 }
0x1200   : > { %4173 = vadd.xlane.f32.xlu0 %v4172_v32  ;;  %4176 = vadd.xlane.f32.xlu1 %v4175_v51  ;;  %v4385_v32 = vsel %vm3910_vm13, %v4334_v4, 0.0  ;;  %v4343_v51 = vrot.slane %v4335_v41, %v13194_v27  ;;  %v4388_v59 = vsel %vm3910_vm13, %v4352_v38, 0.0  ;;  %v4541_v41 = vcombine.low %v4517_v18, %v4533_v60 }
0x1201   : > { %v3934_v10 = vpop.xlane.xlu0 %3933  ;;  %v4141_v11 = vpop.xlane.xlu1 %4140  ;;  %v4542_v38 = vcombine.high %v4517_v18, %v4533_v60 }
0x1202   : > { %v5515_v28 = vsel %vm3326_vm15, %v3919_v47, %v4141_v11  ;;  %v4526_v11 = vcombine.high %v13311_v5, %v13338_v50  ;;  %v4391_v4 = vsel %vm3910_vm13, %v4343_v51, 0.0  ;;  %v4353_v62 = vcombine.high %v4343_v51, %v15617_v48 }
0x1203   : > { %v4510_v5 = vcombine.high %v13076_v26, %v13324_v40  ;;  %v4354_v51 = vcombine.high %v4350_v37, %v15617_v48  ;;  %v4549_v43 = vrot.slane %v4541_v41, %v13194_v27  ;;  %v4556_v18 = vrot.slane %v4542_v38, %v13194_v27 }
0x1204   : > { %4179 = vadd.xlane.f32.xlu0 %v4178_v23  ;;  %4380 = vadd.xlane.f32.xlu1 %v4379_v45 }
0x1205   : > { %v13526_v53 = vpop.xlane.xlu0 %4137  ;;  %v4147_v29 = vpop.xlane.xlu1 %4146  ;;  %v4524_v26 = vrot.slane %v4510_v5, %v13187_v35  ;;  %v4574_v5 = vcombine.high %v4556_v18, %v15617_v48 }
0x1206   : > { %v5517_v47 = vsel %vm3326_vm15, %v3925_v52, %v4147_v29 }
0x1208   : > { %4383 = vadd.xlane.f32.xlu0 %v4382_v2  ;;  %4386 = vadd.xlane.f32.xlu1 %v4385_v32  ;;  %v4394_v2 = vsel %vm3910_vm13, %v4353_v62, 0.0  ;;  %v4397_v32 = vsel %vm3910_vm13, %v4350_v37, 0.0  ;;  %v4731_v62 = vcombine.low %v13094_v19, %v13363_v7 }
0x1209   : > { %v4144_v23 = vpop.xlane.xlu0 %4143  ;;  %v4153_v63 = vpop.xlane.xlu1 %4152 }
0x120a   : > { %v5516_v52 = vsel %vm3326_vm15, %v3922_v57, %v4144_v23  ;;  %v5519_v45 = vsel %vm3326_vm15, %v3931_v24, %v4153_v63  ;;  %v4540_v57 = vrot.slane %v4526_v11, %v13187_v35  ;;  %v4400_v11 = vsel %vm3910_vm13, %v4354_v51, 0.0 }
0x120b   : > { %v4601_v63 = vsel %vm3910_vm13, %v4549_v43, 0.0 }
0x120c   : > { %4389 = vadd.xlane.f32.xlu0 %v4388_v59  ;;  %4392 = vadd.xlane.f32.xlu1 %v4391_v4  ;;  %v4573_v59 = vcombine.high %v4549_v43, %v15617_v48  ;;  %v4557_v4 = vcombine.low %v4524_v26, %v4540_v57 }
0x120d   : > { %v4150_v50 = vpop.xlane.xlu0 %4149  ;;  %v4357_v8 = vpop.xlane.xlu1 %4356 }
0x120e   : > { %v5518_v24 = vsel %vm3326_vm15, %v3928_v3, %v4150_v50  ;;  %v5530_v29 = vsel %vm5529_vm14, %v5513_v30, %v4357_v8  ;;  %v4747_v3 = vcombine.low %v13351_v56, %v13375_v6  ;;  %v4604_v50 = vsel %vm3910_vm13, %v4573_v59, 0.0 }
0x120f   : > { %v4607_v8 = vsel %vm3910_vm13, %v4556_v18, 0.0  ;;  %v4565_v38 = vrot.slane %v4557_v4, %v13194_v27 }
0x1210   : > { %4395 = vadd.xlane.f32.xlu0 %v4394_v2  ;;  %4398 = vadd.xlane.f32.xlu1 %v4397_v32  ;;  %v4558_v2 = vcombine.high %v4524_v26, %v4540_v57  ;;  %v4739_v32 = vrot.slane %v4731_v62, %v13187_v35 }
0x1211   : > { %v4156_v40 = vpop.xlane.xlu0 %4155  ;;  %v4363_v23 = vpop.xlane.xlu1 %4362  ;;  %v4613_v18 = vsel %vm3910_vm13, %v4565_v38, 0.0  ;;  %v4575_v57 = vcombine.high %v4565_v38, %v15617_v48 }
0x1212   : > { %v5520_v30 = vsel %vm3326_vm15, %v3934_v10, %v4156_v40  ;;  %v5532_v60 = vsel %vm5529_vm14, %v5515_v28, %v4363_v23  ;;  %v4755_v10 = vrot.slane %v4747_v3, %v13187_v35  ;;  %v4748_v40 = vcombine.high %v13351_v56, %v13375_v6 }
0x1213   : > { %v4610_v3 = vsel %vm3910_vm13, %v4574_v5, 0.0  ;;  %v4572_v26 = vrot.slane %v4558_v2, %v13194_v27  ;;  %v4732_v6 = vcombine.high %v13094_v19, %v13363_v7  ;;  %v4616_v62 = vsel %vm3910_vm13, %v4575_v57, 0.0 }
0x1214   : > { %4401 = vadd.xlane.f32.xlu0 %v4400_v11  ;;  %4602 = vadd.xlane.f32.xlu1 %v4601_v63  ;;  %v4763_v11 = vcombine.low %v4739_v32, %v4755_v10  ;;  %v4762_v63 = vrot.slane %v4748_v40, %v13187_v35  ;;  %v4764_v4 = vcombine.high %v4739_v32, %v4755_v10 }
0x1215   : > { %v13563_v37 = vpop.xlane.xlu0 %4359  ;;  %v4369_v41 = vpop.xlane.xlu1 %4368  ;;  %v4576_v5 = vcombine.high %v4572_v26, %v15617_v48  ;;  %v4746_v19 = vrot.slane %v4732_v6, %v13187_v35  ;;  %v4953_v40 = vcombine.low %v13112_v25, %v13398_v9 }
0x1216   : > { %v13567_v28 = vsel %vm5529_vm14, %v5517_v47, %v4369_v41  ;;  %v4619_v41 = vsel %vm3910_vm13, %v4572_v26, 0.0  ;;  %v4778_v38 = vrot.slane %v4764_v4, %v13194_v27 }
0x1217   : > { %v4622_v2 = vsel %vm3910_vm13, %v4576_v5, 0.0  ;;  %v4780_v6 = vcombine.high %v4746_v19, %v4762_v63 }
0x1218   : > { %4605 = vadd.xlane.f32.xlu0 %v4604_v50  ;;  %4608 = vadd.xlane.f32.xlu1 %v4607_v8  ;;  %v4771_v50 = vrot.slane %v4763_v11, %v13194_v27  ;;  %v4829_v26 = vsel %vm3910_vm13, %v4778_v38, 0.0 }
0x1219   : > { %v4366_v51 = vpop.xlane.xlu0 %4365  ;;  %v4375_v43 = vpop.xlane.xlu1 %4374 }
0x121a   : > { %v13577_v47 = vsel %vm5529_vm14, %v5516_v52, %v4366_v51  ;;  %v13580_v23 = vsel %vm5529_vm14, %v5519_v45, %v4375_v43  ;;  %v4823_v32 = vsel %vm3910_vm13, %v4771_v50, 0.0  ;;  %v4795_v51 = vcombine.high %v4771_v50, %v15617_v48 }
0x121b   : > { %v4779_v43 = vcombine.low %v4746_v19, %v4762_v63  ;;  %v4954_v19 = vcombine.high %v13112_v25, %v13398_v9 }
0x121c   : > { %4611 = vadd.xlane.f32.xlu0 %v4610_v3  ;;  %4614 = vadd.xlane.f32.xlu1 %v4613_v18  ;;  %v4796_v18 = vcombine.high %v4778_v38, %v15617_v48  ;;  %v4826_v57 = vsel %vm3910_vm13, %v4795_v51, 0.0 }
0x121d   : > { %v4372_v56 = vpop.xlane.xlu0 %4371  ;;  %v4579_v52 = vpop.xlane.xlu1 %4578  ;;  %v4787_v11 = vrot.slane %v4779_v43, %v13194_v27  ;;  %v4968_v43 = vrot.slane %v4954_v19, %v13187_v35 }
0x121e   : > { %v13590_v45 = vsel %vm5529_vm14, %v5518_v24, %v4372_v56  ;;  %v13593_v59 = vsel %vm1380_vm3, %v5530_v29, %v4579_v52  ;;  %v4969_v24 = vcombine.low %v13387_v39, %v13409_v42  ;;  %v4961_v56 = vrot.slane %v4953_v40, %v13187_v35 }
0x121f   : > { %v4835_v5 = vsel %vm3910_vm13, %v4787_v11, 0.0  ;;  %v4797_v50 = vcombine.high %v4787_v11, %v15617_v48  ;;  %v5191_v40 = vcombine.low %v13419_v31, %v13446_v20 }
0x1220   : > { %4617 = vadd.xlane.f32.xlu0 %v4616_v62  ;;  %4620 = vadd.xlane.f32.xlu1 %v4619_v41  ;;  %v4970_v62 = vcombine.high %v13387_v39, %v13409_v42  ;;  %v4832_v41 = vsel %vm3910_vm13, %v4796_v18, 0.0 }
0x1221   : > { %v4378_v7 = vpop.xlane.xlu0 %4377  ;;  %v4585_v8 = vpop.xlane.xlu1 %4584  ;;  %v4838_v38 = vsel %vm3910_vm13, %v4797_v50, 0.0 }
0x1222   : > { %v13603_v29 = vsel %vm5529_vm14, %v5520_v30, %v4378_v7  ;;  %v13606_v10 = vsel %vm1380_vm3, %v5532_v60, %v4585_v8  ;;  %v4977_v60 = vrot.slane %v4969_v24, %v13187_v35  ;;  %v4794_v7 = vrot.slane %v4780_v6, %v13194_v27 }
0x1223   : > { %v4984_v39 = vrot.slane %v4970_v62, %v13187_v35  ;;  %v5175_v6 = vcombine.low %v13130_v21, %v13430_v12 }
0x1224   : > { %4623 = vadd.xlane.f32.xlu0 %v4622_v2  ;;  %4824 = vadd.xlane.f32.xlu1 %v4823_v32  ;;  %v4985_v63 = vcombine.low %v4961_v56, %v4977_v60  ;;  %v4986_v42 = vcombine.high %v4961_v56, %v4977_v60  ;;  %v4841_v2 = vsel %vm3910_vm13, %v4794_v7, 0.0  ;;  %v4798_v32 = vcombine.high %v4794_v7, %v15617_v48 }
0x1225   : > { %v13614_v3 = vpop.xlane.xlu0 %4581  ;;  %v13616_v30 = vpop.xlane.xlu1 %4590  ;;  %v5001_v60 = vcombine.low %v4968_v43, %v4984_v39 }
0x1226   : > { %v4993_v51 = vrot.slane %v4985_v63, %v13194_v27  ;;  %v4844_v18 = vsel %vm3910_vm13, %v4798_v32, 0.0  ;;  %v5000_v11 = vrot.slane %v4986_v42, %v13194_v27  ;;  %v5183_v42 = vrot.slane %v5175_v6, %v13187_v35 }
0x1227   : > { %v5009_v19 = vrot.slane %v5001_v60, %v13194_v27  ;;  %v5192_v32 = vcombine.high %v13419_v31, %v13446_v20 }
0x1228   : > { %4827 = vadd.xlane.f32.xlu0 %v4826_v57  ;;  %4830 = vadd.xlane.f32.xlu1 %v4829_v26  ;;  %v5045_v57 = vsel %vm3910_vm13, %v4993_v51, 0.0  ;;  %v5017_v26 = vcombine.high %v4993_v51, %v15617_v48  ;;  %v5051_v7 = vsel %vm3910_vm13, %v5000_v11, 0.0  ;;  %v5018_v63 = vcombine.high %v5000_v11, %v15617_v48 }
0x1229   : > { %v13624_v52 = vpop.xlane.xlu0 %4587  ;;  %v13626_v4 = vpop.xlane.xlu1 %4596  ;;  %v5206_v31 = vrot.slane %v5192_v32, %v13187_v35 }
0x122a   : > { %v5048_v50 = vsel %vm3910_vm13, %v5017_v26, 0.0  ;;  %v5054_v51 = vsel %vm3910_vm13, %v5018_v63, 0.0  ;;  %v5413_v63 = vcombine.low %v13457_v17, %v13482_v61 }
0x122c   : > { %4833 = vadd.xlane.f32.xlu0 %v4832_v41  ;;  %4836 = vadd.xlane.f32.xlu1 %v4835_v5  ;;  %v5199_v41 = vrot.slane %v5191_v40, %v13187_v35  ;;  %v5002_v5 = vcombine.high %v4968_v43, %v4984_v39  ;;  %v5057_v43 = vsel %vm3910_vm13, %v5009_v19, 0.0  ;;  %v5019_v40 = vcombine.high %v5009_v19, %v15617_v48 }
0x122d   : > { %v13636_v8 = vpop.xlane.xlu0 %4593  ;;  %v13638_v24 = vpop.xlane.xlu1 %4800 }
0x122e   : > { %v5207_v39 = vcombine.low %v5183_v42, %v5199_v41  ;;  %v5016_v60 = vrot.slane %v5002_v5, %v13194_v27  ;;  %v5060_v11 = vsel %vm3910_vm13, %v5019_v40, 0.0  ;;  %v5208_v5 = vcombine.high %v5183_v42, %v5199_v41 }
0x122f   : > { %v5397_v42 = vcombine.low %v13152_v15, %v13470_v58 }
0x1230   : > { %4839 = vadd.xlane.f32.xlu0 %v4838_v38  ;;  %4842 = vadd.xlane.f32.xlu1 %v4841_v2  ;;  %v5215_v20 = vrot.slane %v5207_v39, %v13194_v27  ;;  %v5063_v6 = vsel %vm3910_vm13, %v5016_v60, 0.0  ;;  %v5222_v41 = vrot.slane %v5208_v5, %v13194_v27 }
0x1231   : > { %v13646_v25 = vpop.xlane.xlu0 %4599  ;;  %v13648_v9 = vpop.xlane.xlu1 %4806  ;;  %v5405_v5 = vrot.slane %v5397_v42, %v13187_v35  ;;  %v5398_v42 = vcombine.high %v13152_v15, %v13470_v58 }
0x1232   : > { %v5267_v39 = vsel %vm3910_vm13, %v5215_v20, 0.0 }
0x1234   : > { %4845 = vadd.xlane.f32.xlu0 %v4844_v18  ;;  %5046 = vadd.xlane.f32.xlu1 %v5045_v57  ;;  %v5176_v18 = vcombine.high %v13130_v21, %v13430_v12 }
0x1235   : > { %v13658_v56 = vpop.xlane.xlu0 %4803  ;;  %v13660_v62 = vpop.xlane.xlu1 %4812 }
0x1238   : > { %5049 = vadd.xlane.f32.xlu0 %v5048_v50  ;;  %5052 = vadd.xlane.f32.xlu1 %v5051_v7  ;;  %v5020_v50 = vcombine.high %v5016_v60, %v15617_v48  ;;  %v5190_v7 = vrot.slane %v5176_v18, %v13187_v35  ;;  %v5421_v60 = vrot.slane %v5413_v63, %v13187_v35 }
0x1239   : > { %v13668_v38 = vpop.xlane.xlu0 %4809  ;;  %v13670_v2 = vpop.xlane.xlu1 %4818  ;;  %v5414_v63 = vcombine.high %v13457_v17, %v13482_v61 }
0x123a   : > { %v5223_v19 = vcombine.low %v5190_v7, %v5206_v31  ;;  %v5066_v32 = vsel %vm3910_vm13, %v5020_v50, 0.0  ;;  %v5224_v18 = vcombine.high %v5190_v7, %v5206_v31  ;;  %v5429_v31 = vcombine.low %v5405_v5, %v5421_v60 }
0x123b   : > { %v5428_v55 = vrot.slane %v5414_v63, %v13187_v35  ;;  %v5430_v34 = vcombine.high %v5405_v5, %v5421_v60 }
0x123c   : > { %5055 = vadd.xlane.f32.xlu0 %v5054_v51  ;;  %5058 = vadd.xlane.f32.xlu1 %v5057_v43  ;;  %v5239_v51 = vcombine.high %v5215_v20, %v15617_v48  ;;  %v5240_v20 = vcombine.high %v5222_v41, %v15617_v48  ;;  %v5231_v50 = vrot.slane %v5223_v19, %v13194_v27 }
0x123d   : > { %v13680_v57 = vpop.xlane.xlu0 %4815  ;;  %v13682_v26 = vpop.xlane.xlu1 %5022  ;;  %v5238_v19 = vrot.slane %v5224_v18, %v13194_v27  ;;  %v5437_v17 = vrot.slane %v5429_v31, %v13194_v27  ;;  %v5412_v18 = vrot.slane %v5398_v42, %v13187_v35 }
0x123e   : > { %v5276_v7 = vsel %vm3910_vm13, %v5240_v20, 0.0 }
0x123f   : > { %v5285_v20 = vsel %vm3910_vm13, %v5238_v19, 0.0  ;;  %v5489_v58 = vsel %vm3910_vm13, %v5437_v17, 0.0  ;;  %v5461_v31 = vcombine.high %v5437_v17, %v15617_v48  ;;  %v5446_v5 = vcombine.high %v5412_v18, %v5428_v55 }
0x1240   : > { %5061 = vadd.xlane.f32.xlu0 %v5060_v11  ;;  %5064 = vadd.xlane.f32.xlu1 %v5063_v6  ;;  %v5270_v11 = vsel %vm3910_vm13, %v5239_v51, 0.0  ;;  %v5273_v6 = vsel %vm3910_vm13, %v5222_v41, 0.0  ;;  %v5279_v51 = vsel %vm3910_vm13, %v5231_v50, 0.0  ;;  %v5241_v41 = vcombine.high %v5231_v50, %v15617_v48 }
0x1241   : > { %v13690_v21 = vpop.xlane.xlu0 %4821  ;;  %v13692_v12 = vpop.xlane.xlu1 %5028  ;;  %v5242_v50 = vcombine.high %v5238_v19, %v15617_v48  ;;  %v5492_v42 = vsel %vm3910_vm13, %v5461_v31, 0.0 }
0x1242   : > { %v5282_v61 = vsel %vm3910_vm13, %v5241_v41, 0.0  ;;  %v5445_v41 = vcombine.low %v5412_v18, %v5428_v55  ;;  %v5460_v55 = vrot.slane %v5446_v5, %v13194_v27 }
0x1243   : > { %v5288_v63 = vsel %vm3910_vm13, %v5242_v50, 0.0 }
0x1244   : > { %5067 = vadd.xlane.f32.xlu0 %v5066_v32  ;;  %5268 = vadd.xlane.f32.xlu1 %v5267_v39  ;;  %v5453_v35 = vrot.slane %v5445_v41, %v13194_v27  ;;  %v5464_v5 = vcombine.high %v5460_v55, %v15617_v48 }
0x1245   : > { %v13702_v43 = vpop.xlane.xlu0 %5025  ;;  %v13704_v40 = vpop.xlane.xlu1 %5034 }
0x1248   : > { %5271 = vadd.xlane.f32.xlu0 %v5270_v11  ;;  %5274 = vadd.xlane.f32.xlu1 %v5273_v6 }
0x1249   : > { %v13712_v32 = vpop.xlane.xlu0 %5031  ;;  %v13714_v39 = vpop.xlane.xlu1 %5040 }
0x124c   : > { %5277 = vadd.xlane.f32.xlu0 %v5276_v7  ;;  %5280 = vadd.xlane.f32.xlu1 %v5279_v51  ;;  %v5444_v51 = vrot.slane %v5430_v34, %v13194_v27 }
0x124d   : > { %v13724_v11 = vpop.xlane.xlu0 %5037  ;;  %v5245_v6 = vpop.xlane.xlu1 %5244 }
0x1250   : > { %5283 = vadd.xlane.f32.xlu0 %v5282_v61  ;;  %5286 = vadd.xlane.f32.xlu1 %v5285_v20  ;;  %v5495_v61 = vsel %vm3910_vm13, %v5444_v51, 0.0  ;;  %v5462_v20 = vcombine.high %v5444_v51, %v15617_v48  ;;  %v5562_v51 = vsel %vm1752_vm4, %v13593_v59, %v13638_v24  ;;  %v5550_v59 = vsel %vm1380_vm3, %v13567_v28, %v13616_v30 }
0x1251   : > { %v13732_v7 = vpop.xlane.xlu0 %5043  ;;  %v5251_v15 = vpop.xlane.xlu1 %5250  ;;  %v5579_v41 = vsel %vm5578_vm8, %v5562_v51, %v13682_v26  ;;  %v5564_v24 = vsel %vm1752_vm4, %v13606_v10, %v13648_v9  ;;  %v5566_v26 = vsel %vm1752_vm4, %v5550_v59, %v13660_v62  ;;  %v5549_v62 = vsel %vm1380_vm3, %v13577_v47, %v13624_v52 }
0x1252   : > { %v5498_v34 = vsel %vm3910_vm13, %v5462_v20, 0.0 }
0x1254   : > { %5289 = vadd.xlane.f32.xlu0 %v5288_v63  ;;  %5490 = vadd.xlane.f32.xlu1 %v5489_v58  ;;  %v5501_v58 = vsel %vm3910_vm13, %v5453_v35, 0.0  ;;  %v5463_v63 = vcombine.high %v5453_v35, %v15617_v48  ;;  %v5507_v35 = vsel %vm3910_vm13, %v5460_v55, 0.0  ;;  %v5583_v55 = vsel %vm5578_vm8, %v5566_v26, %v13704_v40 }
0x1255   : > { %v13738_v19 = vpop.xlane.xlu0 %5247  ;;  %v5257_v60 = vpop.xlane.xlu1 %5256 }
0x1256   : > { %v5600_v13 = vsel %vm5595_vm9, %v5583_v55, %v5257_v60 }
0x1258   : > { %5493 = vadd.xlane.f32.xlu0 %v5492_v42  ;;  %5496 = vadd.xlane.f32.xlu1 %v5495_v61  ;;  %v5504_v42 = vsel %vm3910_vm13, %v5463_v63, 0.0  ;;  %v5596_v61 = vsel %vm5595_vm9, %v5579_v41, %v5245_v6  ;;  %v5581_v6 = vsel %vm5578_vm8, %v5564_v24, %v13692_v12  ;;  %v5510_v63 = vsel %vm3910_vm13, %v5464_v5, 0.0 }
0x1259   : > { %v5254_v17 = vpop.xlane.xlu0 %5253  ;;  %v5263_v50 = vpop.xlane.xlu1 %5262  ;;  %v5552_v12 = vsel %vm1380_vm3, %v13580_v23, %v13626_v4  ;;  %vm5876_vm13 = vcmp.eq.s32.totalorder %v12983_v14, 1 }
0x125a   : > { %v5568_v60 = vsel %vm1752_vm4, %v5552_v12, %v13670_v2 }
0x125b   : > { %v5585_v52 = vsel %vm5578_vm8, %v5568_v60, %v13714_v39 }
0x125c   : > { %5499 = vadd.xlane.f32.xlu0 %v5498_v34  ;;  %5502 = vadd.xlane.f32.xlu1 %v5501_v58  ;;  %v5602_v2 = vsel %vm5595_vm9, %v5585_v52, %v5263_v50 }
0x125d   : > { %v5260_v18 = vpop.xlane.xlu0 %5259  ;;  %v5467_v31 = vpop.xlane.xlu1 %5466 }
0x125e   : > { %v5613_v20 = vsel %vm5612_vm10, %v5596_v61, %v5467_v31  ;;  %v5598_v31 = vsel %vm5595_vm9, %v5581_v6, %v5251_v15  ;;  %v5565_v15 = vsel %vm1752_vm4, %v5549_v62, %v13668_v38 }
0x125f   : > { %v13775_v28 = vsel %vm5873_vm7, %v5613_v20, -1e+09  ;;  %v5582_v47 = vsel %vm5578_vm8, %v5565_v15, %v13712_v32  ;;  %v5551_v32 = vsel %vm1380_vm3, %v13590_v45, %v13636_v8  ;;  %vm5878_vm7 = vcmp.eq.s32.totalorder %v12988_v46, 1 }
0x1260   : > { %5505 = vadd.xlane.f32.xlu0 %v5504_v42  ;;  %5508 = vadd.xlane.f32.xlu1 %v5507_v35  ;;  %15618 = vst [vmem:[#allocation134_spill] sm:$0xff] %v13775_v28  ;;  %v5906_v51 = vsel %vm5905_vm11, %v13775_v28, -inf  ;;  %v5599_v38 = vsel %vm5595_vm9, %v5582_v47, %v5254_v17  ;;  %v5567_v16 = vsel %vm1752_vm4, %v5551_v32, %v13680_v57 }
0x1261   : > { %v13758_v34 = vpop.xlane.xlu0 %5265  ;;  %v5473_v58 = vpop.xlane.xlu1 %5472  ;;  %v5553_v57 = vsel %vm1380_vm3, %v13603_v29, %v13646_v25 }
0x1262   : > { %v5615_v10 = vsel %vm5612_vm10, %v5598_v31, %v5473_v58  ;;  %v5569_v58 = vsel %vm1752_vm4, %v5553_v57, %v13690_v21 }
0x1263   : > { %v13804_v4 = vsel %vm5875_vm12, %v5615_v10, -1e+09  ;;  %v5586_v24 = vsel %vm5578_vm8, %v5569_v58, %v13732_v7  ;;  %vm5880_vm12 = vcmp.eq.s32.totalorder %v12992_v36, 1 }
0x1264   : > { %5511 = vadd.xlane.f32.xlu0 %v5510_v63  ;;  %15620 = vst [vmem:[#allocation136_spill] sm:$0xff] %v13804_v4  ;;  %v5912_v17 = vsel %vm5905_vm11, %v13804_v4, -inf  ;;  %v5603_v46 = vsel %vm5595_vm9, %v5586_v24, %v13758_v34 }
0x1265   : > { %v5470_v30 = vpop.xlane.xlu0 %5469  ;;  %v5479_v9 = vpop.xlane.xlu1 %5478 }
0x1266   : > { %v5617_v40 = vsel %vm5612_vm10, %v5600_v13, %v5479_v9 }
0x1267   : > { %v13794_v49 = vsel %vm5877_vm5, %v5617_v40, -1e+09  ;;  %vm5879_vm5 = vcmp.eq.s32.totalorder %v12990_v1, 1  ;;  %v5584_v1 = vsel %vm5578_vm8, %v5567_v16, %v13724_v11 }
0x1268   : > { %15619 = vst [vmem:[#allocation135_spill] sm:$0xff] %v13794_v49  ;;  %5907 = vmax.xlane.f32.xlu0 %v5906_v51  ;;  %v5918_v23 = vsel %vm5905_vm11, %v13794_v49, -inf  ;;  %v5601_v5 = vsel %vm5595_vm9, %v5584_v1, %v5260_v18 }
0x1269   : > { %v5476_v41 = vpop.xlane.xlu0 %5475  ;;  %5919 = vmax.xlane.f32.xlu1 %v5918_v23  ;;  %v5485_v42 = vpop.xlane.xlu1 %5484 }
0x126a   : > { %v5616_v39 = vsel %vm5612_vm10, %v5599_v38, %v5476_v41  ;;  %v5619_v35 = vsel %vm5612_vm10, %v5602_v2, %v5485_v42 }
0x126b   : > { %v13819_v50 = vsel %vm5879_vm5, %v5619_v35, -1e+09  ;;  %v13825_v8 = vsel %vm5876_vm13, %v5616_v39, -1e+09  ;;  %vm5874_vm5 = vcmp.eq.s32.totalorder %v12996_v33, 1  ;;  %vm5881_vm13 = vcmp.eq.s32.totalorder %v12994_v22, 1 }
0x126c   : > { %15621 = vst [vmem:[#allocation137_spill] sm:$0xff] %v13819_v50  ;;  %5913 = vmax.xlane.f32.xlu0 %v5912_v17  ;;  %v5924_v45 = vsel %vm5905_vm11, %v13819_v50, -inf  ;;  %15622 = vst [vmem:[#allocation138_spill] sm:$0xff] %v13825_v8  ;;  %v5915_v59 = vsel %vm5905_vm11, %v13825_v8, -inf }
0x126d   : > { %v5482_v14 = vpop.xlane.xlu0 %5481  ;;  %5925 = vmax.xlane.f32.xlu1 %v5924_v45  ;;  %v3916_v61 = vpop.xlane.xlu1 %3915 }
0x126e   : > { %v5618_v20 = vsel %vm5612_vm10, %v5601_v5, %v5482_v14  ;;  %v5514_v11 = vsel %vm3326_vm15, %v3916_v61, %v13526_v53 }
0x126f   : > { %v5531_v18 = vsel %vm5529_vm14, %v5514_v11, %v13563_v37  ;;  %v13845_v25 = vsel %vm5878_vm7, %v5618_v20, -1e+09  ;;  %vm5882_vm7 = vcmp.eq.s32.totalorder %v12998_v44, 1 }
0x1270   : > { %v5547_v29 = vsel %vm1380_vm3, %v5531_v18, %v13614_v3  ;;  %5916 = vmax.xlane.f32.xlu0 %v5915_v59  ;;  %15623 = vst [vmem:[#allocation139_spill] sm:$0xff] %v13845_v25  ;;  %v5921_v3 = vsel %vm5905_vm11, %v13845_v25, -inf }
0x1271   : > { %v5563_v53 = vsel %vm1752_vm4, %v5547_v29, %v13658_v56  ;;  %v5488_v21 = vpop.xlane.xlu0 %5487  ;;  %v13851_v37 = vpop.xlane.xlu1 %3936 }
0x1272   : > { %v5620_v26 = vsel %vm5612_vm10, %v5603_v46, %v5488_v21  ;;  %v5580_v7 = vsel %vm5578_vm8, %v5563_v53, %v13702_v43 }
0x1273   : > { %v5597_v6 = vsel %vm5595_vm9, %v5580_v7, %v13738_v19  ;;  %v13863_v34 = vsel %vm5880_vm12, %v5620_v26, -1e+09  ;;  %vm5883_vm12 = vcmp.eq.s32.totalorder %v13000_v54, 1 }
0x1274   : > { %5922 = vmax.xlane.f32.xlu0 %v5921_v3  ;;  %v5614_v56 = vsel %vm5612_vm10, %v5597_v6, %v5470_v30  ;;  %15624 = vst [vmem:[#allocation140_spill] sm:$0xff] %v13863_v34  ;;  %v5927_v19 = vsel %vm5905_vm11, %v13863_v34, -inf }
0x1275   : > { %v13865_v63 = vpop.xlane.xlu0 %3939  ;;  %v13867_v55 = vpop.xlane.xlu1 %3942  ;;  %v13869_v43 = vsel %vm5874_vm5, %v5614_v56, -1e+09  ;;  %vm5884_vm5 = vcmp.eq.s32.totalorder %v13002_v0, 1 }
0x1276   : > { %15625 = vst [vmem:[#allocation141_spill] sm:$0xff] %v13869_v43  ;;  %v5909_v36 = vsel %vm5905_vm11, %v13869_v43, -inf }
0x1277   : > { %5910 = vmax.xlane.f32.xlu1 %v5909_v36 }
0x1278   : > { %5928 = vmax.xlane.f32.xlu0 %v5927_v19 }
0x1279   : > { %v3946_v33 = vpop.xlane.xlu0 %3945  ;;  %v3949_v31 = vpop.xlane.xlu1 %3948 }
0x127d   : > { %v13875_v13 = vpop.xlane.xlu0 %3951  ;;  %v13877_v10 = vpop.xlane.xlu1 %3954 }
0x1281   : > { %v13879_v30 = vpop.xlane.xlu0 %3957  ;;  %v4159_v9 = vpop.xlane.xlu1 %4158 }
0x1282   : > { %v5521_v25 = vsel %vm3326_vm15, %v13851_v37, %v4159_v9 }
0x1285   : > { %v4162_v62 = vpop.xlane.xlu0 %4161  ;;  %v4165_v12 = vpop.xlane.xlu1 %4164 }
0x1286   : > { %v5522_v49 = vsel %vm3326_vm15, %v13865_v63, %v4162_v62 }
0x1289   : > { %v4168_v40 = vpop.xlane.xlu0 %4167  ;;  %v4171_v15 = vpop.xlane.xlu1 %4170 }
0x128a   : > { %v5524_v37 = vsel %vm3326_vm15, %v3946_v33, %v4168_v40  ;;  %v5525_v9 = vsel %vm3326_vm15, %v3949_v31, %v4171_v15 }
0x128d   : > { %v4174_v60 = vpop.xlane.xlu0 %4173  ;;  %v4177_v51 = vpop.xlane.xlu1 %4176 }
0x1291   : > { %v13881_v47 = vpop.xlane.xlu0 %4179  ;;  %v4381_v52 = vpop.xlane.xlu1 %4380 }
0x1292   : > { %v5538_v43 = vsel %vm5529_vm14, %v5521_v25, %v4381_v52  ;;  %v5523_v25 = vsel %vm3326_vm15, %v13867_v55, %v4165_v12  ;;  %v5527_v55 = vsel %vm3326_vm15, %v13877_v10, %v4177_v51 }
0x1295   : > { %v4384_v23 = vpop.xlane.xlu0 %4383  ;;  %v4387_v38 = vpop.xlane.xlu1 %4386 }
0x1299   : > { %v13883_v2 = vpop.xlane.xlu0 %4389  ;;  %v13885_v41 = vpop.xlane.xlu1 %4392 }
0x129a   : > { %v5541_v10 = vsel %vm5529_vm14, %v5524_v37, %v13883_v2 }
0x129d   : > { %v13887_v42 = vpop.xlane.xlu0 %4395  ;;  %v13889_v32 = vpop.xlane.xlu1 %4398 }
0x129e   : > { %v5544_v44 = vsel %vm5529_vm14, %v5527_v55, %v13889_v32 }
0x12a1   : > { %v13891_v39 = vpop.xlane.xlu0 %4401  ;;  %v4603_v35 = vpop.xlane.xlu1 %4602 }
0x12a2   : > { %v5554_v4 = vsel %vm1380_vm3, %v5538_v43, %v4603_v35  ;;  %v5526_v43 = vsel %vm3326_vm15, %v13875_v13, %v4174_v60  ;;  %v5539_v35 = vsel %vm5529_vm14, %v5522_v49, %v4384_v23  ;;  %v5528_v49 = vsel %vm3326_vm15, %v13879_v30, %v13881_v47 }
0x12a3   : > { %v5542_v30 = vsel %vm5529_vm14, %v5525_v9, %v13885_v41  ;;  %v5543_v47 = vsel %vm5529_vm14, %v5526_v43, %v13887_v42  ;;  %v15628_v9 = vld [vmem:[#allocation115_spill] sm:$0xff]  ;;  %v5545_v0 = vsel %vm5529_vm14, %v5528_v49, %v13891_v39  ;;  %v15629_v43 = vld [vmem:[#allocation116_spill] sm:$0xff] }
0x12a5   : > { %v4606_v16 = vpop.xlane.xlu0 %4605  ;;  %v4609_v17 = vpop.xlane.xlu1 %4608 }
0x12a6   : > { %v5555_v33 = vsel %vm1380_vm3, %v5539_v35, %v4606_v16 }
0x12a9   : > { %v13893_v1 = vpop.xlane.xlu0 %4611  ;;  %v13895_v45 = vpop.xlane.xlu1 %4614 }
0x12aa   : > { %v5557_v16 = vsel %vm1380_vm3, %v5541_v10, %v13893_v1 }
0x12ad   : > { %v13897_v5 = vpop.xlane.xlu0 %4617  ;;  %v13899_v14 = vpop.xlane.xlu1 %4620 }
0x12b1   : > { %v13901_v61 = vpop.xlane.xlu0 %4623  ;;  %v4825_v57 = vpop.xlane.xlu1 %4824 }
0x12b2   : > { %v5570_v28 = vsel %vm1752_vm4, %v5554_v4, %v4825_v57  ;;  %v5561_v35 = vsel %vm1380_vm3, %v5545_v0, %v13901_v61 }
0x12b5   : > { %v4828_v20 = vpop.xlane.xlu0 %4827  ;;  %v4831_v11 = vpop.xlane.xlu1 %4830 }
0x12b6   : > { %v5571_v13 = vsel %vm1752_vm4, %v5555_v33, %v4828_v20 }
0x12b9   : > { %v13903_v58 = vpop.xlane.xlu0 %4833  ;;  %v13905_v18 = vpop.xlane.xlu1 %4836 }
0x12ba   : > { %v5573_v42 = vsel %vm1752_vm4, %v5557_v16, %v13903_v58 }
0x12bd   : > { %v13907_v59 = vpop.xlane.xlu0 %4839  ;;  %v13909_v24 = vpop.xlane.xlu1 %4842 }
0x12c1   : > { %v13911_v29 = vpop.xlane.xlu0 %4845  ;;  %v5047_v46 = vpop.xlane.xlu1 %5046 }
0x12c2   : > { %v5587_v52 = vsel %vm5578_vm8, %v5570_v28, %v5047_v46  ;;  %v5577_v39 = vsel %vm1752_vm4, %v5561_v35, %v13911_v29  ;;  %v15631_v29 = vld [vmem:[#allocation117_spill] sm:$0xff] }
0x12c5   : > { %v5050_v53 = vpop.xlane.xlu0 %5049  ;;  %v5053_v21 = vpop.xlane.xlu1 %5052 }
0x12c6   : > { %v5588_v15 = vsel %vm5578_vm8, %v5571_v13, %v5050_v53  ;;  %v15627_v53 = vld [vmem:[#allocation114_spill] sm:$0xff] }
0x12c7   : > { %vm5885_vm15 = vcmp.eq.s32.totalorder %v15627_v53, 1 }
0x12c9   : > { %v5056_v26 = vpop.xlane.xlu0 %5055  ;;  %v5059_v7 = vpop.xlane.xlu1 %5058 }
0x12cd   : > { %v13913_v3 = vpop.xlane.xlu0 %5061  ;;  %v13915_v6 = vpop.xlane.xlu1 %5064 }
0x12d1   : > { %v13917_v56 = vpop.xlane.xlu0 %5067  ;;  %v5269_v36 = vpop.xlane.xlu1 %5268 }
0x12d2   : > { %15626 = vst [vmem:[#allocation142_spill] sm:$0xff] %v13917_v56  ;;  %v5540_v56 = vsel %vm5529_vm14, %v5523_v25, %v4387_v38  ;;  %v5604_v63 = vsel %vm5595_vm9, %v5587_v52, %v5269_v36  ;;  %vm5888_vm14 = vcmp.eq.s32.totalorder %v15631_v29, 1 }
0x12d3   : > { %v5556_v28 = vsel %vm1380_vm3, %v5540_v56, %v4609_v17  ;;  %v5558_v17 = vsel %vm1380_vm3, %v5542_v30, %v13895_v45  ;;  %v5590_v45 = vsel %vm5578_vm8, %v5573_v42, %v5056_v26  ;;  %v5560_v56 = vsel %vm1380_vm3, %v5544_v44, %v13899_v14 }
0x12d4   : > { %v5572_v12 = vsel %vm1752_vm4, %v5556_v28, %v4831_v11  ;;  %v5574_v20 = vsel %vm1752_vm4, %v5558_v17, %v13905_v18 }
0x12d5   : > { %v5272_v19 = vpop.xlane.xlu0 %5271  ;;  %v5275_v48 = vpop.xlane.xlu1 %5274  ;;  %v5589_v60 = vsel %vm5578_vm8, %v5572_v12, %v5053_v21  ;;  %v5591_v11 = vsel %vm5578_vm8, %v5574_v20, %v5059_v7  ;;  %v5559_v7 = vsel %vm1380_vm3, %v5543_v47, %v13897_v5 }
0x12d6   : > { %v5605_v22 = vsel %vm5595_vm9, %v5588_v15, %v5272_v19  ;;  %v5606_v23 = vsel %vm5595_vm9, %v5589_v60, %v5275_v48  ;;  %v5575_v32 = vsel %vm1752_vm4, %v5559_v7, %v13907_v59  ;;  %v15632_v60 = vld [vmem:[#allocation134_spill] sm:$0xff]  ;;  %v15638_v7 = vld [vmem:[#allocation139_spill] sm:$0xff] }
0x12d7   : > { %v5592_v5 = vsel %vm5578_vm8, %v5575_v32, %v13913_v3 }
0x12d9   : > { %v5278_v27 = vpop.xlane.xlu0 %5277  ;;  %v5281_v34 = vpop.xlane.xlu1 %5280 }
0x12da   : > { %v5607_v18 = vsel %vm5595_vm9, %v5590_v45, %v5278_v27  ;;  %v5608_v54 = vsel %vm5595_vm9, %v5591_v11, %v5281_v34  ;;  %v5576_v27 = vsel %vm1752_vm4, %v5560_v56, %v13909_v24 }
0x12db   : > { %v5593_v14 = vsel %vm5578_vm8, %v5576_v27, %v13915_v6 }
0x12dd   : > { %v13922_v8 = vpop.xlane.xlu0 %5283  ;;  %v13924_v50 = vpop.xlane.xlu1 %5286 }
0x12de   : > { %v5609_v24 = vsel %vm5595_vm9, %v5592_v5, %v13922_v8  ;;  %v5610_v3 = vsel %vm5595_vm9, %v5593_v14, %v13924_v50  ;;  %v15630_v50 = vld [vmem:[#allocation142_spill] sm:$0xff] }
0x12df   : > { %v5594_v33 = vsel %vm5578_vm8, %v5577_v39, %v15630_v50  ;;  %vm6324_vm8 = vcmask 64512  }
0x12e1   : > { %v13943_v62 = vpop.xlane.xlu0 %5289  ;;  %v5491_v4 = vpop.xlane.xlu1 %5490 }
0x12e2   : > { %v5621_v31 = vsel %vm5612_vm10, %v5604_v63, %v5491_v4 }
0x12e3   : > { %v13958_v40 = vsel %vm5881_vm13, %v5621_v31, -1e+09  ;;  %vm5886_vm13 = vcmp.eq.s32.totalorder %v15628_v9, 1  ;;  %v5611_v31 = vsel %vm5595_vm9, %v5594_v33, %v13943_v62  ;;  %vm6327_vm9 = vcmask 97280  }
0x12e4   : > { %v5930_v51 = vsel %vm5905_vm11, %v13958_v40, -inf }
0x12e5   : > { %v5494_v38 = vpop.xlane.xlu0 %5493  ;;  %5931 = vmax.xlane.f32.xlu1 %v5930_v51  ;;  %v5497_v2 = vpop.xlane.xlu1 %5496 }
0x12e6   : > { %v5622_v57 = vsel %vm5612_vm10, %v5605_v22, %v5494_v38  ;;  %v5623_v41 = vsel %vm5612_vm10, %v5606_v23, %v5497_v2  ;;  %v15633_v22 = vld [vmem:[#allocation135_spill] sm:$0xff]  ;;  %v15634_v38 = vld [vmem:[#allocation136_spill] sm:$0xff] }
0x12e7   : > { %v13984_v48 = vsel %vm5882_vm7, %v5622_v57, -1e+09  ;;  %v13988_v1 = vsel %vm5883_vm12, %v5623_v41, -1e+09  ;;  %vm5887_vm7 = vcmp.eq.s32.totalorder %v15629_v43, 1  ;;  %v15635_v41 = vld [vmem:[#allocation137_spill] sm:$0xff] }
0x12e8   : > { %v5933_v46 = vsel %vm5905_vm11, %v13984_v48, -inf  ;;  %v5936_v58 = vsel %vm5905_vm11, %v13988_v1, -inf }
0x12e9   : > { %v5500_v21 = vpop.xlane.xlu0 %5499  ;;  %5934 = vmax.xlane.f32.xlu0 %v5933_v46  ;;  %5937 = vmax.xlane.f32.xlu1 %v5936_v58  ;;  %v5503_v26 = vpop.xlane.xlu1 %5502  ;;  %v15636_v46 = vld [vmem:[#allocation138_spill] sm:$0xff] }
0x12ea   : > { %v5624_v36 = vsel %vm5612_vm10, %v5607_v18, %v5500_v21  ;;  %v5625_v19 = vsel %vm5612_vm10, %v5608_v54, %v5503_v26  ;;  %v15637_v18 = vld [vmem:[#allocation141_spill] sm:$0xff] }
0x12eb   : > { %v14013_v34 = vsel %vm5884_vm5, %v5624_v36, -1e+09  ;;  %v14015_v25 = vsel %vm5885_vm15, %v5625_v19, -1e+09  ;;  %vm8620_vm5 = vcmask 1043456  }
0x12ec   : > { %v5939_v37 = vsel %vm5905_vm11, %v14013_v34, -inf  ;;  %v5942_v59 = vsel %vm5905_vm11, %v14015_v25, -inf }
0x12ed   : > { %v5506_v52 = vpop.xlane.xlu0 %5505  ;;  %5940 = vmax.xlane.f32.xlu0 %v5939_v37  ;;  %5943 = vmax.xlane.f32.xlu1 %v5942_v59  ;;  %v5509_v6 = vpop.xlane.xlu1 %5508  ;;  %v15639_v37 = vld [vmem:[#allocation140_spill] sm:$0xff] }
0x12ee   : > { %v5626_v63 = vsel %vm5612_vm10, %v5609_v24, %v5506_v52  ;;  %v5627_v4 = vsel %vm5612_vm10, %v5610_v3, %v5509_v6 }
0x12ef   : > { %v14039_v8 = vsel %vm5886_vm13, %v5626_v63, -1e+09  ;;  %v14041_v55 = vsel %vm5887_vm7, %v5627_v4, -1e+09 }
0x12f0   : > { %v5945_v28 = vsel %vm5905_vm11, %v14039_v8, -inf  ;;  %v5948_v61 = vsel %vm5905_vm11, %v14041_v55, -inf }
0x12f1   : > { %v5512_v49 = vpop.xlane.xlu0 %5511  ;;  %5946 = vmax.xlane.f32.xlu0 %v5945_v28  ;;  %5949 = vmax.xlane.f32.xlu1 %v5948_v61 }
0x12f2   : > { %v5628_v13 = vsel %vm5612_vm10, %v5611_v31, %v5512_v49 }
0x12f3   : > { %v14053_v12 = vsel %vm5888_vm14, %v5628_v13, -1e+09 }
0x12f4   : > { %v5951_v10 = vsel %vm5905_vm11, %v14053_v12, -inf }
0x12f5   : > { %v5908_v15 = vpop.xlane.xlu0 %5907  ;;  %5952 = vmax.xlane.f32.xlu0 %v5951_v10 }
0x12f6   : > { %v5954_v51 = vsub.f32 %v15632_v60, %v5908_v15  ;;  %v5920_v30 = vpop.xlane.xlu1 %5919 }
0x12f7   : > { %v5958_v62 = vsub.f32 %v15633_v22, %v5920_v30 }
0x12f8   : > { %v5970_v47 = vmul.f32 1.442695, %v5954_v51 }
0x12f9   : > { %v5914_v23 = vpop.xlane.xlu0 %5913  ;;  %v5978_v17 = vmul.f32 1.442695, %v5958_v62 }
0x12fa   : > { %10439 = vpow2.f32 %v5970_v47  ;;  %v5956_v2 = vsub.f32 %v15634_v38, %v5914_v23  ;;  %v5926_v16 = vpop.xlane.xlu1 %5925 }
0x12fb   : > { %v5960_v42 = vsub.f32 %v15635_v41, %v5926_v16 }
0x12fc   : > { %v5974_v57 = vmul.f32 1.442695, %v5956_v2 }
0x12fd   : > { %v5917_v20 = vpop.xlane.xlu0 %5916  ;;  %v5982_v45 = vmul.f32 1.442695, %v5960_v42 }
0x12fe   : > { %10441 = vpow2.f32 %v5974_v57  ;;  %v5957_v58 = vsub.f32 %v15636_v46, %v5917_v20 }
0x12ff   : > { %10443 = vpow2.f32 %v5978_v17 }
0x1300   : > { %10445 = vpow2.f32 %v5982_v45  ;;  %v5976_v26 = vmul.f32 1.442695, %v5957_v58 }
0x1301   : > { %v5923_v11 = vpop.xlane.xlu0 %5922 }
0x1302   : > { %v5959_v56 = vsub.f32 %v15638_v7, %v5923_v11 }
0x1304   : > { %v14062_v53 = vpop.eup %10439  ;;  %v5911_v44 = vpop.xlane.xlu1 %5910  ;;  %v5980_v14 = vmul.f32 1.442695, %v5959_v56 }
0x1305   : > { %v5955_v54 = vsub.f32 %v15637_v18, %v5911_v44  ;;  %v6002_v21 = vsel %vm5905_vm11, %v14062_v53, 0.0  ;;  %v5929_v32 = vpop.xlane.xlu0 %5928 }
0x1306   : > { %6003 = vadd.xlane.f32.xlu1 %v6002_v21  ;;  %v5961_v59 = vsub.f32 %v15639_v37, %v5929_v32 }
0x1307   : > { %v5972_v36 = vmul.f32 1.442695, %v5955_v54 }
0x1308   : > { %v14068_v19 = vpop.eup %10441  ;;  %v5984_v24 = vmul.f32 1.442695, %v5961_v59 }
0x1309   : > { %10447 = vpow2.f32 %v5972_v36  ;;  %v6008_v27 = vsel %vm5905_vm11, %v14068_v19, 0.0  ;;  %v14072_v5 = vpop.eup %10443 }
0x130a   : > { %6009 = vadd.xlane.f32.xlu1 %v6008_v27  ;;  %10449 = vpow2.f32 %v5976_v26  ;;  %v6014_v9 = vsel %vm5905_vm11, %v14072_v5, 0.0  ;;  %v14077_v0 = vpop.eup %10445 }
0x130b   : > { %10451 = vpow2.f32 %v5980_v14  ;;  %v6020_v3 = vsel %vm5905_vm11, %v14077_v0, 0.0 }
0x130c   : > { %10453 = vpow2.f32 %v5984_v24 }
0x130e   : > { %6015 = vadd.xlane.f32.xlu1 %v6014_v9 }
0x1312   : > { %6021 = vadd.xlane.f32.xlu1 %v6020_v3 }
0x1313   : > { %v14081_v52 = vpop.eup %10447 }
0x1314   : > { %v6005_v6 = vsel %vm5905_vm11, %v14081_v52, 0.0  ;;  %v14085_v43 = vpop.eup %10449 }
0x1315   : > { %6006 = vadd.xlane.f32.xlu0 %v6005_v6  ;;  %v6011_v35 = vsel %vm5905_vm11, %v14085_v43, 0.0  ;;  %v14089_v63 = vpop.eup %10451  ;;  %v15641_v6 = vmov 1  }
0x1316   : > { %v6017_v4 = vsel %vm5905_vm11, %v14089_v63, 0.0  ;;  %v14093_v39 = vpop.eup %10453 }
0x1317   : > { %v6023_v50 = vsel %vm5905_vm11, %v14093_v39, 0.0 }
0x1319   : > { %6012 = vadd.xlane.f32.xlu0 %v6011_v35 }
0x131d   : > { %6018 = vadd.xlane.f32.xlu0 %v6017_v4  ;;  %v11377_v4 = vmov 6  }
0x1321   : > { %6024 = vadd.xlane.f32.xlu0 %v6023_v50  ;;  %v15465_v50 = vmov 7  }
0x1372   : > { %v5932_v33 = vpop.xlane.xlu1 %5931 }
0x1373   : > { %v5962_v28 = vsub.f32 %v13958_v40, %v5932_v33 }
0x1375   : > { %v5986_v61 = vmul.f32 1.442695, %v5962_v28 }
0x1376   : > { %v5935_v31 = vpop.xlane.xlu0 %5934  ;;  %v5938_v49 = vpop.xlane.xlu1 %5937 }
0x1377   : > { %10455 = vpow2.f32 %v5986_v61  ;;  %v5963_v29 = vsub.f32 %v13984_v48, %v5935_v31  ;;  %v5964_v13 = vsub.f32 %v13988_v1, %v5938_v49  ;;  %v15642_v61 = vmov 0  }
0x1379   : > { %v5988_v10 = vmul.f32 1.442695, %v5963_v29  ;;  %v5990_v15 = vmul.f32 1.442695, %v5964_v13 }
0x137a   : > { %v5941_v60 = vpop.xlane.xlu0 %5940  ;;  %v5944_v51 = vpop.xlane.xlu1 %5943 }
0x137b   : > { %10457 = vpow2.f32 %v5988_v10  ;;  %v5965_v30 = vsub.f32 %v14013_v34, %v5941_v60  ;;  %v5966_v47 = vsub.f32 %v14015_v25, %v5944_v51 }
0x137c   : > { %10459 = vpow2.f32 %v5990_v15 }
0x137d   : > { %v5992_v22 = vmul.f32 1.442695, %v5965_v30  ;;  %v5994_v40 = vmul.f32 1.442695, %v5966_v47 }
0x137e   : > { %v5947_v62 = vpop.xlane.xlu0 %5946  ;;  %v5950_v23 = vpop.xlane.xlu1 %5949 }
0x137f   : > { %10461 = vpow2.f32 %v5992_v22  ;;  %v5967_v38 = vsub.f32 %v14039_v8, %v5947_v62  ;;  %v5968_v48 = vsub.f32 %v14041_v55, %v5950_v23 }
0x1380   : > { %10463 = vpow2.f32 %v5994_v40 }
0x1381   : > { %v14104_v1 = vpop.eup %10455  ;;  %v5996_v2 = vmul.f32 1.442695, %v5967_v38  ;;  %v5998_v16 = vmul.f32 1.442695, %v5968_v48 }
0x1382   : > { %v5953_v17 = vpop.xlane.xlu0 %5952  ;;  %v6026_v34 = vsel %vm5905_vm11, %v14104_v1, 0.0 }
0x1383   : > { %10465 = vpow2.f32 %v5996_v2  ;;  %v5969_v25 = vsub.f32 %v14053_v12, %v5953_v17  ;;  %6027 = vadd.xlane.f32.xlu1 %v6026_v34 }
0x1384   : > { %10467 = vpow2.f32 %v5998_v16 }
0x1385   : > { %v14109_v57 = vpop.eup %10457  ;;  %v6000_v41 = vmul.f32 1.442695, %v5969_v25 }
0x1386   : > { %v14111_v8 = vpop.eup %10459  ;;  %v6029_v55 = vsel %vm5905_vm11, %v14109_v57, 0.0 }
0x1387   : > { %10469 = vpow2.f32 %v6000_v41  ;;  %6030 = vadd.xlane.f32.xlu0 %v6029_v55  ;;  %v6032_v42 = vsel %vm5905_vm11, %v14111_v8, 0.0 }
0x1388   : > { %6033 = vadd.xlane.f32.xlu1 %v6032_v42 }
0x1389   : > { %v14117_v20 = vpop.eup %10461 }
0x138a   : > { %v14119_v45 = vpop.eup %10463  ;;  %v6035_v12 = vsel %vm5905_vm11, %v14117_v20, 0.0 }
0x138b   : > { %6036 = vadd.xlane.f32.xlu0 %v6035_v12  ;;  %v6038_v11 = vsel %vm5905_vm11, %v14119_v45, 0.0 }
0x138c   : > { %6039 = vadd.xlane.f32.xlu1 %v6038_v11 }
0x138d   : > { %v14125_v46 = vpop.eup %10465 }
0x138e   : > { %v14127_v58 = vpop.eup %10467  ;;  %v6041_v44 = vsel %vm5905_vm11, %v14125_v46, 0.0 }
0x138f   : > { %6042 = vadd.xlane.f32.xlu0 %v6041_v44  ;;  %v6044_v18 = vsel %vm5905_vm11, %v14127_v58, 0.0 }
0x1390   : > { %6045 = vadd.xlane.f32.xlu1 %v6044_v18 }
0x1391   : > { %v14133_v54 = vpop.eup %10469 }
0x1392   : > { %v6047_v21 = vsel %vm5905_vm11, %v14133_v54, 0.0 }
0x1393   : > { %6048 = vadd.xlane.f32.xlu0 %v6047_v21  ;;  %v6004_v26 = vpop.xlane.xlu1 %6003 }
0x1394   : > { %10471 = vrcp.f32 %v6004_v26 }
0x1397   : > { %v6010_v7 = vpop.xlane.xlu1 %6009 }
0x1398   : > { %10473 = vrcp.f32 %v6010_v7 }
0x139b   : > { %v6016_v56 = vpop.xlane.xlu1 %6015 }
0x139c   : > { %10475 = vrcp.f32 %v6016_v56 }
0x139e   : > { %v10472_v36 = vpop.eup %10471 }
0x139f   : > { %v14138_v32 = vmul.f32 %v10472_v36, %v14062_v53  ;;  %v6022_v27 = vpop.xlane.xlu1 %6021  ;;  %v15640_v53 = vmov 2  }
0x13a0   : > { %10477 = vrcp.f32 %v6022_v27 }
0x13a1   : > { %6084 = vperm.xlu1 %10242, %v14138_v32  }
0x13a2   : > { %v10474_v14 = vpop.eup %10473  ;;  %v6007_v35 = vpop.xlane.xlu0 %6006 }
0x13a3   : > { %v14142_v37 = vmul.f32 %v10474_v14, %v14068_v19  ;;  %v11374_v19 = vmov 3   ;;  %10479 = vrcp.f32 %v6007_v35 }
0x13a5   : > { %6094 = vperm.xlu1 %10242, %v14142_v37  }
0x13a6   : > { %v10476_v59 = vpop.eup %10475  ;;  %v6013_v31 = vpop.xlane.xlu0 %6012 }
0x13a7   : > { %v6070_v9 = vmul.f32 %v10476_v59, %v14072_v5  ;;  %v11375_v5 = vmov 4   ;;  %10481 = vrcp.f32 %v6013_v31 }
0x13a9   : > { %6357 = vperm.xlu0 %10244, %v6070_v9   ;;  %6104 = vperm.xlu1 %10242, %v6070_v9  }
0x13aa   : > { %v10478_v24 = vpop.eup %10477 }
0x13ab   : > { %v6072_v3 = vmul.f32 %v10478_v24, %v14077_v0  ;;  %v15464_v0 = vmov 5  }
0x13ad   : > { %6365 = vperm.xlu0 %10244, %v6072_v3   ;;  %6114 = vperm.xlu1 %10242, %v6072_v3   ;;  %v10480_v33 = vpop.eup %10479 }
0x13ae   : > { %v14167_v28 = vmul.f32 %v10480_v33, %v14081_v52  ;;  %v6019_v52 = vpop.xlane.xlu0 %6018 }
0x13af   : > { %10483 = vrcp.f32 %v6019_v52 }
0x13b1   : > { %10245 = vset.pattern.permute.xlu0 %v15640_v53  ;;  %10243 = vset.pattern.permute.xlu1 %v15641_v6  ;;  %v10482_v29 = vpop.eup %10481 }
0x13b2   : > { %6581 = vperm.xlu0 %10245, %v14138_v32   ;;  %6341 = vperm.xlu1 %10243, %v14138_v32   ;;  %v6025_v49 = vpop.xlane.xlu0 %6024  ;;  %v14182_v13 = vmul.f32 %v10482_v29, %v14085_v43 }
0x13b3   : > { %10485 = vrcp.f32 %v6025_v49 }
0x13b6   : > { %10248 = vset.pattern.permute.xlu0 %v11374_v19  ;;  %6349 = vperm.xlu1 %10243, %v14142_v37  }
0x13b7   : > { %6837 = vperm.xlu0 %10248, %v6070_v9  }
0x13b9   : > { %v10484_v10 = vpop.eup %10483 }
0x13ba   : > { %10246 = vset.pattern.permute.xlu1 %v15640_v53  ;;  %v14187_v15 = vmul.f32 %v10484_v10, %v14089_v63 }
0x13bb   : > { %6845 = vperm.xlu0 %10248, %v6072_v3   ;;  %6589 = vperm.xlu1 %10246, %v14142_v37  }
0x13bd   : > { %v10486_v60 = vpop.eup %10485 }
0x13be   : > { %v14191_v51 = vmul.f32 %v10486_v60, %v14093_v39 }
0x13bf   : > { %10249 = vset.pattern.permute.xlu0 %v11375_v5  ;;  %6597 = vperm.xlu1 %10246, %v6070_v9  }
0x13c0   : > { %7061 = vperm.xlu0 %10249, %v14138_v32  }
0x13c3   : > { %6605 = vperm.xlu1 %10246, %v6072_v3  }
0x13c4   : > { %10252 = vset.pattern.permute.xlu0 %v15464_v0 }
0x13c5   : > { %7317 = vperm.xlu0 %10252, %v6070_v9  }
0x13c7   : > { %10247 = vset.pattern.permute.xlu1 %v11374_v19 }
0x13c8   : > { %6821 = vperm.xlu1 %10247, %v14138_v32  }
0x13c9   : > { %7325 = vperm.xlu0 %10252, %v6072_v3  }
0x13cc   : > { %6829 = vperm.xlu1 %10247, %v14142_v37  }
0x13cd   : > { %10253 = vset.pattern.permute.xlu0 %v11377_v4 }
0x13ce   : > { %7541 = vperm.xlu0 %10253, %v14138_v32  }
0x13d0   : > { %10250 = vset.pattern.permute.xlu1 %v11375_v5 }
0x13d1   : > { %7069 = vperm.xlu1 %10250, %v14142_v37  }
0x13d2   : > { %10256 = vset.pattern.permute.xlu0 %v15465_v50 }
0x13d3   : > { %7797 = vperm.xlu0 %10256, %v6070_v9  }
0x13d5   : > { %7077 = vperm.xlu1 %10250, %v6070_v9  }
0x13d7   : > { %7805 = vperm.xlu0 %10256, %v6072_v3  }
0x13d9   : > { %7085 = vperm.xlu1 %10250, %v6072_v3  }
0x13db   : > { %10257 = vset.pattern.permute.xlu0 %v15642_v61 }
0x13dc   : > { %6089 = vperm.xlu0 %10257, %v14167_v28  }
0x13dd   : > { %10251 = vset.pattern.permute.xlu1 %v15464_v0 }
0x13de   : > { %7301 = vperm.xlu1 %10251, %v14138_v32  }
0x13e0   : > { %10259 = vset.pattern.permute.xlu0 %v15641_v6 }
0x13e1   : > { %6345 = vperm.xlu0 %10259, %v14167_v28  }
0x13e2   : > { %7309 = vperm.xlu1 %10251, %v14142_v37  }
0x13e6   : > { %10254 = vset.pattern.permute.xlu1 %v11377_v4 }
0x13e7   : > { %7549 = vperm.xlu1 %10254, %v14142_v37  }
0x13eb   : > { %7557 = vperm.xlu1 %10254, %v6070_v9  }
0x13ef   : > { %7565 = vperm.xlu1 %10254, %v6072_v3  }
0x13f3   : > { %10255 = vset.pattern.permute.xlu1 %v15465_v50 }
0x13f4   : > { %7781 = vperm.xlu1 %10255, %v14138_v32  }
0x13f8   : > { %7789 = vperm.xlu1 %10255, %v14142_v37  }
0x13fc   : > { %10258 = vset.pattern.permute.xlu1 %v15642_v61 }
0x13fd   : > { %6099 = vperm.xlu1 %10258, %v14182_v13  }
0x1401   : > { %6109 = vperm.xlu1 %10258, %v14187_v15  }
0x1405   : > { %6119 = vperm.xlu1 %10258, %v14191_v51  }
0x1410   : > { %v6028_v30 = vpop.xlane.xlu1 %6027 }
0x1411   : > { %10487 = vrcp.f32 %v6028_v30 }
0x1414   : > { %v14211_v2 = vpop.xlane.xlu0 %6030 }
0x1415   : > { %v6034_v43 = vpop.xlane.xlu1 %6033 }
0x1416   : > { %10489 = vrcp.f32 %v6034_v43 }
0x1418   : > { %v14222_v25 = vpop.xlane.xlu0 %6036 }
0x1419   : > { %v6040_v47 = vpop.xlane.xlu1 %6039 }
0x141a   : > { %10491 = vrcp.f32 %v6040_v47 }
0x141b   : > { %v10488_v22 = vpop.eup %10487 }
0x141c   : > { %v14195_v40 = vmul.f32 %v10488_v22, %v14104_v1  ;;  %v14232_v55 = vpop.xlane.xlu0 %6042 }
0x141d   : > { %v6046_v63 = vpop.xlane.xlu1 %6045 }
0x141e   : > { %10493 = vrcp.f32 %v6046_v63  ;;  %6373 = vperm.xlu0 %10259, %v14195_v40   ;;  %6124 = vperm.xlu1 %10258, %v14195_v40  }
0x141f   : > { %10495 = vrcp.f32 %v14211_v2 }
0x1420   : > { %v10490_v39 = vpop.eup %10489  ;;  %10497 = vrcp.f32 %v14222_v25 }
0x1421   : > { %v14200_v62 = vmul.f32 %v10490_v39, %v14111_v8  ;;  %v14202_v23 = vpop.permute.xlu1 %6084  ;;  %10499 = vrcp.f32 %v14232_v55 }
0x1423   : > { %6381 = vperm.xlu0 %10259, %v14200_v62   ;;  %6134 = vperm.xlu1 %10258, %v14200_v62  }
0x1424   : > { %v10492_v38 = vpop.eup %10491 }
0x1425   : > { %v14207_v48 = vmul.f32 %v10492_v38, %v14119_v45  ;;  %v14209_v1 = vpop.permute.xlu1 %6094  ;;  %v14240_v45 = vpop.xlane.xlu0 %6048  ;;  %v15643_v38 = vld [vmem:[#allocation130_spill] sm:$0xff] }
0x1426   : > { %v6162_v63 = vcombine.low %v14202_v23, %v14209_v1  ;;  %10501 = vrcp.f32 %v14240_v45 }
0x1427   : > { %6389 = vperm.xlu0 %10259, %v14207_v48   ;;  %6144 = vperm.xlu1 %10258, %v14207_v48  }
0x1428   : > { %v10494_v16 = vpop.eup %10493 }
0x1429   : > { %v14216_v17 = vmul.f32 %v10494_v16, %v14127_v58  ;;  %v14218_v34 = vpop.permute.xlu1 %6104  ;;  %v14246_v11 = vpop.permute.xlu0 %6357 }
0x142b   : > { %6397 = vperm.xlu0 %10259, %v14216_v17   ;;  %6154 = vperm.xlu1 %10258, %v14216_v17  }
0x142d   : > { %v14224_v41 = vpop.permute.xlu1 %6114  ;;  %v14256_v18 = vpop.permute.xlu0 %6365 }
0x142e   : > { %v6178_v39 = vcombine.low %v14218_v34, %v14224_v41 }
0x142f   : > { %10262 = vset.pattern.permute.xlu0 %v15640_v53  ;;  %10260 = vset.pattern.permute.xlu1 %v15641_v6 }
0x1430   : > { %6593 = vperm.xlu0 %10262, %v14182_v13   ;;  %6353 = vperm.xlu1 %10260, %v14182_v13  }
0x1431   : > { %v14230_v8 = vpop.permute.xlu1 %6341  ;;  %v14262_v26 = vpop.permute.xlu0 %6581 }
0x1434   : > { %6601 = vperm.xlu0 %10262, %v14187_v15   ;;  %6361 = vperm.xlu1 %10260, %v14187_v15  }
0x1435   : > { %v14236_v42 = vpop.permute.xlu1 %6349 }
0x1436   : > { %v14270_v56 = vpop.permute.xlu0 %6837 }
0x1438   : > { %6609 = vperm.xlu0 %10262, %v14191_v51   ;;  %6369 = vperm.xlu1 %10260, %v14191_v51  }
0x143a   : > { %v14242_v12 = vpop.permute.xlu1 %6589  ;;  %v14280_v27 = vpop.permute.xlu0 %6845 }
0x143c   : > { %10263 = vset.pattern.permute.xlu0 %v11374_v19  ;;  %10261 = vset.pattern.permute.xlu1 %v15640_v53 }
0x143d   : > { %6825 = vperm.xlu0 %10263, %v14167_v28   ;;  %6585 = vperm.xlu1 %10261, %v14167_v28  }
0x143e   : > { %v14250_v58 = vpop.permute.xlu1 %6597 }
0x143f   : > { %v14288_v37 = vpop.permute.xlu0 %7061 }
0x1441   : > { %6853 = vperm.xlu0 %10263, %v14195_v40   ;;  %6613 = vperm.xlu1 %10261, %v14195_v40  }
0x1442   : > { %v14254_v44 = vpop.permute.xlu1 %6605 }
0x1444   : > { %v14296_v9 = vpop.permute.xlu0 %7317 }
0x1445   : > { %6861 = vperm.xlu0 %10263, %v14200_v62   ;;  %6621 = vperm.xlu1 %10261, %v14200_v62  }
0x1447   : > { %v14260_v21 = vpop.permute.xlu1 %6821 }
0x1448   : > { %v14304_v35 = vpop.permute.xlu0 %7325 }
0x1449   : > { %6869 = vperm.xlu0 %10263, %v14207_v48   ;;  %6629 = vperm.xlu1 %10261, %v14207_v48  }
0x144b   : > { %v14266_v7 = vpop.permute.xlu1 %6829 }
0x144d   : > { %6877 = vperm.xlu0 %10263, %v14216_v17   ;;  %6637 = vperm.xlu1 %10261, %v14216_v17   ;;  %v14312_v31 = vpop.permute.xlu0 %7541 }
0x1450   : > { %v14272_v36 = vpop.permute.xlu1 %7069 }
0x1451   : > { %10266 = vset.pattern.permute.xlu0 %v11375_v5  ;;  %10264 = vset.pattern.permute.xlu1 %v11374_v19 }
0x1452   : > { %7073 = vperm.xlu0 %10266, %v14182_v13   ;;  %6833 = vperm.xlu1 %10264, %v14182_v13   ;;  %v14318_v49 = vpop.permute.xlu0 %7797 }
0x1454   : > { %v14278_v32 = vpop.permute.xlu1 %7077 }
0x1456   : > { %7081 = vperm.xlu0 %10266, %v14187_v15   ;;  %6841 = vperm.xlu1 %10264, %v14187_v15   ;;  %v14330_v60 = vpop.permute.xlu0 %7805 }
0x1458   : > { %v14284_v14 = vpop.permute.xlu1 %7085 }
0x145a   : > { %7089 = vperm.xlu0 %10266, %v14191_v51   ;;  %6849 = vperm.xlu1 %10264, %v14191_v51  }
0x145b   : > { %v6090_v43 = vpop.permute.xlu0 %6089 }
0x145d   : > { %v14290_v59 = vpop.permute.xlu1 %7301 }
0x145e   : > { %10267 = vset.pattern.permute.xlu0 %v15464_v0  ;;  %10265 = vset.pattern.permute.xlu1 %v11375_v5 }
0x145f   : > { %7305 = vperm.xlu0 %10267, %v14167_v28   ;;  %7065 = vperm.xlu1 %10265, %v14167_v28  }
0x1461   : > { %v14298_v24 = vpop.permute.xlu1 %7309 }
0x1463   : > { %7333 = vperm.xlu0 %10267, %v14195_v40   ;;  %7093 = vperm.xlu1 %10265, %v14195_v40  }
0x1466   : > { %v14302_v3 = vpop.permute.xlu1 %7549 }
0x1467   : > { %7341 = vperm.xlu0 %10267, %v14200_v62   ;;  %7101 = vperm.xlu1 %10265, %v14200_v62  }
0x146a   : > { %v14308_v33 = vpop.permute.xlu1 %7557 }
0x146b   : > { %7349 = vperm.xlu0 %10267, %v14207_v48   ;;  %7109 = vperm.xlu1 %10265, %v14207_v48  }
0x146e   : > { %v14314_v52 = vpop.permute.xlu1 %7565 }
0x146f   : > { %7357 = vperm.xlu0 %10267, %v14216_v17   ;;  %7117 = vperm.xlu1 %10265, %v14216_v17  }
0x1473   : > { %10270 = vset.pattern.permute.xlu0 %v11377_v4  ;;  %10268 = vset.pattern.permute.xlu1 %v15464_v0  ;;  %v14322_v29 = vpop.permute.xlu1 %7781 }
0x1474   : > { %7553 = vperm.xlu0 %10270, %v14182_v13   ;;  %7313 = vperm.xlu1 %10268, %v14182_v13  }
0x1477   : > { %v14326_v10 = vpop.permute.xlu1 %7789 }
0x1478   : > { %7561 = vperm.xlu0 %10270, %v14187_v15   ;;  %7321 = vperm.xlu1 %10268, %v14187_v15  }
0x147c   : > { %7569 = vperm.xlu0 %10270, %v14191_v51   ;;  %7329 = vperm.xlu1 %10268, %v14191_v51   ;;  %v6100_v30 = vpop.permute.xlu1 %6099 }
0x147d   : > { %v6170_v47 = vcombine.low %v6090_v43, %v6100_v30  ;;  %v14348_v43 = vrot.slane %v6162_v63, %v15643_v38 }
0x147f   : > { %v14343_v16 = vrot.slane %v6170_v47, %v15643_v38  ;;  %v10496_v47 = vpop.eup %10495 }
0x1480   : > { %10271 = vset.pattern.permute.xlu0 %v15465_v50  ;;  %10269 = vset.pattern.permute.xlu1 %v11377_v4  ;;  %v6110_v22 = vpop.permute.xlu1 %6109  ;;  %v10498_v25 = vpop.eup %10497 }
0x1481   : > { %7785 = vperm.xlu0 %10271, %v14167_v28   ;;  %7545 = vperm.xlu1 %10269, %v14167_v28   ;;  %v14352_v28 = vrot.slane %v6178_v39, %v15643_v38  ;;  %v6194_v1 = vcombine.low %v14348_v43, %v14343_v16  ;;  %v10500_v55 = vpop.eup %10499 }
0x1484   : > { %v6120_v0 = vpop.permute.xlu1 %6119 }
0x1485   : > { %7813 = vperm.xlu0 %10271, %v14195_v40   ;;  %7573 = vperm.xlu1 %10269, %v14195_v40   ;;  %v6186_v30 = vcombine.low %v6110_v22, %v6120_v0  ;;  %v15644_v0 = vld [vmem:[#allocation132_spill] sm:$0xff]  ;;  %v6346_v22 = vpop.permute.xlu0 %6345 }
0x1486   : > { %v14368_v2 = vrot.slane %v6194_v1, %v15644_v0 }
0x1487   : > { %v14355_v23 = vrot.slane %v6186_v30, %v15643_v38 }
0x1489   : > { %v6210_v34 = vcombine.low %v14352_v28, %v14355_v23  ;;  %7821 = vperm.xlu0 %10271, %v14200_v62   ;;  %7581 = vperm.xlu1 %10269, %v14200_v62   ;;  %v14379_v62 = vmul.f32 %v10496_v47, %v14109_v57  ;;  %v14391_v57 = vmul.f32 %v10500_v55, %v14125_v46 }
0x148a   : > { %v6420_v55 = vcombine.low %v14246_v11, %v14256_v18  ;;  %v6644_v18 = vcombine.low %v14262_v26, %v14242_v12 }
0x148b   : > { %v14365_v40 = vrot.slane %v6210_v34, %v15644_v0 }
0x148c   : > { %v14469_v26 = vrot.slane %v6644_v18, %v15643_v38 }
0x148d   : > { %7829 = vperm.xlu0 %10271, %v14207_v48   ;;  %7589 = vperm.xlu1 %10269, %v14207_v48   ;;  %v14386_v48 = vmul.f32 %v10498_v25, %v14117_v20  ;;  %v6404_v25 = vcombine.low %v14230_v8, %v14236_v42  ;;  %v14441_v8 = vrot.slane %v6420_v55, %v15643_v38 }
0x148e   : > { %v6660_v42 = vcombine.low %v14250_v58, %v14254_v44 }
0x148f   : > { %v14436_v41 = vrot.slane %v6404_v25, %v15643_v38 }
0x1490   : > { %v14460_v44 = vrot.slane %v6660_v42, %v15643_v38 }
0x1491   : > { %7837 = vperm.xlu0 %10271, %v14216_v17   ;;  %7597 = vperm.xlu1 %10269, %v14216_v17   ;;  %v10502_v17 = vpop.eup %10501 }
0x1492   : > { %v14400_v20 = vmul.f32 %v10502_v17, %v14133_v54 }
0x1495   : > { %10273 = vset.pattern.permute.xlu0 %v15642_v61  ;;  %10272 = vset.pattern.permute.xlu1 %v15465_v50 }
0x1496   : > { %6129 = vperm.xlu0 %10273, %v14379_v62   ;;  %7793 = vperm.xlu1 %10272, %v14182_v13  }
0x149a   : > { %6139 = vperm.xlu0 %10273, %v14386_v48   ;;  %7801 = vperm.xlu1 %10272, %v14187_v15  }
0x149d   : > { %v14393_v45 = vpop.permute.xlu0 %6373  ;;  %v14395_v63 = vpop.permute.xlu1 %6124 }
0x149e   : > { %6149 = vperm.xlu0 %10273, %v14391_v57   ;;  %7809 = vperm.xlu1 %10272, %v14191_v51  }
0x14a2   : > { %v14402_v13 = vpop.permute.xlu0 %6381  ;;  %6159 = vperm.xlu0 %10273, %v14400_v20   ;;  %10274 = vset.pattern.permute.xlu1 %v15641_v6  ;;  %v14406_v46 = vpop.permute.xlu1 %6134 }
0x14a3   : > { %6377 = vperm.xlu1 %10274, %v14379_v62  }
0x14a6   : > { %v14409_v15 = vpop.permute.xlu0 %6389  ;;  %10275 = vset.pattern.permute.xlu0 %v15640_v53  ;;  %v14412_v39 = vpop.permute.xlu1 %6144 }
0x14a7   : > { %6617 = vperm.xlu0 %10275, %v14379_v62   ;;  %6385 = vperm.xlu1 %10274, %v14386_v48  }
0x14aa   : > { %v14416_v54 = vpop.permute.xlu0 %6397  ;;  %v14418_v51 = vpop.permute.xlu1 %6154 }
0x14ab   : > { %6625 = vperm.xlu0 %10275, %v14386_v48   ;;  %6393 = vperm.xlu1 %10274, %v14391_v57  }
0x14af   : > { %6633 = vperm.xlu0 %10275, %v14391_v57   ;;  %v6594_v6 = vpop.permute.xlu0 %6593  ;;  %6401 = vperm.xlu1 %10274, %v14400_v20   ;;  %v6354_v30 = vpop.permute.xlu1 %6353 }
0x14b0   : > { %v6412_v1 = vcombine.low %v6346_v22, %v6354_v30 }
0x14b2   : > { %v14432_v17 = vrot.slane %v6412_v1, %v15643_v38 }
0x14b3   : > { %6641 = vperm.xlu0 %10275, %v14400_v20   ;;  %v6602_v34 = vpop.permute.xlu0 %6601  ;;  %10276 = vset.pattern.permute.xlu1 %v11374_v19  ;;  %v6362_v47 = vpop.permute.xlu1 %6361 }
0x14b4   : > { %6857 = vperm.xlu1 %10276, %v14379_v62  }
0x14b7   : > { %10277 = vset.pattern.permute.xlu0 %v11375_v5  ;;  %v6610_v22 = vpop.permute.xlu0 %6609  ;;  %v6370_v30 = vpop.permute.xlu1 %6369  ;;  %v6436_v5 = vcombine.low %v14436_v41, %v14432_v17 }
0x14b8   : > { %v6668_v19 = vcombine.low %v6602_v34, %v6610_v22  ;;  %v6428_v50 = vcombine.low %v6362_v47, %v6370_v30  ;;  %7097 = vperm.xlu0 %10277, %v14379_v62   ;;  %6865 = vperm.xlu1 %10276, %v14386_v48  }
0x14ba   : > { %v14448_v11 = vrot.slane %v6428_v50, %v15643_v38  ;;  %v14453_v1 = vrot.slane %v6668_v19, %v15643_v38  ;;  %v14463_v50 = vrot.slane %v6436_v5, %v15644_v0 }
0x14bc   : > { %v6452_v34 = vcombine.low %v14441_v8, %v14448_v11  ;;  %7105 = vperm.xlu0 %10277, %v14386_v48   ;;  %v6826_v47 = vpop.permute.xlu0 %6825  ;;  %v6586_v25 = vpop.permute.xlu1 %6585  ;;  %6873 = vperm.xlu1 %10276, %v14391_v57   ;;  %v6692_v22 = vcombine.low %v14460_v44, %v14453_v1 }
0x14bd   : > { %v6652_v58 = vcombine.low %v6586_v25, %v6594_v6 }
0x14be   : > { %v14466_v12 = vrot.slane %v6452_v34, %v15644_v0  ;;  %v14490_v18 = vrot.slane %v6692_v22, %v15644_v0 }
0x14bf   : > { %v14472_v55 = vrot.slane %v6652_v58, %v15643_v38  ;;  %v15649_v58 = vmov 5  }
0x14c0   : > { %7113 = vperm.xlu0 %10277, %v14391_v57   ;;  %v14477_v6 = vpop.permute.xlu0 %6853  ;;  %v14479_v30 = vpop.permute.xlu1 %6613  ;;  %6881 = vperm.xlu1 %10276, %v14400_v20  }
0x14c1   : > { %15645 = vst [vmem:[#allocation114_spill] sm:$0xff] %v14477_v6  ;;  %15646 = vst [vmem:[#allocation115_spill] sm:$0xff] %v14479_v30  ;;  %v6676_v42 = vcombine.low %v14469_v26, %v14472_v55  ;;  %v6227_v30 = vcombine.high %v14368_v2, %v14365_v40 }
0x14c3   : > { %v14487_v5 = vrot.slane %v6676_v42, %v15644_v0 }
0x14c4   : > { %7121 = vperm.xlu0 %10277, %v14400_v20   ;;  %v14493_v34 = vpop.permute.xlu0 %6861  ;;  %v14495_v25 = vpop.permute.xlu1 %6621  ;;  %10278 = vset.pattern.permute.xlu1 %v15649_v58 }
0x14c5   : > { %15647 = vst [vmem:[#allocation116_spill] sm:$0xff] %v14493_v34  ;;  %15648 = vst [vmem:[#allocation142_spill] sm:$0xff] %v14495_v25  ;;  %7337 = vperm.xlu1 %10278, %v14379_v62   ;;  %v6195_v25 = vcombine.high %v14348_v43, %v14343_v16  ;;  %v6469_v16 = vcombine.high %v14463_v50, %v14466_v12 }
0x14c8   : > { %10279 = vset.pattern.permute.xlu0 %v11377_v4  ;;  %v14502_v42 = vpop.permute.xlu0 %6869  ;;  %v14504_v53 = vpop.permute.xlu1 %6629 }
0x14c9   : > { %15650 = vst [vmem:[#allocation117_spill] sm:$0xff] %v14502_v42  ;;  %15651 = vst [vmem:[#allocation134_spill] sm:$0xff] %v14504_v53  ;;  %7577 = vperm.xlu0 %10279, %v14379_v62   ;;  %7345 = vperm.xlu1 %10278, %v14386_v48   ;;  %v15654_v53 = vmov 7  }
0x14cc   : > { %v14508_v22 = vpop.permute.xlu0 %6877  ;;  %v14510_v6 = vpop.permute.xlu1 %6637 }
0x14cd   : > { %15652 = vst [vmem:[#allocation135_spill] sm:$0xff] %v14508_v22  ;;  %15653 = vst [vmem:[#allocation136_spill] sm:$0xff] %v14510_v6  ;;  %7585 = vperm.xlu0 %10279, %v14386_v48   ;;  %7353 = vperm.xlu1 %10278, %v14391_v57   ;;  %v6884_v22 = vcombine.low %v14260_v21, %v14266_v7  ;;  %v6211_v6 = vcombine.high %v14352_v28, %v14355_v23 }
0x14cf   : > { %v14534_v7 = vrot.slane %v6884_v22, %v15643_v38 }
0x14d1   : > { %7593 = vperm.xlu0 %10279, %v14391_v57   ;;  %v7074_v58 = vpop.permute.xlu0 %7073  ;;  %v6834_v4 = vpop.permute.xlu1 %6833  ;;  %7361 = vperm.xlu1 %10278, %v14400_v20  }
0x14d2   : > { %v6892_v19 = vcombine.low %v6826_v47, %v6834_v4  ;;  %v6900_v47 = vcombine.low %v14270_v56, %v14280_v27  ;;  %v6225_v56 = vrot.slane %v6211_v6, %v15644_v0  ;;  %v6453_v27 = vcombine.high %v14441_v8, %v14448_v11 }
0x14d3   : > { %v7124_v8 = vcombine.low %v14288_v37, %v14272_v36  ;;  %v6437_v11 = vcombine.high %v14436_v41, %v14432_v17 }
0x14d4   : > { %v14528_v4 = vrot.slane %v6892_v19, %v15643_v38  ;;  %v14544_v43 = vrot.slane %v6900_v47, %v15643_v38 }
0x14d5   : > { %7601 = vperm.xlu0 %10279, %v14400_v20   ;;  %v7082_v42 = vpop.permute.xlu0 %7081  ;;  %v6842_v34 = vpop.permute.xlu1 %6841  ;;  %10280 = vset.pattern.permute.xlu1 %v15654_v53  ;;  %v14576_v22 = vrot.slane %v7124_v8, %v15643_v38  ;;  %v6451_v47 = vrot.slane %v6437_v11, %v15644_v0 }
0x14d6   : > { %7817 = vperm.xlu1 %10280, %v14379_v62   ;;  %v7140_v62 = vcombine.low %v14278_v32, %v14284_v14 }
0x14d9   : > { %v7090_v21 = vpop.permute.xlu0 %7089  ;;  %6300 = vrot.lane.b32.xlu0 %v6227_v30, %s11379_s8  ;;  %v6850_v53 = vpop.permute.xlu1 %6849  ;;  %v6916_v30 = vcombine.low %v14534_v7, %v14528_v4 }
0x14da   : > { %v7148_v28 = vcombine.low %v7082_v42, %v7090_v21  ;;  %v6908_v23 = vcombine.low %v6842_v34, %v6850_v53  ;;  %10282 = vset.pattern.permute.xlu0 %v15642_v61  ;;  %7825 = vperm.xlu1 %10280, %v14386_v48   ;;  %v6209_v48 = vrot.slane %v6195_v25, %v15644_v0 }
0x14db   : > { %v6467_v42 = vrot.slane %v6453_v27, %v15644_v0  ;;  %v14567_v25 = vrot.slane %v7140_v62, %v15643_v38  ;;  %v14570_v41 = vrot.slane %v6916_v30, %v15644_v0 }
0x14dc   : > { %v14551_v19 = vrot.slane %v6908_v23, %v15643_v38  ;;  %v14560_v6 = vrot.slane %v7148_v28, %v15643_v38  ;;  %v6228_v37 = vcombine.low %v6209_v48, %v6225_v56  ;;  %v6229_v11 = vcombine.high %v6209_v48, %v6225_v56 }
0x14dd   : > { %6542 = vrot.lane.b32.xlu0 %v6469_v16, %s11379_s8  ;;  %v6470_v27 = vcombine.low %v6451_v47, %v6467_v42 }
0x14de   : > { %v6932_v32 = vcombine.low %v14544_v43, %v14551_v19  ;;  %v7306_v14 = vpop.permute.xlu0 %7305  ;;  %v7066_v34 = vpop.permute.xlu1 %7065  ;;  %7833 = vperm.xlu1 %10280, %v14391_v57   ;;  %v7172_v57 = vcombine.low %v14567_v25, %v14560_v6 }
0x14df   : > { %v7132_v36 = vcombine.low %v7066_v34, %v7074_v58 }
0x14e0   : > { %v14573_v17 = vrot.slane %v6932_v32, %v15644_v0  ;;  %v14599_v62 = vrot.slane %v7172_v57, %v15644_v0  ;;  %v6693_v57 = vcombine.high %v14460_v44, %v14453_v1  ;;  %v6933_v44 = vcombine.high %v14544_v43, %v14551_v19 }
0x14e1   : > { %v14580_v21 = vrot.slane %v7132_v36, %v15643_v38  ;;  %6308 = vrot.lane.b32.xlu0 %v6228_v37, %s11380_s13  ;;  %v6677_v36 = vcombine.high %v14469_v26, %v14472_v55  ;;  %v6471_v37 = vcombine.high %v6451_v47, %v6467_v42 }
0x14e2   : > { %v14585_v58 = vpop.permute.xlu0 %7333  ;;  %v14587_v53 = vpop.permute.xlu1 %7093  ;;  %7841 = vperm.xlu1 %10280, %v14400_v20   ;;  %v6949_v19 = vcombine.high %v14570_v41, %v14573_v17 }
0x14e3   : > { %v7156_v23 = vcombine.low %v14576_v22, %v14580_v21 }
0x14e5   : > { %v14595_v16 = vrot.slane %v7156_v23, %v15644_v0  ;;  %6550 = vrot.lane.b32.xlu0 %v6470_v27, %s11380_s13  ;;  %v6691_v23 = vrot.slane %v6677_v36, %v15644_v0  ;;  %v6709_v27 = vcombine.high %v14487_v5, %v14490_v18  ;;  %v7364_v36 = vcombine.low %v14290_v59, %v14298_v24 }
0x14e6   : > { %v14601_v30 = vpop.permute.xlu0 %7341  ;;  %v14603_v8 = vpop.permute.xlu1 %7101  ;;  %10281 = vset.pattern.permute.xlu1 %v15642_v61 }
0x14e9   : > { %6316 = vrot.lane.b32.xlu0 %v6229_v11, %s11381_s1  ;;  %v6707_v11 = vrot.slane %v6693_v57, %v15644_v0  ;;  %v6917_v57 = vcombine.high %v14534_v7, %v14528_v4 }
0x14ea   : > { %v14609_v20 = vpop.permute.xlu0 %7349  ;;  %v14611_v34 = vpop.permute.xlu1 %7109 }
0x14eb   : > { %v6710_v42 = vcombine.low %v6691_v23, %v6707_v11  ;;  %v6711_v32 = vcombine.high %v6691_v23, %v6707_v11  ;;  %v7371_v23 = vrot.slane %v7364_v36, %v15643_v38  ;;  %v6931_v4 = vrot.slane %v6917_v57, %v15644_v0 }
0x14ec   : > { %v7604_v11 = vcombine.low %v14312_v31, %v14302_v3  ;;  %v7157_v31 = vcombine.high %v14576_v22, %v14580_v21 }
0x14ed   : > { %6558 = vrot.lane.b32.xlu0 %v6471_v37, %s11381_s1 }
0x14ee   : > { %v14618_v56 = vpop.permute.xlu0 %7357  ;;  %v14620_v48 = vpop.permute.xlu1 %7117  ;;  %v7611_v3 = vrot.slane %v7604_v11, %v15643_v38  ;;  %v7171_v22 = vrot.slane %v7157_v31, %v15644_v0 }
0x14f1   : > { %6782 = vrot.lane.b32.xlu0 %v6709_v27, %s11379_s8  ;;  %v7380_v27 = vcombine.low %v14296_v9, %v14304_v35  ;;  %v7620_v9 = vcombine.low %v14308_v33, %v14314_v52 }
0x14f3   : > { %v7554_v26 = vpop.permute.xlu0 %7553  ;;  %v7314_v55 = vpop.permute.xlu1 %7313  ;;  %v7387_v7 = vrot.slane %v7380_v27, %v15643_v38  ;;  %v14655_v27 = vrot.slane %v7620_v9, %v15643_v38  ;;  %v7173_v9 = vcombine.high %v14567_v25, %v14560_v6 }
0x14f4   : > { %v7372_v1 = vcombine.low %v7306_v14, %v7314_v55  ;;  %v6947_v14 = vrot.slane %v6933_v44, %v15644_v0 }
0x14f5   : > { %6790 = vrot.lane.b32.xlu0 %v6710_v42, %s11380_s13  ;;  %v7187_v6 = vrot.slane %v7173_v9, %v15644_v0 }
0x14f6   : > { %v7379_v42 = vrot.slane %v7372_v1, %v15643_v38  ;;  %v6950_v1 = vcombine.low %v6931_v4, %v6947_v14 }
0x14f7   : > { %v7562_v47 = vpop.permute.xlu0 %7561  ;;  %v7322_v37 = vpop.permute.xlu1 %7321 }
0x14f8   : > { %v7396_v35 = vcombine.low %v7371_v23, %v7379_v42 }
0x14f9   : > { %6798 = vrot.lane.b32.xlu0 %v6711_v32, %s11381_s1 }
0x14fa   : > { %v14658_v33 = vrot.slane %v7396_v35, %v15644_v0 }
0x14fb   : > { %v7570_v55 = vpop.permute.xlu0 %7569  ;;  %v7330_v43 = vpop.permute.xlu1 %7329 }
0x14fc   : > { %v7628_v59 = vcombine.low %v7562_v47, %v7570_v55  ;;  %v7388_v24 = vcombine.low %v7322_v37, %v7330_v43  ;;  %v6951_v43 = vcombine.high %v6931_v4, %v6947_v14  ;;  %v7189_v14 = vcombine.high %v14595_v16, %v14599_v62 }
0x14fd   : > { %7022 = vrot.lane.b32.xlu0 %v6949_v19, %s11379_s8 }
0x14fe   : > { %v7395_v32 = vrot.slane %v7388_v24, %v15643_v38  ;;  %v14651_v44 = vrot.slane %v7628_v59, %v15643_v38  ;;  %v7397_v24 = vcombine.high %v7371_v23, %v7379_v42  ;;  %v7844_v42 = vcombine.low %v14322_v29, %v14326_v10 }
0x1500   : > { %v7412_v47 = vcombine.low %v7387_v7, %v7395_v32  ;;  %v7786_v37 = vpop.permute.xlu0 %7785  ;;  %v7546_v36 = vpop.permute.xlu1 %7545  ;;  %v7413_v31 = vcombine.high %v7387_v7, %v7395_v32  ;;  %v7411_v25 = vrot.slane %v7397_v24, %v15644_v0  ;;  %v7653_v24 = vcombine.high %v14655_v27, %v14651_v44 }
0x1501   : > { %v7612_v57 = vcombine.low %v7546_v36, %v7554_v26  ;;  %7030 = vrot.lane.b32.xlu0 %v6950_v1, %s11380_s13  ;;  %v7652_v26 = vcombine.low %v14655_v27, %v14651_v44  ;;  %v7851_v29 = vrot.slane %v7844_v42, %v15643_v38 }
0x1502   : > { %v14661_v52 = vrot.slane %v7412_v47, %v15644_v0  ;;  %v7190_v47 = vcombine.low %v7171_v22, %v7187_v6  ;;  %v7427_v9 = vrot.slane %v7413_v31, %v15644_v0 }
0x1503   : > { %v7619_v55 = vrot.slane %v7612_v57, %v15643_v38  ;;  %v14685_v4 = vrot.slane %v7652_v26, %v15644_v0 }
0x1504   : > { %15655 = vst [vmem:[#allocation137_spill] sm:$0xff] %v14661_v52  ;;  %v14669_v19 = vpop.permute.xlu0 %7813  ;;  %v14671_v59 = vpop.permute.xlu1 %7573  ;;  %v7430_v7 = vcombine.low %v7411_v25, %v7427_v9  ;;  %v7431_v31 = vcombine.high %v7411_v25, %v7427_v9 }
0x1505   : > { %v7636_v35 = vcombine.low %v7611_v3, %v7619_v55  ;;  %7038 = vrot.lane.b32.xlu0 %v6951_v43, %s11381_s1  ;;  %v7191_v43 = vcombine.high %v7171_v22, %v7187_v6  ;;  %v7637_v23 = vcombine.high %v7611_v3, %v7619_v55 }
0x1507   : > { %v14680_v21 = vrot.slane %v7636_v35, %v15644_v0  ;;  %v7651_v10 = vrot.slane %v7637_v23, %v15644_v0 }
0x1508   : > { %v14687_v11 = vpop.permute.xlu0 %7821  ;;  %v14689_v1 = vpop.permute.xlu1 %7581 }
0x1509   : > { %7262 = vrot.lane.b32.xlu0 %v7189_v14, %s11379_s8  ;;  %v7429_v14 = vcombine.high %v14658_v33, %v14661_v52 }
0x150c   : > { %v14695_v36 = vpop.permute.xlu0 %7829  ;;  %v14697_v57 = vpop.permute.xlu1 %7589 }
0x150d   : > { %7270 = vrot.lane.b32.xlu0 %v7190_v47, %s11380_s13 }
0x1510   : > { %v14700_v26 = vpop.permute.xlu0 %7837  ;;  %v14702_v35 = vpop.permute.xlu1 %7597 }
0x1511   : > { %7278 = vrot.lane.b32.xlu0 %v7191_v43, %s11381_s1  ;;  %v7860_v43 = vcombine.low %v14318_v49, %v14330_v60  ;;  %v7669_v49 = vcombine.high %v14680_v21, %v14685_v4 }
0x1513   : > { %v7867_v60 = vrot.slane %v7860_v43, %v15643_v38 }
0x1515   : > { %v6130_v28 = vpop.permute.xlu0 %6129  ;;  %7502 = vrot.lane.b32.xlu0 %v7429_v14, %s11379_s8  ;;  %v7794_v47 = vpop.permute.xlu1 %7793 }
0x1516   : > { %v7852_v32 = vcombine.low %v7786_v37, %v7794_v47  ;;  %v6230_v47 = vcombine.low %v14395_v63, %v14406_v46  ;;  %v7667_v63 = vrot.slane %v7653_v24, %v15644_v0 }
0x1518   : > { %v7859_v14 = vrot.slane %v7852_v32, %v15643_v38  ;;  %v14735_v55 = vrot.slane %v6230_v47, %v15643_v38  ;;  %v7671_v24 = vcombine.high %v7651_v10, %v7667_v63 }
0x1519   : > { %v6140_v22 = vpop.permute.xlu0 %6139  ;;  %7510 = vrot.lane.b32.xlu0 %v7430_v7, %s11380_s13  ;;  %v7802_v6 = vpop.permute.xlu1 %7801 }
0x151a   : > { %v6238_v61 = vcombine.low %v6130_v28, %v6140_v22  ;;  %v6246_v28 = vcombine.low %v14412_v39, %v14418_v51  ;;  %v7876_v46 = vcombine.low %v7851_v29, %v7859_v14  ;;  %v7670_v22 = vcombine.low %v7651_v10, %v7667_v63 }
0x151c   : > { %v14729_v44 = vrot.slane %v6238_v61, %v15643_v38  ;;  %v6253_v39 = vrot.slane %v6246_v28, %v15643_v38  ;;  %v14745_v42 = vrot.slane %v7876_v46, %v15644_v0 }
0x151d   : > { %v6150_v52 = vpop.permute.xlu0 %6149  ;;  %7518 = vrot.lane.b32.xlu0 %v7431_v31, %s11381_s1  ;;  %v7810_v37 = vpop.permute.xlu1 %7809 }
0x151e   : > { %v7868_v7 = vcombine.low %v7802_v6, %v7810_v37  ;;  %v6262_v61 = vcombine.low %v14735_v55, %v14729_v44  ;;  %v15660_v37 = vld [vmem:[#allocation134_spill] sm:$0xff] }
0x1520   : > { %v7875_v27 = vrot.slane %v7868_v7, %v15643_v38  ;;  %v14751_v47 = vrot.slane %v6262_v61, %v15644_v0  ;;  %v15658_v61 = vld [vmem:[#allocation115_spill] sm:$0xff] }
0x1521   : > { %v6160_v3 = vpop.permute.xlu0 %6159  ;;  %7742 = vrot.lane.b32.xlu0 %v7669_v49, %s11379_s8  ;;  %v7877_v49 = vcombine.high %v7851_v29, %v7859_v14  ;;  %v6488_v14 = vcombine.low %v14409_v15, %v14416_v54 }
0x1522   : > { %v7892_v25 = vcombine.low %v7867_v60, %v7875_v27  ;;  %v6254_v9 = vcombine.low %v6150_v52, %v6160_v3  ;;  %v6378_v32 = vpop.permute.xlu1 %6377  ;;  %v7893_v43 = vcombine.high %v7867_v60, %v7875_v27  ;;  %v6472_v60 = vcombine.low %v14393_v45, %v14402_v13 }
0x1523   : > { %v7891_v29 = vrot.slane %v7877_v49, %v15644_v0  ;;  %v6495_v15 = vrot.slane %v6488_v14, %v15643_v38  ;;  %v6263_v14 = vcombine.high %v14735_v55, %v14729_v44 }
0x1524   : > { %v14741_v51 = vrot.slane %v7892_v25, %v15644_v0  ;;  %v6261_v6 = vrot.slane %v6254_v9, %v15643_v38  ;;  %v7907_v27 = vrot.slane %v7893_v43, %v15644_v0 }
0x1525   : > { %7750 = vrot.lane.b32.xlu0 %v7670_v22, %s11380_s13  ;;  %v15657_v22 = vld [vmem:[#allocation142_spill] sm:$0xff] }
0x1526   : > { %15656 = vst [vmem:[#allocation138_spill] sm:$0xff] %v14741_v51  ;;  %v6278_v23 = vcombine.low %v6253_v39, %v6261_v6  ;;  %v6618_v31 = vpop.permute.xlu0 %6617  ;;  %v6386_v52 = vpop.permute.xlu1 %6385  ;;  %v7909_v63 = vcombine.high %v14745_v42, %v14741_v51  ;;  %v6712_v45 = vcombine.low %v15658_v61, %v15657_v22  ;;  %v7911_v61 = vcombine.high %v7891_v29, %v7907_v27 }
0x1527   : > { %v6480_v28 = vcombine.low %v6378_v32, %v6386_v52  ;;  %v6479_v52 = vrot.slane %v6472_v60, %v15643_v38  ;;  %v6279_v60 = vcombine.high %v6253_v39, %v6261_v6 }
0x1528   : > { %v14754_v7 = vrot.slane %v6278_v23, %v15644_v0 }
0x1529   : > { %7758 = vrot.lane.b32.xlu0 %v7671_v24, %s11381_s1  ;;  %v6487_v9 = vrot.slane %v6480_v28, %v15643_v38  ;;  %v7910_v24 = vcombine.low %v7891_v29, %v7907_v27  ;;  %v14784_v28 = vrot.slane %v6712_v45, %v15643_v38  ;;  %v6293_v6 = vrot.slane %v6279_v60, %v15644_v0 }
0x152a   : > { %v6626_v46 = vpop.permute.xlu0 %6625  ;;  %v6394_v3 = vpop.permute.xlu1 %6393  ;;  %v6295_v25 = vcombine.high %v14751_v47, %v14754_v7 }
0x152b   : > { %v6720_v32 = vcombine.low %v6618_v31, %v6626_v46  ;;  %v6504_v54 = vcombine.low %v6479_v52, %v6487_v9 }
0x152c   : > { %6302 = vrot.lane.b32.xlu1 %v6295_v25, %s11379_s8  ;;  %v15659_v25 = vld [vmem:[#allocation136_spill] sm:$0xff] }
0x152d   : > { %7982 = vrot.lane.b32.xlu0 %v7909_v63, %s11379_s8  ;;  %v6728_v10 = vcombine.low %v15660_v37, %v15659_v25  ;;  %v14779_v49 = vrot.slane %v6720_v32, %v15643_v38  ;;  %v14792_v32 = vrot.slane %v6504_v54, %v15644_v0 }
0x152e   : > { %v6634_v13 = vpop.permute.xlu0 %6633  ;;  %v6402_v23 = vpop.permute.xlu1 %6401 }
0x152f   : > { %v6496_v43 = vcombine.low %v6394_v3, %v6402_v23  ;;  %v14787_v37 = vrot.slane %v6728_v10, %v15643_v38  ;;  %v6744_v23 = vcombine.low %v14784_v28, %v14779_v49 }
0x1531   : > { %v6503_v31 = vrot.slane %v6496_v43, %v15643_v38  ;;  %7990 = vrot.lane.b32.xlu0 %v7910_v24, %s11380_s13  ;;  %v6505_v24 = vcombine.high %v6479_v52, %v6487_v9  ;;  %v14809_v25 = vrot.slane %v6744_v23, %v15644_v0  ;;  %v15662_v52 = vld [vmem:[#allocation116_spill] sm:$0xff] }
0x1532   : > { %v6642_v46 = vpop.permute.xlu0 %6641 }
0x1533   : > { %v6520_v3 = vcombine.low %v6495_v15, %v6503_v31  ;;  %v6736_v63 = vcombine.low %v6634_v13, %v6642_v46  ;;  %v6858_v22 = vpop.permute.xlu1 %6857  ;;  %v6521_v10 = vcombine.high %v6495_v15, %v6503_v31  ;;  %v6277_v13 = vrot.slane %v6263_v14, %v15644_v0  ;;  %v15661_v15 = vld [vmem:[#allocation112_spill] sm:$0xff] }
0x1534   : > { %v6519_v23 = vrot.slane %v6505_v24, %v15644_v0 }
0x1535   : > { %v14797_v45 = vrot.slane %v6520_v3, %v15644_v0  ;;  %v6743_v39 = vrot.slane %v6736_v63, %v15643_v38  ;;  %7998 = vrot.lane.b32.xlu0 %v7911_v61, %s11381_s1  ;;  %v6535_v31 = vrot.slane %v6521_v10, %v15644_v0  ;;  %v6296_v3 = vcombine.low %v6277_v13, %v6293_v6  ;;  %v15663_v61 = vld [vmem:[#allocation114_spill] sm:$0xff] }
0x1536   : > { %v6952_v14 = vcombine.low %v15663_v61, %v15662_v52  ;;  %v7192_v52 = vcombine.low %v14587_v53, %v14603_v8 }
0x1537   : > { %v6760_v27 = vcombine.low %v14787_v37, %v6743_v39  ;;  %v7098_v29 = vpop.permute.xlu0 %7097  ;;  %v6866_v44 = vpop.permute.xlu1 %6865  ;;  %v6537_v55 = vcombine.high %v14792_v32, %v14797_v45 }
0x1538   : > { %v6960_v46 = vcombine.low %v6858_v22, %v6866_v44  ;;  %v6538_v44 = vcombine.low %v6519_v23, %v6535_v31  ;;  %v14830_v63 = vrot.slane %v6952_v14, %v15643_v38  ;;  %v14845_v53 = vrot.slane %v7192_v52, %v15643_v38 }
0x1539   : > { %v14812_v54 = vrot.slane %v6760_v27, %v15644_v0  ;;  %8010 = vrot.lane.b32.xlu0 %v15661_v15, %s11368_s5  ;;  %6544 = vrot.lane.b32.xlu1 %v6537_v55, %s11379_s8  ;;  %v15664_v27 = vld [vmem:[#allocation135_spill] sm:$0xff]  ;;  %v15665_v15 = vld [vmem:[#allocation117_spill] sm:$0xff] }
0x153a   : > { %v6968_v43 = vcombine.low %v15665_v15, %v15664_v27  ;;  %v14827_v55 = vrot.slane %v6960_v46, %v15643_v38  ;;  %v6297_v27 = vcombine.high %v6277_v13, %v6293_v6 }
0x153b   : > { %v7106_v60 = vpop.permute.xlu0 %7105  ;;  %v6874_v9 = vpop.permute.xlu1 %6873 }
0x153c   : > { %v7200_v22 = vcombine.low %v7098_v29, %v7106_v60  ;;  %v6975_v24 = vrot.slane %v6968_v43, %v15643_v38  ;;  %v6984_v29 = vcombine.low %v14830_v63, %v14827_v55 }
0x153d   : > { %6310 = vrot.lane.b32.xlu1 %v6296_v3, %s11380_s13  ;;  %v7208_v3 = vcombine.low %v14611_v34, %v14620_v48  ;;  %v6761_v48 = vcombine.high %v14787_v37, %v6743_v39  ;;  %v6745_v37 = vcombine.high %v14784_v28, %v14779_v49 }
0x153e   : > { %v14841_v46 = vrot.slane %v7200_v22, %v15643_v38  ;;  %v6539_v22 = vcombine.high %v6519_v23, %v6535_v31  ;;  %v6777_v23 = vcombine.high %v14809_v25, %v14812_v54 }
0x153f   : > { %v7114_v10 = vpop.permute.xlu0 %7113  ;;  %v6882_v51 = vpop.permute.xlu1 %6881  ;;  %v14849_v34 = vrot.slane %v7208_v3, %v15643_v38  ;;  %v6775_v3 = vrot.slane %v6761_v48, %v15644_v0  ;;  %v6759_v49 = vrot.slane %v6745_v37, %v15644_v0  ;;  %v7448_v48 = vcombine.low %v14609_v20, %v14618_v56 }
0x1540   : > { %v6976_v61 = vcombine.low %v6874_v9, %v6882_v51  ;;  %v14856_v9 = vrot.slane %v6984_v29, %v15644_v0  ;;  %v7224_v6 = vcombine.low %v14845_v53, %v14841_v46 }
0x1541   : > { %6552 = vrot.lane.b32.xlu1 %v6538_v44, %s11380_s13  ;;  %v6779_v20 = vcombine.high %v6759_v49, %v6775_v3  ;;  %v14899_v56 = vrot.slane %v7448_v48, %v15643_v38 }
0x1542   : > { %v6983_v60 = vrot.slane %v6976_v61, %v15643_v38  ;;  %v14875_v31 = vrot.slane %v7224_v6, %v15644_v0 }
0x1543   : > { %v7122_v14 = vpop.permute.xlu0 %7121 }
0x1544   : > { %v7216_v15 = vcombine.low %v7114_v10, %v7122_v14  ;;  %v7000_v8 = vcombine.low %v6975_v24, %v6983_v60  ;;  %v7338_v51 = vpop.permute.xlu1 %7337 }
0x1545   : > { %6318 = vrot.lane.b32.xlu1 %v6297_v27, %s11381_s1 }
0x1546   : > { %v14853_v43 = vrot.slane %v7216_v15, %v15643_v38  ;;  %v14861_v13 = vrot.slane %v7000_v8, %v15644_v0  ;;  %v7432_v15 = vcombine.low %v14585_v58, %v14601_v30  ;;  %v6778_v8 = vcombine.low %v6759_v49, %v6775_v3 }
0x1547   : > { %v7688_v58 = vcombine.low %v14697_v57, %v14702_v35  ;;  %v7001_v30 = vcombine.high %v6975_v24, %v6983_v60 }
0x1548   : > { %v7240_v10 = vcombine.low %v14849_v34, %v14853_v43  ;;  %v7578_v44 = vpop.permute.xlu0 %7577  ;;  %v7346_v39 = vpop.permute.xlu1 %7345  ;;  %v7016_v52 = vcombine.low %v14856_v9, %v14861_v13  ;;  %v14892_v37 = vrot.slane %v7432_v15, %v15643_v38 }
0x1549   : > { %6560 = vrot.lane.b32.xlu1 %v6539_v22, %s11381_s1  ;;  %v7440_v29 = vcombine.low %v7338_v51, %v7346_v39  ;;  %v7672_v39 = vcombine.low %v14671_v59, %v14689_v1  ;;  %v6985_v59 = vcombine.high %v14830_v63, %v14827_v55  ;;  %v14918_v60 = vrot.slane %v7688_v58, %v15643_v38 }
0x154a   : > { %v14871_v61 = vrot.slane %v7240_v10, %v15644_v0  ;;  %v7015_v3 = vrot.slane %v7001_v30, %v15644_v0  ;;  %v7017_v63 = vcombine.high %v14856_v9, %v14861_v13 }
0x154b   : > { %v14888_v6 = vrot.slane %v7440_v29, %v15643_v38  ;;  %v14913_v57 = vrot.slane %v7672_v39, %v15643_v38 }
0x154c   : > { %v7586_v14 = vpop.permute.xlu0 %7585  ;;  %v7354_v28 = vpop.permute.xlu1 %7353  ;;  %v7256_v27 = vcombine.low %v14875_v31, %v14871_v61 }
0x154d   : > { %6784 = vrot.lane.b32.xlu1 %v6777_v23, %s11379_s8  ;;  %v7680_v51 = vcombine.low %v7578_v44, %v7586_v14  ;;  %v7464_v44 = vcombine.low %v14892_v37, %v14888_v6 }
0x154f   : > { %v14904_v29 = vrot.slane %v7680_v51, %v15643_v38  ;;  %v14927_v55 = vrot.slane %v7464_v44, %v15644_v0  ;;  %v6999_v51 = vrot.slane %v6985_v59, %v15644_v0 }
0x1550   : > { %v7594_v22 = vpop.permute.xlu0 %7593  ;;  %v7362_v10 = vpop.permute.xlu1 %7361 }
0x1551   : > { %6792 = vrot.lane.b32.xlu1 %v6778_v8, %s11380_s13  ;;  %v7456_v23 = vcombine.low %v7354_v28, %v7362_v10  ;;  %v7704_v28 = vcombine.low %v14913_v57, %v14904_v29  ;;  %v15666_v10 = vcombine.low %v14368_v2, %v14365_v40  ;;  %v15667_v40 = vcombine.low %v14463_v50, %v14466_v12 }
0x1552   : > { %v7225_v12 = vcombine.high %v14845_v53, %v14841_v46 }
0x1553   : > { %v14907_v14 = vrot.slane %v7456_v23, %v15643_v38  ;;  %v14948_v44 = vrot.slane %v7704_v28, %v15644_v0  ;;  %v7241_v28 = vcombine.high %v14849_v34, %v14853_v43 }
0x1554   : > { %v7602_v15 = vpop.permute.xlu0 %7601  ;;  %v7239_v53 = vrot.slane %v7225_v12, %v15644_v0 }
0x1555   : > { %v7696_v1 = vcombine.low %v7594_v22, %v7602_v15  ;;  %6800 = vrot.lane.b32.xlu1 %v6779_v20, %s11381_s1  ;;  %v7480_v35 = vcombine.low %v14899_v56, %v14907_v14  ;;  %v7818_v24 = vpop.permute.xlu1 %7817  ;;  %v7018_v20 = vcombine.low %v6999_v51, %v7015_v3 }
0x1557   : > { %v14922_v49 = vrot.slane %v7696_v1, %v15643_v38  ;;  %v14932_v8 = vrot.slane %v7480_v35, %v15644_v0 }
0x1558   : > { %v6301_v48 = vpop.permute.xlu0 %6300 }
0x1559   : > { %v7720_v22 = vcombine.low %v14918_v60, %v14922_v49  ;;  %v6322_v39 = vsel %vm1752_vm4, %v15666_v10, %v6301_v48  ;;  %7024 = vrot.lane.b32.xlu1 %v7017_v63, %s11379_s8  ;;  %v7826_v23 = vpop.permute.xlu1 %7825  ;;  %v7496_v58 = vcombine.low %v14927_v55, %v14932_v8  ;;  %v7912_v63 = vcombine.low %v14669_v19, %v14687_v11 }
0x155a   : > { %v7920_v59 = vcombine.low %v7818_v24, %v7826_v23  ;;  %v7019_v48 = vcombine.high %v6999_v51, %v7015_v3  ;;  %v7928_v24 = vcombine.low %v14695_v36, %v14700_v26  ;;  %v7255_v11 = vrot.slane %v7241_v28, %v15644_v0 }
0x155b   : > { %v14945_v30 = vrot.slane %v7720_v22, %v15644_v0  ;;  %v14971_v19 = vrot.slane %v7912_v63, %v15643_v38  ;;  %v7257_v36 = vcombine.high %v14875_v31, %v14871_v61 }
0x155c   : > { %v6543_v15 = vpop.permute.xlu0 %6542  ;;  %v14966_v22 = vrot.slane %v7920_v59, %v15643_v38  ;;  %v14977_v26 = vrot.slane %v7928_v24, %v15643_v38 }
0x155d   : > { %v6564_v2 = vsel %vm1752_vm4, %v15667_v40, %v6543_v15  ;;  %7032 = vrot.lane.b32.xlu1 %v7018_v20, %s11380_s13  ;;  %v7834_v1 = vpop.permute.xlu1 %7833  ;;  %v7736_v35 = vcombine.low %v14948_v44, %v14945_v30  ;;  %v7258_v20 = vcombine.low %v7239_v53, %v7255_v11 }
0x155e   : > { %v7944_v43 = vcombine.low %v14971_v19, %v14966_v22 }
0x1560   : > { %v6309_v50 = vpop.permute.xlu0 %6308  ;;  %v14987_v59 = vrot.slane %v7944_v43, %v15644_v0 }
0x1561   : > { %v6325_v10 = vsel %vm6324_vm8, %v6322_v39, %v6309_v50  ;;  %7040 = vrot.lane.b32.xlu1 %v7019_v48, %s11381_s1  ;;  %v7842_v23 = vpop.permute.xlu1 %7841  ;;  %v7465_v48 = vcombine.high %v14892_v37, %v14888_v6  ;;  %v15668_v50 = vld [vmem:[#allocation118_spill] sm:$0xff] }
0x1562   : > { %v7936_v34 = vcombine.low %v7834_v1, %v7842_v23 }
0x1564   : > { %v6551_v46 = vpop.permute.xlu0 %6550  ;;  %v7943_v3 = vrot.slane %v7936_v34, %v15643_v38  ;;  %v7481_v38 = vcombine.high %v14899_v56, %v14907_v14  ;;  %v7497_v56 = vcombine.high %v14927_v55, %v14932_v8 }
0x1565   : > { %v6566_v51 = vsel %vm6324_vm8, %v6564_v2, %v6551_v46  ;;  %7264 = vrot.lane.b32.xlu1 %v7257_v36, %s11379_s8  ;;  %v7259_v2 = vcombine.high %v7239_v53, %v7255_v11  ;;  %v7479_v36 = vrot.slane %v7465_v48, %v15644_v0  ;;  %v7721_v46 = vcombine.high %v14918_v60, %v14922_v49 }
0x1566   : > { %v7960_v39 = vcombine.low %v14977_v26, %v7943_v3  ;;  %v7495_v34 = vrot.slane %v7481_v38, %v15644_v0  ;;  %v15670_v53 = vcombine.low %v14487_v5, %v14490_v18  ;;  %v15671_v38 = vld [vmem:[#allocation120_spill] sm:$0xff]  ;;  %v7737_v5 = vcombine.high %v14948_v44, %v14945_v30 }
0x1567   : > { %v7735_v60 = vrot.slane %v7721_v46, %v15644_v0  ;;  %v15675_v46 = vcombine.low %v14595_v16, %v14599_v62  ;;  %v15678_v16 = vld [vmem:[#allocation137_spill] sm:$0xff] }
0x1568   : > { %v6317_v15 = vpop.permute.xlu0 %6316  ;;  %v14990_v40 = vrot.slane %v7960_v39, %v15644_v0  ;;  %v7498_v6 = vcombine.low %v7479_v36, %v7495_v34  ;;  %v15679_v62 = vcombine.low %v14658_v33, %v15678_v16  ;;  %v15682_v33 = vcombine.low %v14680_v21, %v14685_v4 }
0x1569   : > { %v6328_v1 = vsel %vm6327_vm9, %v6325_v10, %v6317_v15  ;;  %7272 = vrot.lane.b32.xlu1 %v7258_v20, %s11380_s13  ;;  %v15669_v10 = vld [vmem:[#allocation119_spill] sm:$0xff]  ;;  %v7705_v15 = vcombine.high %v14913_v57, %v14904_v29  ;;  %v7961_v29 = vcombine.high %v14977_v26, %v7943_v3  ;;  %v15672_v57 = vcombine.low %v14570_v41, %v14573_v17 }
0x156a   : > { %v7976_v63 = vcombine.low %v14987_v59, %v14990_v40  ;;  %v6336_v12 = vmul.f32 %v15668_v50, %v6328_v1  ;;  %v15674_v3 = vmov 0.0   ;;  %v7977_v17 = vcombine.high %v14987_v59, %v14990_v40  ;;  %v15696_v40 = vld [vmem:[#allocation110_spill] sm:$0xff] }
0x156b   : > { %v7975_v41 = vrot.slane %v7961_v29, %v15644_v0 }
0x156c   : > { %v6559_v28 = vpop.permute.xlu0 %6558 }
0x156d   : > { %v6568_v24 = vsel %vm6327_vm9, %v6566_v51, %v6559_v28  ;;  %7280 = vrot.lane.b32.xlu1 %v7259_v2, %s11381_s1  ;;  %v7499_v51 = vcombine.high %v7479_v36, %v7495_v34  ;;  %v7719_v28 = vrot.slane %v7705_v15, %v15644_v0 }
0x156e   : > { %v6576_v23 = vmul.f32 %v15669_v10, %v6568_v24  ;;  %v10326_v10 = vld [vmem:[#allocation32] sm:$0xff]  }
0x156f   : > { %v7738_v48 = vcombine.low %v7719_v28, %v7735_v60  ;;  %9753 = vmatpush3.bf16.msra.mxu1 %v10326_v10 }
0x1570   : > { %v6578_v14 = vadd.f32 %v6576_v23, %v6336_v12  ;;  %v6783_v11 = vpop.permute.xlu0 %6782  ;;  %v7739_v12 = vcombine.high %v7719_v28, %v7735_v60  ;;  %9764 = vmatprep.subr.bf16.mxu1 %v15674_v3 }
0x1571   : > { %7504 = vrot.lane.b32.xlu1 %v7497_v56, %s11379_s8  ;;  %v6804_v43 = vsel %vm1752_vm4, %v15670_v53, %v6783_v11  ;;  %v7945_v56 = vcombine.high %v14971_v19, %v14966_v22  ;;  %v15673_v11 = vld [vmem:[#allocation121_spill] sm:$0xff] }
0x1574   : > { %v6791_v37 = vpop.permute.xlu0 %6790 }
0x1575   : > { %7512 = vrot.lane.b32.xlu1 %v7498_v6, %s11380_s13  ;;  %v6806_v39 = vsel %vm6324_vm8, %v6804_v43, %v6791_v37  ;;  %v7959_v37 = vrot.slane %v7945_v56, %v15644_v0  ;;  %v15676_v0 = vld [vmem:[#allocation123_spill] sm:$0xff] }
0x1577   : > { %v7978_v22 = vcombine.low %v7959_v37, %v7975_v41  ;;  %v7979_v43 = vcombine.high %v7959_v37, %v7975_v41 }
0x1578   : > { %v6799_v20 = vpop.permute.xlu0 %6798 }
0x1579   : > { %v6808_v1 = vsel %vm6327_vm9, %v6806_v39, %v6799_v20  ;;  %7520 = vrot.lane.b32.xlu1 %v7499_v51, %s11381_s1 }
0x157a   : > { %v6816_v2 = vmul.f32 %v15671_v38, %v6808_v1 }
0x157c   : > { %v6818_v18 = vadd.f32 %v6816_v2, %v6578_v14  ;;  %v7023_v49 = vpop.permute.xlu0 %7022  ;;  %v15677_v2 = vld [vmem:[#allocation113_spill] sm:$0xff] }
0x157d   : > { %7744 = vrot.lane.b32.xlu1 %v7737_v5, %s11379_s8  ;;  %v7044_v50 = vsel %vm1752_vm4, %v15672_v57, %v7023_v49  ;;  %v15681_v57 = vcombine.low %v14751_v47, %v14754_v7  ;;  %v15684_v47 = vcombine.low %v14792_v32, %v14797_v45 }
0x1580   : > { %v7031_v24 = vpop.permute.xlu0 %7030 }
0x1581   : > { %7752 = vrot.lane.b32.xlu1 %v7738_v48, %s11380_s13  ;;  %v7046_v23 = vsel %vm6324_vm8, %v7044_v50, %v7031_v24  ;;  %v15680_v48 = vld [vmem:[#allocation125_spill] sm:$0xff] }
0x1584   : > { %v7039_v34 = vpop.permute.xlu0 %7038 }
0x1585   : > { %v7048_v14 = vsel %vm6327_vm9, %v7046_v23, %v7039_v34  ;;  %7760 = vrot.lane.b32.xlu1 %v7739_v12, %s11381_s1 }
0x1586   : > { %v7056_v26 = vmul.f32 %v15673_v11, %v7048_v14 }
0x1588   : > { %v7058_v36 = vadd.f32 %v7056_v26, %v6818_v18  ;;  %v7263_v6 = vpop.permute.xlu0 %7262  ;;  %v15683_v26 = vld [vmem:[#allocation127_spill] sm:$0xff] }
0x1589   : > { %7984 = vrot.lane.b32.xlu1 %v7977_v17, %s11379_s8  ;;  %v7284_v53 = vsel %vm1752_vm4, %v15675_v46, %v7263_v6  ;;  %s11189_s8 = scalar_lea.vmem %s11188_s26, 512 }
0x158a   : > { %p11191_p8 = scmp.lt.s32.totalorder %s11189_s8, %s11183_s12 }
0x158c   : > { %v7271_v19 = vpop.permute.xlu0 %7270  ;;  %p11192_p9 = por %p11191_p8, %p11190_p7 }
0x158d   : > { %7992 = vrot.lane.b32.xlu1 %v7978_v22, %s11380_s13  ;;  %v7286_v51 = vsel %vm6324_vm8, %v7284_v53, %v7271_v19  ;;  %v15685_v53 = vld [vmem:[#allocation138_spill] sm:$0xff] }
0x158e   : > { %p11193_p10 = pnand %p11192_p9, %p11186_p0 }
0x1590   : > { %v7279_v39 = vpop.permute.xlu0 %7278 }
0x1591   : > { %v7288_v20 = vsel %vm6327_vm9, %v7286_v51, %v7279_v39  ;;  %8000 = vrot.lane.b32.xlu1 %v7979_v43, %s11381_s1  ;;  %v15686_v43 = vcombine.low %v14745_v42, %v15685_v53 }
0x1592   : > { %v7296_v15 = vmul.f32 %v15676_v0, %v7288_v20 }
0x1594   : > { %v7298_v1 = vadd.f32 %v7296_v15, %v7058_v36  ;;  %v7503_v38 = vpop.permute.xlu0 %7502 }
0x1595   : > { %8012 = vrot.lane.b32.xlu1 %v15677_v2, %s11368_s5  ;;  %v7524_v5 = vsel %vm1752_vm4, %v15679_v62, %v7503_v38  ;;  %v15688_v62 = vld [vmem:[#allocation124_spill] sm:$0xff]  ;;  %s15742_s5 = sld [smem:[#allocation159_spill]] }
0x1598   : > { %v7511_v60 = vpop.permute.xlu0 %7510 }
0x1599   : > { %v7526_v18 = vsel %vm6324_vm8, %v7524_v5, %v7511_v60  ;;  %v15687_v60 = vld [vmem:[#allocation122_spill] sm:$0xff] }
0x159b   : > { %s15284_s28 = scalar_lea.hbm %s15742_s5, %s9405_s11 }
0x159c   : > { %v7519_v49 = vpop.permute.xlu0 %7518 }
0x159d   : > { %v7528_v28 = vsel %vm6327_vm9, %v7526_v18, %v7519_v49 }
0x159e   : > { %v7536_v24 = vmul.f32 %v15680_v48, %v7528_v28  ;;  %v6303_v29 = vpop.permute.xlu1 %6302  ;;  %v15689_v28 = vcombine.low %v14809_v25, %v14812_v54 }
0x159f   : > { %v6323_v50 = vsel %vm1752_vm4, %v15681_v57, %v6303_v29 }
0x15a0   : > { %v7538_v12 = vadd.f32 %v7536_v24, %v7298_v1  ;;  %v7743_v10 = vpop.permute.xlu0 %7742 }
0x15a1   : > { %v7764_v34 = vsel %vm1752_vm4, %v15682_v33, %v7743_v10 }
0x15a4   : > { %v7751_v23 = vpop.permute.xlu0 %7750 }
0x15a5   : > { %v7766_v56 = vsel %vm6324_vm8, %v7764_v34, %v7751_v23 }
0x15a8   : > { %v7759_v14 = vpop.permute.xlu0 %7758 }
0x15a9   : > { %v7768_v11 = vsel %vm6327_vm9, %v7766_v56, %v7759_v14  ;;  %v15691_v14 = vld [vmem:[#allocation128_spill] sm:$0xff] }
0x15aa   : > { %v7776_v41 = vmul.f32 %v15683_v26, %v7768_v11 }
0x15ab   : > { %v6545_v17 = vpop.permute.xlu1 %6544 }
0x15ac   : > { %v6565_v7 = vsel %vm1752_vm4, %v15684_v47, %v6545_v17  ;;  %v7983_v36 = vpop.permute.xlu0 %7982  ;;  %v7778_v6 = vadd.f32 %v7776_v41, %v7538_v12 }
0x15ad   : > { %v8004_v51 = vsel %vm1752_vm4, %v15686_v43, %v7983_v36 }
0x15af   : > { %v6311_v37 = vpop.permute.xlu1 %6310 }
0x15b0   : > { %v6326_v21 = vsel %vm6324_vm8, %v6323_v50, %v6311_v37  ;;  %v7991_v4 = vpop.permute.xlu0 %7990  ;;  %v15690_v50 = vld [vmem:[#allocation126_spill] sm:$0xff] }
0x15b1   : > { %v8006_v39 = vsel %vm6324_vm8, %v8004_v51, %v7991_v4 }
0x15b3   : > { %v6553_v22 = vpop.permute.xlu1 %6552 }
0x15b4   : > { %v6567_v19 = vsel %vm6324_vm8, %v6565_v7, %v6553_v22  ;;  %v7999_v46 = vpop.permute.xlu0 %7998 }
0x15b5   : > { %v8008_v0 = vsel %vm6327_vm9, %v8006_v39, %v7999_v46 }
0x15b7   : > { %v6319_v32 = vpop.permute.xlu1 %6318 }
0x15b8   : > { %v6329_v45 = vsel %vm6327_vm9, %v6326_v21, %v6319_v32  ;;  %v8011_v20 = vpop.permute.xlu0 %8010 }
0x15b9   : > { %v8016_v15 = vmul.f32 %v8011_v20, %v8008_v0  ;;  %v6337_v16 = vmul.f32 %v15687_v60, %v6329_v45 }
0x15bb   : > { %v8018_v1 = vadd.f32 %v8016_v15, %v7778_v6  ;;  %v6561_v38 = vpop.permute.xlu1 %6560 }
0x15bc   : > { %v6569_v2 = vsel %vm6327_vm9, %v6567_v19, %v6561_v38 }
0x15bd   : > { %v6577_v5 = vmul.f32 %v15688_v62, %v6569_v2 }
0x15bf   : > { %v6579_v42 = vadd.f32 %v6577_v5, %v6337_v16  ;;  %v6785_v18 = vpop.permute.xlu1 %6784  ;;  %v15695_v5 = vld [vmem:[#allocation109_spill] sm:$0xff] }
0x15c0   : > { %v6805_v48 = vsel %vm1752_vm4, %v15689_v28, %v6785_v18 }
0x15c3   : > { %v6793_v49 = vpop.permute.xlu1 %6792 }
0x15c4   : > { %v6807_v24 = vsel %vm6324_vm8, %v6805_v48, %v6793_v49 }
0x15c7   : > { %v6801_v29 = vpop.permute.xlu1 %6800 }
0x15c8   : > { %v6809_v57 = vsel %vm6327_vm9, %v6807_v24, %v6801_v29  ;;  %v15698_v24 = vld [vmem:[#allocation103_spill] sm:$0xff]  ;;  %v15699_v29 = vld [vmem:[#allocation105_spill] sm:$0xff] }
0x15c9   : > { %v6817_v12 = vmul.f32 %v15690_v50, %v6809_v57  ;;  %v15700_v57 = vld [vmem:[#allocation107_spill] sm:$0xff]  ;;  %v15701_v50 = vld [vmem:[#allocation108_spill] sm:$0xff] }
0x15cb   : > { %v6819_v10 = vadd.f32 %v6817_v12, %v6579_v42  ;;  %v7025_v23 = vpop.permute.xlu1 %7024  ;;  %v15702_v12 = vmov 2  }
0x15cc   : > { %v7045_v34 = vsel %vm1752_vm4, %v7016_v52, %v7025_v23  ;;  %v15692_v52 = vld [vmem:[#allocation129_spill] sm:$0xff] }
0x15cf   : > { %v7033_v33 = vpop.permute.xlu1 %7032 }
0x15d0   : > { %v7047_v56 = vsel %vm6324_vm8, %v7045_v34, %v7033_v33 }
0x15d3   : > { %v7041_v25 = vpop.permute.xlu1 %7040 }
0x15d4   : > { %v7049_v54 = vsel %vm6327_vm9, %v7047_v56, %v7041_v25 }
0x15d5   : > { %v7057_v11 = vmul.f32 %v15691_v14, %v7049_v54 }
0x15d7   : > { %v7059_v26 = vadd.f32 %v7057_v11, %v6819_v10  ;;  %v7265_v41 = vpop.permute.xlu1 %7264 }
0x15d8   : > { %v7285_v47 = vsel %vm1752_vm4, %v7256_v27, %v7265_v41  ;;  %v15693_v27 = vld [vmem:[#allocation131_spill] sm:$0xff]  ;;  %v15703_v41 = vld [vmem:[#allocation106_spill] sm:$0xff] }
0x15db   : > { %v7273_v17 = vpop.permute.xlu1 %7272 }
0x15dc   : > { %v7287_v7 = vsel %vm6324_vm8, %v7285_v47, %v7273_v17  ;;  %v10327_v17 = vld [vmem:[#allocation35] sm:$0xff]  }
0x15dd   : > { %9759 = vmatpush3.bf16.msra.mxu0 %v10327_v17 }
0x15de   : > { %9770 = vmatprep.subr.bf16.mxu0 %v15674_v3 }
0x15df   : > { %v7281_v9 = vpop.permute.xlu1 %7280 }
0x15e0   : > { %v7289_v13 = vsel %vm6327_vm9, %v7287_v7, %v7281_v9 }
0x15e1   : > { %v7297_v36 = vmul.f32 %v15692_v52, %v7289_v13 }
0x15e3   : > { %v7299_v6 = vadd.f32 %v7297_v36, %v7059_v26  ;;  %v7505_v37 = vpop.permute.xlu1 %7504 }
0x15e4   : > { %v7525_v4 = vsel %vm1752_vm4, %v7496_v58, %v7505_v37  ;;  %v15694_v58 = vld [vmem:[#allocation133_spill] sm:$0xff] }
0x15e7   : > { %v7513_v21 = vpop.permute.xlu1 %7512 }
0x15e8   : > { %v7527_v22 = vsel %vm6324_vm8, %v7525_v4, %v7513_v21  ;;  %v15704_v4 = vld [vmem:[#allocation90_spill] sm:$0xff] }
0x15eb   : > { %v7521_v61 = vpop.permute.xlu1 %7520 }
0x15ec   : > { %v7529_v31 = vsel %vm6327_vm9, %v7527_v22, %v7521_v61 }
0x15ed   : > { %v7537_v19 = vmul.f32 %v15693_v27, %v7529_v31 }
0x15ef   : > { %v7539_v46 = vadd.f32 %v7537_v19, %v7299_v6  ;;  %v7745_v53 = vpop.permute.xlu1 %7744  ;;  %v8100_v6 = vld [vmem:[#allocation34] sm:$0x1] }
0x15f0   : > { %v7765_v51 = vsel %vm1752_vm4, %v7736_v35, %v7745_v53  ;;  %v8101_v37 = vunpack.c.l.bf16 %v8100_v6  ;;  %v8188_v6 = vld [vmem:[#allocation37 + $0x8] sm:$0x1] }
0x15f2   : > { %v8105_v22 = vrot.slane %v8101_v37, %v15704_v4 }
0x15f3   : > { %v7753_v43 = vpop.permute.xlu1 %7752 }
0x15f4   : > { %v7767_v39 = vsel %vm6324_vm8, %v7765_v51, %v7753_v43 }
0x15f7   : > { %v7761_v55 = vpop.permute.xlu1 %7760 }
0x15f8   : > { %v7769_v8 = vsel %vm6327_vm9, %v7767_v39, %v7761_v55  ;;  %v10328_v55 = vld [vmem:[#allocation38] sm:$0xff]  }
0x15f9   : > { %v7777_v32 = vmul.f32 %v15694_v58, %v7769_v8  ;;  %v10329_v58 = vld [vmem:[#allocation38 + $0x8] sm:$0xff]  }
0x15fb   : > { %v7985_v45 = vpop.permute.xlu1 %7984  ;;  %v7779_v20 = vadd.f32 %v7777_v32, %v7539_v46  ;;  %v15705_v46 = vld [vmem:[#allocation91_spill] sm:$0xff]  ;;  %v15706_v32 = vld [vmem:[#allocation100_spill] sm:$0xff] }
0x15fc   : > { %v8005_v38 = vsel %vm1752_vm4, %v7976_v63, %v7985_v45  ;;  %v8111_v53 = vrot.slane %v8101_v37, %v15705_v46  ;;  %v15707_v45 = vld [vmem:[#allocation101_spill] sm:$0xff]  ;;  %v8189_v37 = vunpack.c.l.bf16 %v8188_v6 }
0x15ff   : > { %v7993_v0 = vpop.permute.xlu1 %7992 }
0x1600   : > { %v8007_v30 = vsel %vm6324_vm8, %v8005_v38, %v7993_v0  ;;  %v10330_v0 = vld [vmem:[#allocation37] sm:$0xff]  }
0x1603   : > { %v8001_v15 = vpop.permute.xlu1 %8000 }
0x1604   : > { %v8009_v44 = vsel %vm6327_vm9, %v8007_v30, %v8001_v15  ;;  %v8117_v15 = vld [vmem:[#allocation35 + $0x8] sm:$0x1]  ;;  %vm15719_vm9 = vcmask 23568  }
0x1605   : > { %v8118_v38 = vunpack.c.l.bf16 %v8117_v15 }
0x1607   : > { %v8013_v35 = vpop.permute.xlu1 %8012  ;;  %v8122_v30 = vrot.slane %v8118_v38, %v15704_v4 }
0x1608   : > { %v8017_v2 = vmul.f32 %v8013_v35, %v8009_v44 }
0x160a   : > { %v8019_v60 = vadd.f32 %v8017_v2, %v7779_v20  ;;  %v15708_v20 = vld [vmem:[#allocation102_spill] sm:$0xff] }
0x160c   : > { %v8022_v16 = vpack.c.bf16 %v8019_v60, %v8018_v1  ;;  %v15697_v1 = vld [vmem:[#allocation104_spill] sm:$0xff] }
0x160e   : > { %9755 = vmatmul.mubr.msk.bf16.vlgmr.msra.gmra.mrb[80].mxu1 %vm1866_vm6, %v8022_v16 }
0x160f   : > { %9766 = vmatprep.mubr.msk.bf16.mxu1 %vm11355_vm0, %v15674_v3  ;;  %9765 = vmatpush3.bf16.msra.mxu1 %v10330_v0 }
0x1610   : > { %9786 = vmatprep.subr.bf16.mxu1 %v15674_v3 }
0x16e1   : > { %v8066_v62 = vpop.f32.mrb[80].mxu1 }
0x16e2   : > { %v8067_v42 = vadd.f32 %v8066_v62, %v15695_v5  ;;  %v9756_v18 = vpop.f32.mrb[81].mxu1 }
0x16e3   : > { %v8069_v59 = vpop.f32.mrb[82].mxu1 }
0x16e4   : > { %v8070_v63 = vadd.f32 %v8069_v59, %v15696_v40  ;;  %v9757_v49 = vpop.f32.mrb[83].mxu1  ;;  %v8073_v28 = vsel %vm1866_vm6, %v8067_v42, 0.0  ;;  %v10331_v40 = vld [vmem:[#allocation38 + $0x10] ss:$0 sps:$4 sm:$0x77]  }
0x16e5   : > { %8074 = vadd.xlane.f32.xlu0 %v8073_v28 }
0x16e6   : > { %v8076_v48 = vsel %vm1866_vm6, %v8070_v63, 0.0 }
0x16e7   : > { %8077 = vadd.xlane.f32.xlu1 %v8076_v48 }
0x16f8   : > { %8344 = vperm.xlu1 %10281, %v15697_v1   ;;  %v8395_v1 = vshll.u32 %v10331_v40, 16 }
0x16fc   : > { %8354 = vperm.xlu1 %10281, %v15698_v24   ;;  %v8393_v24 = vshrl.u32 %v10331_v40, 16 }
0x1700   : > { %8359 = vperm.xlu1 %10281, %v15699_v29   ;;  %v8397_v29 = vrot.slane %v8395_v1, 1 }
0x1704   : > { %8364 = vperm.xlu1 %10281, %v15700_v57  }
0x1708   : > { %8369 = vperm.xlu1 %10281, %v15701_v50  }
0x170c   : > { %10284 = vset.pattern.permute.xlu1 %v15702_v12 }
0x1772   : > { %v8075_v10 = vpop.xlane.xlu0 %8074 }
0x1773   : > { %v8080_v23 = vmul.f32 0.0625, %v8075_v10 }
0x1774   : > { %v8078_v33 = vpop.xlane.xlu1 %8077 }
0x1775   : > { %v8082_v34 = vsub.f32 %v8067_v42, %v8080_v23  ;;  %v8081_v56 = vmul.f32 0.0625, %v8078_v33 }
0x1777   : > { %v8083_v25 = vsub.f32 %v8070_v63, %v8081_v56  ;;  %v8084_v54 = vmul.f32 %v8082_v34, %v8082_v34  ;;  %v8398_v56 = vor.u32 %v8397_v29, %v8393_v24 }
0x1779   : > { %v8086_v14 = vsel %vm1866_vm6, %v8084_v54, 0.0  ;;  %v8085_v11 = vmul.f32 %v8083_v25, %v8083_v25 }
0x177a   : > { %8087 = vadd.xlane.f32.xlu0 %v8086_v14 }
0x177b   : > { %v8089_v26 = vsel %vm1866_vm6, %v8085_v11, 0.0 }
0x177e   : > { %8090 = vadd.xlane.f32.xlu0 %v8089_v26  ;;  %v8400_v26 = vsel %vm1762_vm1, %v8398_v56, 0 }
0x1794   : > { %8349 = vperm.xlu0 %10282, %v15703_v41  }
0x1798   : > { %10283 = vset.pattern.permute.xlu0 %v15702_v12 }
0x1807   : > { %v8088_v47 = vpop.xlane.xlu0 %8087 }
0x1808   : > { %v8092_v7 = vmul.f32 0.0625, %v8088_v47 }
0x180a   : > { %v8094_v9 = vadd.f32 1e-06, %v8092_v7 }
0x180b   : > { %v8091_v13 = vpop.xlane.xlu0 %8090 }
0x180c   : > { %10503 = vrsqrt.f32 %v8094_v9  ;;  %v8093_v52 = vmul.f32 0.0625, %v8091_v13  ;;  %v15709_v9 = vld [vmem:[#allocation87_spill] sm:$0xff]  ;;  %v15710_v13 = vld [vmem:[#allocation88_spill] sm:$0xff] }
0x180e   : > { %v8095_v36 = vadd.f32 1e-06, %v8093_v52  ;;  %v15711_v52 = vld [vmem:[#allocation89_spill] sm:$0xff] }
0x1810   : > { %10505 = vrsqrt.f32 %v8095_v36  ;;  %v10332_v36 = vld [vmem:[#allocation40] sm:$0xff]  }
0x1816   : > { %v10504_v21 = vpop.eup %10503 }
0x1817   : > { %v8098_v61 = vmul.f32 %v10504_v21, %v8082_v34  ;;  %v8340_v21 = vld [vmem:[#allocation38 + $0x10] sm:$0x1] }
0x1819   : > { %v8106_v27 = vmul.f32 %v8105_v22, %v8098_v61  ;;  %v8341_v61 = vunpack.c.l.bf16 %v8340_v21 }
0x181a   : > { %v10506_v31 = vpop.eup %10505 }
0x181b   : > { %v8099_v19 = vmul.f32 %v10506_v31, %v8083_v25  ;;  %v8112_v51 = vadd.f32 %v8111_v53, %v8106_v27  ;;  %v8193_v31 = vrot.slane %v8189_v37, %v15704_v4 }
0x181d   : > { %v8107_v43 = vmul.f32 %v8105_v22, %v8099_v19  ;;  %v8345_v22 = vpop.permute.xlu1 %8344  ;;  %v8375_v19 = vrot.slane %v8341_v61, %v15704_v4 }
0x181f   : > { %v8113_v39 = vadd.f32 %v8111_v53, %v8107_v43  ;;  %v8465_v43 = vld [vmem:[#allocation38 + $0x10] sm:$0x4] }
0x1821   : > { %v8116_v8 = vpack.c.bf16 %v8113_v39, %v8112_v51  ;;  %v8355_v51 = vpop.permute.xlu1 %8354 }
0x1823   : > { %9761 = vmatmul.mubr.msk.bf16.vlgmr.msra.gmra.mrb[72].mxu0 %vm1866_vm6, %v8116_v8 }
0x1824   : > { %9771 = vmatpush3.bf16.msra.mxu0 %v10328_v55  ;;  %9774 = vmatprep.mubr.msk.bf16.mxu0 %vm11355_vm0, %v15674_v3 }
0x1825   : > { %9772 = vmatprep.subr.bf16.mxu0 %v15674_v3  ;;  %v8360_v38 = vpop.permute.xlu1 %8359 }
0x1828   : > { %9773 = vmatpush3.bf16.msra.mxu0 %v10329_v58 }
0x1829   : > { %9800 = vmatprep.subr.bf16.mxu0 %v15674_v3 }
0x182b   : > { %9775 = vmatmul.mubr.msk.bf16.vlgmr.msra.gmra.mrb[76].mxu0 %vm1481_vm2, %v15706_v32  ;;  %v8350_v32 = vpop.permute.xlu0 %8349 }
0x182c   : > { %9778 = vmatprep.mubr.msk.bf16.mxu0 %vm11355_vm0, %v15674_v3  ;;  %9801 = vmatpush3.bf16.msra.mxu0 %v10332_v36  ;;  %v8377_v0 = vmul.f32 %v8375_v19, %v8350_v32 }
0x1833   : > { %9779 = vmatmul.mubr.msk.bf16.gmra.mrb[80].mxu0 %vm1481_vm2, %v15707_v45  ;;  %v8466_v45 = vunpack.c.l.bf16 %v8465_v43 }
0x1834   : > { %9782 = vmatprep.mubr.msk.bf16.mxu0 %vm11355_vm0, %v15674_v3 }
0x183b   : > { %9783 = vmatmul.mubr.msk.bf16.gmra.mrb[84].mxu0 %vm1481_vm2, %v15708_v20  ;;  %v8376_v20 = vmul.f32 %v8375_v19, %v8345_v22 }
0x183c   : > { %9802 = vmatprep.mubr.msk.bf16.mxu0 %vm11355_vm0, %v15674_v3 }
0x18f6   : > { %v8166_v44 = vpop.f32.mrb[72].mxu0 }
0x18f7   : > { %v8167_v35 = vadd.f32 %v8166_v44, %v8122_v30  ;;  %v9762_v2 = vpop.f32.mrb[73].mxu0  ;;  %v15712_v44 = vld [vmem:[#allocation111_spill] sm:$0xff] }
0x18f8   : > { %v8169_v60 = vpop.f32.mrb[74].mxu0 }
0x18f9   : > { %v8175_v16 = vmin.f32 %v8167_v35, 0.0  ;;  %v8170_v62 = vadd.f32 %v8169_v60, %v8122_v30  ;;  %v9763_v5 = vpop.f32.mrb[75].mxu0  ;;  %vm8173_vm2 = vcmp.gt.f32.partialorder %v8167_v35, 0.0 }
0x18fb   : > { %v8177_v42 = vmul.f32 1.442695, %v8175_v16  ;;  %v8176_v18 = vmin.f32 %v8170_v62, 0.0  ;;  %vm8174_vm10 = vcmp.gt.f32.partialorder %v8170_v62, 0.0 }
0x18fd   : > { %10507 = vpow2.f32 %v8177_v42  ;;  %v8179_v59 = vmul.f32 1.442695, %v8176_v18  ;;  %v8378_v18 = vmul.f32 %v8375_v19, %v8355_v51 }
0x18fe   : > { %v8317_v63 = vpop.f32.mrb[76].mxu0 }
0x18ff   : > { %10509 = vpow2.f32 %v8179_v59  ;;  %v9776_v49 = vpop.f32.mrb[77].mxu0  ;;  %v8382_v15 = vadd.f32 %v8376_v20, %v8317_v63  ;;  %v8610_v20 = vld [vmem:[#allocation41] sm:$0xf] }
0x1900   : > { %v8320_v28 = vpop.f32.mrb[78].mxu0  ;;  %v8365_v49 = vpop.permute.xlu1 %8364 }
0x1901   : > { %v9777_v48 = vpop.f32.mrb[79].mxu0  ;;  %v8383_v2 = vadd.f32 %v8377_v0, %v8320_v28  ;;  %v8622_v0 = vsel %vm8620_vm5, %v8610_v20, 0  ;;  %v15715_v20 = vld [vmem:[#allocation82_spill] sm:$0xff] }
0x1902   : > { %v8379_v48 = vmul.f32 %v8375_v19, %v8360_v38 }
0x1906   : > { %v15170_v57 = vpop.f32.mrb[80].mxu0 }
0x1907   : > { %v10508_v50 = vpop.eup %10507  ;;  %v9780_v12 = vpop.f32.mrb[81].mxu0  ;;  %v8384_v1 = vadd.f32 %v8378_v18, %v15170_v57 }
0x1908   : > { %v9374_v10 = vadd.f32 -1.0, %v10508_v50  ;;  %v15172_v23 = vpop.f32.mrb[82].mxu0  ;;  %v15713_v50 = vmov 0  }
0x1909   : > { %v10510_v33 = vpop.eup %10509  ;;  %v9781_v34 = vpop.f32.mrb[83].mxu0  ;;  %v8385_v63 = vadd.f32 %v8379_v48, %v15172_v23 }
0x190a   : > { %v9375_v25 = vadd.f32 -1.0, %v10510_v33  ;;  %v8183_v54 = vsel %vm8173_vm2, %v8167_v35, %v9374_v10  ;;  %v8470_v35 = vrot.slane %v8466_v45, %v15712_v44 }
0x190c   : > { %v8184_v14 = vsel %vm8174_vm10, %v8170_v62, %v9375_v25  ;;  %vm15721_vm10 = vmmov %vm15719_vm9 }
0x190d   : > { %v8187_v11 = vpack.c.bf16 %v8184_v14, %v8183_v54  ;;  %v8370_v54 = vpop.permute.xlu1 %8369  ;;  %v8380_v14 = vmul.f32 %v8375_v19, %v8365_v49 }
0x190e   : > { %v15175_v41 = vpop.f32.mrb[84].mxu0 }
0x190f   : > { %9767 = vmatmul.mubr.msk.bf16.vlgmr.msra.gmra.mrb[84].mxu1 %vm1866_vm6, %v8187_v11  ;;  %v9784_v17 = vpop.f32.mrb[85].mxu0  ;;  %v8386_v57 = vadd.f32 %v8380_v14, %v15175_v41  ;;  %v15714_v41 = vmov 1065369472  }
0x1910   : > { %9787 = vmatpush3.bf16.msra.mxu1 %v8400_v26  ;;  %v15178_v47 = vpop.f32.mrb[86].mxu0  ;;  %9788 = vmatprep.mubr.msk.bf16.mxu1 %vm11355_vm0, %v15674_v3  ;;  %v8381_v17 = vmul.f32 %v8375_v19, %v8370_v54 }
0x1911   : > { %v9785_v7 = vpop.f32.mrb[87].mxu0  ;;  %9814 = vmatprep.subr.bf16.mxu1 %v15674_v3 }
0x1912   : > { %v8387_v23 = vadd.f32 %v8381_v17, %v15178_v47 }
0x1917   : > { %9789 = vmatmul.mubr.msk.bf16.vlgmr.msra.gmra.mrb[88].mxu1 %vm1752_vm4, %v15709_v9 }
0x1918   : > { %9792 = vmatprep.mubr.msk.bf16.mxu1 %vm11355_vm0, %v15674_v3  ;;  %9815 = vmatpush3.bf16.msra.mxu1 %v8622_v0  ;;  %v15716_v0 = vld [vmem:[#allocation84_spill] sm:$0xff] }
0x1919   : > { %vm8697_vm7 = vcmp.eq.f32.partialorder %v15716_v0, 0.0 }
0x191f   : > { %9793 = vmatmul.mubr.msk.bf16.gmra.mrb[92].mxu1 %vm1752_vm4, %v15710_v13 }
0x1920   : > { %9796 = vmatprep.mubr.msk.bf16.mxu1 %vm11355_vm0, %v15674_v3 }
0x1927   : > { %9797 = vmatmul.mubr.msk.bf16.gmra.mrb[96].mxu1 %vm1752_vm4, %v15711_v52 }
0x1928   : > { %9816 = vmatprep.mubr.msk.bf16.mxu1 %vm11355_vm0, %v15674_v3 }
0x19e2   : > { %v8237_v27 = vpop.f32.mrb[84].mxu1 }
0x19e3   : > { %v8238_v46 = vadd.f32 %v8237_v27, %v8193_v31  ;;  %v9768_v53 = vpop.f32.mrb[85].mxu1 }
0x19e4   : > { %v8240_v39 = vpop.f32.mrb[86].mxu1 }
0x19e5   : > { %v8244_v55 = vmax.f32 %v8238_v46, 0.0  ;;  %v15197_v8 = vadd.f32 %v8240_v39, %v8193_v31  ;;  %v9769_v58 = vpop.f32.mrb[87].mxu1 }
0x19e7   : > { %8250 = vrot.lane.b32.xlu1 %v8244_v55, %s11382_s30 }
0x19ea   : > { %v8436_v30 = vpop.f32.mrb[88].mxu1 }
0x19eb   : > { %v8459_v60 = vadd.f32 %v8436_v30, %v8382_v15  ;;  %v9790_v16 = vpop.f32.mrb[89].mxu1  ;;  %v8578_v15 = vld [vmem:[#allocation40 + $0x8] sm:$0x1] }
0x19ec   : > { %v8439_v62 = vpop.f32.mrb[90].mxu1  ;;  %v8580_v38 = vpack.i.b16 %v8578_v15, %v8578_v15  ;;  %v15717_v15 = vld [vmem:[#allocation83_spill] sm:$0xff] }
0x19ed   : > { %v8460_v5 = vadd.f32 %v8439_v62, %v8383_v2  ;;  %v9791_v42 = vpop.f32.mrb[91].mxu1  ;;  %v8471_v59 = vadd.f32 %v8470_v35, %v8459_v60  ;;  %vm8694_vm14 = vcmp.eq.f32.partialorder %v15717_v15, 0.0 }
0x19ef   : > { %v8472_v40 = vadd.f32 %v8470_v35, %v8460_v5 }
0x19f1   : > { %v8477_v24 = vpack.c.bf16 %v8472_v40, %v8471_v59 }
0x19f2   : > { %v8444_v29 = vpop.f32.mrb[92].mxu1 }
0x19f3   : > { %v8483_v12 = vmin.bf16 %v15713_v50, %v8477_v24  ;;  %v8461_v10 = vadd.f32 %v8444_v29, %v8384_v1  ;;  %v9794_v28 = vpop.f32.mrb[93].mxu1  ;;  %vm8480_vm1 = vcmp.gt.bf16.partialorder %v8477_v24, 0 }
0x19f4   : > { %v8447_v33 = vpop.f32.mrb[94].mxu1 }
0x19f5   : > { %v8487_v34 = vmul.bf16 1069105081, %v8483_v12  ;;  %v8462_v56 = vadd.f32 %v8447_v33, %v8385_v63  ;;  %v9795_v25 = vpop.f32.mrb[95].mxu1  ;;  %v8473_v11 = vadd.f32 %v8470_v35, %v8461_v10 }
0x19f7   : > { %10511 = vpow.bf16 %v8487_v34  ;;  %v8474_v26 = vadd.f32 %v8470_v35, %v8462_v56 }
0x19f9   : > { %v8478_v7 = vpack.c.bf16 %v8474_v26, %v8473_v11 }
0x19fa   : > { %v8452_v9 = vpop.f32.mrb[96].mxu1 }
0x19fb   : > { %v8484_v13 = vmin.bf16 %v15713_v50, %v8478_v7  ;;  %v8463_v52 = vadd.f32 %v8452_v9, %v8386_v57  ;;  %v9798_v36 = vpop.f32.mrb[97].mxu1  ;;  %vm8481_vm11 = vcmp.gt.bf16.partialorder %v8478_v7, 0 }
0x19fc   : > { %v8455_v6 = vpop.f32.mrb[98].mxu1 }
0x19fd   : > { %v8490_v37 = vmul.bf16 1069105081, %v8484_v13  ;;  %v8464_v21 = vadd.f32 %v8455_v6, %v8387_v23  ;;  %v9799_v22 = vpop.f32.mrb[99].mxu1  ;;  %v8475_v61 = vadd.f32 %v8470_v35, %v8463_v52  ;;  %v8681_v23 = vld [vmem:[#allocation41 + $0x4] sm:$0x1] }
0x19fe   : > { %v8682_v13 = vunpack.c.l.bf16 %v8681_v23 }
0x19ff   : > { %10513 = vpow.bf16 %v8490_v37  ;;  %v8476_v31 = vadd.f32 %v8470_v35, %v8464_v21  ;;  %v8585_v35 = vrot.slane %v8580_v38, %v15704_v4 }
0x1a00   : > { %v8686_v52 = vrot.slane %v8682_v13, %v15704_v4 }
0x1a01   : > { %v8479_v27 = vpack.c.bf16 %v8476_v31, %v8475_v61 }
0x1a02   : > { %v10512_v46 = vpop.eup %10511 }
0x1a03   : > { %v8485_v19 = vmin.bf16 %v15713_v50, %v8479_v27  ;;  %v8495_v53 = vsub.bf16 %v10512_v46, %v15714_v41  ;;  %vm8482_vm12 = vcmp.gt.bf16.partialorder %v8479_v27, 0 }
0x1a05   : > { %v8493_v43 = vmul.bf16 1069105081, %v8485_v19  ;;  %v8498_v47 = vsel %vm8480_vm1, %v8477_v24, %v8495_v53  ;;  %vm15722_vm1 = vmmov %vm15719_vm9 }
0x1a06   : > { %9803 = vmatmul.mubr.msk.bf16.vlgmr.msra.gmra.mrb[88].mxu0 %vm1866_vm6, %v8498_v47  ;;  %vm15725_vm5 = vmmov %vm15722_vm1 }
0x1a07   : > { %10515 = vpow.bf16 %v8493_v43  ;;  %9806 = vmatprep.mubr.msk.bf16.mxu0 %vm11355_vm0, %v15674_v3 }
0x1a0a   : > { %v10514_v51 = vpop.eup %10513 }
0x1a0b   : > { %v8496_v39 = vsub.bf16 %v10514_v51, %v15714_v41 }
0x1a0d   : > { %v8499_v55 = vsel %vm8481_vm11, %v8478_v7, %v8496_v39 }
0x1a0e   : > { %9807 = vmatmul.mubr.msk.bf16.gmra.mrb[92].mxu0 %vm1866_vm6, %v8499_v55  ;;  %v8245_v55 = vmax.f32 %v15197_v8, 0.0 }
0x1a0f   : > { %9810 = vmatprep.mubr.msk.bf16.mxu0 %vm11355_vm0, %v15674_v3 }
0x1a12   : > { %v10516_v58 = vpop.eup %10515 }
0x1a13   : > { %v8497_v32 = vsub.bf16 %v10516_v58, %v15714_v41 }
0x1a15   : > { %v8500_v45 = vsel %vm8482_vm12, %v8479_v27, %v8497_v32  ;;  %vm15724_vm12 = vmmov %vm15722_vm1 }
0x1a16   : > { %9811 = vmatmul.mubr.msk.bf16.gmra.mrb[96].mxu0 %vm1866_vm6, %v8500_v45 }
0x1a59   : > { %v15241_v58 = vpop.permute.xlu1 %8250 }
0x1ad9   : > { %v8552_v30 = vpop.f32.mrb[88].mxu0 }
0x1ada   : > { %v9804_v44 = vpop.f32.mrb[89].mxu0 }
0x1adb   : > { %v8555_v2 = vpop.f32.mrb[90].mxu0 }
0x1adc   : > { %v8575_v60 = vpack.c.bf16 %v8555_v2, %v8552_v30  ;;  %v9805_v16 = vpop.f32.mrb[91].mxu0  ;;  %v15718_v30 = vld [vmem:[#allocation86_spill] sm:$0xff] }
0x1ade   : > { %v8586_v62 = vadd.bf16 %v8585_v35, %v8575_v60  ;;  %v15720_v60 = vld [vmem:[#allocation81_spill] sm:$0xff] }
0x1adf   : > { %vm8695_vm2 = vcmp.eq.f32.partialorder %v15720_v60, 0.0 }
0x1ae0   : > { %v8592_v5 = vmin.bf16 %v15713_v50, %v8586_v62  ;;  %vm8589_vm6 = vcmp.gt.bf16.partialorder %v8586_v62, 0 }
0x1ae1   : > { %v8560_v42 = vpop.f32.mrb[92].mxu0 }
0x1ae2   : > { %v8596_v18 = vmul.bf16 1069105081, %v8592_v5  ;;  %v9808_v59 = vpop.f32.mrb[93].mxu0 }
0x1ae3   : > { %v8563_v40 = vpop.f32.mrb[94].mxu0  ;;  %v15723_v59 = vld [vmem:[#allocation85_spill] sm:$0xff] }
0x1ae4   : > { %10517 = vpow.bf16 %v8596_v18  ;;  %v8576_v49 = vpack.c.bf16 %v8563_v40, %v8560_v42  ;;  %v9809_v48 = vpop.f32.mrb[95].mxu0  ;;  %vm8696_vm11 = vcmp.eq.f32.partialorder %v15723_v59, 0.0 }
0x1ae6   : > { %v8587_v1 = vadd.bf16 %v8585_v35, %v8576_v49 }
0x1ae8   : > { %v8593_v24 = vmin.bf16 %v15713_v50, %v8587_v1  ;;  %vm8590_vm15 = vcmp.gt.bf16.partialorder %v8587_v1, 0 }
0x1ae9   : > { %v8568_v29 = vpop.f32.mrb[96].mxu0 }
0x1aea   : > { %v8599_v63 = vmul.bf16 1069105081, %v8593_v24  ;;  %v9812_v12 = vpop.f32.mrb[97].mxu0 }
0x1aeb   : > { %v8571_v10 = vpop.f32.mrb[98].mxu0 }
0x1aec   : > { %10519 = vpow.bf16 %v8599_v63  ;;  %v8577_v28 = vpack.c.bf16 %v8571_v10, %v8568_v29  ;;  %v9813_v33 = vpop.f32.mrb[99].mxu0 }
0x1aee   : > { %v8588_v34 = vadd.bf16 %v8585_v35, %v8577_v28 }
0x1aef   : > { %v10518_v56 = vpop.eup %10517 }
0x1af0   : > { %v8604_v25 = vsub.bf16 %v10518_v56, %v15714_v41  ;;  %v8594_v54 = vmin.bf16 %v15713_v50, %v8588_v34  ;;  %vm8591_vm13 = vcmp.gt.bf16.partialorder %v8588_v34, 0 }
0x1af2   : > { %v8607_v14 = vsel %vm8589_vm6, %v8586_v62, %v8604_v25  ;;  %v8602_v11 = vmul.bf16 1069105081, %v8594_v54  ;;  %vm15726_vm6 = vmmov %vm15722_vm1 }
0x1af3   : > { %9817 = vmatmul.mubr.msk.bf16.vlgmr.msra.gmra.mrb[100].mxu1 %vm6324_vm8, %v8607_v14 }
0x1af4   : > { %10521 = vpow.bf16 %v8602_v11  ;;  %9820 = vmatprep.mubr.msk.bf16.mxu1 %vm11355_vm0, %v15674_v3 }
0x1af7   : > { %v10520_v26 = vpop.eup %10519 }
0x1af8   : > { %v8605_v17 = vsub.bf16 %v10520_v26, %v15714_v41 }
0x1afa   : > { %v8608_v57 = vsel %vm8590_vm15, %v8587_v1, %v8605_v17  ;;  %vm15727_vm15 = vmmov %vm15722_vm1 }
0x1afb   : > { %9821 = vmatmul.mubr.msk.bf16.gmra.mrb[104].mxu1 %vm6324_vm8, %v8608_v57 }
0x1afc   : > { %9824 = vmatprep.mubr.msk.bf16.mxu1 %vm11355_vm0, %v15674_v3  ;;  %vm8693_vm0 = vcmp.eq.f32.partialorder %v15715_v20, 0.0  ;;  %v15734_v20 = vld [vmem:[#allocation93_spill] sm:$0xff] }
0x1aff   : > { %v10522_v50 = vpop.eup %10521 }
0x1b00   : > { %v8606_v7 = vsub.bf16 %v10522_v50, %v15714_v41 }
0x1b02   : > { %v8609_v9 = vsel %vm8591_vm13, %v8588_v34, %v8606_v7  ;;  %vm15728_vm13 = vmmov %vm15722_vm1 }
0x1b03   : > { %9825 = vmatmul.mubr.msk.bf16.gmra.mrb[108].mxu1 %vm6324_vm8, %v8609_v9  ;;  %vm8698_vm8 = vcmp.eq.f32.partialorder %v15718_v30, 0.0  ;;  %v15735_v30 = vld [vmem:[#allocation96_spill] sm:$0xff] }
0x1bc6   : > { %v8658_v36 = vpop.f32.mrb[100].mxu1 }
0x1bc7   : > { %v8687_v6 = vadd.f32 %v8686_v52, %v8658_v36  ;;  %v9818_v37 = vpop.f32.mrb[101].mxu1 }
0x1bc8   : > { %v8661_v21 = vpop.f32.mrb[102].mxu1 }
0x1bc9   : > { %8705 = vrot.lane.b32.xlu1 %v8687_v6, %s11382_s30  ;;  %v9819_v22 = vpop.f32.mrb[103].mxu1  ;;  %v8688_v61 = vadd.f32 %v8686_v52, %v8661_v21 }
0x1bcd   : > { %8707 = vrot.lane.b32.xlu1 %v8688_v61, %s11382_s30 }
0x1bce   : > { %v8666_v3 = vpop.f32.mrb[104].mxu1 }
0x1bcf   : > { %v9822_v31 = vpop.f32.mrb[105].mxu1  ;;  %v8689_v51 = vadd.f32 %v8686_v52, %v8666_v3 }
0x1bd0   : > { %v8669_v27 = vpop.f32.mrb[106].mxu1 }
0x1bd1   : > { %v9823_v46 = vpop.f32.mrb[107].mxu1  ;;  %v8690_v39 = vadd.f32 %v8686_v52, %v8669_v27 }
0x1bd6   : > { %v8674_v19 = vpop.f32.mrb[108].mxu1 }
0x1bd7   : > { %v8691_v41 = vadd.f32 %v8686_v52, %v8674_v19  ;;  %v9826_v53 = vpop.f32.mrb[109].mxu1 }
0x1bd8   : > { %v8677_v43 = vpop.f32.mrb[110].mxu1 }
0x1bd9   : > { %v8692_v47 = vadd.f32 %v8686_v52, %v8677_v43  ;;  %8713 = vrot.lane.b32.xlu1 %v8691_v41, %s11382_s30  ;;  %v9827_v4 = vpop.f32.mrb[111].mxu1 }
0x1bdb   : > { %8715 = vrot.lane.b32.xlu0 %v8692_v47, %s11382_s30 }
0x1bdd   : > { %8709 = vrot.lane.b32.xlu1 %v8689_v51, %s11382_s30 }
0x1bdf   : > { %8711 = vrot.lane.b32.xlu0 %v8690_v39, %s11382_s30 }
0x1be1   : > { %8252 = vrot.lane.b32.xlu1 %v8245_v55, %s11382_s30 }
0x1c3b   : > { %v8706_v32 = vpop.permute.xlu1 %8705 }
0x1c3c   : > { %v8723_v44 = vsel %vm8693_vm0, -1e+09, %v8706_v32  ;;  %vm15729_vm0 = vmmov %vm15722_vm1 }
0x1c3d   : > { %v8729_v5 = vsel %vm15721_vm10, %v8723_v44, -inf }
0x1c3f   : > { %v8708_v45 = vpop.permute.xlu1 %8707 }
0x1c40   : > { %v8724_v16 = vsel %vm8694_vm14, -1e+09, %v8708_v45  ;;  %vm15731_vm14 = vmmov %vm15729_vm0  ;;  %v15733_v45 = vld [vmem:[#allocation92_spill] sm:$0xff] }
0x1c41   : > { %v8734_v48 = vsel %vm15724_vm12, %v8724_v16, -inf }
0x1c4b   : > { %v8714_v38 = vpop.permute.xlu1 %8713 }
0x1c4c   : > { %v8727_v35 = vsel %vm8697_vm7, -1e+09, %v8714_v38  ;;  %vm15730_vm7 = vmmov %vm15729_vm0 }
0x1c4d   : > { %v8731_v8 = vsel %vm15719_vm9, %v8727_v35, -inf  ;;  %v8716_v2 = vpop.permute.xlu0 %8715  ;;  %vm8246_vm9 = vcmp.lt.f32.partialorder %v15733_v45, 1.0 }
0x1c4e   : > { %v8728_v62 = vsel %vm8698_vm8, -1e+09, %v8716_v2  ;;  %v8732_v40 = vmax.f32 %v8729_v5, %v8731_v8  ;;  %vm15732_vm8 = vmmov %vm15729_vm0  ;;  %v8256_v15 = vsel %vm8246_vm9, 0.0, %v15241_v58 }
0x1c4f   : > { %v8736_v42 = vsel %vm15722_vm1, %v8728_v62, -inf  ;;  %v8710_v18 = vpop.permute.xlu1 %8709 }
0x1c50   : > { %v8725_v49 = vsel %vm8695_vm2, -1e+09, %v8710_v18  ;;  %v8737_v29 = vmax.f32 %v8734_v48, %v8736_v42  ;;  %vm8247_vm2 = vcmp.lt.f32.partialorder %v15734_v20, 1.0  ;;  %v15737_v18 = vld [vmem:[#allocation95_spill] sm:$0xff] }
0x1c51   : > { %v8730_v1 = vsel %vm15725_vm5, %v8725_v49, -inf  ;;  %v8712_v24 = vpop.permute.xlu0 %8711  ;;  %v8776_v59 = vunpack.c.l.bf16 %v15737_v18 }
0x1c52   : > { %v8733_v63 = vmax.f32 %v8732_v40, %v8730_v1  ;;  %v8726_v12 = vsel %vm8696_vm11, -1e+09, %v8712_v24  ;;  %v15738_v40 = vld [vmem:[#allocation97_spill] sm:$0xff] }
0x1c53   : > { %v8735_v10 = vsel %vm15726_vm6, %v8726_v12, -inf  ;;  %v8253_v0 = vpop.permute.xlu1 %8252  ;;  %v8778_v58 = vunpack.c.l.bf16 %v15738_v40 }
0x1c54   : > { %v8739_v28 = vsub.f32 %v8723_v44, %v8733_v63  ;;  %v8741_v33 = vsub.f32 %v8725_v49, %v8733_v63  ;;  %v8743_v34 = vsub.f32 %v8727_v35, %v8733_v63  ;;  %v8738_v56 = vmax.f32 %v8737_v29, %v8735_v10  ;;  %v15736_v35 = vld [vmem:[#allocation94_spill] sm:$0xff] }
0x1c55   : > { %v8257_v38 = vsel %vm8247_vm2, 0.0, %v8253_v0  ;;  %v8777_v44 = vunpack.c.l.bf16 %v15735_v30  ;;  %v8775_v8 = vunpack.c.l.bf16 %v15736_v35  ;;  %v15739_v10 = vld [vmem:[#allocation98_spill] sm:$0xff] }
0x1c56   : > { %v8745_v25 = vmul.f32 1.442695, %v8739_v28  ;;  %v8749_v54 = vmul.f32 1.442695, %v8741_v33  ;;  %v8753_v14 = vmul.f32 1.442695, %v8743_v34  ;;  %v8740_v11 = vsub.f32 %v8724_v16, %v8738_v56 }
0x1c57   : > { %v8742_v26 = vsub.f32 %v8726_v12, %v8738_v56  ;;  %v8744_v17 = vsub.f32 %v8728_v62, %v8738_v56  ;;  %v8779_v28 = vunpack.c.l.bf16 %v15739_v10  ;;  %v15740_v33 = vld [vmem:[#allocation99_spill] sm:$0xff] }
0x1c58   : > { %10523 = vpow2.f32 %v8745_v25  ;;  %v8747_v57 = vmul.f32 1.442695, %v8740_v11  ;;  %v8780_v34 = vunpack.c.l.bf16 %v15740_v33 }
0x1c59   : > { %10525 = vpow2.f32 %v8749_v54  ;;  %v8751_v50 = vmul.f32 1.442695, %v8742_v26  ;;  %v8755_v7 = vmul.f32 1.442695, %v8744_v17 }
0x1c5a   : > { %10527 = vpow2.f32 %v8753_v14 }
0x1c5b   : > { %10529 = vpow2.f32 %v8747_v57 }
0x1c5c   : > { %10531 = vpow2.f32 %v8751_v50 }
0x1c5d   : > { %10533 = vpow2.f32 %v8755_v7 }
0x1c62   : > { %v10524_v9 = vpop.eup %10523 }
0x1c63   : > { %v10526_v23 = vpop.eup %10525  ;;  %v8757_v13 = vsel %vm15727_vm15, %v10524_v9, 0.0 }
0x1c64   : > { %v10528_v52 = vpop.eup %10527  ;;  %v8758_v36 = vsel %vm15728_vm13, %v10526_v23, 0.0 }
0x1c65   : > { %v10530_v6 = vpop.eup %10529  ;;  %v8759_v37 = vadd.f32 %v8758_v36, %v8757_v13  ;;  %v8760_v22 = vsel %vm15729_vm0, %v10528_v52, 0.0 }
0x1c66   : > { %v10532_v21 = vpop.eup %10531  ;;  %v8762_v61 = vsel %vm15730_vm7, %v10530_v6, 0.0 }
0x1c67   : > { %v10534_v3 = vpop.eup %10533  ;;  %v8761_v31 = vadd.f32 %v8760_v22, %v8759_v37  ;;  %v8763_v27 = vsel %vm15731_vm14, %v10532_v21, 0.0 }
0x1c68   : > { %v8764_v46 = vadd.f32 %v8763_v27, %v8762_v61  ;;  %v8765_v19 = vsel %vm15732_vm8, %v10534_v3, 0.0 }
0x1c69   : > { %10535 = vrcp.f32 %v8761_v31 }
0x1c6a   : > { %v8766_v41 = vadd.f32 %v8765_v19, %v8764_v46 }
0x1c6c   : > { %10537 = vrcp.f32 %v8766_v41 }
0x1c73   : > { %v10536_v53 = vpop.eup %10535 }
0x1c74   : > { %v8771_v43 = vmul.f32 %v10536_v53, %v10526_v23  ;;  %v8769_v47 = vmul.f32 %v10536_v53, %v10524_v9  ;;  %v8773_v32 = vmul.f32 %v10536_v53, %v10528_v52 }
0x1c76   : > { %v10538_v4 = vpop.eup %10537  ;;  %8793 = vperm.xlu1 %10284, %v8771_v43   ;;  %8783 = vperm.xlu0 %10283, %v8769_v47  }
0x1c77   : > { %v8772_v51 = vmul.f32 %v10538_v4, %v10532_v21  ;;  %v8770_v39 = vmul.f32 %v10538_v4, %v10530_v6  ;;  %v8774_v55 = vmul.f32 %v10538_v4, %v10534_v3 }
0x1c7a   : > { %8798 = vperm.xlu0 %10283, %v8772_v51   ;;  %8788 = vperm.xlu1 %10284, %v8770_v39  }
0x1c7e   : > { %8808 = vperm.xlu0 %10283, %v8774_v55   ;;  %8803 = vperm.xlu1 %10284, %v8773_v32  }
0x1c82   : > { %8831 = vrot.lane.b32.xlu0 %v8257_v38, %s11383_s10  ;;  %8829 = vrot.lane.b32.xlu1 %v8256_v15, %s11383_s10 }
0x1cf5   : > { %v8794_v2 = vpop.permute.xlu1 %8793  ;;  %v8784_v60 = vpop.permute.xlu0 %8783 }
0x1cf6   : > { %v8813_v16 = vmul.f32 %v8794_v2, %v8777_v44  ;;  %v8811_v62 = vmul.f32 %v8784_v60, %v8775_v8 }
0x1cf8   : > { %v8818_v5 = vsel %vm1380_vm3, %v8813_v16, 0.0  ;;  %v8817_v42 = vsel %vm1380_vm3, %v8811_v62, 0.0 }
0x1cf9   : > { %v8819_v49 = vadd.f32 %v8818_v5, %v8817_v42  ;;  %v8789_v48 = vpop.permute.xlu1 %8788  ;;  %v8799_v1 = vpop.permute.xlu0 %8798 }
0x1cfa   : > { %v8812_v24 = vmul.f32 %v8789_v48, %v8776_v59  ;;  %v8814_v29 = vmul.f32 %v8799_v1, %v8778_v58 }
0x1cfc   : > { %v8822_v63 = vsel %vm1380_vm3, %v8812_v24, 0.0  ;;  %v8823_v12 = vsel %vm1380_vm3, %v8814_v29, 0.0 }
0x1cfd   : > { %v8824_v56 = vadd.f32 %v8823_v12, %v8822_v63  ;;  %v8804_v25 = vpop.permute.xlu1 %8803  ;;  %v8809_v54 = vpop.permute.xlu0 %8808 }
0x1cfe   : > { %v8815_v14 = vmul.f32 %v8804_v25, %v8779_v28  ;;  %v8816_v11 = vmul.f32 %v8809_v54, %v8780_v34 }
0x1d00   : > { %v8820_v26 = vsel %vm1380_vm3, %v8815_v14, 0.0  ;;  %v8825_v17 = vsel %vm1380_vm3, %v8816_v11, 0.0 }
0x1d01   : > { %v8821_v57 = vadd.f32 %v8820_v26, %v8819_v49  ;;  %v8826_v50 = vadd.f32 %v8825_v17, %v8824_v56  ;;  %v8830_v7 = vpop.permute.xlu1 %8829  ;;  %v8832_v9 = vpop.permute.xlu0 %8831 }
0x1d03   : > { %v8835_v23 = vsel %vm1380_vm3, %v8821_v57, %v8830_v7  ;;  %v8836_v13 = vsel %vm1380_vm3, %v8826_v50, %v8832_v9 }
0x1d04   : > { %8837 = vst.msk [vmem:[%s1314_s7] sm:$0xff] %vm1752_vm4, %v8835_v23  ;;  %8838 = vst.msk [vmem:[%s1314_s7 + $0x8] sm:$0xff] %vm1752_vm4, %v8836_v13 }
0x1d05   : > { %11196 = shalt.err (!%p11193_p10)
}
0x1d06   : > { %s11197_s1 = scalar_lea.hbm %s15284_s28, 256  ;;  %s11201_s7 = scalar_lea.hbm %s15742_s5, 512 }
0x1d07   : > { %p11198_p1 = scmp.ne.s32.totalorder %s15284_s28, %s11197_s1  ;;  %p11202_p11 = scmp.lt.u32.totalorder %s15284_s28, %s15742_s5 }
0x1d08   : > { %p11203_p12 = scmp.lt.u32.totalorder %s11201_s7, %s11197_s1  ;;  %p11205_p2 = scmp.lt.u32.totalorder %s11197_s1, %s15284_s28 }
0x1d09   : > { %p11199_p3 = pnand %p11198_p1, %p15743_p13 }
0x1d0a   : > { %p11204_p6 = por %p11203_p12, %p11202_p11 }
0x1d0b   : > { %p11200_p5 = pneg %p11199_p3 }
0x1d0c   : > { %p11206_p0 = por %p11205_p2, %p11204_p6 }
0x1d0e   : > { %p11207_p7 = pnand %p11206_p0, %p11200_p5 }
0x1d10   : > { %11210 = shalt.err (!%p11207_p7)
}
0x1d11   : > { %s11385_s2 = smov 128  }
0x1d12   : > { %9953 = dma.vmem_to_hbm [thread:$0]  (%p15743_p13), %s15279_s9, 256, %s15284_s28, %s8840_s27, %s11385_s2, %s11385_s2, %s11380_s13  }
0x1d13 PF: > { %s15744_s12 = sld [smem:[#allocation69_spill]]  ;;  %s15745_s6 = sld [smem:[#allocation79_spill]] }
0x1d19   : > { %s8868_s8 = sand.u32 1, %s15744_s12   ;;  %p15747_p8 = scmp.ne.s32.totalorder %s15745_s6, 0 }
0x1d1a   : > { %s8869_s1 = scalar_lea.sflag [#allocation4], %s8868_s8 }
0x1d1b   : > { %p10023_p9 = pnand %p9225_p4, %p15747_p8 }
0x1d1d   : > { %11288 = dma.done.wait (!%p10023_p9), %s8869_s1, 256  }
0x1d1e   : > { %11290 = vsyncadd (!%p10023_p9), %s8869_s1, 4294967040  ;;  %s15748_s28 = sld [smem:[#allocation74_spill]]  ;;  %s15749_s27 = sld [smem:[#allocation70_spill]] }
0x1d1f   : > { %s15750_s3 = sld [smem:[#allocation71_spill]]  ;;  %s15751_s7 = sld [smem:[#allocation75_spill]] }
0x1d24   : > { %p56_p10 = scmp.ge.s32.totalorder %s15748_s28, 4  }
0x1d26   :  { %58 = sbr.rel (!%p56_p10) target bundleno = 38 (0x26), region = 309 }
0x1d2d   :  { %8874 = vsyncpa [#allocation3], 1 }
0x1d2e   :  { %8876 = vsyncpa [#allocation3 + $0x1], 1 }
0x1d2f   :  { %8877 = vsyncpa [#allocation6], 1 }
0x1d30   :  { %8879 = vsyncpa [#allocation6 + $0x1], 1 }
0x1d31   :  { %8880 = vsyncpa [#allocation9], 1 }
0x1d32   :  { %8882 = vsyncpa [#allocation9 + $0x1], 1 }
0x1d33   :  { %8883 = vsyncpa [#allocation12], 1 }
0x1d34   :  { %8884 = vsyncpa [#allocation15], 1 }
0x1d35   :  { %8885 = vsyncpa [#allocation18], 1 }
0x1d36   :  { %8886 = vsyncpa [#allocation21], 1 }
0x1d37   :  { %8887 = vsyncpa [#allocation24], 1 }
0x1d38   :  { %8888 = vsyncpa [#allocation27], 1 }
0x1d39   :  { %8889 = vsyncpa [#allocation30], 1 }
0x1d3a   :  { %8890 = vsyncpa [#allocation33], 1 }
0x1d3b   :  { %8891 = vsyncpa [#allocation36], 1 }
0x1d3c   :  { %8892 = vsyncpa [#allocation39], 1 }
0x1d3d   :  { %8893 = vsyncpa [#allocation42], 1 }
0x1d3e   :  { %8894 = vsyncpa [#allocation4], 1 }
0x1d3f   :  { %8896 = vsyncpa [#allocation4 + $0x1], 1 }

</bundles_post_ra>
